<compile_context>
chip_gen: v6e
topology: v6e:2x2x1
jax: 0.10.0
libtpu: 0.0.40
codegen_flags: <defaults>
</compile_context>

<pallas_src>
import functools
import math
from collections import namedtuple

import numpy as np

import jax
import jax.numpy as jnp
from jax.experimental import pallas as pl
from jax.experimental.pallas import tpu as pltpu

F32 = jnp.float32
BF16 = jnp.bfloat16

_VMEM_STREAM_BUDGET = 8 * 1024 * 1024     # per-step double-buffered window target
_VMEM_LIMIT = 32 * 1024 * 1024            # explicit scoped-VMEM limit (OK v5e..v7x)


def _round_up(x, m):
    return ((x + m - 1) // m) * m


# ----------------------------------------------------------------------------
# Pallas kernels:  out = PReLU(A @ W + bias) [+ addend]   (bf16 in/out, f32 acc)
# ----------------------------------------------------------------------------

def _mm_kernel(a_ref, w_ref, e_ref, o_ref):
    z = jnp.dot(a_ref[...], w_ref[...], preferred_element_type=jnp.float32)
    z = z + e_ref[0:1, :]                              # folded bias
    z = jnp.where(z >= 0.0, z, z * e_ref[1:2, :])      # PReLU (alpha=0 -> ReLU, 1 -> id)
    o_ref[...] = z.astype(o_ref.dtype)


def _mm_kernel_add(a_ref, w_ref, e_ref, r_ref, o_ref):
    z = jnp.dot(a_ref[...], w_ref[...], preferred_element_type=jnp.float32)
    z = z + e_ref[0:1, :]
    z = jnp.where(z >= 0.0, z, z * e_ref[1:2, :])
    o_ref[...] = (z + r_ref[...].astype(jnp.float32)).astype(o_ref.dtype)


def _mm_kernel_t(a_ref, w_ref, e_ref, o_ref):
    # Transposed product: out (N, TM) so the store lane dim is the big row
    # count -> lane-dense stores when N << 128 (stem convs with N=10/20).
    z = jnp.dot(w_ref[...], a_ref[...], preferred_element_type=jnp.float32)
    z = z + e_ref[:, 0:1]
    z = jnp.where(z >= 0.0, z, z * e_ref[:, 1:2])
    o_ref[...] = z.astype(o_ref.dtype)


def _row_tile(M, K, N, has_add):
    """8-aligned row tile giving >=2 grid steps within the VMEM stream budget."""
    parts = 2
    while True:
        tm = _round_up(pl.cdiv(M, parts), 8)
        per_step = 2 * tm * (K + N * (2 if has_add else 1)) * 2   # bf16, double-buffered
        if per_step <= _VMEM_STREAM_BUDGET or tm <= 8:
            return tm
        parts += 1


def _row_tile_t(M, K, N):
    """128-aligned (lane) row tile for the transposed kernel."""
    if M <= 256:
        return M
    parts = 2
    while True:
        tm = _round_up(pl.cdiv(M, parts), 128)
        per_step = 2 * tm * (K + N) * 2
        if per_step <= _VMEM_STREAM_BUDGET or tm <= 128:
            return tm
        parts += 1


@functools.lru_cache(maxsize=None)
def _mm_call(M, K, N, TM, has_add):
    in_specs = [
        pl.BlockSpec((TM, K), lambda i: (i, 0)),   # A (patch rows)
        pl.BlockSpec((K, N), lambda i: (0, 0)),    # folded weight (resident)
        pl.BlockSpec((2, N), lambda i: (0, 0)),    # [bias ; prelu alpha]
    ]
    kern = _mm_kernel
    allow = [True, False, False]
    if has_add:
        in_specs.append(pl.BlockSpec((TM, N), lambda i: (i, 0)))   # residual / node sum
        kern = _mm_kernel_add
        allow.append(True)
    return pl.pallas_call(
        kern,
        out_shape=jax.ShapeDtypeStruct((M, N), BF16),
        grid=(pl.cdiv(M, TM),),
        in_specs=in_specs,
        out_specs=pl.BlockSpec((TM, N), lambda i: (i, 0)),
        compiler_params=pltpu.CompilerParams(
            dimension_semantics=("parallel",),
            allow_input_fusion=allow,
            vmem_limit_bytes=_VMEM_LIMIT),
    )


@functools.lru_cache(maxsize=None)
def _mm_call_t(M, K, N, TM):
    return pl.pallas_call(
        _mm_kernel_t,
        out_shape=jax.ShapeDtypeStruct((N, M), BF16),
        grid=(pl.cdiv(M, TM),),
        in_specs=[pl.BlockSpec((K, TM), lambda i: (0, i)),   # A^T
                  pl.BlockSpec((N, K), lambda i: (0, 0)),    # W^T
                  pl.BlockSpec((N, 2), lambda i: (0, 0))],   # [bias | alpha]
        out_specs=pl.BlockSpec((N, TM), lambda i: (0, i)),
        compiler_params=pltpu.CompilerParams(
            dimension_semantics=("parallel",),
            allow_input_fusion=[True, False, False],
            vmem_limit_bytes=_VMEM_LIMIT),
    )


def fused_matmul(A, Wm, bias, alpha, addend=None):
    M, K = A.shape
    N = Wm.shape[1]
    TM = _row_tile(M, K, N, addend is not None)
    eb = jnp.stack([bias, alpha]).astype(F32)                      # (2, N)
    args = [A.astype(BF16), Wm.astype(BF16), eb]
    if addend is not None:
        args.append(addend.reshape(M, N).astype(BF16))
    return _mm_call(M, K, N, TM, addend is not None)(*args)


def fused_matmul_t(A, Wm, bias, alpha):
    M, K = A.shape
    N = Wm.shape[1]
    TM = _row_tile_t(M, K, N)
    eb = jnp.stack([bias, alpha], axis=1).astype(F32)              # (N, 2)
    out_t = _mm_call_t(M, K, N, TM)(
        jnp.transpose(A.astype(BF16)), jnp.transpose(Wm.astype(BF16)), eb)
    return jnp.transpose(out_t)                                    # (M, N) bf16


# ----------------------------------------------------------------------------
# Conv plumbing (XLA glue that fuses under the single outer jit / into the call)
# ----------------------------------------------------------------------------

def _im2col(x, KH, KW, stride, padding, dilation=1):
    """NHWC -> (N*Ho*Wo, KH*KW*C) patches, column order (kh, kw, cin)."""
    N, H, W, C = x.shape
    Ho = (H + 2 * padding - dilation * (KH - 1) - 1) // stride + 1
    Wo = (W + 2 * padding - dilation * (KW - 1) - 1) // stride + 1
    if padding:
        x = jnp.pad(x, ((0, 0), (padding, padding), (padding, padding), (0, 0)))
    cols = []
    for kh in range(KH):
        for kw in range(KW):
            h0 = kh * dilation
            w0 = kw * dilation
            cols.append(x[:, h0:h0 + stride * (Ho - 1) + 1:stride,
                          w0:w0 + stride * (Wo - 1) + 1:stride, :])
    patches = jnp.concatenate(cols, axis=-1) if len(cols) > 1 else cols[0]
    return patches.reshape(N * Ho * Wo, KH * KW * C), Ho, Wo


def _shuffle_perm(C, groups=4):
    """channel_shuffle(y, groups)[..., new] == y[..., perm[new]]."""
    cpg = C // groups
    perm = np.empty((C,), np.int32)
    for k in range(cpg):
        for g in range(groups):
            perm[k * groups + g] = g * cpg + k
    return perm


def _fold_conv(w, Cin, groups, pre_scale=None, pre_shift=None,
               post_scale=None, post_bias=None, alpha=None, out_perm=None):
    """OIHW weight -> (KH*KW*Cin, Cout) block-diag-over-groups matrix with
    pre/post per-channel affines and channel_shuffle folded in.

    Returns (Wm, bias, alpha).  All trace-time constants (params are baked).
    TODO(synk): the pre_shift->bias fold is exact only away from zero-padded
    borders; exact here since eval-mode BN has shift == 0."""
    Cout, Cin_g, KH, KW = w.shape
    Cout_g = Cout // groups
    Wm = jnp.zeros((KH, KW, Cin, Cout), F32)
    for g in range(groups):
        wg = jnp.transpose(w[g * Cout_g:(g + 1) * Cout_g].astype(F32), (2, 3, 1, 0))
        Wm = Wm.at[:, :, g * Cin_g:(g + 1) * Cin_g,
                   g * Cout_g:(g + 1) * Cout_g].set(wg)
    Wm = Wm.reshape(KH * KW * Cin, Cout)
    bias = jnp.zeros((Cout,), F32)
    if pre_shift is not None:
        bias = bias + jnp.tile(pre_shift.astype(F32), KH * KW) @ Wm
    if pre_scale is not None:
        Wm = Wm * jnp.tile(pre_scale.astype(F32), KH * KW)[:, None]
    if post_scale is not None:
        Wm = Wm * post_scale.astype(F32)[None, :]
        bias = bias * post_scale.astype(F32)
    if post_bias is not None:
        bias = bias + post_bias.astype(F32)
    al = jnp.ones((Cout,), F32) if alpha is None else alpha.astype(F32)
    if out_perm is not None:
        Wm = Wm[:, out_perm]
        bias = bias[out_perm]
        al = al[out_perm]
    return Wm, bias, al


def _fr_patches(x):
    """FactorizedReduce input patches: concat of even/even and odd/odd slices."""
    p1 = x[:, 0::2, 0::2, :]
    p2 = x[:, 1::2, 1::2, :]          # == conv_2 input x[:, :, 1:, 1:] sampled s=2
    Ho = min(p1.shape[1], p2.shape[1])
    Wo = min(p1.shape[2], p2.shape[2])
    p1 = p1[:, :Ho, :Wo, :]
    p2 = p2[:, :Ho, :Wo, :]
    Nb, Cin = x.shape[0], x.shape[-1]
    A = jnp.concatenate([p1, p2], axis=-1).reshape(Nb * Ho * Wo, 2 * Cin)
    return A, (Nb, Ho, Wo)


def _fr_fold(p, Cin):
    """FactorizedReduce: BN -> two 1x1 s2 convs -> cat -> PReLU, folded."""
    s = p['bn']['scale'].astype(F32)
    t = p['bn']['shift'].astype(F32)
    Ch = p['w1'].shape[0]
    w1 = p['w1'].reshape(Ch, Cin).astype(F32)
    w2 = p['w2'].reshape(Ch, Cin).astype(F32)
    Wm = jnp.zeros((2 * Cin, 2 * Ch), F32)
    Wm = Wm.at[:Cin, :Ch].set((w1 * s[None, :]).T)
    Wm = Wm.at[Cin:, Ch:].set((w2 * s[None, :]).T)
    bias = jnp.concatenate([w1 @ t, w2 @ t])
    return Wm, bias, p['alpha'].astype(F32)


def factorized_reduce_call(p, x):
    A, (Nb, Ho, Wo) = _fr_patches(x)
    Wm, bias, alpha = _fr_fold(p, x.shape[-1])
    out = fused_matmul(A, Wm, bias, alpha)
    return out.reshape(Nb, Ho, Wo, Wm.shape[1])


def max_pool2d_3x3(x, stride):
    # Tiny op; max of 9 shifted slices fuses to one XLA pass under the jit.
    N, H, W, C = x.shape
    Ho = (H + 2 - 3) // stride + 1
    Wo = (W + 2 - 3) // stride + 1
    neg = float(jnp.finfo(x.dtype).min)
    xp = jnp.pad(x, ((0, 0), (1, 1), (1, 1), (0, 0)), constant_values=neg)
    out = None
    for kh in range(3):
        for kw in range(3):
            sl = xp[:, kh:kh + stride * (Ho - 1) + 1:stride,
                    kw:kw + stride * (Wo - 1) + 1:stride, :]
            out = sl if out is None else jnp.maximum(out, sl)
    return out


# ----------------------------------------------------------------------------
# Parameter initialization (deterministic, PRNGKey(0)-derived)
# ----------------------------------------------------------------------------

class _KeyGen:
    def __init__(self, seed):
        self._key = jax.random.PRNGKey(seed)

    def __call__(self):
        self._key, sub = jax.random.split(self._key)
        return sub


def _init_conv_w(kg, cout, cin_g, kh, kw):
    fan_in = cin_g * kh * kw
    return jax.random.normal(kg(), (cout, cin_g, kh, kw), F32) / math.sqrt(fan_in)


def _init_bn(C, eps=1e-5):
    # PyTorch eval defaults (gamma=1, beta=0, mean=0, var=1) folded to affine.
    return {'scale': jnp.full((C,), 1.0 / math.sqrt(1.0 + eps), F32),
            'shift': jnp.zeros((C,), F32)}


def _init_prelu(C):
    return jnp.full((C,), 0.25, F32)


def _init_relu_conv_bn(kg, C_in, C_out, k):
    return {'bn': _init_bn(C_in), 'w': _init_conv_w(kg, C_out, C_in, k, k),
            'alpha': _init_prelu(C_out), 'C_in': C_in, 'C_out': C_out}


def _init_grouped_conv_op(kg, C, k, groups):
    return {'bn': _init_bn(C), 'w': _init_conv_w(kg, C, C // groups, k, k),
            'alpha': _init_prelu(C)}


def _init_factorized_reduce(kg, C_in, C_out):
    assert C_out % 2 == 0
    return {'bn': _init_bn(C_in),
            'w1': _init_conv_w(kg, C_out // 2, C_in, 1, 1),
            'w2': _init_conv_w(kg, C_out // 2, C_in, 1, 1),
            'alpha': _init_prelu(C_out)}


def _init_op(kg, name, C, stride, groups):
    if name in ('sep_conv_3x3', 'dil_conv_3x3'):
        return _init_grouped_conv_op(kg, C, 3, groups)
    if name == 'max_pool_3x3':
        return {}
    if name == 'skip_connect':
        return {} if stride == 1 else _init_factorized_reduce(kg, C, C)
    raise NotImplementedError(name)


# ----------------------------------------------------------------------------
# Cell & network forwards
# ----------------------------------------------------------------------------

Genotype = namedtuple('Genotype', 'normal normal_concat reduce reduce_concat')

GENOTYPE = Genotype(
    normal=[('sep_conv_3x3', 0), ('skip_connect', 1), ('dil_conv_3x3', 1),
            ('sep_conv_3x3', 0), ('skip_connect', 0), ('sep_conv_3x3', 2),
            ('dil_conv_3x3', 3), ('sep_conv_3x3', 1)],
    normal_concat=[2, 3, 4, 5],
    reduce=[('sep_conv_3x3', 0), ('max_pool_3x3', 1), ('dil_conv_3x3', 2),
            ('sep_conv_3x3', 1), ('skip_connect', 2), ('sep_conv_3x3', 0),
            ('max_pool_3x3', 1), ('dil_conv_3x3', 3)],
    reduce_concat=[2, 3, 4, 5])

_CONV_GEOM = {'sep_conv_3x3': (3, 1, 1), 'dil_conv_3x3': (3, 2, 2)}  # (k, pad, dil)


def _cell_conv_call(o, x, groups, extra_add=None):
    """SepConv / DilConv:  BN -> grouped conv -> PReLU -> shuffle [-> +addend],
    one fused Pallas call (BN scale + shuffle folded into W)."""
    C = x.shape[-1]
    k, pad, dil = _CONV_GEOM[o['name']]
    p = o['p']
    A, Ho, Wo = _im2col(x, k, k, o['stride'], pad, dil)
    Wf, bf, af = _fold_conv(p['w'], C, groups,
                            pre_scale=p['bn']['scale'], pre_shift=p['bn']['shift'],
                            alpha=p['alpha'], out_perm=_shuffle_perm(C, 4))
    add = None if extra_add is None else extra_add.reshape(A.shape[0], C)
    out = fused_matmul(A, Wf, bf, af, addend=add)
    return out.reshape(x.shape[0], Ho, Wo, C)


def _batched_cell_convs(op_list, op_ids, states01, groups):
    """All conv ops reading states[0]/[1]: ONE Pallas call with dedup'ed patch
    blocks (block-diag K) and concatenated output channels (lane-denser N)."""
    C = states01[0].shape[-1]
    perm = _shuffle_perm(C, 4)
    key_to_slot, patch_mats, col_entries = {}, [], []
    out_sp = None
    for o in op_list:
        k, pad, dil = _CONV_GEOM[o['name']]
        key = (o['index'], k, o['stride'], pad, dil)
        if key not in key_to_slot:
            x = states01[o['index']]
            A_blk, Ho, Wo = _im2col(x, k, k, o['stride'], pad, dil)
            sp = (x.shape[0], Ho, Wo)
            if out_sp is None:
                out_sp = sp
            assert sp == out_sp
            key_to_slot[key] = len(patch_mats)
            patch_mats.append(A_blk)
        p = o['p']
        Wf, bf, af = _fold_conv(p['w'], C, groups,
                                pre_scale=p['bn']['scale'],
                                pre_shift=p['bn']['shift'],
                                alpha=p['alpha'], out_perm=perm)
        col_entries.append((key_to_slot[key], Wf, bf, af))
    k_sizes = [pm.shape[1] for pm in patch_mats]
    k_off = np.concatenate([[0], np.cumsum(k_sizes)]).astype(int)
    n_ops = len(op_list)
    Wm = jnp.zeros((int(k_off[-1]), n_ops * C), F32)
    biases, alphas = [], []
    for j, (slot, Wf, bf, af) in enumerate(col_entries):
        Wm = Wm.at[int(k_off[slot]):int(k_off[slot + 1]),
                   j * C:(j + 1) * C].set(Wf)
        biases.append(bf)
        alphas.append(af)
    A = jnp.concatenate([pm.astype(BF16) for pm in patch_mats], axis=1)
    out = fused_matmul(A, Wm, jnp.concatenate(biases), jnp.concatenate(alphas))
    Nb, Ho, Wo = out_sp
    return {op_id: out[:, j * C:(j + 1) * C].reshape(Nb, Ho, Wo, C)
            for j, op_id in enumerate(op_ids)}


def cell_fwd(cell, s0_in, s1_in, groups):
    C = cell['C']

    # ---- preprocess0 + preprocess1: ONE merged Pallas call (block-diag K) ----
    if cell['pre0']['type'] == 'fr':
        p0 = cell['pre0']['p']
        A0, sp0 = _fr_patches(s0_in)
        W0, b0, a0 = _fr_fold(p0, s0_in.shape[-1])
        skip0 = False
    else:
        p0 = cell['pre0']['p']
        Nb0, H0, Wd0, C0 = s0_in.shape
        A0 = s0_in.reshape(Nb0 * H0 * Wd0, C0)
        sp0 = (Nb0, H0, Wd0)
        W0, b0, a0 = _fold_conv(p0['w'], C0, 1,
                                pre_scale=p0['bn']['scale'],
                                pre_shift=p0['bn']['shift'], alpha=p0['alpha'])
        skip0 = (C0 == C)                    # ReLUConvBN self-skip (stride 1)
    p1 = cell['pre1']
    Nb1, H1, Wd1, C1 = s1_in.shape
    A1 = s1_in.reshape(Nb1 * H1 * Wd1, C1)
    W1m, b1, a1 = _fold_conv(p1['w'], C1, 1,
                             pre_scale=p1['bn']['scale'],
                             pre_shift=p1['bn']['shift'], alpha=p1['alpha'])
    skip1 = (C1 == C)
    assert A0.shape[0] == A1.shape[0]
    K0, K1 = A0.shape[1], A1.shape[1]
    Wm = jnp.zeros((K0 + K1, 2 * C), F32)
    Wm = Wm.at[:K0, :C].set(W0)
    Wm = Wm.at[K0:, C:].set(W1m)
    A = jnp.concatenate([A0.astype(BF16), A1.astype(BF16)], axis=1)
    out = fused_matmul(A, Wm, jnp.concatenate([b0, b1]), jnp.concatenate([a0, a1]))
    s0p = out[:, :C].reshape(sp0 + (C,))
    s1p = out[:, C:].reshape((Nb1, H1, Wd1, C))
    if skip0:
        s0p = s0p + s0_in.astype(s0p.dtype)
    if skip1:
        s1p = s1p + s1_in.astype(s1p.dtype)

    states = [s0p, s1p]
    ops = cell['ops']

    # ---- all conv ops on states[0]/[1]: ONE batched Pallas call --------------
    level0 = [j for j, o in enumerate(ops)
              if o['name'] in _CONV_GEOM and o['index'] < 2]
    pre_h = {}
    if level0:
        pre_h = _batched_cell_convs([ops[j] for j in level0], level0,
                                    [s0p, s1p], groups)

    # ---- node sums; deeper conv ops fuse (self-skip + partner) as addend -----
    for i in range(len(ops) // 2):
        parts, deferred = [], []
        for op_id in (2 * i, 2 * i + 1):
            o = ops[op_id]
            x = states[o['index']]
            if op_id in pre_h:
                parts.append(pre_h[op_id])
            elif o['name'] == 'max_pool_3x3':
                parts.append(max_pool2d_3x3(x, o['stride']))
            elif o['name'] == 'skip_connect':
                parts.append(x if o['stride'] == 1
                             else factorized_reduce_call(o['p'], x))
            else:
                deferred.append(o)
        acc = None
        for h in parts:
            acc = h if acc is None else acc + h
        for j, o in enumerate(deferred):
            x = states[o['index']]
            extra = x if o['stride'] == 1 else None       # self-skip (+x) after shuffle
            if j == len(deferred) - 1 and acc is not None:
                extra = acc if extra is None else extra + acc
            h = _cell_conv_call(o, x, groups, extra_add=extra)
            acc = h if j == len(deferred) - 1 else (h if acc is None else acc + h)
        states.append(acc)

    return jnp.concatenate([states[i] for i in cell['concat']], axis=-1)


def stem_forward(params, x):
    """stem0 / stem1 with the transposed (lane-dense-store) kernel."""
    C = params['C']
    sg = params['stem_groups']
    st0, st1 = params['stem0'], params['stem1']
    # stem0: Conv3x3 s2 -> BN -> ReLU (alpha=0)
    W1, b1, a1 = _fold_conv(st0['w1'], 3, 1,
                            post_scale=st0['bn1']['scale'],
                            post_bias=st0['bn1']['shift'],
                            alpha=jnp.zeros((C // 2,), F32))
    A, Ho, Wo = _im2col(x, 3, 3, 2, 1)
    s = fused_matmul_t(A, W1, b1, a1).reshape(x.shape[0], Ho, Wo, C // 2)
    # stem0: grouped Conv3x3 s2 -> BN (identity activation)
    W2, b2, a2 = _fold_conv(st0['w2'], C // 2, sg,
                            post_scale=st0['bn2']['scale'],
                            post_bias=st0['bn2']['shift'])
    A, Ho, Wo = _im2col(s, 3, 3, 2, 1)
    s0 = fused_matmul_t(A, W2, b2, a2).reshape(s.shape[0], Ho, Wo, C)
    # stem1: ReLU -> grouped Conv3x3 s2 -> BN
    W3, b3, a3 = _fold_conv(st1['w'], C, sg,
                            post_scale=st1['bn']['scale'],
                            post_bias=st1['bn']['shift'])
    A, Ho, Wo = _im2col(jnp.maximum(s0, 0), 3, 3, 2, 1)
    s1 = fused_matmul_t(A, W3, b3, a3).reshape(s0.shape[0], Ho, Wo, C)
    return s0, s1


def _init_cell(kg, genotype, C_pp, C_p, C, reduction, reduction_prev, groups):
    cell = {'reduction_prev': reduction_prev, 'C': C}
    if reduction_prev:
        cell['pre0'] = {'type': 'fr', 'p': _init_factorized_reduce(kg, C_pp, C)}
    else:
        cell['pre0'] = {'type': 'rcb', 'p': _init_relu_conv_bn(kg, C_pp, C, 1)}
    cell['pre1'] = _init_relu_conv_bn(kg, C_p, C, 1)
    if reduction:
        op_names, indices = zip(*genotype.reduce)
        concat = genotype.reduce_concat
    else:
        op_names, indices = zip(*genotype.normal)
        concat = genotype.normal_concat
    ops = []
    for name, index in zip(op_names, indices):
        stride = 2 if reduction and index < 2 else 1
        ops.append({'name': name, 'index': int(index), 'stride': stride,
                    'p': _init_op(kg, name, C, stride, groups)})
    cell['ops'] = ops
    cell['concat'] = list(concat)
    cell['multiplier'] = len(concat)
    return cell


def init_bats_network(seed, C, num_classes, layers, auxiliary, genotype, groups):
    kg = _KeyGen(seed)
    stem_groups = C // 20
    assert stem_groups >= 1, "C must be >= 20 (stem uses groups=C//20)"
    params = {'C': C, 'layers': layers, 'groups': groups,
              'stem_groups': stem_groups, 'auxiliary': auxiliary}
    params['stem0'] = {
        'w1': _init_conv_w(kg, C // 2, 3, 3, 3), 'bn1': _init_bn(C // 2),
        'w2': _init_conv_w(kg, C, (C // 2) // stem_groups, 3, 3), 'bn2': _init_bn(C)}
    params['stem1'] = {
        'w': _init_conv_w(kg, C, C // stem_groups, 3, 3), 'bn': _init_bn(C)}
    C_pp, C_p, C_curr = C, C, C
    cells = []
    reduction_prev = True
    for i in range(layers):
        if i in [layers // 3, 2 * layers // 3]:
            C_curr *= 2
            reduction = True
        else:
            reduction = False
        cell = _init_cell(kg, genotype, C_pp, C_p, C_curr, reduction,
                          reduction_prev, groups)
        reduction_prev = reduction
        cells.append(cell)
        C_pp, C_p = C_p, cell['multiplier'] * C_curr
    params['cells'] = cells
    params['classifier'] = {
        'w': jax.random.normal(kg(), (num_classes, C_p), F32) / math.sqrt(C_p),
        'b': jnp.zeros((num_classes,), F32)}
    return params


def bats_network_forward(params, x_nchw):
    x = jnp.transpose(x_nchw.astype(F32), (0, 2, 3, 1))     # NCHW -> NHWC
    s0, s1 = stem_forward(params, x)
    for cell in params['cells']:
        s0, s1 = s1, cell_fwd(cell, s0, s1, params['groups'])
    N, H, W, Cf = s1.shape
    assert H == 7 and W == 7, "final feature map must be 7x7 for AvgPool2d(7)"
    pooled = jnp.mean(s1.astype(F32), axis=(1, 2))           # AvgPool2d(7) + flatten
    logits = pooled @ params['classifier']['w'].T + params['classifier']['b']
    return logits, None   # (logits, logits_aux); aux head is training-only


if __name__ == "__main__":
    C = 20
    NUM_CLASSES = 10
    LAYERS = 1
    GROUPS = 4

    params = init_bats_network(0, C, NUM_CLASSES, LAYERS, False, GENOTYPE, GROUPS)

    key = jax.random.PRNGKey(0)
    x = jax.random.normal(key, (2, 3, 112, 112), F32)   # NCHW like the PyTorch module

    # One outer jit: params baked as constants; all pad/slice/concat glue fuses.
    forward = jax.jit(functools.partial(bats_network_forward, params))

    logits, logits_aux = forward(x)
    logits = jax.block_until_ready(logits)

    assert logits.shape == (2, NUM_CLASSES)
    assert logits_aux is None
    assert bool(jnp.all(jnp.isfinite(logits)))
    print("KERNEL_OK")
</pallas_src>

<mosaic_0001>
module attributes {stable_mosaic.version = 11 : i64} {
  func.func @_mm_kernel_t(%arg0: i32, %arg1: memref<27x3200xbf16, #tpu.memory_space<vmem>>, %arg2: memref<10x27xbf16, #tpu.memory_space<vmem>>, %arg3: memref<10x2xf32, #tpu.memory_space<vmem>>, %arg4: memref<10x3200xbf16, #tpu.memory_space<vmem>>) attributes {dimension_semantics = [#tpu.dimension_semantics<parallel>], iteration_bounds = array<i64: 2>, scalar_prefetch = 0 : i64, scratch_operands = 0 : i64, tpu.core_type = #tpu.core_type<tc>, window_params = [{transform_indices = @transform_0, window_bounds = array<i64: 27, 3200>}, {pipeline_mode = #tpu.pipeline_mode<synchronous>, transform_indices = @transform_1, window_bounds = array<i64: 10, 27>}, {pipeline_mode = #tpu.pipeline_mode<synchronous>, transform_indices = @transform_2, window_bounds = array<i64: 10, 2>}, {transform_indices = @transform_3, window_bounds = array<i64: 10, 3200>}]} {
    %c0 = arith.constant 0 : index
    %c0_0 = arith.constant 0 : index
    %0 = vector.load %arg2[%c0, %c0_0] : memref<10x27xbf16, #tpu.memory_space<vmem>>, vector<10x27xbf16>
    %c0_1 = arith.constant 0 : index
    %c0_2 = arith.constant 0 : index
    %1 = vector.load %arg1[%c0_1, %c0_2] : memref<27x3200xbf16, #tpu.memory_space<vmem>>, vector<27x3200xbf16>
    %cst = arith.constant dense<0.000000e+00> : vector<10x3200xf32>
    %2 = tpu.matmul %0, %1, %cst {dimension_numbers = #tpu.dot_dimension_numbers<[1], [0], [0], [1], [0, 0, 1, 1], [], []>} : vector<10x27xbf16>, vector<27x3200xbf16>, vector<10x3200xf32> -> vector<10x3200xf32>
    %c0_3 = arith.constant 0 : index
    %c0_4 = arith.constant 0 : index
    %3 = vector.load %arg3[%c0_3, %c0_4] : memref<10x2xf32, #tpu.memory_space<vmem>>, vector<10x1xf32>
    %4 = vector.broadcast %3 : vector<10x1xf32> to vector<10x3200xf32>
    %5 = arith.addf %2, %4 : vector<10x3200xf32>
    %cst_5 = arith.constant 0.000000e+00 : f32
    %6 = vector.broadcast %cst_5 : f32 to vector<10x3200xf32>
    %7 = arith.cmpf oge, %5, %6 : vector<10x3200xf32>
    %c0_6 = arith.constant 0 : index
    %c1 = arith.constant 1 : index
    %8 = vector.load %arg3[%c0_6, %c1] : memref<10x2xf32, #tpu.memory_space<vmem>>, vector<10x1xf32>
    %9 = vector.broadcast %8 : vector<10x1xf32> to vector<10x3200xf32>
    %10 = arith.mulf %5, %9 : vector<10x3200xf32>
    %11 = arith.select %7, %5, %10 : vector<10x3200xi1>, vector<10x3200xf32>
    %12 = arith.truncf %11 : vector<10x3200xf32> to vector<10x3200xbf16>
    %c0_7 = arith.constant 0 : index
    %c0_8 = arith.constant 0 : index
    %13 = vector.load %arg4[%c0_7, %c0_8] : memref<10x3200xbf16, #tpu.memory_space<vmem>>, vector<10x3200xbf16>
    tpu.vector_store %arg4[%c0_7, %c0_8], %12 {strides = array<i32>} : memref<10x3200xbf16, #tpu.memory_space<vmem>>, vector<10x3200xbf16>,
    return
  }
  func.func @transform_0(%arg0: i32) -> (i32, i32) {
    %c0_i32 = arith.constant 0 : i32
    %c0_i32_0 = arith.constant 0 : i32
    return %c0_i32, %arg0 : i32, i32
  }
  func.func @transform_1(%arg0: i32) -> (i32, i32) {
    %c0_i32 = arith.constant 0 : i32
    %c0_i32_0 = arith.constant 0 : i32
    %c0_i32_1 = arith.constant 0 : i32
    return %c0_i32, %c0_i32_0 : i32, i32
  }
  func.func @transform_2(%arg0: i32) -> (i32, i32) {
    %c0_i32 = arith.constant 0 : i32
    %c0_i32_0 = arith.constant 0 : i32
    %c0_i32_1 = arith.constant 0 : i32
    return %c0_i32, %c0_i32_0 : i32, i32
  }
  func.func @transform_3(%arg0: i32) -> (i32, i32) {
    %c0_i32 = arith.constant 0 : i32
    %c0_i32_0 = arith.constant 0 : i32
    return %c0_i32, %arg0 : i32, i32
  }
}

module attributes {stable_mosaic.version = 11 : i64} {
  func.func @_mm_kernel_t(%arg0: i32, %arg1: memref<90x896xbf16, #tpu.memory_space<vmem>>, %arg2: memref<20x90xbf16, #tpu.memory_space<vmem>>, %arg3: memref<20x2xf32, #tpu.memory_space<vmem>>, %arg4: memref<20x896xbf16, #tpu.memory_space<vmem>>) attributes {dimension_semantics = [#tpu.dimension_semantics<parallel>], iteration_bounds = array<i64: 2>, scalar_prefetch = 0 : i64, scratch_operands = 0 : i64, tpu.core_type = #tpu.core_type<tc>, window_params = [{transform_indices = @transform_0, window_bounds = array<i64: 90, 896>}, {pipeline_mode = #tpu.pipeline_mode<synchronous>, transform_indices = @transform_1, window_bounds = array<i64: 20, 90>}, {pipeline_mode = #tpu.pipeline_mode<synchronous>, transform_indices = @transform_2, window_bounds = array<i64: 20, 2>}, {transform_indices = @transform_3, window_bounds = array<i64: 20, 896>}]} {
    %c0 = arith.constant 0 : index
    %c0_0 = arith.constant 0 : index
    %0 = vector.load %arg2[%c0, %c0_0] : memref<20x90xbf16, #tpu.memory_space<vmem>>, vector<20x90xbf16>
    %c0_1 = arith.constant 0 : index
    %c0_2 = arith.constant 0 : index
    %1 = vector.load %arg1[%c0_1, %c0_2] : memref<90x896xbf16, #tpu.memory_space<vmem>>, vector<90x896xbf16>
    %cst = arith.constant dense<0.000000e+00> : vector<20x896xf32>
    %2 = tpu.matmul %0, %1, %cst {dimension_numbers = #tpu.dot_dimension_numbers<[1], [0], [0], [1], [0, 0, 1, 1], [], []>} : vector<20x90xbf16>, vector<90x896xbf16>, vector<20x896xf32> -> vector<20x896xf32>
    %c0_3 = arith.constant 0 : index
    %c0_4 = arith.constant 0 : index
    %3 = vector.load %arg3[%c0_3, %c0_4] : memref<20x2xf32, #tpu.memory_space<vmem>>, vector<20x1xf32>
    %4 = vector.broadcast %3 : vector<20x1xf32> to vector<20x896xf32>
    %5 = arith.addf %2, %4 : vector<20x896xf32>
    %cst_5 = arith.constant 0.000000e+00 : f32
    %6 = vector.broadcast %cst_5 : f32 to vector<20x896xf32>
    %7 = arith.cmpf oge, %5, %6 : vector<20x896xf32>
    %c0_6 = arith.constant 0 : index
    %c1 = arith.constant 1 : index
    %8 = vector.load %arg3[%c0_6, %c1] : memref<20x2xf32, #tpu.memory_space<vmem>>, vector<20x1xf32>
    %9 = vector.broadcast %8 : vector<20x1xf32> to vector<20x896xf32>
    %10 = arith.mulf %5, %9 : vector<20x896xf32>
    %11 = arith.select %7, %5, %10 : vector<20x896xi1>, vector<20x896xf32>
    %12 = arith.truncf %11 : vector<20x896xf32> to vector<20x896xbf16>
    %c0_7 = arith.constant 0 : index
    %c0_8 = arith.constant 0 : index
    %13 = vector.load %arg4[%c0_7, %c0_8] : memref<20x896xbf16, #tpu.memory_space<vmem>>, vector<20x896xbf16>
    tpu.vector_store %arg4[%c0_7, %c0_8], %12 {strides = array<i32>} : memref<20x896xbf16, #tpu.memory_space<vmem>>, vector<20x896xbf16>,
    return
  }
  func.func @transform_0(%arg0: i32) -> (i32, i32) {
    %c0_i32 = arith.constant 0 : i32
    %c0_i32_0 = arith.constant 0 : i32
    return %c0_i32, %arg0 : i32, i32
  }
  func.func @transform_1(%arg0: i32) -> (i32, i32) {
    %c0_i32 = arith.constant 0 : i32
    %c0_i32_0 = arith.constant 0 : i32
    %c0_i32_1 = arith.constant 0 : i32
    return %c0_i32, %c0_i32_0 : i32, i32
  }
  func.func @transform_2(%arg0: i32) -> (i32, i32) {
    %c0_i32 = arith.constant 0 : i32
    %c0_i32_0 = arith.constant 0 : i32
    %c0_i32_1 = arith.constant 0 : i32
    return %c0_i32, %c0_i32_0 : i32, i32
  }
  func.func @transform_3(%arg0: i32) -> (i32, i32) {
    %c0_i32 = arith.constant 0 : i32
    %c0_i32_0 = arith.constant 0 : i32
    return %c0_i32, %arg0 : i32, i32
  }
}

module attributes {stable_mosaic.version = 11 : i64} {
  func.func @_mm_kernel_t(%arg0: i32, %arg1: memref<180x256xbf16, #tpu.memory_space<vmem>>, %arg2: memref<20x180xbf16, #tpu.memory_space<vmem>>, %arg3: memref<20x2xf32, #tpu.memory_space<vmem>>, %arg4: memref<20x256xbf16, #tpu.memory_space<vmem>>) attributes {dimension_semantics = [#tpu.dimension_semantics<parallel>], iteration_bounds = array<i64: 2>, scalar_prefetch = 0 : i64, scratch_operands = 0 : i64, tpu.core_type = #tpu.core_type<tc>, window_params = [{transform_indices = @transform_0, window_bounds = array<i64: 180, 256>}, {pipeline_mode = #tpu.pipeline_mode<synchronous>, transform_indices = @transform_1, window_bounds = array<i64: 20, 180>}, {pipeline_mode = #tpu.pipeline_mode<synchronous>, transform_indices = @transform_2, window_bounds = array<i64: 20, 2>}, {transform_indices = @transform_3, window_bounds = array<i64: 20, 256>}]} {
    %c0 = arith.constant 0 : index
    %c0_0 = arith.constant 0 : index
    %0 = vector.load %arg2[%c0, %c0_0] : memref<20x180xbf16, #tpu.memory_space<vmem>>, vector<20x180xbf16>
    %c0_1 = arith.constant 0 : index
    %c0_2 = arith.constant 0 : index
    %1 = vector.load %arg1[%c0_1, %c0_2] : memref<180x256xbf16, #tpu.memory_space<vmem>>, vector<180x256xbf16>
    %cst = arith.constant dense<0.000000e+00> : vector<20x256xf32>
    %2 = tpu.matmul %0, %1, %cst {dimension_numbers = #tpu.dot_dimension_numbers<[1], [0], [0], [1], [0, 0, 1, 1], [], []>} : vector<20x180xbf16>, vector<180x256xbf16>, vector<20x256xf32> -> vector<20x256xf32>
    %c0_3 = arith.constant 0 : index
    %c0_4 = arith.constant 0 : index
    %3 = vector.load %arg3[%c0_3, %c0_4] : memref<20x2xf32, #tpu.memory_space<vmem>>, vector<20x1xf32>
    %4 = vector.broadcast %3 : vector<20x1xf32> to vector<20x256xf32>
    %5 = arith.addf %2, %4 : vector<20x256xf32>
    %cst_5 = arith.constant 0.000000e+00 : f32
    %6 = vector.broadcast %cst_5 : f32 to vector<20x256xf32>
    %7 = arith.cmpf oge, %5, %6 : vector<20x256xf32>
    %c0_6 = arith.constant 0 : index
    %c1 = arith.constant 1 : index
    %8 = vector.load %arg3[%c0_6, %c1] : memref<20x2xf32, #tpu.memory_space<vmem>>, vector<20x1xf32>
    %9 = vector.broadcast %8 : vector<20x1xf32> to vector<20x256xf32>
    %10 = arith.mulf %5, %9 : vector<20x256xf32>
    %11 = arith.select %7, %5, %10 : vector<20x256xi1>, vector<20x256xf32>
    %12 = arith.truncf %11 : vector<20x256xf32> to vector<20x256xbf16>
    %c0_7 = arith.constant 0 : index
    %c0_8 = arith.constant 0 : index
    %13 = vector.load %arg4[%c0_7, %c0_8] : memref<20x256xbf16, #tpu.memory_space<vmem>>, vector<20x256xbf16>
    tpu.vector_store %arg4[%c0_7, %c0_8], %12 {strides = array<i32>} : memref<20x256xbf16, #tpu.memory_space<vmem>>, vector<20x256xbf16>,
    return
  }
  func.func @transform_0(%arg0: i32) -> (i32, i32) {
    %c0_i32 = arith.constant 0 : i32
    %c0_i32_0 = arith.constant 0 : i32
    return %c0_i32, %arg0 : i32, i32
  }
  func.func @transform_1(%arg0: i32) -> (i32, i32) {
    %c0_i32 = arith.constant 0 : i32
    %c0_i32_0 = arith.constant 0 : i32
    %c0_i32_1 = arith.constant 0 : i32
    return %c0_i32, %c0_i32_0 : i32, i32
  }
  func.func @transform_2(%arg0: i32) -> (i32, i32) {
    %c0_i32 = arith.constant 0 : i32
    %c0_i32_0 = arith.constant 0 : i32
    %c0_i32_1 = arith.constant 0 : i32
    return %c0_i32, %c0_i32_0 : i32, i32
  }
  func.func @transform_3(%arg0: i32) -> (i32, i32) {
    %c0_i32 = arith.constant 0 : i32
    %c0_i32_0 = arith.constant 0 : i32
    return %c0_i32, %arg0 : i32, i32
  }
}

module attributes {stable_mosaic.version = 11 : i64} {
  func.func @_mm_kernel(%arg0: i32, %arg1: memref<200x60xbf16, #tpu.memory_space<vmem>>, %arg2: memref<60x80xbf16, #tpu.memory_space<vmem>>, %arg3: memref<2x80xf32, #tpu.memory_space<vmem>>, %arg4: memref<200x80xbf16, #tpu.memory_space<vmem>>) attributes {dimension_semantics = [#tpu.dimension_semantics<parallel>], iteration_bounds = array<i64: 2>, scalar_prefetch = 0 : i64, scratch_operands = 0 : i64, tpu.core_type = #tpu.core_type<tc>, window_params = [{transform_indices = @transform_0, window_bounds = array<i64: 200, 60>}, {pipeline_mode = #tpu.pipeline_mode<synchronous>, transform_indices = @transform_1, window_bounds = array<i64: 60, 80>}, {pipeline_mode = #tpu.pipeline_mode<synchronous>, transform_indices = @transform_2, window_bounds = array<i64: 2, 80>}, {transform_indices = @transform_3, window_bounds = array<i64: 200, 80>}]} {
    %c0 = arith.constant 0 : index
    %c0_0 = arith.constant 0 : index
    %0 = vector.load %arg1[%c0, %c0_0] : memref<200x60xbf16, #tpu.memory_space<vmem>>, vector<200x60xbf16>
    %c0_1 = arith.constant 0 : index
    %c0_2 = arith.constant 0 : index
    %1 = vector.load %arg2[%c0_1, %c0_2] : memref<60x80xbf16, #tpu.memory_space<vmem>>, vector<60x80xbf16>
    %cst = arith.constant dense<0.000000e+00> : vector<200x80xf32>
    %2 = tpu.matmul %0, %1, %cst {dimension_numbers = #tpu.dot_dimension_numbers<[1], [0], [0], [1], [0, 0, 1, 1], [], []>} : vector<200x60xbf16>, vector<60x80xbf16>, vector<200x80xf32> -> vector<200x80xf32>
    %c0_3 = arith.constant 0 : index
    %c0_4 = arith.constant 0 : index
    %3 = vector.load %arg3[%c0_3, %c0_4] : memref<2x80xf32, #tpu.memory_space<vmem>>, vector<1x80xf32>
    %4 = vector.broadcast %3 : vector<1x80xf32> to vector<200x80xf32>
    %5 = arith.addf %2, %4 : vector<200x80xf32>
    %cst_5 = arith.constant 0.000000e+00 : f32
    %6 = vector.broadcast %cst_5 : f32 to vector<200x80xf32>
    %7 = arith.cmpf oge, %5, %6 : vector<200x80xf32>
    %c1 = arith.constant 1 : index
    %c0_6 = arith.constant 0 : index
    %8 = vector.load %arg3[%c1, %c0_6] : memref<2x80xf32, #tpu.memory_space<vmem>>, vector<1x80xf32>
    %9 = vector.broadcast %8 : vector<1x80xf32> to vector<200x80xf32>
    %10 = arith.mulf %5, %9 : vector<200x80xf32>
    %11 = arith.select %7, %5, %10 : vector<200x80xi1>, vector<200x80xf32>
    %12 = arith.truncf %11 : vector<200x80xf32> to vector<200x80xbf16>
    %c0_7 = arith.constant 0 : index
    %c0_8 = arith.constant 0 : index
    %13 = vector.load %arg4[%c0_7, %c0_8] : memref<200x80xbf16, #tpu.memory_space<vmem>>, vector<200x80xbf16>
    tpu.vector_store %arg4[%c0_7, %c0_8], %12 {strides = array<i32>} : memref<200x80xbf16, #tpu.memory_space<vmem>>, vector<200x80xbf16>,
    return
  }
  func.func @transform_0(%arg0: i32) -> (i32, i32) {
    %c0_i32 = arith.constant 0 : i32
    %c0_i32_0 = arith.constant 0 : i32
    return %arg0, %c0_i32 : i32, i32
  }
  func.func @transform_1(%arg0: i32) -> (i32, i32) {
    %c0_i32 = arith.constant 0 : i32
    %c0_i32_0 = arith.constant 0 : i32
    %c0_i32_1 = arith.constant 0 : i32
    return %c0_i32, %c0_i32_0 : i32, i32
  }
  func.func @transform_2(%arg0: i32) -> (i32, i32) {
    %c0_i32 = arith.constant 0 : i32
    %c0_i32_0 = arith.constant 0 : i32
    %c0_i32_1 = arith.constant 0 : i32
    return %c0_i32, %c0_i32_0 : i32, i32
  }
  func.func @transform_3(%arg0: i32) -> (i32, i32) {
    %c0_i32 = arith.constant 0 : i32
    %c0_i32_0 = arith.constant 0 : i32
    return %arg0, %c0_i32 : i32, i32
  }
}

module attributes {stable_mosaic.version = 11 : i64} {
  func.func @_mm_kernel(%arg0: i32, %arg1: memref<56x720xbf16, #tpu.memory_space<vmem>>, %arg2: memref<720x120xbf16, #tpu.memory_space<vmem>>, %arg3: memref<2x120xf32, #tpu.memory_space<vmem>>, %arg4: memref<56x120xbf16, #tpu.memory_space<vmem>>) attributes {dimension_semantics = [#tpu.dimension_semantics<parallel>], iteration_bounds = array<i64: 2>, scalar_prefetch = 0 : i64, scratch_operands = 0 : i64, tpu.core_type = #tpu.core_type<tc>, window_params = [{transform_indices = @transform_0, window_bounds = array<i64: 56, 720>}, {pipeline_mode = #tpu.pipeline_mode<synchronous>, transform_indices = @transform_1, window_bounds = array<i64: 720, 120>}, {pipeline_mode = #tpu.pipeline_mode<synchronous>, transform_indices = @transform_2, window_bounds = array<i64: 2, 120>}, {transform_indices = @transform_3, window_bounds = array<i64: 56, 120>}]} {
    %c0 = arith.constant 0 : index
    %c0_0 = arith.constant 0 : index
    %0 = vector.load %arg1[%c0, %c0_0] : memref<56x720xbf16, #tpu.memory_space<vmem>>, vector<56x720xbf16>
    %c0_1 = arith.constant 0 : index
    %c0_2 = arith.constant 0 : index
    %1 = vector.load %arg2[%c0_1, %c0_2] : memref<720x120xbf16, #tpu.memory_space<vmem>>, vector<720x120xbf16>
    %cst = arith.constant dense<0.000000e+00> : vector<56x120xf32>
    %2 = tpu.matmul %0, %1, %cst {dimension_numbers = #tpu.dot_dimension_numbers<[1], [0], [0], [1], [0, 0, 1, 1], [], []>} : vector<56x720xbf16>, vector<720x120xbf16>, vector<56x120xf32> -> vector<56x120xf32>
    %c0_3 = arith.constant 0 : index
    %c0_4 = arith.constant 0 : index
    %3 = vector.load %arg3[%c0_3, %c0_4] : memref<2x120xf32, #tpu.memory_space<vmem>>, vector<1x120xf32>
    %4 = vector.broadcast %3 : vector<1x120xf32> to vector<56x120xf32>
    %5 = arith.addf %2, %4 : vector<56x120xf32>
    %cst_5 = arith.constant 0.000000e+00 : f32
    %6 = vector.broadcast %cst_5 : f32 to vector<56x120xf32>
    %7 = arith.cmpf oge, %5, %6 : vector<56x120xf32>
    %c1 = arith.constant 1 : index
    %c0_6 = arith.constant 0 : index
    %8 = vector.load %arg3[%c1, %c0_6] : memref<2x120xf32, #tpu.memory_space<vmem>>, vector<1x120xf32>
    %9 = vector.broadcast %8 : vector<1x120xf32> to vector<56x120xf32>
    %10 = arith.mulf %5, %9 : vector<56x120xf32>
    %11 = arith.select %7, %5, %10 : vector<56x120xi1>, vector<56x120xf32>
    %12 = arith.truncf %11 : vector<56x120xf32> to vector<56x120xbf16>
    %c0_7 = arith.constant 0 : index
    %c0_8 = arith.constant 0 : index
    %13 = vector.load %arg4[%c0_7, %c0_8] : memref<56x120xbf16, #tpu.memory_space<vmem>>, vector<56x120xbf16>
    tpu.vector_store %arg4[%c0_7, %c0_8], %12 {strides = array<i32>} : memref<56x120xbf16, #tpu.memory_space<vmem>>, vector<56x120xbf16>,
    return
  }
  func.func @transform_0(%arg0: i32) -> (i32, i32) {
    %c0_i32 = arith.constant 0 : i32
    %c0_i32_0 = arith.constant 0 : i32
    return %arg0, %c0_i32 : i32, i32
  }
  func.func @transform_1(%arg0: i32) -> (i32, i32) {
    %c0_i32 = arith.constant 0 : i32
    %c0_i32_0 = arith.constant 0 : i32
    %c0_i32_1 = arith.constant 0 : i32
    return %c0_i32, %c0_i32_0 : i32, i32
  }
  func.func @transform_2(%arg0: i32) -> (i32, i32) {
    %c0_i32 = arith.constant 0 : i32
    %c0_i32_0 = arith.constant 0 : i32
    %c0_i32_1 = arith.constant 0 : i32
    return %c0_i32, %c0_i32_0 : i32, i32
  }
  func.func @transform_3(%arg0: i32) -> (i32, i32) {
    %c0_i32 = arith.constant 0 : i32
    %c0_i32_0 = arith.constant 0 : i32
    return %arg0, %c0_i32 : i32, i32
  }
}

module attributes {stable_mosaic.version = 11 : i64} {
  func.func @_mm_kernel_add(%arg0: i32, %arg1: memref<56x360xbf16, #tpu.memory_space<vmem>>, %arg2: memref<360x40xbf16, #tpu.memory_space<vmem>>, %arg3: memref<2x40xf32, #tpu.memory_space<vmem>>, %arg4: memref<56x40xbf16, #tpu.memory_space<vmem>>, %arg5: memref<56x40xbf16, #tpu.memory_space<vmem>>) attributes {dimension_semantics = [#tpu.dimension_semantics<parallel>], iteration_bounds = array<i64: 2>, scalar_prefetch = 0 : i64, scratch_operands = 0 : i64, tpu.core_type = #tpu.core_type<tc>, window_params = [{transform_indices = @transform_0, window_bounds = array<i64: 56, 360>}, {pipeline_mode = #tpu.pipeline_mode<synchronous>, transform_indices = @transform_1, window_bounds = array<i64: 360, 40>}, {pipeline_mode = #tpu.pipeline_mode<synchronous>, transform_indices = @transform_2, window_bounds = array<i64: 2, 40>}, {transform_indices = @transform_3, window_bounds = array<i64: 56, 40>}, {transform_indices = @transform_4, window_bounds = array<i64: 56, 40>}]} {
    %c0 = arith.constant 0 : index
    %c0_0 = arith.constant 0 : index
    %0 = vector.load %arg1[%c0, %c0_0] : memref<56x360xbf16, #tpu.memory_space<vmem>>, vector<56x360xbf16>
    %c0_1 = arith.constant 0 : index
    %c0_2 = arith.constant 0 : index
    %1 = vector.load %arg2[%c0_1, %c0_2] : memref<360x40xbf16, #tpu.memory_space<vmem>>, vector<360x40xbf16>
    %cst = arith.constant dense<0.000000e+00> : vector<56x40xf32>
    %2 = tpu.matmul %0, %1, %cst {dimension_numbers = #tpu.dot_dimension_numbers<[1], [0], [0], [1], [0, 0, 1, 1], [], []>} : vector<56x360xbf16>, vector<360x40xbf16>, vector<56x40xf32> -> vector<56x40xf32>
    %c0_3 = arith.constant 0 : index
    %c0_4 = arith.constant 0 : index
    %3 = vector.load %arg3[%c0_3, %c0_4] : memref<2x40xf32, #tpu.memory_space<vmem>>, vector<1x40xf32>
    %4 = vector.broadcast %3 : vector<1x40xf32> to vector<56x40xf32>
    %5 = arith.addf %2, %4 : vector<56x40xf32>
    %cst_5 = arith.constant 0.000000e+00 : f32
    %6 = vector.broadcast %cst_5 : f32 to vector<56x40xf32>
    %7 = arith.cmpf oge, %5, %6 : vector<56x40xf32>
    %c1 = arith.constant 1 : index
    %c0_6 = arith.constant 0 : index
    %8 = vector.load %arg3[%c1, %c0_6] : memref<2x40xf32, #tpu.memory_space<vmem>>, vector<1x40xf32>
    %9 = vector.broadcast %8 : vector<1x40xf32> to vector<56x40xf32>
    %10 = arith.mulf %5, %9 : vector<56x40xf32>
    %11 = arith.select %7, %5, %10 : vector<56x40xi1>, vector<56x40xf32>
    %c0_7 = arith.constant 0 : index
    %c0_8 = arith.constant 0 : index
    %12 = vector.load %arg4[%c0_7, %c0_8] : memref<56x40xbf16, #tpu.memory_space<vmem>>, vector<56x40xbf16>
    %13 = arith.extf %12 : vector<56x40xbf16> to vector<56x40xf32>
    %14 = arith.addf %11, %13 : vector<56x40xf32>
    %15 = arith.truncf %14 : vector<56x40xf32> to vector<56x40xbf16>
    %c0_9 = arith.constant 0 : index
    %c0_10 = arith.constant 0 : index
    %16 = vector.load %arg5[%c0_9, %c0_10] : memref<56x40xbf16, #tpu.memory_space<vmem>>, vector<56x40xbf16>
    tpu.vector_store %arg5[%c0_9, %c0_10], %15 {strides = array<i32>} : memref<56x40xbf16, #tpu.memory_space<vmem>>, vector<56x40xbf16>,
    return
  }
  func.func @transform_0(%arg0: i32) -> (i32, i32) {
    %c0_i32 = arith.constant 0 : i32
    %c0_i32_0 = arith.constant 0 : i32
    return %arg0, %c0_i32 : i32, i32
  }
  func.func @transform_1(%arg0: i32) -> (i32, i32) {
    %c0_i32 = arith.constant 0 : i32
    %c0_i32_0 = arith.constant 0 : i32
    %c0_i32_1 = arith.constant 0 : i32
    return %c0_i32, %c0_i32_0 : i32, i32
  }
  func.func @transform_2(%arg0: i32) -> (i32, i32) {
    %c0_i32 = arith.constant 0 : i32
    %c0_i32_0 = arith.constant 0 : i32
    %c0_i32_1 = arith.constant 0 : i32
    return %c0_i32, %c0_i32_0 : i32, i32
  }
  func.func @transform_3(%arg0: i32) -> (i32, i32) {
    %c0_i32 = arith.constant 0 : i32
    %c0_i32_0 = arith.constant 0 : i32
    return %arg0, %c0_i32 : i32, i32
  }
  func.func @transform_4(%arg0: i32) -> (i32, i32) {
    %c0_i32 = arith.constant 0 : i32
    %c0_i32_0 = arith.constant 0 : i32
    return %arg0, %c0_i32 : i32, i32
  }
}

</mosaic_0001>

<bundles_post_ra>
// kernel: bats_network_forward.14
= control target key start
LH: loop header
LB: loop body
LE: loop exit
PB: predicated region body
PF: predicated region fallthrough
CT: control target
= control target key end

     0   :  { %s3922_s12 = smov 0   ;;  %s3924_s13 = smov 0   ;;  %s4720_s0 = inlined_call_operand.vmem [shape: bf16[10,27], index: 0, kind: input, shape index: {}]   ;;  %s4721_s1 = inlined_call_operand.vmem [shape: f32[10,2], index: 1, kind: input, shape index: {}]   ;;  %s4722_s2 = inlined_call_operand.vmem [shape: bf16[6272,27], index: 2, kind: input, shape index: {}]   ;;  %s4723_s3 = inlined_call_operand.vmem [shape: bf16[10,6272], index: 3, kind: output, shape index: {}]  }
   0x1   :  { %s3926_s14 = smov 0  }
   0x2 LB: > { %s3935_s15 = sadd.s32 4294967295, %s3829_s14   ;;  %s3937_s16 = sadd.s32 1, %s3829_s14   ;;  %s3829_s14 = sphi %s3926_s14, %s4737_s14   ;;  %s3825_s13 = sphi %s3924_s13, %s4736_s13   ;;  %s3821_s12 = sphi %s3922_s12, %s4735_s12  }
   0x3   : > { %s85_s17 = ssub.s32 %s3829_s14, %s3937_s16  ;;  %s88_s18 = sadd.s32 1, %s3825_s13 }
   0x4   : > { %p86_p0 = scmp.eq.s32.totalorder %s85_s17, 0  ;;  %p98_p1 = scmp.ne.s32.totalorder %s3825_s13, %s3821_s12 }
   0x5   : > { %p99_p2 = scmp.eq.s32.totalorder %s3935_s15, 1  ;;  %p2979_p3 = scmp.ge.s32.totalorder %s3829_s14, 1 }
   0x6   : > { %s3945_s19 = scalar_select %p86_p0, %s3825_s13, %s88_s18  }
   0x7   : > { %p3947_p4 = por %p99_p2, %p98_p1  ;;  %p146_p5 = scmp.lt.s32.totalorder %s3829_s14, 3 }
   0x9   : > { %p147_p6 = pnand %p2979_p3, %p146_p5 }
   0xb   : > { %150 = sbr.rel (%p147_p6) target bundleno = 458 (0x1ca), region = 32 }
  0x10   : > { %s3952_s21 = smul.u32 25, %s3935_s15  ;;  %v1197_v0 = vld [vmem:[%s4721_s1] sm:$0xff]  ;;  %v3895_v1 = vmov 0   ;;  %v3896_v2 = vmov 1   ;;  %v1198_v3 = vld [vmem:[%s4721_s1 + $0x8] sm:$0x3] }
  0x11   : > { %1599 = vmatprep.mubr.bf16.mxu1 %v3895_v1  ;;  %1556 = vmatprep.mubr.bf16.mxu0 %v3895_v1  ;;  %vm1445_vm0 = vcmask 1044480   ;;  %vm1446_vm1 = vcmask 1045504   ;;  %v3897_v7 = vmov 65535   ;;  %v4005_v33 = vld [vmem:[%s4720_s0] sm:$0x1f]   ;;  %vm1441_vm2 = vcmask 220160  }
  0x12   : > { %p178_p7 = scmp.lt.s32.totalorder %s3952_s21, 48  ;;  %s407_s24 = sadd.s32 24, %s3952_s21  ;;  %3683 = vset.pattern.permute.xlu0 %v3895_v1  ;;  %3684 = vset.pattern.permute.xlu1 %v3896_v2  ;;  %v1447_v8 = vsel %vm1445_vm0, 4294967295, %v3897_v7  ;;  %vm3899_vm3 = vmmov 0  }
  0x13   : > { %s408_s25 = ssub.s32 48, %s407_s24  ;;  %1201 = vperm.xlu0 %3683, %v1197_v0   ;;  %2132 = vperm.xlu1 %3684, %v1197_v0   ;;  %v3979_v12 = vsel %vm1446_vm1, %v1447_v8, 0  ;;  %s2425_s28 = ssub.s32 (%p3947_p4), 49, %s3952_s21 }
  0x14   : > { %s179_s26 = scalar_select %p178_p7, %s3952_s21, 48 }
  0x15   : > { %p409_p8 = scmp.lt.s32.totalorder %s408_s25, 0  ;;  %p2426_p9 = scmp.lt.s32.totalorder (%p3947_p4), %s2425_s28, 25 }
  0x16   : > { %s2980_s29 = sshll.u32 %s179_s26, 2  ;;  %s170_s26 = sand.u32 1, %s3821_s12  }
  0x17   : > { %s3969_s5 = scalar_lea.vmem %s4722_s2, %s2980_s29  ;;  %1206 = vperm.xlu0 %3683, %v1198_v3   ;;  %2136 = vperm.xlu1 %3684, %v1198_v3   ;;  %s3523_s27 = smul.u32 200, %s170_s26 }
  0x18   : > { %v3686_v4 = vld [vmem:[%s3969_s5 + $0x190] sm:$0xff]   ;;  %v3688_v6 = vld [vmem:[%s3969_s5 + $0x258] sm:$0xff]   ;;  %s410_s6 = scalar_select %p409_p8, 0, 255  ;;  %v3975_v9 = vld [vmem:[%s3969_s5 + $0x188] sm:$0xff]  }
  0x19   : > { %v3687_v5 = vld [vmem:[%s3969_s5 + $0x250] sm:$0xff]   ;;  %3419 = vst [vmem:[#allocation3 + $0x138] sm:$0xff] %v3688_v6   ;;  %v3693_v10 = vld [vmem:[%s3969_s5 + $0x8] sm:$0xff]   ;;  %v192_v14 = vld [vmem:[%s3969_s5] sm:$0xff]   ;;  %s4169_s12 = scalar_lea.vmem [#allocation2], %s3523_s27   ;;  %s3225_s29 = smul.u32 (%p3947_p4), 100, %s3935_s15 }
  0x1a   : > { %3414 = vst [vmem:[#allocation3 + $0x130] sm:$0xff] %v3687_v5   ;;  %s411_s7 = sshrl.u32 %s410_s6, 1  ;;  %v3694_v11 = vld [vmem:[%s3969_s5 + $0xc8] sm:$0xff]   ;;  %v3695_v13 = vld [vmem:[%s3969_s5 + $0xd0] sm:$0xff]   ;;  %198 = vst [vmem:[#allocation3] sm:$0xff] %v192_v14  }
  0x1b   : > { %3685 = vset.pattern.permute.xlu0 %v3896_v2  ;;  %s412_s8 = sor.u32 %s411_s7, %s410_s6  ;;  %3294 = vst [vmem:[#allocation3 + $0x68] sm:$0xff] %v3694_v11   ;;  %v3703_v15 = vld [vmem:[%s3969_s5 + $0x1a0] sm:$0xff]   ;;  %3299 = vst [vmem:[#allocation3 + $0x70] sm:$0xff] %v3695_v13   ;;  %v3705_v18 = vld [vmem:[%s3969_s5 + $0x268] sm:$0xff]  }
  0x1c   : > { %s413_s9 = sand.u32 85, %s412_s8  ;;  %v3704_v16 = vld [vmem:[%s3969_s5 + $0x260] sm:$0xff]   ;;  %v3987_v21 = vld [vmem:[%s3969_s5 + $0x198] sm:$0xff]   ;;  %3429 = vst [vmem:[#allocation3 + $0x148] sm:$0xff] %v3705_v18   ;;  %v4000_v32 = vld [vmem:[%s3969_s5 + $0x10] sm:$0xff]  }
  0x1d   : > { %s414_s10 = sshrl.u32 %s413_s9, 1  ;;  %3424 = vst [vmem:[#allocation3 + $0x140] sm:$0xff] %v3704_v16   ;;  %v3707_v22 = vld [vmem:[%s3969_s5 + $0x18] sm:$0xff]   ;;  %v3709_v31 = vld [vmem:[%s3969_s5 + $0xe0] sm:$0xff]   ;;  %v3711_v35 = vld [vmem:[%s3969_s5 + $0x1b0] sm:$0xff]  }
  0x1e   : > { %s415_s11 = sor.u32 %s414_s10, %s413_s9  ;;  %v3708_v25 = vld [vmem:[%s3969_s5 + $0xd8] sm:$0xff]   ;;  %3309 = vst [vmem:[#allocation3 + $0x80] sm:$0xff] %v3709_v31   ;;  %v3712_v38 = vld [vmem:[%s3969_s5 + $0x270] sm:$0xff]   ;;  %v4013_v42 = vld [vmem:[%s3969_s5 + $0x1a8] sm:$0xff]  }
  0x1f   : > { %s416_s14 = sand.u32 51, %s415_s11  ;;  %3304 = vst [vmem:[#allocation3 + $0x78] sm:$0xff] %v3708_v25   ;;  %v3713_v39 = vld [vmem:[%s3969_s5 + $0x278] sm:$0xff]   ;;  %3434 = vst [vmem:[#allocation3 + $0x150] sm:$0xff] %v3712_v38   ;;  %v4018_v43 = vld [vmem:[%s3969_s5 + $0x28] sm:$0xff]  }
  0x20   : > { %s417_s17 = sshrl.u32 %s416_s14, 2  ;;  %3439 = vst [vmem:[#allocation3 + $0x158] sm:$0xff] %v3713_v39   ;;  %v3716_v52 = vld [vmem:[%s3969_s5 + $0xe8] sm:$0xff]   ;;  %v3717_v56 = vld [vmem:[%s3969_s5 + $0xf0] sm:$0xff]   ;;  %v4029_v57 = vld [vmem:[%s3969_s5 + $0x20] sm:$0xff]  }
  0x21   : > { %v1185_v17 = vld [vmem:[#allocation3 + $0x134] sm:$0x33]  ;;  %s418_s18 = sor.u32 %s417_s17, %s416_s14  ;;  %3314 = vst [vmem:[#allocation3 + $0x88] sm:$0xff] %v3716_v52   ;;  %3319 = vst [vmem:[#allocation3 + $0x90] sm:$0xff] %v3717_v56   ;;  %v4044_v8 = vld [vmem:[%s3969_s5 + $0x1b8] sm:$0xff]  }
  0x22   : > { %v3109_v19 = vcombine.high %v3686_v4, %v1185_v17  ;;  %v3108_v20 = vcombine.low %v3686_v4, %v1185_v17  ;;  %s3989_s22 = sand.u32 15, %s418_s18  ;;  %v1159_v27 = vld [vmem:[#allocation3 + $0x6c] sm:$0xff]  ;;  %v3699_v48 = vld [vmem:[#allocation3 + $0x4] ss:$100 sps:$4 sm:$0xff]   ;;  %v3721_v5 = vld [vmem:[%s3969_s5 + $0x288] sm:$0xff]  }
  0x23   : > { %s3691_s23 = sor.u32 240, %s3989_s22  ;;  %v3084_v29 = vcombine.high %v3693_v10, %v1159_v27  ;;  %v3083_v30 = vcombine.low %v3693_v10, %v1159_v27  ;;  %v4032_v59 = vld [vmem:[%s3969_s5 + $0x1c0] sm:$0xff]   ;;  %3449 = vst [vmem:[#allocation3 + $0x168] sm:$0xff] %v3721_v5   ;;  %v4048_v10 = vld [vmem:[%s3969_s5 + $0x38] sm:$0xff]   ;;  %v3728_v25 = vld [vmem:[%s3969_s5 + $0x290] sm:$0xff]  }
  0x24   : > { %v1459_v23 = vand.u32 %v3109_v19, %v3979_v12  ;;  %v1456_v24 = vand.u32 %v3108_v20, %v3979_v12  ;;  %v3692_v26 = vld [vmem:[%s3969_s5 + $0x1e8] ss:$100 sps:$4 sm:%s3691_s23]   ;;  %v3698_v28 = vld [vmem:[%s3969_s5 + $0x60] ss:$100 sps:$4 sm:%s3691_s23]   ;;  %v1187_v34 = vld [vmem:[#allocation3 + $0x144] sm:$0x33] }
  0x25   : > { %3409 = vst [vmem:[#allocation3 + $0x128] sm:$0xff] %v3692_v26   ;;  %3289 = vst [vmem:[#allocation3 + $0x60] sm:$0xff] %v3698_v28   ;;  %v3112_v36 = vcombine.low %v3703_v15, %v1187_v34  ;;  %v3113_v37 = vcombine.high %v3703_v15, %v1187_v34  ;;  %v1186_v45 = vld [vmem:[#allocation3 + $0x13c] sm:$0x33]  ;;  %v3720_v4 = vld [vmem:[%s3969_s5 + $0x280] sm:$0xff]  }
  0x26   : > { %1579 = vmatprep.subr.bf16.mxu1 %v1459_v23  ;;  %v1161_v49 = vld [vmem:[#allocation3 + $0x7c] sm:$0xff]  ;;  %v3111_v55 = vcombine.high %v3987_v21, %v1186_v45  ;;  %v3110_v60 = vcombine.low %v3987_v21, %v1186_v45  ;;  %v1160_v61 = vld [vmem:[#allocation3 + $0x74] sm:$0xff]  ;;  %v1188_v63 = vld [vmem:[#allocation3 + $0x14c] sm:$0x33]  ;;  %3444 = vst [vmem:[#allocation3 + $0x160] sm:$0xff] %v3720_v4  }
  0x27   : > { %1580 = vmatpush1.bf16.msra.mxu1 %v1456_v24  ;;  %v1471_v40 = vand.u32 %v3113_v37, %v3979_v12  ;;  %v1468_v41 = vand.u32 %v3112_v36, %v3979_v12  ;;  %v3087_v50 = vcombine.low %v3707_v22, %v1161_v49  ;;  %v3088_v51 = vcombine.high %v3707_v22, %v1161_v49  ;;  %v1189_v62 = vld [vmem:[#allocation3 + $0x154] sm:$0x33]  ;;  %v3724_v14 = vld [vmem:[%s3969_s5 + $0xf8] sm:$0xff]   ;;  %v4059_v19 = vld [vmem:[%s3969_s5 + $0x30] sm:$0xff]  }
  0x28   : > { %1581 = vmatprep.subr.bf16.mxu1 %v3084_v29  ;;  %v1465_v0 = vand.u32 %v3111_v55, %v3979_v12  ;;  %v3116_v2 = vcombine.low %v3711_v35, %v1189_v62  ;;  %v3117_v3 = vcombine.high %v3711_v35, %v1189_v62  ;;  %v3086_v11 = vcombine.high %v4000_v32, %v1160_v61  ;;  %v1163_v15 = vld [vmem:[#allocation3 + $0x8c] sm:$0xff]  ;;  %v1162_v22 = vld [vmem:[#allocation3 + $0x84] sm:$0xff]  ;;  %v4081_v36 = vld [vmem:[%s3969_s5 + $0x48] sm:$0xff]  }
  0x29   : > { %v3115_v13 = vcombine.high %v4013_v42, %v1188_v63  ;;  %v3725_v16 = vld [vmem:[%s3969_s5 + $0x100] sm:$0xff]   ;;  %v3091_v17 = vcombine.low %v4018_v43, %v1163_v15  ;;  %v3092_v18 = vcombine.high %v4018_v43, %v1163_v15  ;;  %3324 = vst [vmem:[#allocation3 + $0x98] sm:$0xff] %v3724_v14   ;;  %v3085_v20 = vcombine.low %v4000_v32, %v1160_v61  ;;  %v4065_v23 = vld [vmem:[%s3969_s5 + $0x1d0] sm:$0xff]   ;;  %v3729_v28 = vld [vmem:[%s3969_s5 + $0x298] sm:$0xff]  }
  0x2a   : > { %v1483_v6 = vand.u32 %v3117_v3, %v3979_v12  ;;  %v1480_v7 = vand.u32 %v3116_v2, %v3979_v12  ;;  %v3114_v21 = vcombine.low %v4013_v42, %v1188_v63  ;;  %3329 = vst [vmem:[#allocation3 + $0xa0] sm:$0xff] %v3725_v16   ;;  %3454 = vst [vmem:[#allocation3 + $0x170] sm:$0xff] %v3728_v25   ;;  %v4074_v32 = vld [vmem:[%s3969_s5 + $0x1c8] sm:$0xff]   ;;  %v3733_v45 = vld [vmem:[%s3969_s5 + $0x110] sm:$0xff]  }
  0x2b   : > { %1582 = vmatpush1.bf16.msra.mxu1 %v3083_v30  ;;  %v1477_v24 = vand.u32 %v3115_v13, %v3979_v12  ;;  %v3090_v34 = vcombine.high %v4029_v57, %v1162_v22  ;;  %3459 = vst [vmem:[#allocation3 + $0x178] sm:$0xff] %v3729_v28   ;;  %v3732_v39 = vld [vmem:[%s3969_s5 + $0x108] sm:$0xff]   ;;  %3339 = vst [vmem:[#allocation3 + $0xb0] sm:$0xff] %v3733_v45   ;;  %v3739_v63 = vld [vmem:[%s3969_s5 + $0x118] sm:$0xff]  }
  0x2c   : > { %v1184_v44 = vld [vmem:[#allocation3 + $0x12c] sm:$0x33]  ;;  %1665 = vmatprep.subr.bf16.mxu1 %v1471_v40  ;;  %v3701_v58 = vld [vmem:[#allocation3] ss:$100 sps:$4 sm:$0xff]   ;;  %v1474_v29 = vand.u32 %v3114_v21, %v3979_v12  ;;  %3334 = vst [vmem:[#allocation3 + $0xa8] sm:$0xff] %v3732_v39   ;;  %3344 = vst [vmem:[#allocation3 + $0xb8] sm:$0xff] %v3739_v63  }
  0x2d   : > { %v3107_v46 = vcombine.high %v3975_v9, %v1184_v44  ;;  %v3106_v47 = vcombine.low %v3975_v9, %v1184_v44  ;;  %v1462_v9 = vand.u32 %v3110_v60, %v3979_v12  ;;  %v1190_v26 = vld [vmem:[#allocation3 + $0x15c] sm:$0x33]  ;;  %v1191_v27 = vld [vmem:[#allocation3 + $0x164] sm:$0x33]  ;;  %v3078_v52 = vld [vmem:[%s3969_s5 + $0x2a8] sm:$0xf] }
  0x2e   : > { %3132 = vmatmul.mubr.msk.bf16.vlgmr.msra.gmra.mxu1 %vm1441_vm2, %v4005_v33  ;;  %v3120_v30 = vcombine.low %v4032_v59, %v1191_v27  ;;  %v3121_v31 = vcombine.high %v4032_v59, %v1191_v27  ;;  %v3119_v35 = vcombine.high %v4044_v8, %v1190_v26  ;;  %v3118_v42 = vcombine.low %v4044_v8, %v1190_v26  ;;  %v3737_v59 = vld [vmem:[%s3969_s5 + $0x1d8] sm:$0xff]   ;;  %v3740_v4 = vld [vmem:[%s3969_s5 + $0x50] sm:$0xff]  }
  0x2f   : > { %1685 = vmatprep.mubr.bf16.mxu1 %v3895_v1  ;;  %1666 = vmatpush1.bf16.msra.mxu1 %v1468_v41  ;;  %v1453_v53 = vand.u32 %v3107_v46, %v3979_v12  ;;  %v1450_v54 = vand.u32 %v3106_v47, %v3979_v12  ;;  %v3089_v41 = vcombine.low %v4029_v57, %v1162_v22  ;;  %v4096_v47 = vld [vmem:[%s3969_s5 + $0x40] sm:$0xff]   ;;  %v3738_v60 = vld [vmem:[%s3969_s5 + $0x58] sm:$0xff]  }
  0x30   : > { %1667 = vmatprep.subr.bf16.mxu1 %v3088_v51  ;;  %v1495_v37 = vand.u32 %v3121_v31, %v3979_v12  ;;  %v1492_v38 = vand.u32 %v3120_v30, %v3979_v12  ;;  %v1164_v44 = vld [vmem:[#allocation3 + $0x94] sm:$0xff]  ;;  %v1489_v46 = vand.u32 %v3119_v35, %v3979_v12  ;;  %1119 = vst [vmem:[#allocation3 + $0x188] sm:$0xf] %v3078_v52  ;;  %v3898_v35 = vmov 0.0  }
  0x31   : > { %1536 = vmatprep.subr.bf16.mxu0 %v1453_v53  ;;  %v1165_v40 = vld [vmem:[#allocation3 + $0x9c] sm:$0xff]  ;;  %v1192_v49 = vld [vmem:[#allocation3 + $0x16c] sm:$0x33]  ;;  %v1486_v53 = vand.u32 %v3118_v42, %v3979_v12  ;;  %v3094_v55 = vcombine.high %v4059_v19, %v1164_v44  ;;  %v3093_v2 = vcombine.low %v4059_v19, %v1164_v44 }
  0x32   : > { %1537 = vmatpush1.bf16.msra.mxu0 %v1450_v54  ;;  %v3096_v43 = vcombine.high %v4048_v10, %v1165_v40  ;;  %v3736_v51 = vld [vmem:[%s3969_s5 + $0x2a0] sm:$0xff]   ;;  %v3122_v3 = vcombine.low %v4074_v32, %v1192_v49 }
  0x33   : > { %1668 = vmatpush1.bf16.msra.mxu1 %v3087_v50  ;;  %1538 = vmatprep.subr.bf16.mxu0 %v3699_v48  ;;  %v3095_v48 = vcombine.low %v4048_v10, %v1165_v40  ;;  %v3735_v50 = vld [vmem:[%s3969_s5 + $0x1e0] sm:$0xff]   ;;  %3464 = vst [vmem:[#allocation3 + $0x180] sm:$0xff] %v3736_v51  }
  0x34   : > { %1751 = vmatprep.subr.bf16.mxu1 %v1483_v6  ;;  %v1193_v54 = vld [vmem:[#allocation3 + $0x174] sm:$0x33]  ;;  %v1167_v6 = vld [vmem:[#allocation3 + $0xac] sm:$0xff]  ;;  %v1498_v13 = vand.u32 %v3122_v3, %v3979_v12 }
  0x35   : > { %v3124_v56 = vcombine.low %v4065_v23, %v1193_v54  ;;  %v3125_v57 = vcombine.high %v4065_v23, %v1193_v54  ;;  %v3100_v8 = vcombine.high %v4081_v36, %v1167_v6  ;;  %v3029_v10 = vld [vmem:[%s3969_s5 + $0x124] sm:%s3989_s22] }
  0x36   : > { %3134 = vmatmul.mubr.msk.bf16.vlgmr.msra.gmra.mxu1 %vm1441_vm2, %v4005_v33  ;;  %1539 = vmatpush1.bf16.msra.mxu0 %v3701_v58  ;;  %v3123_v58 = vcombine.high %v4074_v32, %v1192_v49  ;;  %665 = vst [vmem:[#allocation3 + $0xc4] sm:$0xf] %v3029_v10  ;;  %v1168_v27 = vld [vmem:[#allocation3 + $0xb4] sm:$0xff] }
  0x37   : > { %1771 = vmatprep.mubr.bf16.mxu1 %v3895_v1  ;;  %1622 = vmatprep.subr.bf16.mxu0 %v1465_v0  ;;  %v1507_v61 = vand.u32 %v3125_v57, %v3979_v12  ;;  %v1504_v62 = vand.u32 %v3124_v56, %v3979_v12  ;;  %v3028_v0 = vld [vmem:[%s3969_s5 + $0x120] sm:$0xf]  ;;  %v3102_v30 = vcombine.high %v3740_v4, %v1168_v27 }
  0x38   : > { %1752 = vmatpush1.bf16.msra.mxu1 %v1480_v7  ;;  %643 = vst [vmem:[#allocation3 + $0xc0] sm:$0xf] %v3028_v0  ;;  %v1501_v5 = vand.u32 %v3123_v58, %v3979_v12  ;;  %v3079_v7 = vld [vmem:[%s3969_s5 + $0x2ac] sm:%s3989_s22]  ;;  %v3101_v31 = vcombine.low %v3740_v4, %v1168_v27  ;;  %s4297_s5 = scalar_lea.vmem (%p3947_p4), %s4723_s3, %s3225_s29  }
  0x39   : > { %3131 = vmatmul.mubr.msk.bf16.vlgmr.msra.gmra.mxu0 %vm1441_vm2, %v4005_v33  ;;  %1753 = vmatprep.subr.bf16.mxu1 %v3092_v18  ;;  %1141 = vst [vmem:[#allocation3 + $0x18c] sm:$0xf] %v3079_v7 }
  0x3a   : > { %1623 = vmatpush1.bf16.msra.mxu0 %v1462_v9  ;;  %1642 = vmatprep.mubr.bf16.mxu0 %v3895_v1  ;;  %v1166_v9 = vld [vmem:[#allocation3 + $0xa4] sm:$0xff]  ;;  %v1194_v15 = vld [vmem:[#allocation3 + $0x17c] sm:$0x33] }
  0x3b   : > { %1624 = vmatprep.subr.bf16.mxu0 %v3086_v11  ;;  %v3099_v11 = vcombine.low %v4081_v36, %v1167_v6  ;;  %v1195_v14 = vld [vmem:[#allocation3 + $0x184] sm:$0x33]  ;;  %v3098_v16 = vcombine.high %v4096_v47, %v1166_v9  ;;  %v3127_v19 = vcombine.high %v3737_v59, %v1194_v15  ;;  %v3097_v22 = vcombine.low %v4096_v47, %v1166_v9 }
  0x3c   : > { %1754 = vmatpush1.bf16.msra.mxu1 %v3091_v17  ;;  %v3128_v17 = vcombine.low %v3735_v50, %v1195_v14  ;;  %v3129_v18 = vcombine.high %v3735_v50, %v1195_v14  ;;  %v3126_v23 = vcombine.low %v3737_v59, %v1194_v15 }
  0x3d   : > { %1837 = vmatprep.subr.bf16.mxu1 %v1495_v37  ;;  %v1513_v25 = vand.u32 %v3127_v19, %v3979_v12  ;;  %v3742_v36 = vld [vmem:[#allocation3 + $0x60] ss:$100 sps:$4 sm:$0xff]  }
  0x3e   : > { %1625 = vmatpush1.bf16.msra.mxu0 %v3085_v20  ;;  %v1519_v20 = vand.u32 %v3129_v18, %v3979_v12  ;;  %v1516_v21 = vand.u32 %v3128_v17, %v3979_v12 }
  0x3f   : > { %1708 = vmatprep.subr.bf16.mxu0 %v1477_v24  ;;  %3136 = vmatmul.mubr.msk.bf16.vlgmr.msra.gmra.mxu1 %vm1441_vm2, %v4005_v33  ;;  %v1169_v24 = vld [vmem:[#allocation3 + $0xbc] sm:$0xff] }
  0x40   : > { %1857 = vmatprep.mubr.bf16.mxu1 %v3895_v1  ;;  %1838 = vmatpush1.bf16.msra.mxu1 %v1492_v38  ;;  %v3104_v26 = vcombine.high %v3738_v60, %v1169_v24  ;;  %v3103_v28 = vcombine.low %v3738_v60, %v1169_v24  ;;  %v3741_v32 = vld [vmem:[#allocation3 + $0x128] ss:$100 sps:$4 sm:$0x3f]  }
  0x41   : > { %3133 = vmatmul.mubr.msk.bf16.vlgmr.msra.gmra.mxu0 %vm1441_vm2, %v4005_v33  ;;  %1839 = vmatprep.subr.bf16.mxu1 %v3096_v43 }
  0x42   : > { %1709 = vmatpush1.bf16.msra.mxu0 %v1474_v29  ;;  %1728 = vmatprep.mubr.bf16.mxu0 %v3895_v1  ;;  %v1510_v29 = vand.u32 %v3126_v23, %v3979_v12 }
  0x43   : > { %1710 = vmatprep.subr.bf16.mxu0 %v3090_v34  ;;  %v1522_v34 = vand.u32 %v3741_v32, %v3979_v12 }
  0x44   : > { %1840 = vmatpush1.bf16.msra.mxu1 %v3095_v48 }
  0x45   : > { %1923 = vmatprep.subr.bf16.mxu1 %v1507_v61 }
  0x46   : > { %1711 = vmatpush1.bf16.msra.mxu0 %v3089_v41 }
  0x47   : > { %1794 = vmatprep.subr.bf16.mxu0 %v1489_v46  ;;  %3138 = vmatmul.mubr.msk.bf16.vlgmr.msra.gmra.mxu1 %vm1441_vm2, %v4005_v33 }
  0x48   : > { %1943 = vmatprep.mubr.bf16.mxu1 %v3895_v1  ;;  %1924 = vmatpush1.bf16.msra.mxu1 %v1504_v62 }
  0x49   : > { %3135 = vmatmul.mubr.msk.bf16.vlgmr.msra.gmra.mxu0 %vm1441_vm2, %v4005_v33  ;;  %1925 = vmatprep.subr.bf16.mxu1 %v3100_v8 }
  0x4a   : > { %1795 = vmatpush1.bf16.msra.mxu0 %v1486_v53  ;;  %1814 = vmatprep.mubr.bf16.mxu0 %v3895_v1 }
  0x4b   : > { %1796 = vmatprep.subr.bf16.mxu0 %v3094_v55 }
  0x4c   : > { %1926 = vmatpush1.bf16.msra.mxu1 %v3099_v11 }
  0x4d   : > { %2009 = vmatprep.subr.bf16.mxu1 %v1519_v20 }
  0x4e   : > { %1797 = vmatpush1.bf16.msra.mxu0 %v3093_v2 }
  0x4f   : > { %1880 = vmatprep.subr.bf16.mxu0 %v1501_v5  ;;  %3140 = vmatmul.mubr.msk.bf16.vlgmr.msra.gmra.mxu1 %vm1441_vm2, %v4005_v33 }
  0x50   : > { %2010 = vmatpush1.bf16.msra.mxu1 %v1516_v21  ;;  %2029 = vmatprep.mubr.bf16.mxu1 %v3895_v1 }
  0x51   : > { %3137 = vmatmul.mubr.msk.bf16.vlgmr.msra.gmra.mxu0 %vm1441_vm2, %v4005_v33  ;;  %2011 = vmatprep.subr.bf16.mxu1 %v3104_v26 }
  0x52   : > { %1881 = vmatpush1.bf16.msra.mxu0 %v1498_v13  ;;  %1900 = vmatprep.mubr.bf16.mxu0 %v3895_v1 }
  0x53   : > { %1882 = vmatprep.subr.bf16.mxu0 %v3098_v16 }
  0x54   : > { %2012 = vmatpush1.bf16.msra.mxu1 %v3103_v28 }
  0x56   : > { %1883 = vmatpush1.bf16.msra.mxu0 %v3097_v22 }
  0x57   : > { %1966 = vmatprep.subr.bf16.mxu0 %v1513_v25  ;;  %3142 = vmatmul.mubr.msk.bf16.vlgmr.msra.gmra.mxu1 %vm1441_vm2, %v4005_v33 }
  0x59   : > { %3139 = vmatmul.mubr.msk.bf16.vlgmr.msra.gmra.mxu0 %vm1441_vm2, %v4005_v33 }
  0x5a   : > { %1967 = vmatpush1.bf16.msra.mxu0 %v1510_v29  ;;  %1986 = vmatprep.mubr.bf16.mxu0 %v3895_v1 }
  0x5b   : > { %1968 = vmatprep.subr.bf16.mxu0 %v3102_v30 }
  0x5e   : > { %1969 = vmatpush1.bf16.msra.mxu0 %v3101_v31 }
  0x5f   : > { %3515 = vmatprep.subr.bf16.mxu0 %v3898_v35 }
  0x61   : > { %3141 = vmatmul.mubr.msk.bf16.vlgmr.msra.gmra.mxu0 %vm1441_vm2, %v4005_v33 }
  0x62   : > { %3516 = vmatpush3.bf16.msra.mxu0 %v1522_v34  ;;  %3519 = vmatprep.mubr.msk.bf16.mxu0 %vm3899_vm3, %v3898_v35 }
  0x63   : > { %3517 = vmatprep.subr.bf16.mxu0 %v3898_v35 }
  0x66   : > { %3518 = vmatpush3.bf16.msra.mxu0 %v3742_v36 }
  0x69   : > { %3520 = vmatmul.mubr.msk.bf16.vlgmr.msra.gmra.mxu0 %vm1441_vm2, %v4005_v33 }
  0x8e   : > { %v4152_v1 = vpop.permute.xlu0 %1201  ;;  %v4154_v37 = vpop.permute.xlu1 %2132 }
  0x92   : > { %v4158_v40 = vpop.permute.xlu0 %1206  ;;  %v4162_v44 = vpop.permute.xlu1 %2136 }
  0xee   : > { %v1601_v12 = vpop.f32.mrf.mxu1 }
  0xef   : > { %v1602_v38 = vadd.f32 %v1601_v12, %v4152_v1 }
  0xf0   : > { %v1603_v39 = vpop.f32.mrf.mxu1 }
  0xf1   : > { %vm2083_vm4 = vcmp.ge.f32.partialorder %v1602_v38, 0.0  ;;  %v1604_v41 = vadd.f32 %v1603_v39, %v4152_v1  ;;  %v2141_v42 = vmul.f32 %v4154_v37, %v1602_v38 }
  0xf2   : > { %v1605_v43 = vpop.f32.mrf.mxu1 }
  0xf3   : > { %vm2084_vm5 = vcmp.ge.f32.partialorder %v1604_v41, 0.0  ;;  %v2142_v33 = vmul.f32 %v4154_v37, %v1604_v41  ;;  %v2191_v45 = vsel %vm2083_vm4, %v1602_v38, %v2141_v42  ;;  %v1606_v46 = vadd.f32 %v1605_v43, %v4158_v40 }
  0xf4   : > { %v1607_v47 = vpop.f32.mrf.mxu1 }
  0xf5   : > { %v2192_v48 = vsel %vm2084_vm5, %v1604_v41, %v2142_v33  ;;  %vm2108_vm6 = vcmp.ge.f32.partialorder %v1606_v46, 0.0  ;;  %v1608_v49 = vadd.f32 %v1607_v47, %v4158_v40  ;;  %v2166_v50 = vmul.f32 %v4162_v44, %v1606_v46 }
  0xf6   : > { %v3200_v51 = vpack.c.bf16 %v2192_v48, %v2191_v45  ;;  %v1687_v54 = vpop.f32.mrf.mxu1 }
  0xf7   : > { %vm2109_vm7 = vcmp.ge.f32.partialorder %v1608_v49, 0.0  ;;  %v2167_v52 = vmul.f32 %v4162_v44, %v1608_v49  ;;  %v2216_v53 = vsel %vm2108_vm6, %v1606_v46, %v2166_v50  ;;  %v1688_v55 = vadd.f32 %v1687_v54, %v4152_v1 }
  0xf8   : > { %2392 = vst [vmem:[%s4169_s12 + $0x8] sm:$0xff] %v3200_v51  ;;  %v1689_v57 = vpop.f32.mrf.mxu1 }
  0xf9   : > { %v2217_v56 = vsel %vm2109_vm7, %v1608_v49, %v2167_v52  ;;  %vm2087_vm8 = vcmp.ge.f32.partialorder %v1688_v55, 0.0  ;;  %v2145_v59 = vmul.f32 %v4154_v37, %v1688_v55  ;;  %v1690_v60 = vadd.f32 %v1689_v57, %v4152_v1  ;;  %v1558_v62 = vpop.f32.mrf.mxu0 }
  0xfa   : > { %v3213_v58 = vpack.c.bf16 %v2217_v56, %v2216_v53  ;;  %v1691_v61 = vpop.f32.mrf.mxu1  ;;  %v1559_v3 = vadd.f32 %v1558_v62, %v4152_v1 }
  0xfb   : > { %v2195_v63 = vsel %vm2087_vm8, %v1688_v55, %v2145_v59  ;;  %vm2088_vm9 = vcmp.ge.f32.partialorder %v1690_v60, 0.0  ;;  %v2146_v0 = vmul.f32 %v4154_v37, %v1690_v60  ;;  %v1692_v2 = vadd.f32 %v1691_v61, %v4158_v40  ;;  %v1560_v5 = vpop.f32.mrf.mxu0 }
  0xfc   : > { %2405 = vst [vmem:[%s4169_s12 + $0x6c] sm:$0x11] %v3213_v58  ;;  %v1693_v4 = vpop.f32.mrf.mxu1  ;;  %vm2081_vm11 = vcmp.ge.f32.partialorder %v1559_v3, 0.0  ;;  %v1561_v9 = vadd.f32 %v1560_v5, %v4152_v1  ;;  %v2139_v10 = vmul.f32 %v4154_v37, %v1559_v3 }
  0xfd   : > { %v2196_v6 = vsel %vm2088_vm9, %v1690_v60, %v2146_v0  ;;  %vm2112_vm10 = vcmp.ge.f32.partialorder %v1692_v2, 0.0  ;;  %v2170_v7 = vmul.f32 %v4162_v44, %v1692_v2  ;;  %v1694_v8 = vadd.f32 %v1693_v4, %v4158_v40  ;;  %v1562_v13 = vpop.f32.mrf.mxu0 }
  0xfe   : > { %v3202_v11 = vpack.c.bf16 %v2196_v6, %v2195_v63  ;;  %vm2082_vm13 = vcmp.ge.f32.partialorder %v1561_v9, 0.0  ;;  %v2140_v15 = vmul.f32 %v4154_v37, %v1561_v9  ;;  %v1563_v16 = vadd.f32 %v1562_v13, %v4158_v40 }
  0xff   : > { %vm2113_vm12 = vcmp.ge.f32.partialorder %v1694_v8, 0.0  ;;  %v2171_v14 = vmul.f32 %v4162_v44, %v1694_v8  ;;  %v2220_v17 = vsel %vm2112_vm10, %v1692_v2, %v2170_v7  ;;  %v2189_v18 = vsel %vm2081_vm11, %v1559_v3, %v2139_v10  ;;  %v1564_v19 = vpop.f32.mrf.mxu0  ;;  %v1773_v21 = vpop.f32.mrf.mxu1 }
 0x100   : > { %2394 = vst [vmem:[%s4169_s12 + $0x18] sm:$0xff] %v3202_v11  ;;  %v2190_v22 = vsel %vm2082_vm13, %v1561_v9, %v2140_v15  ;;  %vm2106_vm14 = vcmp.ge.f32.partialorder %v1563_v16, 0.0  ;;  %v1565_v23 = vadd.f32 %v1564_v19, %v4158_v40  ;;  %v2164_v24 = vmul.f32 %v4162_v44, %v1563_v16 }
 0x101   : > { %v2221_v20 = vsel %vm2113_vm12, %v1694_v8, %v2171_v14  ;;  %v3199_v25 = vpack.c.bf16 %v2190_v22, %v2189_v18  ;;  %v1644_v26 = vpop.f32.mrf.mxu0  ;;  %v1774_v28 = vadd.f32 %v1773_v21, %v4152_v1  ;;  %v1775_v29 = vpop.f32.mrf.mxu1 }
 0x102   : > { %v3215_v27 = vpack.c.bf16 %v2221_v20, %v2220_v17  ;;  %vm2107_vm15 = vcmp.ge.f32.partialorder %v1565_v23, 0.0  ;;  %v2165_v30 = vmul.f32 %v4162_v44, %v1565_v23  ;;  %v1645_v31 = vadd.f32 %v1644_v26, %v4152_v1 }
 0x103   : > { %2391 = vst [vmem:[%s4169_s12] sm:$0xff] %v3199_v25  ;;  %v2214_v32 = vsel %vm2106_vm14, %v1563_v16, %v2164_v24  ;;  %v1646_v34 = vpop.f32.mrf.mxu0  ;;  %vm2091_vm0 = vcmp.ge.f32.partialorder %v1774_v28, 0.0  ;;  %v2149_v35 = vmul.f32 %v4154_v37, %v1774_v28  ;;  %v1776_v36 = vadd.f32 %v1775_v29, %v4152_v1  ;;  %v1777_v12 = vpop.f32.mrf.mxu1 }
 0x104   : > { %2407 = vst [vmem:[%s4169_s12 + $0x7c] sm:$0x11] %v3215_v27  ;;  %v2215_v38 = vsel %vm2107_vm15, %v1565_v23, %v2165_v30  ;;  %vm2085_vm1 = vcmp.ge.f32.partialorder %v1645_v31, 0.0  ;;  %v2143_v39 = vmul.f32 %v4154_v37, %v1645_v31  ;;  %v1647_v41 = vadd.f32 %v1646_v34, %v4152_v1 }
 0x105   : > { %v3212_v42 = vpack.c.bf16 %v2215_v38, %v2214_v32  ;;  %v1648_v43 = vpop.f32.mrf.mxu0  ;;  %vm2092_vm2 = vcmp.ge.f32.partialorder %v1776_v36, 0.0  ;;  %v2150_v33 = vmul.f32 %v4154_v37, %v1776_v36  ;;  %v1779_v45 = vpop.f32.mrf.mxu1  ;;  %v2199_v48 = vsel %vm2091_vm0, %v1774_v28, %v2149_v35 }
 0x106   : > { %vm2086_vm3 = vcmp.ge.f32.partialorder %v1647_v41, 0.0  ;;  %v2144_v46 = vmul.f32 %v4154_v37, %v1647_v41  ;;  %v1649_v47 = vadd.f32 %v1648_v43, %v4158_v40  ;;  %v2193_v49 = vsel %vm2085_vm1, %v1645_v31, %v2143_v39 }
 0x107   : > { %2404 = vst [vmem:[%s4169_s12 + $0x64] sm:$0x11] %v3212_v42  ;;  %v1650_v50 = vpop.f32.mrf.mxu0  ;;  %v2200_v51 = vsel %vm2092_vm2, %v1776_v36, %v2150_v33  ;;  %v1778_v52 = vadd.f32 %v1777_v12, %v4158_v40  ;;  %v1780_v53 = vadd.f32 %v1779_v45, %v4158_v40  ;;  %v1859_v4 = vpop.f32.mrf.mxu1 }
 0x108   : > { %v2194_v54 = vsel %vm2086_vm3, %v1647_v41, %v2144_v46  ;;  %vm2110_vm4 = vcmp.ge.f32.partialorder %v1649_v47, 0.0  ;;  %v2168_v55 = vmul.f32 %v4162_v44, %v1649_v47  ;;  %v1651_v56 = vadd.f32 %v1650_v50, %v4158_v40 }
 0x109   : > { %v3201_v57 = vpack.c.bf16 %v2194_v54, %v2193_v49  ;;  %v1730_v58 = vpop.f32.mrf.mxu0  ;;  %v3204_v59 = vpack.c.bf16 %v2200_v51, %v2199_v48  ;;  %vm2116_vm5 = vcmp.ge.f32.partialorder %v1778_v52, 0.0  ;;  %v2174_v60 = vmul.f32 %v4162_v44, %v1778_v52  ;;  %v1861_v13 = vpop.f32.mrf.mxu1 }
 0x10a   : > { %vm2111_vm6 = vcmp.ge.f32.partialorder %v1651_v56, 0.0  ;;  %v2169_v61 = vmul.f32 %v4162_v44, %v1651_v56  ;;  %v1731_v62 = vadd.f32 %v1730_v58, %v4152_v1  ;;  %v2218_v63 = vsel %vm2110_vm4, %v1649_v47, %v2168_v55 }
 0x10b   : > { %2393 = vst [vmem:[%s4169_s12 + $0x10] sm:$0xff] %v3201_v57  ;;  %2396 = vst [vmem:[%s4169_s12 + $0x28] sm:$0xff] %v3204_v59  ;;  %v1732_v0 = vpop.f32.mrf.mxu0  ;;  %v2224_v2 = vsel %vm2116_vm5, %v1778_v52, %v2174_v60  ;;  %vm2117_vm7 = vcmp.ge.f32.partialorder %v1780_v53, 0.0  ;;  %v2175_v3 = vmul.f32 %v4162_v44, %v1780_v53  ;;  %v1860_v11 = vadd.f32 %v1859_v4, %v4152_v1  ;;  %v1863_v21 = vpop.f32.mrf.mxu1 }
 0x10c   : > { %v2219_v5 = vsel %vm2111_vm6, %v1651_v56, %v2169_v61  ;;  %vm2089_vm8 = vcmp.ge.f32.partialorder %v1731_v62, 0.0  ;;  %v2147_v6 = vmul.f32 %v4154_v37, %v1731_v62  ;;  %v1733_v7 = vadd.f32 %v1732_v0, %v4152_v1 }
 0x10d   : > { %v3214_v8 = vpack.c.bf16 %v2219_v5, %v2218_v63  ;;  %v1734_v9 = vpop.f32.mrf.mxu0  ;;  %v2225_v10 = vsel %vm2117_vm7, %v1780_v53, %v2175_v3  ;;  %vm2095_vm10 = vcmp.ge.f32.partialorder %v1860_v11, 0.0  ;;  %v2153_v19 = vmul.f32 %v4154_v37, %v1860_v11  ;;  %v1865_v29 = vpop.f32.mrf.mxu1 }
 0x10e   : > { %v2197_v14 = vsel %vm2089_vm8, %v1731_v62, %v2147_v6  ;;  %vm2090_vm9 = vcmp.ge.f32.partialorder %v1733_v7, 0.0  ;;  %v2148_v15 = vmul.f32 %v4154_v37, %v1733_v7  ;;  %v1735_v16 = vadd.f32 %v1734_v9, %v4158_v40 }
 0x10f   : > { %2406 = vst [vmem:[%s4169_s12 + $0x74] sm:$0x11] %v3214_v8  ;;  %v3217_v17 = vpack.c.bf16 %v2225_v10, %v2224_v2  ;;  %v1736_v18 = vpop.f32.mrf.mxu0  ;;  %v1862_v20 = vadd.f32 %v1861_v13, %v4152_v1  ;;  %v2203_v26 = vsel %vm2095_vm10, %v1860_v11, %v2153_v19  ;;  %v1864_v36 = vadd.f32 %v1863_v21, %v4158_v40  ;;  %v1945_v42 = vpop.f32.mrf.mxu1 }
 0x110   : > { %v2198_v22 = vsel %vm2090_vm9, %v1733_v7, %v2148_v15  ;;  %vm2114_vm11 = vcmp.ge.f32.partialorder %v1735_v16, 0.0  ;;  %v2172_v23 = vmul.f32 %v4162_v44, %v1735_v16  ;;  %v1737_v24 = vadd.f32 %v1736_v18, %v4158_v40 }
 0x111   : > { %v3203_v25 = vpack.c.bf16 %v2198_v22, %v2197_v14  ;;  %2409 = vst [vmem:[%s4169_s12 + $0x8c] sm:$0x11] %v3217_v17  ;;  %v1816_v27 = vpop.f32.mrf.mxu0  ;;  %vm2096_vm12 = vcmp.ge.f32.partialorder %v1862_v20, 0.0  ;;  %v2154_v28 = vmul.f32 %v4154_v37, %v1862_v20  ;;  %v1866_v12 = vadd.f32 %v1865_v29, %v4158_v40  ;;  %v1947_v50 = vpop.f32.mrf.mxu1 }
 0x112   : > { %vm2115_vm13 = vcmp.ge.f32.partialorder %v1737_v24, 0.0  ;;  %v2173_v30 = vmul.f32 %v4162_v44, %v1737_v24  ;;  %v1817_v31 = vadd.f32 %v1816_v27, %v4152_v1  ;;  %v2222_v32 = vsel %vm2114_vm11, %v1735_v16, %v2172_v23 }
 0x113   : > { %2395 = vst [vmem:[%s4169_s12 + $0x20] sm:$0xff] %v3203_v25  ;;  %v2204_v34 = vsel %vm2096_vm12, %v1862_v20, %v2154_v28  ;;  %v1818_v35 = vpop.f32.mrf.mxu0  ;;  %vm2120_vm15 = vcmp.ge.f32.partialorder %v1864_v36, 0.0  ;;  %v2178_v45 = vmul.f32 %v4162_v44, %v1864_v36  ;;  %vm2121_vm0 = vcmp.ge.f32.partialorder %v1866_v12, 0.0  ;;  %v1949_v58 = vpop.f32.mrf.mxu1 }
 0x114   : > { %v2223_v38 = vsel %vm2115_vm13, %v1737_v24, %v2173_v30  ;;  %vm2093_vm14 = vcmp.ge.f32.partialorder %v1817_v31, 0.0  ;;  %v2151_v39 = vmul.f32 %v4154_v37, %v1817_v31  ;;  %v3206_v41 = vpack.c.bf16 %v2204_v34, %v2203_v26 }
 0x115   : > { %v3216_v43 = vpack.c.bf16 %v2223_v38, %v2222_v32  ;;  %v1819_v33 = vadd.f32 %v1818_v35, %v4152_v1  ;;  %v1820_v46 = vpop.f32.mrf.mxu0  ;;  %v2179_v49 = vmul.f32 %v4162_v44, %v1866_v12  ;;  %v2228_v52 = vsel %vm2120_vm15, %v1864_v36, %v2178_v45  ;;  %v1951_v2 = vpop.f32.mrf.mxu1 }
 0x116   : > { %v2201_v47 = vsel %vm2093_vm14, %v1817_v31, %v2151_v39  ;;  %2398 = vst [vmem:[%s4169_s12 + $0x38] sm:$0xff] %v3206_v41  ;;  %v1821_v48 = vadd.f32 %v1820_v46, %v4158_v40  ;;  %v1946_v54 = vadd.f32 %v1945_v42, %v4152_v1  ;;  %v1948_v5 = vadd.f32 %v1947_v50, %v4152_v1 }
 0x117   : > { %2408 = vst [vmem:[%s4169_s12 + $0x84] sm:$0x11] %v3216_v43  ;;  %vm2094_vm1 = vcmp.ge.f32.partialorder %v1819_v33, 0.0  ;;  %v2152_v51 = vmul.f32 %v4154_v37, %v1819_v33  ;;  %v1822_v53 = vpop.f32.mrf.mxu0  ;;  %v2229_v56 = vsel %vm2121_vm0, %v1866_v12, %v2179_v49  ;;  %v1950_v7 = vadd.f32 %v1949_v58, %v4158_v40  ;;  %v2031_v13 = vpop.f32.mrf.mxu1 }
 0x118   : > { %vm2118_vm2 = vcmp.ge.f32.partialorder %v1821_v48, 0.0  ;;  %v2176_v55 = vmul.f32 %v4162_v44, %v1821_v48  ;;  %v1823_v57 = vadd.f32 %v1822_v53, %v4158_v40  ;;  %v3219_v60 = vpack.c.bf16 %v2229_v56, %v2228_v52 }
 0x119   : > { %v2202_v59 = vsel %vm2094_vm1, %v1819_v33, %v2152_v51  ;;  %vm2099_vm3 = vcmp.ge.f32.partialorder %v1946_v54, 0.0  ;;  %v2157_v61 = vmul.f32 %v4154_v37, %v1946_v54  ;;  %v1902_v62 = vpop.f32.mrf.mxu0  ;;  %v1952_v11 = vadd.f32 %v1951_v2, %v4158_v40  ;;  %v2033_v19 = vpop.f32.mrf.mxu1 }
 0x11a   : > { %v3205_v63 = vpack.c.bf16 %v2202_v59, %v2201_v47  ;;  %vm2119_vm4 = vcmp.ge.f32.partialorder %v1823_v57, 0.0  ;;  %v2177_v0 = vmul.f32 %v4162_v44, %v1823_v57  ;;  %v2226_v3 = vsel %vm2118_vm2, %v1821_v48, %v2176_v55  ;;  %2411 = vst [vmem:[%s4169_s12 + $0x9c] sm:$0x11] %v3219_v60 }
 0x11b   : > { %v1903_v4 = vadd.f32 %v1902_v62, %v4152_v1  ;;  %v1904_v6 = vpop.f32.mrf.mxu0  ;;  %v2207_v9 = vsel %vm2099_vm3, %v1946_v54, %v2157_v61  ;;  %vm2100_vm6 = vcmp.ge.f32.partialorder %v1948_v5, 0.0  ;;  %v2158_v17 = vmul.f32 %v4154_v37, %v1948_v5  ;;  %v2035_v32 = vpop.f32.mrf.mxu1 }
 0x11c   : > { %2397 = vst [vmem:[%s4169_s12 + $0x30] sm:$0xff] %v3205_v63  ;;  %v2227_v8 = vsel %vm2119_vm4, %v1823_v57, %v2177_v0  ;;  %v1905_v10 = vadd.f32 %v1904_v6, %v4152_v1  ;;  %vm2124_vm8 = vcmp.ge.f32.partialorder %v1950_v7, 0.0  ;;  %v2182_v21 = vmul.f32 %v4162_v44, %v1950_v7 }
 0x11d   : > { %v3218_v14 = vpack.c.bf16 %v2227_v8, %v2226_v3  ;;  %vm2097_vm5 = vcmp.ge.f32.partialorder %v1903_v4, 0.0  ;;  %v2155_v15 = vmul.f32 %v4154_v37, %v1903_v4  ;;  %v1906_v16 = vpop.f32.mrf.mxu0  ;;  %vm2125_vm9 = vcmp.ge.f32.partialorder %v1952_v11, 0.0  ;;  %v2037_v50 = vpop.f32.mrf.mxu1 }
 0x11e   : > { %vm2098_vm7 = vcmp.ge.f32.partialorder %v1905_v10, 0.0  ;;  %v2156_v18 = vmul.f32 %v4154_v37, %v1905_v10  ;;  %v1907_v22 = vadd.f32 %v1906_v16, %v4158_v40  ;;  %v2208_v24 = vsel %vm2100_vm6, %v1948_v5, %v2158_v17 }
 0x11f   : > { %2410 = vst [vmem:[%s4169_s12 + $0x94] sm:$0x11] %v3218_v14  ;;  %v2205_v20 = vsel %vm2097_vm5, %v1903_v4, %v2155_v15  ;;  %v1908_v23 = vpop.f32.mrf.mxu0  ;;  %v2183_v26 = vmul.f32 %v4162_v44, %v1952_v11  ;;  %v3208_v28 = vpack.c.bf16 %v2208_v24, %v2207_v9  ;;  %v2232_v30 = vsel %vm2124_vm8, %v1950_v7, %v2182_v21 }
 0x120   : > { %v2206_v25 = vsel %vm2098_vm7, %v1905_v10, %v2156_v18  ;;  %v1909_v27 = vadd.f32 %v1908_v23, %v4158_v40  ;;  %vm2122_vm10 = vcmp.ge.f32.partialorder %v1907_v22, 0.0  ;;  %v2180_v34 = vmul.f32 %v4162_v44, %v1907_v22 }
 0x121   : > { %v3207_v29 = vpack.c.bf16 %v2206_v25, %v2205_v20  ;;  %v1988_v31 = vpop.f32.mrf.mxu0  ;;  %v2233_v35 = vsel %vm2125_vm9, %v1952_v11, %v2183_v26  ;;  %2400 = vst [vmem:[%s4169_s12 + $0x48] sm:$0xff] %v3208_v28  ;;  %v2032_v38 = vadd.f32 %v2031_v13, %v4152_v1  ;;  %v2034_v41 = vadd.f32 %v2033_v19, %v4152_v1 }
 0x122   : > { %vm2123_vm11 = vcmp.ge.f32.partialorder %v1909_v27, 0.0  ;;  %v2181_v36 = vmul.f32 %v4162_v44, %v1909_v27  ;;  %v3221_v12 = vpack.c.bf16 %v2233_v35, %v2232_v30  ;;  %v1989_v39 = vadd.f32 %v1988_v31, %v4152_v1 }
 0x123   : > { %2399 = vst [vmem:[%s4169_s12 + $0x40] sm:$0xff] %v3207_v29  ;;  %v1990_v42 = vpop.f32.mrf.mxu0  ;;  %v2230_v43 = vsel %vm2122_vm10, %v1907_v22, %v2180_v34  ;;  %v2036_v46 = vadd.f32 %v2035_v32, %v4158_v40  ;;  %vm2103_vm12 = vcmp.ge.f32.partialorder %v2032_v38, 0.0  ;;  %v2161_v48 = vmul.f32 %v4154_v37, %v2032_v38 }
 0x124   : > { %v2231_v33 = vsel %vm2123_vm11, %v1909_v27, %v2181_v36  ;;  %v1991_v45 = vadd.f32 %v1990_v42, %v4152_v1  ;;  %2413 = vst [vmem:[%s4169_s12 + $0xac] sm:$0x11] %v3221_v12  ;;  %vm2101_vm13 = vcmp.ge.f32.partialorder %v1989_v39, 0.0  ;;  %v2159_v51 = vmul.f32 %v4154_v37, %v1989_v39 }
 0x125   : > { %v3220_v47 = vpack.c.bf16 %v2231_v33, %v2230_v43  ;;  %v1992_v49 = vpop.f32.mrf.mxu0  ;;  %vm2104_vm14 = vcmp.ge.f32.partialorder %v2034_v41, 0.0  ;;  %v2162_v52 = vmul.f32 %v4154_v37, %v2034_v41  ;;  %v2211_v53 = vsel %vm2103_vm12, %v2032_v38, %v2161_v48 }
 0x126   : > { %vm2102_vm15 = vcmp.ge.f32.partialorder %v1991_v45, 0.0  ;;  %v2160_v54 = vmul.f32 %v4154_v37, %v1991_v45  ;;  %vm2128_vm0 = vcmp.ge.f32.partialorder %v2036_v46, 0.0  ;;  %v2186_v55 = vmul.f32 %v4162_v44, %v2036_v46 }
 0x127   : > { %2412 = vst [vmem:[%s4169_s12 + $0xa4] sm:$0x11] %v3220_v47  ;;  %v1994_v56 = vpop.f32.mrf.mxu0  ;;  %v2209_v57 = vsel %vm2101_vm13, %v1989_v39, %v2159_v51  ;;  %v2212_v58 = vsel %vm2104_vm14, %v2034_v41, %v2162_v52  ;;  %v1993_v59 = vadd.f32 %v1992_v49, %v4158_v40  ;;  %v2038_v60 = vadd.f32 %v2037_v50, %v4158_v40 }
 0x128   : > { %v3210_v61 = vpack.c.bf16 %v2212_v58, %v2211_v53  ;;  %v2210_v62 = vsel %vm2102_vm15, %v1991_v45, %v2160_v54  ;;  %v2236_v63 = vsel %vm2128_vm0, %v2036_v46, %v2186_v55  ;;  %v1995_v0 = vadd.f32 %v1994_v56, %v4158_v40 }
 0x129   : > { %v2074_v2 = vpop.f32.mrf.mxu0  ;;  %v3209_v3 = vpack.c.bf16 %v2210_v62, %v2209_v57  ;;  %vm2126_vm1 = vcmp.ge.f32.partialorder %v1993_v59, 0.0  ;;  %v2184_v4 = vmul.f32 %v4162_v44, %v1993_v59  ;;  %vm2129_vm2 = vcmp.ge.f32.partialorder %v2038_v60, 0.0 }
 0x12a   : > { %2402 = vst [vmem:[%s4169_s12 + $0x58] sm:$0xff] %v3210_v61  ;;  %v2187_v5 = vmul.f32 %v4162_v44, %v2038_v60  ;;  %vm2127_vm3 = vcmp.ge.f32.partialorder %v1995_v0, 0.0  ;;  %v2185_v6 = vmul.f32 %v4162_v44, %v1995_v0  ;;  %v2075_v7 = vadd.f32 %v2074_v2, %v4152_v1 }
 0x12b   : > { %v3521_v8 = vpop.f32.mrf.mxu0  ;;  %2401 = vst [vmem:[%s4169_s12 + $0x50] sm:$0xff] %v3209_v3  ;;  %v2234_v9 = vsel %vm2126_vm1, %v1993_v59, %v2184_v4 }
 0x12c   : > { %v2237_v10 = vsel %vm2129_vm2, %v2038_v60, %v2187_v5  ;;  %v2235_v11 = vsel %vm2127_vm3, %v1995_v0, %v2185_v6  ;;  %vm2105_vm4 = vcmp.ge.f32.partialorder %v2075_v7, 0.0  ;;  %v2163_v13 = vmul.f32 %v4154_v37, %v2075_v7 }
 0x12d   : > { %v2077_v14 = vpop.f32.mrf.mxu0  ;;  %v3223_v15 = vpack.c.bf16 %v2237_v10, %v2236_v63  ;;  %v3222_v16 = vpack.c.bf16 %v2235_v11, %v2234_v9 }
 0x12e   : > { %v2078_v17 = vadd.f32 %v2077_v14, %v4158_v40  ;;  %v2213_v18 = vsel %vm2105_vm4, %v2075_v7, %v2163_v13 }
 0x12f   : > { %v3522_v19 = vpop.f32.mrf.mxu0  ;;  %2415 = vst [vmem:[%s4169_s12 + $0xbc] sm:$0x11] %v3223_v15  ;;  %2414 = vst [vmem:[%s4169_s12 + $0xb4] sm:$0x11] %v3222_v16  ;;  %v3211_v1 = vpack.c.bf16 %v2213_v18, %v2213_v18 }
 0x130   : > { %vm2130_vm5 = vcmp.ge.f32.partialorder %v2078_v17, 0.0  ;;  %v2188_v20 = vmul.f32 %v4162_v44, %v2078_v17 }
 0x131   : > { %2403 = vst [vmem:[%s4169_s12 + $0x60] sm:$0xf] %v3211_v1  ;;  %2423 = sbr.rel (!%p3947_p4) target bundleno = 458 (0x1ca), region = 36 }
 0x132   : > { %v2238_v21 = vsel %vm2130_vm5, %v2078_v17, %v2188_v20 }
 0x133   : > { %v3224_v22 = vpack.c.bf16 %v2238_v21, %v2238_v21 }
 0x135   : > { %2416 = vst [vmem:[%s4169_s12 + $0xc4] sm:$0x1] %v3224_v22 }
 0x136   : > { %s4739_s28 = smov (!%p2426_p9, %s2425_s28), 25 }
 0x137   : > { %s3170_s6 = sshll.u32 %s4739_s28, 7  ;;  %s4299_s7 = sshll.u32 %s4739_s28, 2 }
 0x138   : > { %p3174_p10 = scmp.eq.s32.totalorder %s3170_s6, 0 }
 0x139   : > { %p2436_p11 = scmp.lt.u32.totalorder (!%p3174_p10), %s4299_s7, 8 }
 0x13a   : > { %2435 = sbr.rel (%p3174_p10) target bundleno = 458 (0x1ca), region = 40 }
 0x13f   : > { %2439 = sbr.rel (%p2436_p11) target bundleno = 448 (0x1c0), region = 44  ;;  %s4303_s20 = sand.u32 (!%p2436_p11), 7, %s4299_s7  }
 0x140   : > { %p2458_p12 = scmp.eq.s32.totalorder (!%p2436_p11), %s4303_s20, 0  ;;  %p3175_p13 = scmp.ne.s32.totalorder (!%p2436_p11), %s4303_s20, 0 }
 0x144   : > { %2461 = sbr.rel (%p3175_p13) target bundleno = 383 (0x17f), region = 59  ;;  %s2462_s15 = sshrl.u32 (!%p3175_p13), %s4299_s7, 3 }
 0x145   : > { %s4310_s21 = sshrl.u32 (!%p3175_p13), %s2462_s15, 5 }
 0x146   : > { %p3176_p0 = scmp.le.s32.totalorder (!%p3175_p13), %s4310_s21, 0 }
 0x149   : > { %2904 = sbr.rel (%p3176_p0) target bundleno = 367 (0x16f), region = 338  ;;  %s4725_s8 = smov (!%p3176_p0), %s4297_s5 }
 0x14a   : > { %s4726_s9 = smov (!%p3176_p0), %s4169_s12  ;;  %s4319_s10 = smov (!%p3176_p0), 0  }
 0x14b   : > { %s4321_s11 = smov (!%p3176_p0), 0  }
 0x14e LB: >> { %v2475_v37 = vld [vmem:[%s3837_s9] sm:$0xff]  ;;  %v2477_v40 = vld [vmem:[%s3837_s9 + $0x8] sm:$0xff]  ;;  %v2479_v44 = vld [vmem:[%s3837_s9 + $0x10] sm:$0xff]  ;;  %s2603_s14 = sadd.s32 1, %s3841_s10  ;;  %s2469_s11 = sadd.s32 1, %s3845_s11   ;;  %s3845_s11 = sphi %s4321_s11, %s2469_s11   ;;  %s3841_s10 = sphi %s4319_s10, %s4729_s10   ;;  %s3837_s9 = sphi %s4726_s9, %s4728_s9   ;;  %s3833_s8 = sphi %s4725_s8, %s4727_s8  }
 0x14f   : >> { %2476 = vst [vmem:[%s3833_s8] sm:$0xff] %v2475_v37  ;;  %2478 = vst [vmem:[%s3833_s8 + $0x8] sm:$0xff] %v2477_v40  ;;  %v2481_v23 = vld [vmem:[%s3837_s9 + $0x18] sm:$0xff]  ;;  %v2483_v24 = vld [vmem:[%s3837_s9 + $0x20] sm:$0xff]  ;;  %p2604_p1 = scmp.ge.s32.totalorder %s2603_s14, %s4310_s21  ;;  %p2468_p2 = scmp.ge.s32.totalorder %s2469_s11, %s4310_s21 }
 0x150   : >> { %2480 = vst [vmem:[%s3833_s8 + $0x10] sm:$0xff] %v2479_v44  ;;  %v2485_v25 = vld [vmem:[%s3837_s9 + $0x28] sm:$0xff]  ;;  %2482 = vst [vmem:[%s3833_s8 + $0x18] sm:$0xff] %v2481_v23  ;;  %v2487_v26 = vld [vmem:[%s3837_s9 + $0x30] sm:$0xff] }
 0x151   : >> { %2484 = vst [vmem:[%s3833_s8 + $0x20] sm:$0xff] %v2483_v24  ;;  %2486 = vst [vmem:[%s3833_s8 + $0x28] sm:$0xff] %v2485_v25  ;;  %v2489_v27 = vld [vmem:[%s3837_s9 + $0x38] sm:$0xff]  ;;  %v2491_v28 = vld [vmem:[%s3837_s9 + $0x40] sm:$0xff]  ;;  %s4741_s14 = smov (%p2604_p1, %s2603_s14), 0 }
 0x152   : >> { %2488 = vst [vmem:[%s3833_s8 + $0x30] sm:$0xff] %v2487_v26  ;;  %2490 = vst [vmem:[%s3833_s8 + $0x38] sm:$0xff] %v2489_v27  ;;  %v2493_v29 = vld [vmem:[%s3837_s9 + $0x48] sm:$0xff]  ;;  %v2495_v30 = vld [vmem:[%s3837_s9 + $0x50] sm:$0xff]  ;;  %s3177_s17 = sshll.u32 %s4741_s14, 8  ;;  %s4729_s10 = smov %s4741_s14 }
 0x153   : >> { %2492 = vst [vmem:[%s3833_s8 + $0x40] sm:$0xff] %v2491_v28  ;;  %v2497_v31 = vld [vmem:[%s3837_s9 + $0x58] sm:$0xff]  ;;  %2494 = vst [vmem:[%s3833_s8 + $0x48] sm:$0xff] %v2493_v29  ;;  %v2499_v32 = vld [vmem:[%s3837_s9 + $0x60] sm:$0xff]  ;;  %s4377_s18 = scalar_lea.vmem %s4169_s12, %s3177_s17 [#allocation2]   ;;  %s4380_s22 = scalar_lea.vmem %s4297_s5, %s3177_s17  }
 0x154   : >> { %2496 = vst [vmem:[%s3833_s8 + $0x50] sm:$0xff] %v2495_v30  ;;  %2498 = vst [vmem:[%s3833_s8 + $0x58] sm:$0xff] %v2497_v31  ;;  %v2501_v34 = vld [vmem:[%s3837_s9 + $0x68] sm:$0xff]  ;;  %v2503_v35 = vld [vmem:[%s3837_s9 + $0x70] sm:$0xff] }
 0x155   : >> { %2500 = vst [vmem:[%s3833_s8 + $0x60] sm:$0xff] %v2499_v32  ;;  %2502 = vst [vmem:[%s3833_s8 + $0x68] sm:$0xff] %v2501_v34  ;;  %v2505_v36 = vld [vmem:[%s3837_s9 + $0x78] sm:$0xff]  ;;  %v2507_v12 = vld [vmem:[%s3837_s9 + $0x80] sm:$0xff] }
 0x156   : >> { %2504 = vst [vmem:[%s3833_s8 + $0x70] sm:$0xff] %v2503_v35  ;;  %v2509_v38 = vld [vmem:[%s3837_s9 + $0x88] sm:$0xff]  ;;  %2506 = vst [vmem:[%s3833_s8 + $0x78] sm:$0xff] %v2505_v36  ;;  %v2511_v39 = vld [vmem:[%s3837_s9 + $0x90] sm:$0xff] }
 0x157   : >> { %2508 = vst [vmem:[%s3833_s8 + $0x80] sm:$0xff] %v2507_v12  ;;  %2510 = vst [vmem:[%s3833_s8 + $0x88] sm:$0xff] %v2509_v38  ;;  %v2513_v41 = vld [vmem:[%s3837_s9 + $0x98] sm:$0xff]  ;;  %v2515_v42 = vld [vmem:[%s3837_s9 + $0xa0] sm:$0xff] }
 0x158   : >> { %2512 = vst [vmem:[%s3833_s8 + $0x90] sm:$0xff] %v2511_v39  ;;  %2514 = vst [vmem:[%s3833_s8 + $0x98] sm:$0xff] %v2513_v41  ;;  %v2517_v43 = vld [vmem:[%s3837_s9 + $0xa8] sm:$0xff]  ;;  %v2519_v33 = vld [vmem:[%s3837_s9 + $0xb0] sm:$0xff] }
 0x159   : >> { %2516 = vst [vmem:[%s3833_s8 + $0xa0] sm:$0xff] %v2515_v42  ;;  %v2521_v45 = vld [vmem:[%s3837_s9 + $0xb8] sm:$0xff]  ;;  %2518 = vst [vmem:[%s3833_s8 + $0xa8] sm:$0xff] %v2517_v43  ;;  %v2523_v46 = vld [vmem:[%s3837_s9 + $0xc0] sm:$0xff] }
 0x15a   : >> { %2520 = vst [vmem:[%s3833_s8 + $0xb0] sm:$0xff] %v2519_v33  ;;  %2522 = vst [vmem:[%s3833_s8 + $0xb8] sm:$0xff] %v2521_v45  ;;  %v2525_v47 = vld [vmem:[%s3837_s9 + $0xc8] sm:$0xff]  ;;  %v2527_v48 = vld [vmem:[%s3837_s9 + $0xd0] sm:$0xff] }
 0x15b   : >> { %2524 = vst [vmem:[%s3833_s8 + $0xc0] sm:$0xff] %v2523_v46  ;;  %2526 = vst [vmem:[%s3833_s8 + $0xc8] sm:$0xff] %v2525_v47  ;;  %v2529_v49 = vld [vmem:[%s3837_s9 + $0xd8] sm:$0xff]  ;;  %v2531_v50 = vld [vmem:[%s3837_s9 + $0xe0] sm:$0xff] }
 0x15c   : >> { %2528 = vst [vmem:[%s3833_s8 + $0xd0] sm:$0xff] %v2527_v48  ;;  %v2533_v51 = vld [vmem:[%s3837_s9 + $0xe8] sm:$0xff]  ;;  %2530 = vst [vmem:[%s3833_s8 + $0xd8] sm:$0xff] %v2529_v49  ;;  %v2535_v52 = vld [vmem:[%s3837_s9 + $0xf0] sm:$0xff] }
 0x15d   : >> { %2532 = vst [vmem:[%s3833_s8 + $0xe0] sm:$0xff] %v2531_v50  ;;  %2534 = vst [vmem:[%s3833_s8 + $0xe8] sm:$0xff] %v2533_v51  ;;  %v2537_v53 = vld [vmem:[%s3837_s9 + $0xf8] sm:$0xff]  ;;  %v2539_v54 = vld [vmem:[%s3837_s9 + $0x64] sm:$0xff] }
 0x15e   : >> { %2536 = vst [vmem:[%s3833_s8 + $0xf0] sm:$0xff] %v2535_v52  ;;  %2538 = vst [vmem:[%s3833_s8 + $0xf8] sm:$0xff] %v2537_v53  ;;  %v2541_v55 = vld [vmem:[%s3837_s9 + $0x6c] sm:$0xff]  ;;  %v2543_v56 = vld [vmem:[%s3837_s9 + $0x74] sm:$0xff] }
 0x15f   : >> { %2540 = vst [vmem:[%s3833_s8 + $0xc4] sm:$0xff] %v2539_v54  ;;  %v2545_v57 = vld [vmem:[%s3837_s9 + $0x7c] sm:$0xff]  ;;  %2542 = vst [vmem:[%s3833_s8 + $0xcc] sm:$0xff] %v2541_v55  ;;  %v2547_v58 = vld [vmem:[%s3837_s9 + $0x84] sm:$0xff] }
 0x160   : >> { %2544 = vst [vmem:[%s3833_s8 + $0xd4] sm:$0xff] %v2543_v56  ;;  %2546 = vst [vmem:[%s3833_s8 + $0xdc] sm:$0xff] %v2545_v57  ;;  %v2549_v59 = vld [vmem:[%s3837_s9 + $0x8c] sm:$0xff]  ;;  %v2551_v60 = vld [vmem:[%s3837_s9 + $0x94] sm:$0xff] }
 0x161   : >> { %2548 = vst [vmem:[%s3833_s8 + $0xe4] sm:$0xff] %v2547_v58  ;;  %2550 = vst [vmem:[%s3833_s8 + $0xec] sm:$0xff] %v2549_v59  ;;  %v2553_v61 = vld [vmem:[%s3837_s9 + $0x9c] sm:$0xff]  ;;  %v2555_v62 = vld [vmem:[%s3837_s9 + $0xa4] sm:$0xff] }
 0x162   : >> { %2552 = vst [vmem:[%s3833_s8 + $0xf4] sm:$0xff] %v2551_v60  ;;  %v2557_v63 = vld [vmem:[%s3837_s9 + $0xac] sm:$0xff]  ;;  %2554 = vst [vmem:[%s3833_s8 + $0xfc] sm:$0xff] %v2553_v61  ;;  %v2559_v0 = vld [vmem:[%s3837_s9 + $0xb4] sm:$0xff] }
 0x163   : >> { %2556 = vst [vmem:[%s3833_s8 + $0x104] sm:$0xff] %v2555_v62  ;;  %2558 = vst [vmem:[%s3833_s8 + $0x10c] sm:$0xff] %v2557_v63  ;;  %v2561_v2 = vld [vmem:[%s3837_s9 + $0xbc] sm:$0xff]  ;;  %v2563_v3 = vld [vmem:[%s3837_s9 + $0xc4] sm:$0xff] }
 0x164   : >> { %2560 = vst [vmem:[%s3833_s8 + $0x114] sm:$0xff] %v2559_v0  ;;  %2562 = vst [vmem:[%s3833_s8 + $0x11c] sm:$0xff] %v2561_v2  ;;  %v2565_v4 = vld [vmem:[%s3837_s9 + $0xcc] sm:$0xff]  ;;  %v2567_v5 = vld [vmem:[%s3837_s9 + $0xd4] sm:$0xff] }
 0x165   : >> { %2564 = vst [vmem:[%s3833_s8 + $0x124] sm:$0xff] %v2563_v3  ;;  %v2569_v6 = vld [vmem:[%s3837_s9 + $0xdc] sm:$0xff]  ;;  %2566 = vst [vmem:[%s3833_s8 + $0x12c] sm:$0xff] %v2565_v4  ;;  %v2571_v7 = vld [vmem:[%s3837_s9 + $0xe4] sm:$0xff] }
 0x166   : >> { %2568 = vst [vmem:[%s3833_s8 + $0x134] sm:$0xff] %v2567_v5  ;;  %2570 = vst [vmem:[%s3833_s8 + $0x13c] sm:$0xff] %v2569_v6  ;;  %v2573_v8 = vld [vmem:[%s3837_s9 + $0xec] sm:$0xff]  ;;  %v2575_v9 = vld [vmem:[%s3837_s9 + $0xf4] sm:$0xff] }
 0x167   : >> { %2572 = vst [vmem:[%s3833_s8 + $0x144] sm:$0xff] %v2571_v7  ;;  %2574 = vst [vmem:[%s3833_s8 + $0x14c] sm:$0xff] %v2573_v8  ;;  %v2577_v10 = vld [vmem:[%s3837_s9 + $0xfc] sm:$0xff]  ;;  %v2579_v11 = vld [vmem:[%s3837_s9 + $0x104] sm:$0xff] }
 0x168   : >> { %2576 = vst [vmem:[%s3833_s8 + $0x154] sm:$0xff] %v2575_v9  ;;  %v2581_v13 = vld [vmem:[%s3837_s9 + $0x10c] sm:$0xff]  ;;  %2578 = vst [vmem:[%s3833_s8 + $0x15c] sm:$0xff] %v2577_v10  ;;  %v2583_v14 = vld [vmem:[%s3837_s9 + $0x114] sm:$0xff] }
 0x169   : >> { %2580 = vst [vmem:[%s3833_s8 + $0x164] sm:$0xff] %v2579_v11  ;;  %2582 = vst [vmem:[%s3833_s8 + $0x16c] sm:$0xff] %v2581_v13  ;;  %v2585_v15 = vld [vmem:[%s3837_s9 + $0x11c] sm:$0xff]  ;;  %v2587_v16 = vld [vmem:[%s3837_s9 + $0x124] sm:$0xff] }
 0x16a   : >> { %2584 = vst [vmem:[%s3833_s8 + $0x174] sm:$0xff] %v2583_v14  ;;  %2586 = vst [vmem:[%s3833_s8 + $0x17c] sm:$0xff] %v2585_v15  ;;  %v2589_v17 = vld [vmem:[%s3837_s9 + $0x12c] sm:$0xff]  ;;  %v2591_v18 = vld [vmem:[%s3837_s9 + $0x134] sm:$0xff]  ;;  %2471 = sbr.rel (!%p2468_p2) target bundleno = 334 (0x14e), region = 344 }
 0x16b   : >> { %2588 = vst [vmem:[%s3833_s8 + $0x184] sm:$0xff] %v2587_v16  ;;  %v2593_v19 = vld [vmem:[%s3837_s9 + $0x13c] sm:$0xff]  ;;  %2590 = vst [vmem:[%s3833_s8 + $0x18c] sm:$0xff] %v2589_v17  ;;  %v2595_v1 = vld [vmem:[%s3837_s9 + $0x144] sm:$0xff] }
 0x16c   : >> { %2592 = vst [vmem:[%s3833_s8 + $0x194] sm:$0xff] %v2591_v18  ;;  %2594 = vst [vmem:[%s3833_s8 + $0x19c] sm:$0xff] %v2593_v19  ;;  %v2597_v20 = vld [vmem:[%s3837_s9 + $0x14c] sm:$0xff]  ;;  %v2599_v21 = vld [vmem:[%s3837_s9 + $0x154] sm:$0xff] }
 0x16d   : >> { %2596 = vst [vmem:[%s3833_s8 + $0x1a4] sm:$0xff] %v2595_v1  ;;  %2598 = vst [vmem:[%s3833_s8 + $0x1ac] sm:$0xff] %v2597_v20  ;;  %v2601_v22 = vld [vmem:[%s3837_s9 + $0x15c] sm:$0xff]  ;;  %s4728_s9 = smov %s4377_s18 }
 0x16e   : >> { %2600 = vst [vmem:[%s3833_s8 + $0x1b4] sm:$0xff] %v2599_v21  ;;  %2602 = vst [vmem:[%s3833_s8 + $0x1bc] sm:$0xff] %v2601_v22  ;;  %s4727_s8 = smov %s4380_s22 }
 0x16f PF: > { %s4486_s23 = sand.u32 31, %s2462_s15   ;;  %s3226_s24 = sshll.u32 %s4310_s21, 12 }
 0x170   : > { %s2614_s25 = sshra.s32 %s3226_s24, 4  ;;  %p3182_p3 = scmp.le.s32.totalorder %s4486_s23, 0 }
 0x171   : > { %s4490_s26 = scalar_lea.vmem %s4169_s12, %s2614_s25 [#allocation2]   ;;  %s2618_s27 = scalar_lea.vmem %s4297_s5, %s2614_s25  }
 0x172   : > { %2918 = sbr.rel (%p3182_p3) target bundleno = 383 (0x17f), region = 349  ;;  %s3847_s28 = smov (!%p3182_p3), %s2618_s27  }
 0x173   : > { %s3851_s29 = smov (!%p3182_p3), %s4490_s26   ;;  %s3855_s30 = smov (!%p3182_p3), 0  }
 0x174   : > { %s3859_s4 = smov (!%p3182_p3), 0  }
 0x177 LB: >> { %v2630_v37 = vld [vmem:[%s3853_s29] sm:$0xff]  ;;  %s2634_s6 = sadd.s32 1, %s3857_s30  ;;  %s2624_s4 = sadd.s32 1, %s3861_s4   ;;  %s3861_s4 = sphi %s3859_s4, %s2624_s4   ;;  %s3857_s30 = sphi %s3855_s30, %s3856_s30   ;;  %s3853_s29 = sphi %s3851_s29, %s2639_s29   ;;  %s3849_s28 = sphi %s3847_s28, %s2640_s28  }
 0x178   : >> { %v2632_v40 = vld [vmem:[%s3853_s29 + $0x64] sm:$0xff]  ;;  %2631 = vst [vmem:[%s3849_s28] sm:$0xff] %v2630_v37  ;;  %p2635_p4 = scmp.ge.s32.totalorder %s2634_s6, %s4486_s23  ;;  %p2623_p5 = scmp.ge.s32.totalorder %s2624_s4, %s4486_s23 }
 0x179   : >> { %2633 = vst [vmem:[%s3849_s28 + $0xc4] sm:$0xff] %v2632_v40 }
 0x17a   : >> { %s4743_s6 = smov (%p2635_p4, %s2634_s6), 0  ;;  %2626 = sbr.rel (!%p2623_p5) target bundleno = 375 (0x177), region = 355 }
 0x17b   : >> { %s3183_s15 = sshll.u32 %s4743_s6, 3  ;;  %s3856_s30 = smov %s4743_s6  }
 0x17c   : >> { %s2639_s29 = scalar_lea.vmem %s4490_s26, %s3183_s15 [#allocation2]   ;;  %s2640_s28 = scalar_lea.vmem %s2618_s27, %s3183_s15  }
 0x17f PF: > { %2643 = sbr.rel (%p2458_p12) target bundleno = 448 (0x1c0), region = 77  ;;  %s2645_s21 = ssub.s32 (!%p2458_p12), %s4299_s7, %s4303_s20 }
 0x180   : > { %s2649_s8 = sshrl.u32 (!%p2458_p12), %s4299_s7, 3  ;;  %s4504_s9 = scalar_lea.vmem (!%p2458_p12), %s4169_s12, %s2645_s21 [#allocation2] }
 0x181   : > { %s4507_s10 = scalar_lea.vmem (!%p2458_p12), %s4297_s5, %s2645_s21  ;;  %s4511_s11 = sshrl.u32 (!%p2458_p12), %s2649_s8, 5 }
 0x182   : > { %p3185_p6 = scmp.le.s32.totalorder (!%p2458_p12), %s4511_s11, 0 }
 0x184   : > { %2932 = sbr.rel (%p3185_p6) target bundleno = 426 (0x1aa), region = 360  ;;  %s4730_s14 = smov (!%p3185_p6), %s4297_s5 }
 0x185   : > { %s4731_s17 = smov (!%p3185_p6), %s4169_s12  ;;  %s4520_s18 = smov (!%p3185_p6), 0  }
 0x186   : > { %s4522_s22 = smov (!%p3185_p6), 0  }
 0x189 LB: >> { %v2662_v44 = vld [vmem:[%s3869_s17] sm:$0xff]  ;;  %v2664_v23 = vld [vmem:[%s3869_s17 + $0x8] sm:$0xff]  ;;  %v2666_v24 = vld [vmem:[%s3869_s17 + $0x10] sm:$0xff]  ;;  %s2790_s23 = sadd.s32 1, %s3873_s18  ;;  %s2656_s22 = sadd.s32 1, %s3877_s22   ;;  %s3877_s22 = sphi %s4522_s22, %s2656_s22   ;;  %s3873_s18 = sphi %s4520_s18, %s4734_s18   ;;  %s3869_s17 = sphi %s4731_s17, %s4733_s17   ;;  %s3865_s14 = sphi %s4730_s14, %s4732_s14  }
 0x18a   : >> { %2663 = vst [vmem:[%s3865_s14] sm:$0xff] %v2662_v44  ;;  %2665 = vst [vmem:[%s3865_s14 + $0x8] sm:$0xff] %v2664_v23  ;;  %v2668_v25 = vld [vmem:[%s3869_s17 + $0x18] sm:$0xff]  ;;  %v2670_v26 = vld [vmem:[%s3869_s17 + $0x20] sm:$0xff]  ;;  %p2791_p7 = scmp.ge.s32.totalorder %s2790_s23, %s4511_s11  ;;  %p2655_p8 = scmp.ge.s32.totalorder %s2656_s22, %s4511_s11 }
 0x18b   : >> { %2667 = vst [vmem:[%s3865_s14 + $0x10] sm:$0xff] %v2666_v24  ;;  %v2672_v27 = vld [vmem:[%s3869_s17 + $0x28] sm:$0xff]  ;;  %2669 = vst [vmem:[%s3865_s14 + $0x18] sm:$0xff] %v2668_v25  ;;  %v2674_v28 = vld [vmem:[%s3869_s17 + $0x30] sm:$0xff] }
 0x18c   : >> { %2671 = vst [vmem:[%s3865_s14 + $0x20] sm:$0xff] %v2670_v26  ;;  %2673 = vst [vmem:[%s3865_s14 + $0x28] sm:$0xff] %v2672_v27  ;;  %v2676_v29 = vld [vmem:[%s3869_s17 + $0x38] sm:$0xff]  ;;  %v2678_v30 = vld [vmem:[%s3869_s17 + $0x40] sm:$0xff]  ;;  %s4745_s23 = smov (%p2791_p7, %s2790_s23), 0 }
 0x18d   : >> { %2675 = vst [vmem:[%s3865_s14 + $0x30] sm:$0xff] %v2674_v28  ;;  %2677 = vst [vmem:[%s3865_s14 + $0x38] sm:$0xff] %v2676_v29  ;;  %v2680_v31 = vld [vmem:[%s3869_s17 + $0x48] sm:$0xff]  ;;  %v2682_v32 = vld [vmem:[%s3869_s17 + $0x50] sm:$0xff]  ;;  %s3186_s24 = sshll.u32 %s4745_s23, 8  ;;  %s4734_s18 = smov %s4745_s23 }
 0x18e   : >> { %2679 = vst [vmem:[%s3865_s14 + $0x40] sm:$0xff] %v2678_v30  ;;  %v2684_v34 = vld [vmem:[%s3869_s17 + $0x58] sm:$0xff]  ;;  %2681 = vst [vmem:[%s3865_s14 + $0x48] sm:$0xff] %v2680_v31  ;;  %v2686_v35 = vld [vmem:[%s3869_s17 + $0x60] sm:$0xff]  ;;  %s4578_s25 = scalar_lea.vmem %s4169_s12, %s3186_s24 [#allocation2]   ;;  %s4581_s26 = scalar_lea.vmem %s4297_s5, %s3186_s24  }
 0x18f   : >> { %2683 = vst [vmem:[%s3865_s14 + $0x50] sm:$0xff] %v2682_v32  ;;  %2685 = vst [vmem:[%s3865_s14 + $0x58] sm:$0xff] %v2684_v34  ;;  %v2688_v36 = vld [vmem:[%s3869_s17 + $0x68] sm:$0xff]  ;;  %v2690_v12 = vld [vmem:[%s3869_s17 + $0x70] sm:$0xff] }
 0x190   : >> { %2687 = vst [vmem:[%s3865_s14 + $0x60] sm:$0xff] %v2686_v35  ;;  %2689 = vst [vmem:[%s3865_s14 + $0x68] sm:$0xff] %v2688_v36  ;;  %v2692_v38 = vld [vmem:[%s3869_s17 + $0x78] sm:$0xff]  ;;  %v2694_v39 = vld [vmem:[%s3869_s17 + $0x80] sm:$0xff] }
 0x191   : >> { %2691 = vst [vmem:[%s3865_s14 + $0x70] sm:$0xff] %v2690_v12  ;;  %v2696_v41 = vld [vmem:[%s3869_s17 + $0x88] sm:$0xff]  ;;  %2693 = vst [vmem:[%s3865_s14 + $0x78] sm:$0xff] %v2692_v38  ;;  %v2698_v42 = vld [vmem:[%s3869_s17 + $0x90] sm:$0xff] }
 0x192   : >> { %2695 = vst [vmem:[%s3865_s14 + $0x80] sm:$0xff] %v2694_v39  ;;  %2697 = vst [vmem:[%s3865_s14 + $0x88] sm:$0xff] %v2696_v41  ;;  %v2700_v43 = vld [vmem:[%s3869_s17 + $0x98] sm:$0xff]  ;;  %v2702_v33 = vld [vmem:[%s3869_s17 + $0xa0] sm:$0xff] }
 0x193   : >> { %2699 = vst [vmem:[%s3865_s14 + $0x90] sm:$0xff] %v2698_v42  ;;  %2701 = vst [vmem:[%s3865_s14 + $0x98] sm:$0xff] %v2700_v43  ;;  %v2704_v45 = vld [vmem:[%s3869_s17 + $0xa8] sm:$0xff]  ;;  %v2706_v46 = vld [vmem:[%s3869_s17 + $0xb0] sm:$0xff] }
 0x194   : >> { %2703 = vst [vmem:[%s3865_s14 + $0xa0] sm:$0xff] %v2702_v33  ;;  %v2708_v47 = vld [vmem:[%s3869_s17 + $0xb8] sm:$0xff]  ;;  %2705 = vst [vmem:[%s3865_s14 + $0xa8] sm:$0xff] %v2704_v45  ;;  %v2710_v48 = vld [vmem:[%s3869_s17 + $0xc0] sm:$0xff] }
 0x195   : >> { %2707 = vst [vmem:[%s3865_s14 + $0xb0] sm:$0xff] %v2706_v46  ;;  %2709 = vst [vmem:[%s3865_s14 + $0xb8] sm:$0xff] %v2708_v47  ;;  %v2712_v49 = vld [vmem:[%s3869_s17 + $0xc8] sm:$0xff]  ;;  %v2714_v50 = vld [vmem:[%s3869_s17 + $0xd0] sm:$0xff] }
 0x196   : >> { %2711 = vst [vmem:[%s3865_s14 + $0xc0] sm:$0xff] %v2710_v48  ;;  %2713 = vst [vmem:[%s3865_s14 + $0xc8] sm:$0xff] %v2712_v49  ;;  %v2716_v51 = vld [vmem:[%s3869_s17 + $0xd8] sm:$0xff]  ;;  %v2718_v52 = vld [vmem:[%s3869_s17 + $0xe0] sm:$0xff] }
 0x197   : >> { %2715 = vst [vmem:[%s3865_s14 + $0xd0] sm:$0xff] %v2714_v50  ;;  %v2720_v53 = vld [vmem:[%s3869_s17 + $0xe8] sm:$0xff]  ;;  %2717 = vst [vmem:[%s3865_s14 + $0xd8] sm:$0xff] %v2716_v51  ;;  %v2722_v54 = vld [vmem:[%s3869_s17 + $0xf0] sm:$0xff] }
 0x198   : >> { %2719 = vst [vmem:[%s3865_s14 + $0xe0] sm:$0xff] %v2718_v52  ;;  %2721 = vst [vmem:[%s3865_s14 + $0xe8] sm:$0xff] %v2720_v53  ;;  %v2724_v55 = vld [vmem:[%s3869_s17 + $0xf8] sm:$0xff]  ;;  %v2726_v56 = vld [vmem:[%s3869_s17 + $0x64] sm:$0xff] }
 0x199   : >> { %2723 = vst [vmem:[%s3865_s14 + $0xf0] sm:$0xff] %v2722_v54  ;;  %2725 = vst [vmem:[%s3865_s14 + $0xf8] sm:$0xff] %v2724_v55  ;;  %v2728_v57 = vld [vmem:[%s3869_s17 + $0x6c] sm:$0xff]  ;;  %v2730_v58 = vld [vmem:[%s3869_s17 + $0x74] sm:$0xff] }
 0x19a   : >> { %2727 = vst [vmem:[%s3865_s14 + $0xc4] sm:$0xff] %v2726_v56  ;;  %v2732_v59 = vld [vmem:[%s3869_s17 + $0x7c] sm:$0xff]  ;;  %2729 = vst [vmem:[%s3865_s14 + $0xcc] sm:$0xff] %v2728_v57  ;;  %v2734_v60 = vld [vmem:[%s3869_s17 + $0x84] sm:$0xff] }
 0x19b   : >> { %2731 = vst [vmem:[%s3865_s14 + $0xd4] sm:$0xff] %v2730_v58  ;;  %2733 = vst [vmem:[%s3865_s14 + $0xdc] sm:$0xff] %v2732_v59  ;;  %v2736_v61 = vld [vmem:[%s3869_s17 + $0x8c] sm:$0xff]  ;;  %v2738_v62 = vld [vmem:[%s3869_s17 + $0x94] sm:$0xff] }
 0x19c   : >> { %2735 = vst [vmem:[%s3865_s14 + $0xe4] sm:$0xff] %v2734_v60  ;;  %2737 = vst [vmem:[%s3865_s14 + $0xec] sm:$0xff] %v2736_v61  ;;  %v2740_v63 = vld [vmem:[%s3869_s17 + $0x9c] sm:$0xff]  ;;  %v2742_v0 = vld [vmem:[%s3869_s17 + $0xa4] sm:$0xff] }
 0x19d   : >> { %2739 = vst [vmem:[%s3865_s14 + $0xf4] sm:$0xff] %v2738_v62  ;;  %v2744_v2 = vld [vmem:[%s3869_s17 + $0xac] sm:$0xff]  ;;  %2741 = vst [vmem:[%s3865_s14 + $0xfc] sm:$0xff] %v2740_v63  ;;  %v2746_v3 = vld [vmem:[%s3869_s17 + $0xb4] sm:$0xff] }
 0x19e   : >> { %2743 = vst [vmem:[%s3865_s14 + $0x104] sm:$0xff] %v2742_v0  ;;  %2745 = vst [vmem:[%s3865_s14 + $0x10c] sm:$0xff] %v2744_v2  ;;  %v2748_v4 = vld [vmem:[%s3869_s17 + $0xbc] sm:$0xff]  ;;  %v2750_v5 = vld [vmem:[%s3869_s17 + $0xc4] sm:$0xff] }
 0x19f   : >> { %2747 = vst [vmem:[%s3865_s14 + $0x114] sm:$0xff] %v2746_v3  ;;  %2749 = vst [vmem:[%s3865_s14 + $0x11c] sm:$0xff] %v2748_v4  ;;  %v2752_v6 = vld [vmem:[%s3869_s17 + $0xcc] sm:$0xff]  ;;  %v2754_v7 = vld [vmem:[%s3869_s17 + $0xd4] sm:$0xff] }
 0x1a0   : >> { %2751 = vst [vmem:[%s3865_s14 + $0x124] sm:$0xff] %v2750_v5  ;;  %v2756_v8 = vld [vmem:[%s3869_s17 + $0xdc] sm:$0xff]  ;;  %2753 = vst [vmem:[%s3865_s14 + $0x12c] sm:$0xff] %v2752_v6  ;;  %v2758_v9 = vld [vmem:[%s3869_s17 + $0xe4] sm:$0xff] }
 0x1a1   : >> { %2755 = vst [vmem:[%s3865_s14 + $0x134] sm:$0xff] %v2754_v7  ;;  %2757 = vst [vmem:[%s3865_s14 + $0x13c] sm:$0xff] %v2756_v8  ;;  %v2760_v10 = vld [vmem:[%s3869_s17 + $0xec] sm:$0xff]  ;;  %v2762_v11 = vld [vmem:[%s3869_s17 + $0xf4] sm:$0xff] }
 0x1a2   : >> { %2759 = vst [vmem:[%s3865_s14 + $0x144] sm:$0xff] %v2758_v9  ;;  %2761 = vst [vmem:[%s3865_s14 + $0x14c] sm:$0xff] %v2760_v10  ;;  %v2764_v13 = vld [vmem:[%s3869_s17 + $0xfc] sm:$0xff]  ;;  %v2766_v14 = vld [vmem:[%s3869_s17 + $0x104] sm:$0xff] }
 0x1a3   : >> { %2763 = vst [vmem:[%s3865_s14 + $0x154] sm:$0xff] %v2762_v11  ;;  %v2768_v15 = vld [vmem:[%s3869_s17 + $0x10c] sm:$0xff]  ;;  %2765 = vst [vmem:[%s3865_s14 + $0x15c] sm:$0xff] %v2764_v13  ;;  %v2770_v16 = vld [vmem:[%s3869_s17 + $0x114] sm:$0xff] }
 0x1a4   : >> { %2767 = vst [vmem:[%s3865_s14 + $0x164] sm:$0xff] %v2766_v14  ;;  %2769 = vst [vmem:[%s3865_s14 + $0x16c] sm:$0xff] %v2768_v15  ;;  %v2772_v17 = vld [vmem:[%s3869_s17 + $0x11c] sm:$0xff]  ;;  %v2774_v18 = vld [vmem:[%s3869_s17 + $0x124] sm:$0xff] }
 0x1a5   : >> { %2771 = vst [vmem:[%s3865_s14 + $0x174] sm:$0xff] %v2770_v16  ;;  %2773 = vst [vmem:[%s3865_s14 + $0x17c] sm:$0xff] %v2772_v17  ;;  %v2776_v19 = vld [vmem:[%s3869_s17 + $0x12c] sm:$0xff]  ;;  %v2778_v1 = vld [vmem:[%s3869_s17 + $0x134] sm:$0xff]  ;;  %2658 = sbr.rel (!%p2655_p8) target bundleno = 393 (0x189), region = 366 }
 0x1a6   : >> { %2775 = vst [vmem:[%s3865_s14 + $0x184] sm:$0xff] %v2774_v18  ;;  %v2780_v20 = vld [vmem:[%s3869_s17 + $0x13c] sm:$0xff]  ;;  %2777 = vst [vmem:[%s3865_s14 + $0x18c] sm:$0xff] %v2776_v19  ;;  %v2782_v21 = vld [vmem:[%s3869_s17 + $0x144] sm:$0xff] }
 0x1a7   : >> { %2779 = vst [vmem:[%s3865_s14 + $0x194] sm:$0xff] %v2778_v1  ;;  %2781 = vst [vmem:[%s3865_s14 + $0x19c] sm:$0xff] %v2780_v20  ;;  %v2784_v22 = vld [vmem:[%s3869_s17 + $0x14c] sm:$0xff]  ;;  %v2786_v37 = vld [vmem:[%s3869_s17 + $0x154] sm:$0xff] }
 0x1a8   : >> { %2783 = vst [vmem:[%s3865_s14 + $0x1a4] sm:$0xff] %v2782_v21  ;;  %2785 = vst [vmem:[%s3865_s14 + $0x1ac] sm:$0xff] %v2784_v22  ;;  %v2788_v40 = vld [vmem:[%s3869_s17 + $0x15c] sm:$0xff]  ;;  %s4733_s17 = smov %s4578_s25 }
 0x1a9   : >> { %2787 = vst [vmem:[%s3865_s14 + $0x1b4] sm:$0xff] %v2786_v37  ;;  %2789 = vst [vmem:[%s3865_s14 + $0x1bc] sm:$0xff] %v2788_v40  ;;  %s4732_s14 = smov %s4581_s26 }
 0x1aa PF: > { %s4687_s27 = sand.u32 31, %s2649_s8   ;;  %s3228_s28 = sshll.u32 %s4511_s11, 12 }
 0x1ab   : > { %s2801_s29 = sshra.s32 %s3228_s28, 4  ;;  %p3191_p9 = scmp.le.s32.totalorder %s4687_s27, 0 }
 0x1ac   : > { %s4691_s30 = scalar_lea.vmem %s4169_s12, %s2801_s29 [#allocation2]   ;;  %s2805_s4 = scalar_lea.vmem %s4297_s5, %s2801_s29  }
 0x1ad   : > { %2946 = sbr.rel (%p3191_p9) target bundleno = 442 (0x1ba), region = 371  ;;  %s3879_s6 = smov (!%p3191_p9), %s2805_s4  }
 0x1ae   : > { %s3883_s15 = smov (!%p3191_p9), %s4691_s30   ;;  %s3887_s21 = smov (!%p3191_p9), 0  }
 0x1af   : > { %s3891_s14 = smov (!%p3191_p9), 0  }
 0x1b2 LB: >> { %v2817_v44 = vld [vmem:[%s3885_s15] sm:$0xff]  ;;  %s2821_s8 = sadd.s32 1, %s3889_s21  ;;  %s2811_s14 = sadd.s32 1, %s3893_s14   ;;  %s3893_s14 = sphi %s3891_s14, %s2811_s14   ;;  %s3889_s21 = sphi %s3887_s21, %s3888_s21   ;;  %s3885_s15 = sphi %s3883_s15, %s2826_s15   ;;  %s3881_s6 = sphi %s3879_s6, %s2827_s6  }
 0x1b3   : >> { %v2819_v23 = vld [vmem:[%s3885_s15 + $0x64] sm:$0xff]  ;;  %2818 = vst [vmem:[%s3881_s6] sm:$0xff] %v2817_v44  ;;  %p2822_p10 = scmp.ge.s32.totalorder %s2821_s8, %s4687_s27  ;;  %p2810_p11 = scmp.ge.s32.totalorder %s2811_s14, %s4687_s27 }
 0x1b4   : >> { %2820 = vst [vmem:[%s3881_s6 + $0xc4] sm:$0xff] %v2819_v23 }
 0x1b5   : >> { %s4747_s8 = smov (%p2822_p10, %s2821_s8), 0  ;;  %2813 = sbr.rel (!%p2810_p11) target bundleno = 434 (0x1b2), region = 377 }
 0x1b6   : >> { %s3192_s11 = sshll.u32 %s4747_s8, 3  ;;  %s3888_s21 = smov %s4747_s8  }
 0x1b7   : >> { %s2826_s15 = scalar_lea.vmem %s4691_s30, %s3192_s11 [#allocation2]   ;;  %s2827_s6 = scalar_lea.vmem %s2805_s4, %s3192_s11  }
 0x1ba PF: > { %s3900_s17 = smov 1  }
 0x1bb   : > { %s2828_s18 = sshll.u32 %s3900_s17, %s4303_s20 }
 0x1bc   : > { %s3194_s22 = sadd.s32 4294967295, %s2828_s18 }
 0x1bd   : > { %v2838_v24 = vld [vmem:[%s4504_s9] sm:%s3194_s22] }
 0x1be   : > { %v2840_v25 = vld [vmem:[%s4504_s9 + $0x64] sm:%s3194_s22]  ;;  %2839 = vst [vmem:[%s4507_s10] sm:%s3194_s22] %v2838_v24 }
 0x1bf   : > { %2841 = vst [vmem:[%s4507_s10 + $0xc4] sm:%s3194_s22] %v2840_v25 }
 0x1c0 PF: > { %p3195_p12 = scmp.ge.u32.totalorder %s4299_s7, 8 }
 0x1c1   : > { %s3901_s23 = smov (!%p3195_p12), 1  }
 0x1c2   : > { %2442 = sbr.rel (%p3195_p12) target bundleno = 458 (0x1ca), region = 48  ;;  %s2443_s24 = sshll.u32 (!%p3195_p12), %s3901_s23, %s4299_s7 }
 0x1c3   : > { %s3196_s25 = sadd.s32 (!%p3195_p12), 4294967295, %s2443_s24 }
 0x1c7   : > { %v2453_v26 = vld [vmem:[%s4169_s12] sm:%s3196_s25] }
 0x1c8   : > { %v2455_v27 = vld [vmem:[%s4169_s12 + $0x64] sm:%s3196_s25]  ;;  %2454 = vst [vmem:[%s4297_s5] sm:%s3196_s25] %v2453_v26 }
 0x1c9   : > { %2456 = vst [vmem:[%s4297_s5 + $0xc4] sm:%s3196_s25] %v2455_v27 }
 0x1ca PF: > { %p10_p13 = scmp.ge.s32.totalorder %s3937_s16, 4   ;;  %s4735_s12 = smov %s3825_s13 }
 0x1cb   : > { %s4736_s13 = smov %s3945_s19  ;;  %s4737_s14 = smov %s3937_s16 }
 0x1cc   :  { %12 = sbr.rel (!%p10_p13) target bundleno = 2 (0x2), region = 388 }

// kernel: bats_network_forward.15
= control target key start
LH: loop header
LB: loop body
LE: loop exit
PB: predicated region body
PF: predicated region fallthrough
CT: control target
= control target key end

     0   :  { %s3210_s12 = smov 0   ;;  %s3212_s13 = smov 0   ;;  %s4053_s0 = inlined_call_operand.vmem [shape: bf16[20,90], index: 0, kind: input, shape index: {}]   ;;  %s4054_s1 = inlined_call_operand.vmem [shape: f32[20,2], index: 1, kind: input, shape index: {}]   ;;  %s4055_s2 = inlined_call_operand.vmem [shape: bf16[1568,90], index: 2, kind: input, shape index: {}]   ;;  %s4056_s3 = inlined_call_operand.vmem [shape: bf16[20,1568], index: 3, kind: output, shape index: {}]  }
   0x1   :  { %s3214_s14 = smov 0  }
   0x2 LB: > { %s3223_s15 = sadd.s32 4294967295, %s3120_s14   ;;  %s3225_s16 = sadd.s32 1, %s3120_s14   ;;  %s3120_s14 = sphi %s3214_s14, %s4072_s14   ;;  %s3116_s13 = sphi %s3212_s13, %s4071_s13   ;;  %s3112_s12 = sphi %s3210_s12, %s4070_s12  }
   0x3   : > { %s85_s17 = ssub.s32 %s3120_s14, %s3225_s16  ;;  %s88_s18 = sadd.s32 1, %s3116_s13 }
   0x4   : > { %p86_p0 = scmp.eq.s32.totalorder %s85_s17, 0  ;;  %p98_p1 = scmp.ne.s32.totalorder %s3116_s13, %s3112_s12 }
   0x5   : > { %p99_p2 = scmp.eq.s32.totalorder %s3223_s15, 1  ;;  %p2383_p3 = scmp.ge.s32.totalorder %s3120_s14, 1 }
   0x6   : > { %s3233_s19 = scalar_select %p86_p0, %s3116_s13, %s88_s18  }
   0x7   : > { %p3235_p4 = por %p99_p2, %p98_p1  ;;  %p146_p5 = scmp.lt.s32.totalorder %s3120_s14, 3 }
   0x9   : > { %p147_p6 = pnand %p2383_p3, %p146_p5 }
   0xb   : > { %150 = sbr.rel (%p147_p6) target bundleno = 498 (0x1f2), region = 32 }
  0x10   : > { %s3240_s21 = smul.u32 7, %s3223_s15  ;;  %v3186_v0 = vmov 0   ;;  %v1154_v1 = vld [vmem:[%s4054_s1] sm:$0xff]  ;;  %v1156_v2 = vld [vmem:[%s4054_s1 + $0x10] sm:$0xf]  ;;  %v1155_v3 = vld [vmem:[%s4054_s1 + $0x8] sm:$0xff] }
  0x11   : > { %1501 = vmatprep.mubr.bf16.mxu1 %v3186_v0  ;;  %1450 = vmatprep.mubr.bf16.mxu0 %v3186_v0  ;;  %v3187_v5 = vmov 1   ;;  %vm1396_vm0 = vcmask 1044480   ;;  %vm1389_vm1 = vcmask 736256  }
  0x12   : > { %p178_p7 = scmp.lt.s32.totalorder %s3240_s21, 12  ;;  %2964 = vset.pattern.permute.xlu0 %v3186_v0  ;;  %2965 = vset.pattern.permute.xlu1 %v3186_v0  ;;  %s245_s24 = sadd.s32 6, %s3240_s21 }
  0x13   : > { %1159 = vperm.xlu0 %2964, %v1154_v1   ;;  %1169 = vperm.xlu1 %2965, %v1156_v2   ;;  %s246_s7 = ssub.s32 12, %s245_s24  ;;  %s1787_s5 = ssub.s32 (%p3235_p4), 13, %s3240_s21 }
  0x14   : > { %s179_s27 = scalar_select %p178_p7, %s3240_s21, 12 }
  0x15   : > { %p247_p8 = scmp.lt.s32.totalorder %s246_s7, 0  ;;  %p1788_p9 = scmp.lt.s32.totalorder (%p3235_p4), %s1787_s5, 7 }
  0x16   : > { %s2384_s30 = sshll.u32 %s179_s27, 2 }
  0x17   : > { %s3261_s6 = scalar_lea.vmem %s4055_s2, %s2384_s30  ;;  %1164 = vperm.xlu0 %2964, %v1155_v3   ;;  %2966 = vset.pattern.permute.xlu1 %v3187_v5  ;;  %s170_s30 = sand.u32 1, %s3112_s12  }
  0x18   : > { %v2968_v4 = vld [vmem:[%s3261_s6 + $0x210] sm:$0xff]   ;;  %v2969_v6 = vld [vmem:[%s3261_s6 + $0x240] sm:$0xff]   ;;  %1641 = vperm.xlu1 %2966, %v1154_v1   ;;  %v2970_v7 = vld [vmem:[%s3261_s6 + $0x248] sm:$0xff]   ;;  %s248_s8 = scalar_select %p247_p8, 0, 255 }
  0x19   : > { %2739 = vst [vmem:[#allocation3 + $0x138] sm:$0xff] %v2969_v6   ;;  %v2971_v8 = vld [vmem:[%s3261_s6 + $0x1a8] sm:$0xff]   ;;  %2744 = vst [vmem:[#allocation3 + $0x140] sm:$0xff] %v2970_v7   ;;  %v2972_v9 = vld [vmem:[%s3261_s6 + $0x1d8] sm:$0xff]   ;;  %s2805_s4 = smul.u32 84, %s170_s30 }
  0x1a   : > { %v2973_v10 = vld [vmem:[%s3261_s6 + $0x1e0] sm:$0xff]   ;;  %2709 = vst [vmem:[#allocation3 + $0x100] sm:$0xff] %v2972_v9   ;;  %v3270_v11 = vld [vmem:[%s3261_s6 + $0x208] sm:$0xff]   ;;  %s249_s9 = sshrl.u32 %s248_s8, 1  ;;  %v2979_v13 = vld [vmem:[%s3261_s6 + $0x170] sm:$0xff]  }
  0x1b   : > { %2967 = vset.pattern.permute.xlu0 %v3187_v5  ;;  %2714 = vst [vmem:[#allocation3 + $0x108] sm:$0xff] %v2973_v10   ;;  %v2978_v12 = vld [vmem:[%s3261_s6 + $0x140] sm:$0xff]   ;;  %s250_s10 = sor.u32 %s249_s9, %s248_s8  ;;  %v2980_v14 = vld [vmem:[%s3261_s6 + $0x178] sm:$0xff]   ;;  %2679 = vst [vmem:[#allocation3 + $0xc8] sm:$0xff] %v2979_v13   ;;  %s3418_s12 = scalar_lea.vmem [#allocation2], %s2805_s4  }
  0x1c   : > { %1645 = vperm.xlu0 %2967, %v1155_v3   ;;  %1649 = vperm.xlu1 %2966, %v1156_v2   ;;  %s251_s11 = sand.u32 85, %s250_s10  ;;  %v3276_v16 = vld [vmem:[%s3261_s6 + $0x1a0] sm:$0xff]   ;;  %2684 = vst [vmem:[#allocation3 + $0xd0] sm:$0xff] %v2980_v14   ;;  %v2985_v19 = vld [vmem:[%s3261_s6 + $0xd8] sm:$0xff]   ;;  %v2986_v22 = vld [vmem:[%s3261_s6 + $0x108] sm:$0xff]  }
  0x1d   : > { %s252_s14 = sshrl.u32 %s251_s11, 1  ;;  %v2987_v25 = vld [vmem:[%s3261_s6 + $0x110] sm:$0xff]   ;;  %2649 = vst [vmem:[#allocation3 + $0x90] sm:$0xff] %v2986_v22   ;;  %v3286_v26 = vld [vmem:[%s3261_s6 + $0x138] sm:$0xff]   ;;  %v2993_v33 = vld [vmem:[%s3261_s6 + $0xa0] sm:$0xff]  }
  0x1e   : > { %s253_s17 = sor.u32 %s252_s14, %s251_s11  ;;  %2654 = vst [vmem:[#allocation3 + $0x98] sm:$0xff] %v2987_v25   ;;  %v2992_v27 = vld [vmem:[%s3261_s6 + $0x70] sm:$0xff]   ;;  %2619 = vst [vmem:[#allocation3 + $0x58] sm:$0xff] %v2993_v33   ;;  %v2994_v35 = vld [vmem:[%s3261_s6 + $0xa8] sm:$0xff]  }
  0x1f   : > { %s254_s18 = sand.u32 51, %s253_s17  ;;  %v3301_v36 = vld [vmem:[%s3261_s6 + $0xd0] sm:$0xff]   ;;  %2624 = vst [vmem:[#allocation3 + $0x60] sm:$0xff] %v2994_v35   ;;  %v2999_v41 = vld [vmem:[%s3261_s6 + $0x8] sm:$0xff]   ;;  %v3000_v42 = vld [vmem:[%s3261_s6 + $0x38] sm:$0xff]  }
  0x20   : > { %v1151_v15 = vld [vmem:[#allocation3 + $0x13c] sm:$0x11]  ;;  %s255_s22 = sshrl.u32 %s254_s18, 2  ;;  %2589 = vst [vmem:[#allocation3 + $0x20] sm:$0xff] %v3000_v42   ;;  %v3328_v63 = vld [vmem:[%s3261_s6 + $0x218] sm:$0xff]   ;;  %v3341_v9 = vld [vmem:[%s3261_s6 + $0x1b0] sm:$0xff]  }
  0x21   : > { %v2508_v17 = vcombine.high %v2968_v4, %v1151_v15  ;;  %v2507_v18 = vcombine.low %v2968_v4, %v1151_v15  ;;  %s256_s23 = sor.u32 %s255_s22, %s254_s18  ;;  %v3001_v43 = vld [vmem:[%s3261_s6 + $0x40] sm:$0xff]   ;;  %v3312_v49 = vld [vmem:[%s3261_s6 + $0x68] sm:$0xff]   ;;  %v2466_v1 = vld [vmem:[%s3261_s6 + $0x250] sm:$0xf] }
  0x22   : > { %v1143_v21 = vld [vmem:[#allocation3 + $0x104] sm:$0xff]  ;;  %s3283_s24 = sand.u32 15, %s256_s23  ;;  %2594 = vst [vmem:[#allocation3 + $0x28] sm:$0xff] %v3001_v43   ;;  %v192_v58 = vld [vmem:[%s3261_s6] sm:$0xff]   ;;  %1079 = vst [vmem:[#allocation3 + $0x148] sm:$0xf] %v2466_v1 }
  0x23   : > { %2515 = vmatprep.subr.msk.bf16.mxu1 %vm1396_vm0, %v2508_v17  ;;  %v1404_v20 = vsel %vm1396_vm0, %v2507_v18, 0  ;;  %v2501_v23 = vcombine.high %v2971_v8, %v1143_v21  ;;  %v2500_v24 = vcombine.low %v2971_v8, %v1143_v21  ;;  %s3289_s25 = sor.u32 240, %s3283_s24  ;;  %v1135_v29 = vld [vmem:[#allocation3 + $0xcc] sm:$0xff]  ;;  %198 = vst [vmem:[#allocation3] sm:$0xff] %v192_v58   ;;  %v2453_v62 = vld [vmem:[%s3261_s6 + $0x1ec] sm:%s3283_s24]  ;;  %v2439_v2 = vld [vmem:[%s3261_s6 + $0x184] sm:%s3283_s24] }
  0x24   : > { %1474 = vmatpush1.bf16.msra.mxu1 %v1404_v20  ;;  %v2977_v28 = vld [vmem:[%s3261_s6 + $0x220] ss:$28 sps:$4 sm:%s3289_s25]   ;;  %v2984_v30 = vld [vmem:[%s3261_s6 + $0x1b8] ss:$28 sps:$4 sm:%s3289_s25]   ;;  %v2494_v31 = vcombine.high %v2978_v12, %v1135_v29  ;;  %v2493_v32 = vcombine.low %v2978_v12, %v1135_v29  ;;  %949 = vst [vmem:[#allocation3 + $0x114] sm:$0xf] %v2453_v62 }
  0x25   : > { %1475 = vmatprep.subr.bf16.mxu1 %v2501_v23  ;;  %2734 = vst [vmem:[#allocation3 + $0x130] sm:$0xff] %v2977_v28   ;;  %2704 = vst [vmem:[#allocation3 + $0xf8] sm:$0xff] %v2984_v30   ;;  %v2991_v34 = vld [vmem:[%s3261_s6 + $0x150] ss:$28 sps:$4 sm:%s3289_s25]   ;;  %v1127_v37 = vld [vmem:[#allocation3 + $0x94] sm:$0xff] }
  0x26   : > { %2674 = vst [vmem:[#allocation3 + $0xc0] sm:$0xff] %v2991_v34   ;;  %v2998_v38 = vld [vmem:[%s3261_s6 + $0xe8] ss:$28 sps:$4 sm:%s3289_s25]   ;;  %v2487_v39 = vcombine.high %v2985_v19, %v1127_v37  ;;  %v2486_v40 = vcombine.low %v2985_v19, %v1127_v37  ;;  %v3005_v51 = vld [vmem:[%s3261_s6 + $0x80] ss:$28 sps:$4 sm:%s3289_s25]  }
  0x27   : > { %2644 = vst [vmem:[#allocation3 + $0x88] sm:$0xff] %v2998_v38   ;;  %v1119_v53 = vld [vmem:[#allocation3 + $0x5c] sm:$0xff]  ;;  %v2467_v54 = vld [vmem:[%s3261_s6 + $0x254] sm:%s3283_s24]  ;;  %2614 = vst [vmem:[#allocation3 + $0x50] sm:$0xff] %v3005_v51  }
  0x28   : > { %1476 = vmatpush1.bf16.msra.mxu1 %v2500_v24  ;;  %v2480_v56 = vcombine.high %v2992_v27, %v1119_v53  ;;  %v2479_v57 = vcombine.low %v2992_v27, %v1119_v53  ;;  %1101 = vst [vmem:[#allocation3 + $0x14c] sm:$0xf] %v2467_v54  ;;  %v3009_v61 = vld [vmem:[%s3261_s6 + $0x18] ss:$28 sps:$4 sm:%s3289_s25]   ;;  %797 = vst [vmem:[#allocation3 + $0xdc] sm:$0xf] %v2439_v2 }
  0x29   : > { %1477 = vmatprep.subr.bf16.mxu1 %v2494_v31  ;;  %2584 = vst [vmem:[#allocation3 + $0x18] sm:$0xff] %v3009_v61   ;;  %v1111_v4 = vld [vmem:[#allocation3 + $0x24] sm:$0xff]  ;;  %v3338_v8 = vld [vmem:[%s4053_s0] sm:$0xff]   ;;  %v2452_v10 = vld [vmem:[%s3261_s6 + $0x1e8] sm:$0xf] }
  0x2a   : > { %v2473_v6 = vcombine.high %v2999_v41, %v1111_v4  ;;  %v2472_v7 = vcombine.low %v2999_v41, %v1111_v4  ;;  %927 = vst [vmem:[#allocation3 + $0x110] sm:$0xf] %v2452_v10  ;;  %v3348_v15 = vld [vmem:[%s3261_s6 + $0x148] sm:$0xff]   ;;  %v2411_v19 = vld [vmem:[%s3261_s6 + $0xb4] sm:%s3283_s24]  ;;  %v2438_v22 = vld [vmem:[%s3261_s6 + $0x180] sm:$0xf] }
  0x2b   : > { %493 = vst [vmem:[#allocation3 + $0x6c] sm:$0xf] %v2411_v19  ;;  %v3010_v20 = vld [vmem:[#allocation3 + $0x4] ss:$28 sps:$4 sm:$0xff]   ;;  %775 = vst [vmem:[#allocation3 + $0xd8] sm:$0xf] %v2438_v22 }
  0x2c   : > { %1478 = vmatpush1.bf16.msra.mxu1 %v2493_v32  ;;  %v1150_v44 = vld [vmem:[#allocation3 + $0x134] sm:$0x11]  ;;  %v1142_v45 = vld [vmem:[#allocation3 + $0xfc] sm:$0xff]  ;;  %v1152_v27 = vld [vmem:[#allocation3 + $0x144] sm:$0x11] }
  0x2d   : > { %1479 = vmatprep.subr.bf16.mxu1 %v2487_v39  ;;  %v2506_v46 = vcombine.high %v3270_v11, %v1150_v44  ;;  %v2505_v47 = vcombine.low %v3270_v11, %v1150_v44  ;;  %v2499_v48 = vcombine.high %v3276_v16, %v1142_v45  ;;  %v1134_v50 = vld [vmem:[#allocation3 + $0xc4] sm:$0xff]  ;;  %v2498_v55 = vcombine.low %v3276_v16, %v1142_v45  ;;  %v2425_v11 = vld [vmem:[%s3261_s6 + $0x11c] sm:%s3283_s24]  ;;  %v3362_v24 = vld [vmem:[%s4053_s0 + $0x8] ss:$0 sps:$4 sm:$0x33]  }
  0x2e   : > { %v2492_v59 = vcombine.high %v3286_v26, %v1134_v50  ;;  %v1126_v60 = vld [vmem:[#allocation3 + $0x8c] sm:$0xff]  ;;  %v2491_v3 = vcombine.low %v3286_v26, %v1134_v50  ;;  %v1118_v12 = vld [vmem:[#allocation3 + $0x54] sm:$0xff]  ;;  %645 = vst [vmem:[#allocation3 + $0xa4] sm:$0xf] %v2425_v11  ;;  %v2397_v28 = vld [vmem:[%s3261_s6 + $0x4c] sm:%s3283_s24]  ;;  %v2510_v33 = vcombine.high %v3328_v63, %v1152_v27  ;;  %v2509_v34 = vcombine.low %v3328_v63, %v1152_v27 }
  0x2f   : > { %2512 = vmatprep.subr.msk.bf16.mxu0 %vm1396_vm0, %v2506_v46  ;;  %v1398_v52 = vsel %vm1396_vm0, %v2505_v47, 0  ;;  %v2485_v5 = vcombine.high %v3301_v36, %v1126_v60  ;;  %v3006_v13 = vld [vmem:[#allocation3 + $0x130] ss:$28 sps:$4 sm:$0x1f]   ;;  %v2484_v14 = vcombine.low %v3301_v36, %v1126_v60  ;;  %v2478_v16 = vcombine.high %v3312_v49, %v1118_v12  ;;  %v3014_v18 = vld [vmem:[#allocation3 + $0xf8] ss:$28 sps:$4 sm:$0xff]  }
  0x30   : > { %1480 = vmatpush1.bf16.msra.mxu1 %v2486_v40  ;;  %1423 = vmatpush1.bf16.msra.mxu0 %v1398_v52  ;;  %v1416_v17 = vsel %vm1396_vm0, %v3006_v13, 0  ;;  %v2477_v21 = vcombine.low %v3312_v49, %v1118_v12  ;;  %v3016_v23 = vld [vmem:[#allocation3 + $0xc0] ss:$28 sps:$4 sm:$0xff]   ;;  %v2424_v29 = vld [vmem:[%s3261_s6 + $0x118] sm:$0xf]  ;;  %v3025_v36 = vld [vmem:[%s3261_s6 + $0x10] sm:$0xff]  }
  0x31   : > { %1424 = vmatprep.subr.bf16.mxu0 %v2499_v48  ;;  %1481 = vmatprep.subr.bf16.mxu1 %v2480_v56  ;;  %v3022_v25 = vld [vmem:[%s3261_s6 + $0xe0] sm:$0xff]   ;;  %341 = vst [vmem:[#allocation3 + $0x34] sm:$0xf] %v2397_v28  ;;  %v1144_v30 = vld [vmem:[#allocation3 + $0x10c] sm:$0xff]  ;;  %623 = vst [vmem:[#allocation3 + $0xa0] sm:$0xf] %v2424_v29 }
  0x32   : > { %v3013_v26 = vld [vmem:[#allocation3] ss:$28 sps:$4 sm:$0xff]   ;;  %v3024_v31 = vld [vmem:[%s3261_s6 + $0x78] sm:$0xff]   ;;  %v2410_v32 = vld [vmem:[%s3261_s6 + $0xb0] sm:$0xf]  ;;  %v1410_v38 = vsel %vm1396_vm0, %v2509_v34, 0  ;;  %v2503_v39 = vcombine.high %v3341_v9, %v1144_v30  ;;  %v2502_v42 = vcombine.low %v3341_v9, %v1144_v30 }
  0x33   : > { %471 = vst [vmem:[#allocation3 + $0x68] sm:$0xf] %v2410_v32  ;;  %v2396_v37 = vld [vmem:[%s3261_s6 + $0x48] sm:$0xf]  ;;  %v1136_v40 = vld [vmem:[#allocation3 + $0xd4] sm:$0xff]  ;;  %s2569_s6 = smul.u32 (%p3235_p4), 28, %s3223_s15 }
  0x34   : > { %1482 = vmatpush1.bf16.msra.mxu1 %v2479_v57  ;;  %1425 = vmatpush1.bf16.msra.mxu0 %v2498_v55  ;;  %319 = vst [vmem:[#allocation3 + $0x30] sm:$0xf] %v2396_v37  ;;  %v3021_v41 = vld [vmem:[#allocation3 + $0x50] ss:$28 sps:$4 sm:$0xff]   ;;  %v2496_v43 = vcombine.high %v3348_v15, %v1136_v40  ;;  %v2495_v46 = vcombine.low %v3348_v15, %v1136_v40 }
  0x35   : > { %1426 = vmatprep.subr.bf16.mxu0 %v2492_v59  ;;  %1483 = vmatprep.subr.bf16.mxu1 %v2473_v6  ;;  %v3018_v35 = vld [vmem:[#allocation3 + $0x88] ss:$28 sps:$4 sm:$0xff]   ;;  %s3474_s9 = scalar_lea.vmem (%p3235_p4), %s4056_s3, %s2569_s6  }
  0x38   : > { %1427 = vmatpush1.bf16.msra.mxu0 %v2491_v3  ;;  %1484 = vmatpush1.bf16.msra.mxu1 %v2472_v7  ;;  %v3023_v44 = vld [vmem:[#allocation3 + $0x18] ss:$28 sps:$4 sm:$0xff]   ;;  %v1128_v45 = vld [vmem:[#allocation3 + $0x9c] sm:$0xff] }
  0x39   : > { %1428 = vmatprep.subr.bf16.mxu0 %v2485_v5  ;;  %2804 = vmatprep.subr.msk.bf16.mxu1 %vm1396_vm0, %v3006_v13  ;;  %v2489_v47 = vcombine.high %v3022_v25, %v1128_v45  ;;  %v2488_v49 = vcombine.low %v3022_v25, %v1128_v45 }
  0x3a   : > { %v1120_v48 = vld [vmem:[#allocation3 + $0x64] sm:$0xff] }
  0x3b   : > { %2516 = vmatmul.mubr.msk.bf16.vlgmr.msra.gmra.mxu1 %vm1389_vm1, %v3338_v8  ;;  %v2482_v50 = vcombine.high %v3024_v31, %v1120_v48  ;;  %v1112_v51 = vld [vmem:[#allocation3 + $0x2c] sm:$0xff]  ;;  %v2481_v52 = vcombine.low %v3024_v31, %v1120_v48 }
  0x3c   : > { %1429 = vmatpush1.bf16.msra.mxu0 %v2484_v14  ;;  %2789 = vmatpush3.bf16.msra.mxu1 %v1416_v17  ;;  %v2475_v53 = vcombine.high %v3025_v36, %v1112_v51  ;;  %v2474_v54 = vcombine.low %v3025_v36, %v1112_v51 }
  0x3d   : > { %1430 = vmatprep.subr.bf16.mxu0 %v2478_v16  ;;  %2790 = vmatprep.subr.bf16.mxu1 %v3014_v18 }
  0x3e   : > { %1511 = vmatprep.mubr.bf16.mxu1 %v3186_v0 }
  0x40   : > { %1431 = vmatpush1.bf16.msra.mxu0 %v2477_v21  ;;  %2791 = vmatpush3.bf16.msra.mxu1 %v3014_v18 }
  0x41   : > { %1432 = vmatprep.subr.bf16.mxu0 %v3010_v20  ;;  %2792 = vmatprep.subr.bf16.mxu1 %v3016_v23 }
  0x43   : > { %2517 = vmatmul.mubr.msk.bf16.gmra.mxu1 %vm1389_vm1, %v3362_v24 }
  0x44   : > { %1433 = vmatpush1.bf16.msra.mxu0 %v3013_v26  ;;  %2793 = vmatpush3.bf16.msra.mxu1 %v3016_v23 }
  0x45   : > { %2518 = vmatprep.subr.msk.bf16.mxu0 %vm1396_vm0, %v2510_v33  ;;  %2794 = vmatprep.subr.bf16.mxu1 %v3018_v35 }
  0x46   : > { %2800 = vmatprep.mubr.msk.bf16.mxu1 %vm1389_vm1, %v3338_v8 }
  0x47   : > { %2513 = vmatmul.mubr.msk.bf16.vlgmr.msra.gmra.mxu0 %vm1389_vm1, %v3338_v8 }
  0x48   : > { %1525 = vmatpush1.bf16.msra.mxu0 %v1410_v38  ;;  %2795 = vmatpush3.bf16.msra.mxu1 %v3018_v35 }
  0x49   : > { %1526 = vmatprep.subr.bf16.mxu0 %v2503_v39  ;;  %1460 = vmatprep.mubr.bf16.mxu0 %v3186_v0 }
  0x4a   : > { %2796 = vmatprep.subr.bf16.mxu1 %v3021_v41 }
  0x4c   : > { %1527 = vmatpush1.bf16.msra.mxu0 %v2502_v42  ;;  %2797 = vmatpush3.bf16.msra.mxu1 %v3021_v41 }
  0x4d   : > { %1528 = vmatprep.subr.bf16.mxu0 %v2496_v43  ;;  %2798 = vmatprep.subr.bf16.mxu1 %v3023_v44 }
  0x4f   : > { %2514 = vmatmul.mubr.msk.bf16.gmra.mxu0 %vm1389_vm1, %v3362_v24 }
  0x50   : > { %1529 = vmatpush1.bf16.msra.mxu0 %v2495_v46  ;;  %2799 = vmatpush3.bf16.msra.mxu1 %v3023_v44 }
  0x51   : > { %1530 = vmatprep.subr.bf16.mxu0 %v2489_v47  ;;  %1552 = vmatprep.mubr.bf16.mxu0 %v3186_v0 }
  0x53   : > { %2801 = vmatmul.mubr.msk.bf16.vlgmr.msra.gmra.mxu1 %vm1389_vm1, %v3362_v24 }
  0x54   : > { %1531 = vmatpush1.bf16.msra.mxu0 %v2488_v49 }
  0x55   : > { %1532 = vmatprep.subr.bf16.mxu0 %v2482_v50 }
  0x58   : > { %1533 = vmatpush1.bf16.msra.mxu0 %v2481_v52 }
  0x59   : > { %1534 = vmatprep.subr.bf16.mxu0 %v2475_v53 }
  0x5c   : > { %1535 = vmatpush1.bf16.msra.mxu0 %v2474_v54 }
  0x5f   : > { %2519 = vmatmul.mubr.msk.bf16.vlgmr.msra.gmra.mxu0 %vm1389_vm1, %v3338_v8 }
  0x60   : > { %1562 = vmatprep.mubr.bf16.mxu0 %v3186_v0 }
  0x67   : > { %2520 = vmatmul.mubr.msk.bf16.gmra.mxu0 %vm1389_vm1, %v3362_v24 }
  0x8e   : > { %v3398_v55 = vpop.permute.xlu0 %1159  ;;  %v3400_v56 = vpop.permute.xlu1 %1169 }
  0x92   : > { %v3402_v57 = vpop.permute.xlu0 %1164 }
  0x93   : > { %v3406_v61 = vpop.permute.xlu1 %1641 }
  0x97   : > { %v3410_v1 = vpop.permute.xlu0 %1645  ;;  %v3421_v15 = vpop.permute.xlu1 %1649 }
  0xfb   : > { %v1503_v58 = vpop.f32.mrf.mxu1 }
  0xfc   : > { %v1504_v59 = vadd.f32 %v1503_v58, %v3398_v55 }
  0xfd   : > { %v1505_v60 = vpop.f32.mrf.mxu1 }
  0xfe   : > { %vm1621_vm2 = vcmp.ge.f32.partialorder %v1504_v59, 0.0  ;;  %v1506_v62 = vadd.f32 %v1505_v60, %v3398_v55  ;;  %v1654_v0 = vmul.f32 %v3406_v61, %v1504_v59 }
  0xff   : > { %v1507_v63 = vpop.f32.mrf.mxu1 }
 0x100   : > { %vm1622_vm3 = vcmp.ge.f32.partialorder %v1506_v62, 0.0  ;;  %v1508_v2 = vadd.f32 %v1507_v63, %v3402_v57  ;;  %v1655_v3 = vmul.f32 %v3406_v61, %v1506_v62  ;;  %v1675_v4 = vsel %vm1621_vm2, %v1504_v59, %v1654_v0 }
 0x101   : > { %v1509_v5 = vpop.f32.mrf.mxu1 }
 0x102   : > { %vm1628_vm4 = vcmp.ge.f32.partialorder %v1508_v2, 0.0  ;;  %v1676_v6 = vsel %vm1622_vm3, %v1506_v62, %v1655_v3  ;;  %v1510_v7 = vadd.f32 %v1509_v5, %v3402_v57  ;;  %v1661_v8 = vmul.f32 %v3410_v1, %v1508_v2 }
 0x103   : > { %v2558_v9 = vpack.c.bf16 %v1676_v6, %v1675_v4  ;;  %v1513_v10 = vpop.f32.mrf.mxu1 }
 0x104   : > { %vm1629_vm5 = vcmp.ge.f32.partialorder %v1510_v7, 0.0  ;;  %v1662_v11 = vmul.f32 %v3410_v1, %v1510_v7  ;;  %v1682_v12 = vsel %vm1628_vm4, %v1508_v2, %v1661_v8  ;;  %v1514_v13 = vadd.f32 %v1513_v10, %v3400_v56 }
 0x105   : > { %1768 = vst [vmem:[%s3418_s12 + $0x8] sm:$0xff] %v2558_v9  ;;  %v1515_v14 = vpop.f32.mrf.mxu1 }
 0x106   : > { %v1683_v16 = vsel %vm1629_vm5, %v1510_v7, %v1662_v11  ;;  %vm1635_vm6 = vcmp.ge.f32.partialorder %v1514_v13, 0.0  ;;  %v1516_v17 = vadd.f32 %v1515_v14, %v3400_v56  ;;  %v1668_v18 = vmul.f32 %v3421_v15, %v1514_v13 }
 0x107   : > { %v1452_v19 = vpop.f32.mrf.mxu0  ;;  %v2562_v20 = vpack.c.bf16 %v1683_v16, %v1682_v12  ;;  %v1517_v21 = vpop.f32.mrf.mxu1 }
 0x108   : > { %v1453_v22 = vadd.f32 %v1452_v19, %v3398_v55  ;;  %vm1636_vm7 = vcmp.ge.f32.partialorder %v1516_v17, 0.0  ;;  %v1669_v23 = vmul.f32 %v3421_v15, %v1516_v17  ;;  %v1689_v24 = vsel %vm1635_vm6, %v1514_v13, %v1668_v18 }
 0x109   : > { %v1454_v25 = vpop.f32.mrf.mxu0  ;;  %1772 = vst [vmem:[%s3418_s12 + $0x24] sm:$0xff] %v2562_v20  ;;  %v1518_v26 = vpop.f32.mrf.mxu1 }
 0x10a   : > { %vm1619_vm8 = vcmp.ge.f32.partialorder %v1453_v22, 0.0  ;;  %v1455_v27 = vadd.f32 %v1454_v25, %v3398_v55  ;;  %v1652_v28 = vmul.f32 %v3406_v61, %v1453_v22  ;;  %v1690_v29 = vsel %vm1636_vm7, %v1516_v17, %v1669_v23 }
 0x10b   : > { %v1456_v30 = vpop.f32.mrf.mxu0  ;;  %v2566_v31 = vpack.c.bf16 %v1690_v29, %v1689_v24 }
 0x10c   : > { %vm1620_vm9 = vcmp.ge.f32.partialorder %v1455_v27, 0.0  ;;  %v1653_v32 = vmul.f32 %v3406_v61, %v1455_v27  ;;  %v1457_v33 = vadd.f32 %v1456_v30, %v3402_v57  ;;  %v1673_v34 = vsel %vm1619_vm8, %v1453_v22, %v1652_v28 }
 0x10d   : > { %v1458_v35 = vpop.f32.mrf.mxu0  ;;  %1776 = vst [vmem:[%s3418_s12 + $0x40] sm:$0x33] %v2566_v31 }
 0x10e   : > { %v1674_v36 = vsel %vm1620_vm9, %v1455_v27, %v1653_v32  ;;  %vm1626_vm10 = vcmp.ge.f32.partialorder %v1457_v33, 0.0  ;;  %v1459_v37 = vadd.f32 %v1458_v35, %v3402_v57  ;;  %v1659_v38 = vmul.f32 %v3410_v1, %v1457_v33 }
 0x10f   : > { %v2557_v39 = vpack.c.bf16 %v1674_v36, %v1673_v34  ;;  %v1462_v40 = vpop.f32.mrf.mxu0 }
 0x110   : > { %vm1627_vm11 = vcmp.ge.f32.partialorder %v1459_v37, 0.0  ;;  %v1660_v41 = vmul.f32 %v3410_v1, %v1459_v37  ;;  %v1463_v42 = vadd.f32 %v1462_v40, %v3400_v56  ;;  %v1680_v43 = vsel %vm1626_vm10, %v1457_v33, %v1659_v38 }
 0x111   : > { %1767 = vst [vmem:[%s3418_s12] sm:$0xff] %v2557_v39  ;;  %v1464_v44 = vpop.f32.mrf.mxu0 }
 0x112   : > { %v1681_v45 = vsel %vm1627_vm11, %v1459_v37, %v1660_v41  ;;  %vm1633_vm12 = vcmp.ge.f32.partialorder %v1463_v42, 0.0  ;;  %v1465_v46 = vadd.f32 %v1464_v44, %v3400_v56  ;;  %v1666_v47 = vmul.f32 %v3421_v15, %v1463_v42 }
 0x113   : > { %v2561_v48 = vpack.c.bf16 %v1681_v45, %v1680_v43  ;;  %v1466_v49 = vpop.f32.mrf.mxu0  ;;  %v2802_v50 = vpop.f32.mrf.mxu1 }
 0x114   : > { %vm1634_vm13 = vcmp.ge.f32.partialorder %v1465_v46, 0.0  ;;  %v1667_v51 = vmul.f32 %v3421_v15, %v1465_v46  ;;  %v1687_v52 = vsel %vm1633_vm12, %v1463_v42, %v1666_v47  ;;  %v1614_v53 = vadd.f32 %v2802_v50, %v3400_v56 }
 0x115   : > { %1771 = vst [vmem:[%s3418_s12 + $0x1c] sm:$0xff] %v2561_v48  ;;  %v1467_v54 = vpop.f32.mrf.mxu0  ;;  %v1605_v58 = vpop.f32.mrf.mxu1 }
 0x116   : > { %v1688_v59 = vsel %vm1634_vm13, %v1465_v46, %v1667_v51  ;;  %vm1639_vm14 = vcmp.ge.f32.partialorder %v1614_v53, 0.0  ;;  %v1672_v60 = vmul.f32 %v3421_v15, %v1614_v53  ;;  %v1606_v62 = vadd.f32 %v1605_v58, %v3398_v55 }
 0x117   : > { %v2565_v0 = vpack.c.bf16 %v1688_v59, %v1687_v52  ;;  %v2803_v63 = vpop.f32.mrf.mxu1 }
 0x118   : > { %v1693_v2 = vsel %vm1639_vm14, %v1614_v53, %v1672_v60  ;;  %vm1625_vm15 = vcmp.ge.f32.partialorder %v1606_v62, 0.0  ;;  %v1658_v3 = vmul.f32 %v3406_v61, %v1606_v62 }
 0x119   : > { %1775 = vst [vmem:[%s3418_s12 + $0x38] sm:$0x33] %v2565_v0  ;;  %v2568_v4 = vpack.c.bf16 %v1693_v2, %v1693_v2  ;;  %v1608_v5 = vpop.f32.mrf.mxu1 }
 0x11a   : > { %v1679_v6 = vsel %vm1625_vm15, %v1606_v62, %v1658_v3  ;;  %v1609_v7 = vadd.f32 %v1608_v5, %v3402_v57 }
 0x11b   : > { %1778 = vst [vmem:[%s3418_s12 + $0x50] sm:$0x3] %v2568_v4  ;;  %v2560_v8 = vpack.c.bf16 %v1679_v6, %v1679_v6 }
 0x11c   : > { %vm1632_vm0 = vcmp.ge.f32.partialorder %v1609_v7, 0.0  ;;  %v1665_v9 = vmul.f32 %v3410_v1, %v1609_v7 }
 0x11d   : > { %1770 = vst [vmem:[%s3418_s12 + $0x18] sm:$0xf] %v2560_v8 }
 0x11e   : > { %v1686_v10 = vsel %vm1632_vm0, %v1609_v7, %v1665_v9 }
 0x11f   : > { %v1554_v11 = vpop.f32.mrf.mxu0  ;;  %v2564_v12 = vpack.c.bf16 %v1686_v10, %v1686_v10 }
 0x120   : > { %v1555_v13 = vadd.f32 %v1554_v11, %v3398_v55 }
 0x121   : > { %1774 = vst [vmem:[%s3418_s12 + $0x34] sm:$0xf] %v2564_v12  ;;  %v1556_v14 = vpop.f32.mrf.mxu0 }
 0x122   : > { %v1656_v16 = vmul.f32 %v3406_v61, %v1555_v13  ;;  %v1557_v17 = vadd.f32 %v1556_v14, %v3398_v55  ;;  %vm1623_vm1 = vcmp.ge.f32.partialorder %v1555_v13, 0.0 }
 0x123   : > { %v1558_v18 = vpop.f32.mrf.mxu0 }
 0x124   : > { %vm1624_vm2 = vcmp.ge.f32.partialorder %v1557_v17, 0.0  ;;  %v1657_v19 = vmul.f32 %v3406_v61, %v1557_v17  ;;  %v1559_v20 = vadd.f32 %v1558_v18, %v3402_v57  ;;  %v1677_v22 = vsel %vm1623_vm1, %v1555_v13, %v1656_v16 }
 0x125   : > { %v1560_v21 = vpop.f32.mrf.mxu0 }
 0x126   : > { %v1678_v23 = vsel %vm1624_vm2, %v1557_v17, %v1657_v19  ;;  %v1663_v24 = vmul.f32 %v3410_v1, %v1559_v20  ;;  %v1561_v25 = vadd.f32 %v1560_v21, %v3402_v57  ;;  %vm1630_vm3 = vcmp.ge.f32.partialorder %v1559_v20, 0.0 }
 0x127   : > { %v2559_v26 = vpack.c.bf16 %v1678_v23, %v1677_v22  ;;  %v1564_v27 = vpop.f32.mrf.mxu0 }
 0x128   : > { %vm1631_vm4 = vcmp.ge.f32.partialorder %v1561_v25, 0.0  ;;  %v1664_v55 = vmul.f32 %v3410_v1, %v1561_v25  ;;  %v1565_v28 = vadd.f32 %v1564_v27, %v3400_v56  ;;  %v1684_v29 = vsel %vm1630_vm3, %v1559_v20, %v1663_v24 }
 0x129   : > { %1769 = vst [vmem:[%s3418_s12 + $0x10] sm:$0xff] %v2559_v26  ;;  %v1566_v61 = vpop.f32.mrf.mxu0 }
 0x12a   : > { %v1685_v30 = vsel %vm1631_vm4, %v1561_v25, %v1664_v55  ;;  %v1670_v31 = vmul.f32 %v3421_v15, %v1565_v28  ;;  %v1567_v32 = vadd.f32 %v1566_v61, %v3400_v56  ;;  %vm1637_vm5 = vcmp.ge.f32.partialorder %v1565_v28, 0.0 }
 0x12b   : > { %v2563_v33 = vpack.c.bf16 %v1685_v30, %v1684_v29  ;;  %v1568_v57 = vpop.f32.mrf.mxu0 }
 0x12c   : > { %vm1638_vm6 = vcmp.ge.f32.partialorder %v1567_v32, 0.0  ;;  %v1671_v34 = vmul.f32 %v3421_v15, %v1567_v32  ;;  %v1691_v1 = vsel %vm1637_vm5, %v1565_v28, %v1670_v31 }
 0x12d   : > { %1773 = vst [vmem:[%s3418_s12 + $0x2c] sm:$0xff] %v2563_v33  ;;  %v1569_v35 = vpop.f32.mrf.mxu0  ;;  %1785 = sbr.rel (!%p3235_p4) target bundleno = 498 (0x1f2), region = 36 }
 0x12e   : > { %v1692_v36 = vsel %vm1638_vm6, %v1567_v32, %v1671_v34 }
 0x12f   : > { %v2567_v37 = vpack.c.bf16 %v1692_v36, %v1691_v1 }
 0x131   : > { %1777 = vst [vmem:[%s3418_s12 + $0x48] sm:$0x33] %v2567_v37 }
 0x132   : > { %s4074_s5 = smov (!%p1788_p9, %s1787_s5), 7 }
 0x133   : > { %s1790_s10 = smul.u32 192, %s4074_s5  ;;  %s3476_s11 = sshll.u32 %s4074_s5, 2 }
 0x135   : > { %p2538_p10 = scmp.eq.s32.totalorder %s1790_s10, 0 }
 0x136   : > { %p1798_p11 = scmp.lt.u32.totalorder (!%p2538_p10), %s3476_s11, 8 }
 0x137   : > { %1797 = sbr.rel (%p2538_p10) target bundleno = 498 (0x1f2), region = 40 }
 0x13c   : > { %1801 = sbr.rel (%p1798_p11) target bundleno = 488 (0x1e8), region = 44  ;;  %s3480_s20 = sand.u32 (!%p1798_p11), 7, %s3476_s11  }
 0x13d   : > { %p1822_p12 = scmp.eq.s32.totalorder (!%p1798_p11), %s3480_s20, 0  ;;  %p2539_p13 = scmp.ne.s32.totalorder (!%p1798_p11), %s3480_s20, 0 }
 0x141   : > { %1825 = sbr.rel (%p2539_p13) target bundleno = 401 (0x191), region = 59  ;;  %s1826_s15 = sshrl.u32 (!%p2539_p13), %s3476_s11, 3 }
 0x142   : > { %3026 = sdivrem.u32 (!%p2539_p13), %s1826_s15, 24 }
 0x14b   : > { %s3487_s21 = spop.drf %3026 }
 0x14c   : > { %p2540_p0 = scmp.le.s32.totalorder %s3487_s21, 0 }
 0x14d   : > { %s4058_s14 = smov (!%p2540_p0), %s3474_s9  ;;  %s4059_s17 = smov (!%p2540_p0), %s3418_s12 }
 0x14e   : > { %2308 = sbr.rel (%p2540_p0) target bundleno = 376 (0x178), region = 306  ;;  %s3496_s18 = smov (!%p2540_p0), 0  }
 0x14f   : > { %s3498_s22 = smov (!%p2540_p0), 0  }
 0x153 LB: >> { %v1840_v56 = vld [vmem:[%s3128_s17] sm:$0xff]  ;;  %v1842_v15 = vld [vmem:[%s3128_s17 + $0x8] sm:$0xff]  ;;  %v1844_v38 = vld [vmem:[%s3128_s17 + $0x10] sm:$0xff]  ;;  %s1984_s23 = sadd.s32 1, %s3132_s18  ;;  %s1834_s22 = sadd.s32 1, %s3136_s22   ;;  %s3136_s22 = sphi %s3498_s22, %s1834_s22   ;;  %s3132_s18 = sphi %s3496_s18, %s4062_s18   ;;  %s3128_s17 = sphi %s4059_s17, %s4061_s17   ;;  %s3124_s14 = sphi %s4058_s14, %s4060_s14  }
 0x154   : >> { %1841 = vst [vmem:[%s3124_s14] sm:$0xff] %v1840_v56  ;;  %1843 = vst [vmem:[%s3124_s14 + $0x8] sm:$0xff] %v1842_v15  ;;  %v1846_v39 = vld [vmem:[%s3128_s17 + $0x18] sm:$0xff]  ;;  %v1848_v40 = vld [vmem:[%s3128_s17 + $0x20] sm:$0xff]  ;;  %p1985_p1 = scmp.ge.s32.totalorder %s1984_s23, %s3487_s21  ;;  %p1833_p2 = scmp.ge.s32.totalorder %s1834_s22, %s3487_s21 }
 0x155   : >> { %1845 = vst [vmem:[%s3124_s14 + $0x10] sm:$0xff] %v1844_v38  ;;  %v1850_v41 = vld [vmem:[%s3128_s17 + $0x28] sm:$0xff]  ;;  %1847 = vst [vmem:[%s3124_s14 + $0x18] sm:$0xff] %v1846_v39  ;;  %v1852_v42 = vld [vmem:[%s3128_s17 + $0x30] sm:$0xff] }
 0x156   : >> { %1849 = vst [vmem:[%s3124_s14 + $0x20] sm:$0xff] %v1848_v40  ;;  %1851 = vst [vmem:[%s3124_s14 + $0x28] sm:$0xff] %v1850_v41  ;;  %v3525_v43 = vld [vmem:[%s3128_s17 + $0x38] sm:$0xff]  ;;  %v3528_v44 = vld [vmem:[%s3128_s17 + $0x40] sm:$0xff]  ;;  %s4076_s23 = smov (%p1985_p1, %s1984_s23), 0 }
 0x157   : >> { %1853 = vst [vmem:[%s3124_s14 + $0x30] sm:$0xff] %v1852_v42  ;;  %1855 = vst [vmem:[%s3124_s14 + $0x38] sm:$0xff] %v3525_v43  ;;  %v3536_v45 = vld [vmem:[%s3128_s17 + $0x48] sm:$0xff]  ;;  %v3539_v46 = vld [vmem:[%s3128_s17 + $0x50] sm:$0xff]  ;;  %s1987_s24 = smul.u32 192, %s4076_s23  ;;  %s4062_s18 = smov %s4076_s23 }
 0x158   : >> { %1857 = vst [vmem:[%s3124_s14 + $0x40] sm:$0xff] %v3528_v44  ;;  %v3542_v47 = vld [vmem:[%s3128_s17 + $0x58] sm:$0xff]  ;;  %1859 = vst [vmem:[%s3124_s14 + $0x48] sm:$0xff] %v3536_v45  ;;  %v3553_v48 = vld [vmem:[%s3128_s17 + $0x60] sm:$0xff] }
 0x159   : >> { %1861 = vst [vmem:[%s3124_s14 + $0x50] sm:$0xff] %v3539_v46  ;;  %1863 = vst [vmem:[%s3124_s14 + $0x58] sm:$0xff] %v3542_v47  ;;  %v3556_v49 = vld [vmem:[%s3128_s17 + $0x68] sm:$0xff]  ;;  %v3559_v50 = vld [vmem:[%s3128_s17 + $0x70] sm:$0xff]  ;;  %s3608_s25 = scalar_lea.vmem %s3418_s12, %s1987_s24 [#allocation2]   ;;  %s3611_s26 = scalar_lea.vmem %s3474_s9, %s1987_s24  }
 0x15a   : >> { %1865 = vst [vmem:[%s3124_s14 + $0x60] sm:$0xff] %v3553_v48  ;;  %1867 = vst [vmem:[%s3124_s14 + $0x68] sm:$0xff] %v3556_v49  ;;  %v3568_v51 = vld [vmem:[%s3128_s17 + $0x78] sm:$0xff]  ;;  %v3571_v52 = vld [vmem:[%s3128_s17 + $0x80] sm:$0xff] }
 0x15b   : >> { %1869 = vst [vmem:[%s3124_s14 + $0x70] sm:$0xff] %v3559_v50  ;;  %v3574_v53 = vld [vmem:[%s3128_s17 + $0x88] sm:$0xff]  ;;  %1871 = vst [vmem:[%s3124_s14 + $0x78] sm:$0xff] %v3568_v51  ;;  %v3584_v54 = vld [vmem:[%s3128_s17 + $0x90] sm:$0xff] }
 0x15c   : >> { %1873 = vst [vmem:[%s3124_s14 + $0x80] sm:$0xff] %v3571_v52  ;;  %1875 = vst [vmem:[%s3124_s14 + $0x88] sm:$0xff] %v3574_v53  ;;  %v3587_v58 = vld [vmem:[%s3128_s17 + $0x98] sm:$0xff]  ;;  %v3590_v59 = vld [vmem:[%s3128_s17 + $0xa0] sm:$0xff] }
 0x15d   : >> { %1877 = vst [vmem:[%s3124_s14 + $0x90] sm:$0xff] %v3584_v54  ;;  %1879 = vst [vmem:[%s3124_s14 + $0x98] sm:$0xff] %v3587_v58  ;;  %v3599_v60 = vld [vmem:[%s3128_s17 + $0xa8] sm:$0xff]  ;;  %v3602_v62 = vld [vmem:[%s3128_s17 + $0xb0] sm:$0xff] }
 0x15e   : >> { %1881 = vst [vmem:[%s3124_s14 + $0xa0] sm:$0xff] %v3590_v59  ;;  %v3605_v0 = vld [vmem:[%s3128_s17 + $0xb8] sm:$0xff]  ;;  %1883 = vst [vmem:[%s3124_s14 + $0xa8] sm:$0xff] %v3599_v60  ;;  %v1890_v2 = vld [vmem:[%s3128_s17 + $0x24] sm:$0xff] }
 0x15f   : >> { %1885 = vst [vmem:[%s3124_s14 + $0xb0] sm:$0xff] %v3602_v62  ;;  %1887 = vst [vmem:[%s3124_s14 + $0xb8] sm:$0xff] %v3605_v0  ;;  %v1888_v63 = vld [vmem:[%s3128_s17 + $0x1c] sm:$0xff]  ;;  %v1892_v3 = vld [vmem:[%s3128_s17 + $0x2c] sm:$0xff] }
 0x160   : >> { %1889 = vst [vmem:[%s3124_s14 + $0x34] sm:$0xff] %v1888_v63  ;;  %1891 = vst [vmem:[%s3124_s14 + $0x3c] sm:$0xff] %v1890_v2  ;;  %v1894_v4 = vld [vmem:[%s3128_s17 + $0x34] sm:$0xff]  ;;  %v1896_v5 = vld [vmem:[%s3128_s17 + $0x3c] sm:$0xff] }
 0x161   : >> { %1893 = vst [vmem:[%s3124_s14 + $0x44] sm:$0xff] %v1892_v3  ;;  %v1898_v6 = vld [vmem:[%s3128_s17 + $0x44] sm:$0xff]  ;;  %1895 = vst [vmem:[%s3124_s14 + $0x4c] sm:$0xff] %v1894_v4  ;;  %v1900_v7 = vld [vmem:[%s3128_s17 + $0x4c] sm:$0xff] }
 0x162   : >> { %1897 = vst [vmem:[%s3124_s14 + $0x54] sm:$0xff] %v1896_v5  ;;  %1899 = vst [vmem:[%s3124_s14 + $0x5c] sm:$0xff] %v1898_v6  ;;  %v1902_v8 = vld [vmem:[%s3128_s17 + $0x54] sm:$0xff]  ;;  %v1904_v9 = vld [vmem:[%s3128_s17 + $0x5c] sm:$0xff] }
 0x163   : >> { %1901 = vst [vmem:[%s3124_s14 + $0x64] sm:$0xff] %v1900_v7  ;;  %1903 = vst [vmem:[%s3124_s14 + $0x6c] sm:$0xff] %v1902_v8  ;;  %v1906_v10 = vld [vmem:[%s3128_s17 + $0x64] sm:$0xff]  ;;  %v1908_v11 = vld [vmem:[%s3128_s17 + $0x6c] sm:$0xff] }
 0x164   : >> { %1905 = vst [vmem:[%s3124_s14 + $0x74] sm:$0xff] %v1904_v9  ;;  %v1910_v12 = vld [vmem:[%s3128_s17 + $0x74] sm:$0xff]  ;;  %1907 = vst [vmem:[%s3124_s14 + $0x7c] sm:$0xff] %v1906_v10  ;;  %v1912_v13 = vld [vmem:[%s3128_s17 + $0x7c] sm:$0xff] }
 0x165   : >> { %1909 = vst [vmem:[%s3124_s14 + $0x84] sm:$0xff] %v1908_v11  ;;  %1911 = vst [vmem:[%s3124_s14 + $0x8c] sm:$0xff] %v1910_v12  ;;  %v1914_v14 = vld [vmem:[%s3128_s17 + $0x84] sm:$0xff]  ;;  %v1916_v16 = vld [vmem:[%s3128_s17 + $0x8c] sm:$0xff] }
 0x166   : >> { %1937 = vst [vmem:[%s3124_s14 + $0x68] sm:$0xff] %v3525_v43  ;;  %1939 = vst [vmem:[%s3124_s14 + $0x70] sm:$0xff] %v3528_v44  ;;  %v1918_v17 = vld [vmem:[%s3128_s17 + $0x94] sm:$0xff]  ;;  %v1920_v18 = vld [vmem:[%s3128_s17 + $0x9c] sm:$0xff] }
 0x167   : >> { %1913 = vst [vmem:[%s3124_s14 + $0x94] sm:$0xff] %v1912_v13  ;;  %1915 = vst [vmem:[%s3124_s14 + $0x9c] sm:$0xff] %v1914_v14  ;;  %v1922_v19 = vld [vmem:[%s3128_s17 + $0xa4] sm:$0xff]  ;;  %v1924_v20 = vld [vmem:[%s3128_s17 + $0xac] sm:$0xff] }
 0x168   : >> { %1917 = vst [vmem:[%s3124_s14 + $0xa4] sm:$0xff] %v1916_v16  ;;  %1941 = vst [vmem:[%s3124_s14 + $0x78] sm:$0xff] %v3536_v45  ;;  %v1926_v21 = vld [vmem:[%s3128_s17 + $0xb4] sm:$0xff]  ;;  %v1928_v22 = vld [vmem:[%s3128_s17 + $0xbc] sm:$0xff] }
 0x169   : >> { %1943 = vst [vmem:[%s3124_s14 + $0x80] sm:$0xff] %v3539_v46  ;;  %1945 = vst [vmem:[%s3124_s14 + $0x88] sm:$0xff] %v3542_v47  ;;  %v1930_v23 = vld [vmem:[%s3128_s17 + $0xc4] sm:$0xff]  ;;  %v1932_v24 = vld [vmem:[%s3128_s17 + $0xcc] sm:$0xff] }
 0x16a   : >> { %1919 = vst [vmem:[%s3124_s14 + $0xac] sm:$0xff] %v1918_v17  ;;  %1921 = vst [vmem:[%s3124_s14 + $0xb4] sm:$0xff] %v1920_v18  ;;  %v1934_v25 = vld [vmem:[%s3128_s17 + $0xd4] sm:$0xff]  ;;  %v1970_v26 = vld [vmem:[%s3128_s17 + $0xc0] sm:$0xff] }
 0x16b   : >> { %1923 = vst [vmem:[%s3124_s14 + $0xbc] sm:$0xff] %v1922_v19  ;;  %1947 = vst [vmem:[%s3124_s14 + $0x90] sm:$0xff] %v3553_v48  ;;  %v1972_v27 = vld [vmem:[%s3128_s17 + $0xc8] sm:$0xff]  ;;  %v1974_v55 = vld [vmem:[%s3128_s17 + $0xd0] sm:$0xff] }
 0x16c   : >> { %1949 = vst [vmem:[%s3124_s14 + $0x98] sm:$0xff] %v3556_v49  ;;  %1951 = vst [vmem:[%s3124_s14 + $0xa0] sm:$0xff] %v3559_v50  ;;  %v1976_v28 = vld [vmem:[%s3128_s17 + $0xd8] sm:$0xff]  ;;  %v1978_v61 = vld [vmem:[%s3128_s17 + $0xe0] sm:$0xff] }
 0x16d   : >> { %1925 = vst [vmem:[%s3124_s14 + $0xc4] sm:$0xff] %v1924_v20  ;;  %1927 = vst [vmem:[%s3124_s14 + $0xcc] sm:$0xff] %v1926_v21  ;;  %v1980_v29 = vld [vmem:[%s3128_s17 + $0xe8] sm:$0xff]  ;;  %v1982_v30 = vld [vmem:[%s3128_s17 + $0xf0] sm:$0xff]  ;;  %s4061_s17 = smov %s3608_s25 }
 0x16e   : >> { %1929 = vst [vmem:[%s3124_s14 + $0xd4] sm:$0xff] %v1928_v22  ;;  %1953 = vst [vmem:[%s3124_s14 + $0xa8] sm:$0xff] %v3568_v51 }
 0x16f   : >> { %1955 = vst [vmem:[%s3124_s14 + $0xb0] sm:$0xff] %v3571_v52  ;;  %1957 = vst [vmem:[%s3124_s14 + $0xb8] sm:$0xff] %v3574_v53 }
 0x170   : >> { %1931 = vst [vmem:[%s3124_s14 + $0xdc] sm:$0xff] %v1930_v23  ;;  %1933 = vst [vmem:[%s3124_s14 + $0xe4] sm:$0xff] %v1932_v24 }
 0x171   : >> { %1935 = vst [vmem:[%s3124_s14 + $0xec] sm:$0xff] %v1934_v25  ;;  %1959 = vst [vmem:[%s3124_s14 + $0xc0] sm:$0xff] %v3584_v54 }
 0x172   : >> { %1961 = vst [vmem:[%s3124_s14 + $0xc8] sm:$0xff] %v3587_v58  ;;  %1963 = vst [vmem:[%s3124_s14 + $0xd0] sm:$0xff] %v3590_v59 }
 0x173   : >> { %1965 = vst [vmem:[%s3124_s14 + $0xd8] sm:$0xff] %v3599_v60  ;;  %1967 = vst [vmem:[%s3124_s14 + $0xe0] sm:$0xff] %v3602_v62  ;;  %1836 = sbr.rel (!%p1833_p2) target bundleno = 339 (0x153), region = 312 }
 0x174   : >> { %1969 = vst [vmem:[%s3124_s14 + $0xe8] sm:$0xff] %v3605_v0  ;;  %1971 = vst [vmem:[%s3124_s14 + $0xf0] sm:$0xff] %v1970_v26 }
 0x175   : >> { %1973 = vst [vmem:[%s3124_s14 + $0xf8] sm:$0xff] %v1972_v27  ;;  %1975 = vst [vmem:[%s3124_s14 + $0x100] sm:$0xff] %v1974_v55 }
 0x176   : >> { %1977 = vst [vmem:[%s3124_s14 + $0x108] sm:$0xff] %v1976_v28  ;;  %1979 = vst [vmem:[%s3124_s14 + $0x110] sm:$0xff] %v1978_v61 }
 0x177   : >> { %1981 = vst [vmem:[%s3124_s14 + $0x118] sm:$0xff] %v1980_v29  ;;  %1983 = vst [vmem:[%s3124_s14 + $0x120] sm:$0xff] %v1982_v30  ;;  %s4060_s14 = smov %s3611_s26 }
 0x178 PF: > { %3028 = sdivrem.u32 %s1826_s15, 24 }
 0x179   : > { %s2541_s27 = smul.u32 3072, %s3487_s21 }
 0x17b   : > { %s1995_s28 = sshra.s32 %s2541_s27, 4 }
 0x17c   : > { %s3732_s29 = scalar_lea.vmem %s3418_s12, %s1995_s28 [#allocation2]   ;;  %s3735_s30 = scalar_lea.vmem %s3474_s9, %s1995_s28  }
 0x181   : > { %s3737_s4 = spop.drf %3028 }
 0x182   : > { %p2543_p3 = scmp.le.s32.totalorder %s3737_s4, 0 }
 0x183   : > { %s4063_s5 = smov (!%p2543_p3), %s3735_s30  ;;  %s3142_s6 = smov (!%p2543_p3), %s3732_s29  }
 0x184   : > { %2322 = sbr.rel (%p2543_p3) target bundleno = 401 (0x191), region = 317  ;;  %s3146_s7 = smov (!%p2543_p3), 0  }
 0x185   : > { %s3150_s8 = smov (!%p2543_p3), 0  }
 0x189 LB: >> { %v2011_v31 = vld [vmem:[%s3144_s6] sm:$0xff]  ;;  %v2015_v33 = vld [vmem:[%s3144_s6 + $0x38] sm:$0xff]  ;;  %s2017_s10 = sadd.s32 1, %s3148_s7  ;;  %s2005_s8 = sadd.s32 1, %s3152_s8   ;;  %s3152_s8 = sphi %s3150_s8, %s2005_s8   ;;  %s3148_s7 = sphi %s3146_s7, %s3147_s7   ;;  %s3144_s6 = sphi %s3142_s6, %s2022_s6   ;;  %s3140_s5 = sphi %s4063_s5, %s2023_s5  }
 0x18a   : >> { %v2013_v32 = vld [vmem:[%s3144_s6 + $0x1c] sm:$0xff]  ;;  %2012 = vst [vmem:[%s3140_s5] sm:$0xff] %v2011_v31  ;;  %2016 = vst [vmem:[%s3140_s5 + $0x68] sm:$0xff] %v2015_v33  ;;  %p2018_p4 = scmp.ge.s32.totalorder %s2017_s10, %s3737_s4  ;;  %p2004_p5 = scmp.ge.s32.totalorder %s2005_s8, %s3737_s4 }
 0x18b   : >> { %2014 = vst [vmem:[%s3140_s5 + $0x34] sm:$0xff] %v2013_v32 }
 0x18c   : >> { %s4078_s10 = smov (%p2018_p4, %s2017_s10), 0  ;;  %2007 = sbr.rel (!%p2004_p5) target bundleno = 393 (0x189), region = 323 }
 0x18d   : >> { %s2544_s15 = sshll.u32 %s4078_s10, 3  ;;  %s3147_s7 = smov %s4078_s10  }
 0x18e   : >> { %s2022_s6 = scalar_lea.vmem %s3732_s29, %s2544_s15 [#allocation2]   ;;  %s2023_s5 = scalar_lea.vmem %s3735_s30, %s2544_s15  }
 0x191 PF: > { %2026 = sbr.rel (%p1822_p12) target bundleno = 488 (0x1e8), region = 77  ;;  %s2028_s21 = ssub.s32 (!%p1822_p12), %s3476_s11, %s3480_s20 }
 0x192   : > { %s2032_s14 = sshrl.u32 (!%p1822_p12), %s3476_s11, 3  ;;  %s3757_s17 = scalar_lea.vmem (!%p1822_p12), %s3418_s12, %s2028_s21 [#allocation2] }
 0x193   : > { %s3760_s18 = scalar_lea.vmem (!%p1822_p12), %s3474_s9, %s2028_s21  ;;  %3030 = sdivrem.u32 (!%p1822_p12), %s2032_s14, 24 }
 0x19c   : > { %s3764_s22 = spop.drf %3030 }
 0x19d   : > { %p2546_p6 = scmp.le.s32.totalorder %s3764_s22, 0 }
 0x19e   : > { %s4064_s23 = smov (!%p2546_p6), %s3474_s9  ;;  %s4065_s24 = smov (!%p2546_p6), %s3418_s12 }
 0x19f   : > { %2336 = sbr.rel (%p2546_p6) target bundleno = 457 (0x1c9), region = 328  ;;  %s3773_s25 = smov (!%p2546_p6), 0  }
 0x1a0   : > { %s3775_s26 = smov (!%p2546_p6), 0  }
 0x1a4 LB: >> { %v2046_v57 = vld [vmem:[%s3160_s24] sm:$0xff]  ;;  %v2048_v34 = vld [vmem:[%s3160_s24 + $0x8] sm:$0xff]  ;;  %v2050_v35 = vld [vmem:[%s3160_s24 + $0x10] sm:$0xff]  ;;  %s2190_s27 = sadd.s32 1, %s3164_s25  ;;  %s2040_s26 = sadd.s32 1, %s3168_s26   ;;  %s3168_s26 = sphi %s3775_s26, %s2040_s26   ;;  %s3164_s25 = sphi %s3773_s25, %s4068_s25   ;;  %s3160_s24 = sphi %s4065_s24, %s4067_s24   ;;  %s3156_s23 = sphi %s4064_s23, %s4066_s23  }
 0x1a5   : >> { %2047 = vst [vmem:[%s3156_s23] sm:$0xff] %v2046_v57  ;;  %2049 = vst [vmem:[%s3156_s23 + $0x8] sm:$0xff] %v2048_v34  ;;  %v2052_v1 = vld [vmem:[%s3160_s24 + $0x18] sm:$0xff]  ;;  %v2054_v36 = vld [vmem:[%s3160_s24 + $0x20] sm:$0xff]  ;;  %p2191_p7 = scmp.ge.s32.totalorder %s2190_s27, %s3764_s22  ;;  %p2039_p8 = scmp.ge.s32.totalorder %s2040_s26, %s3764_s22 }
 0x1a6   : >> { %2051 = vst [vmem:[%s3156_s23 + $0x10] sm:$0xff] %v2050_v35  ;;  %v2056_v37 = vld [vmem:[%s3160_s24 + $0x28] sm:$0xff]  ;;  %2053 = vst [vmem:[%s3156_s23 + $0x18] sm:$0xff] %v2052_v1  ;;  %v2058_v56 = vld [vmem:[%s3160_s24 + $0x30] sm:$0xff] }
 0x1a7   : >> { %2055 = vst [vmem:[%s3156_s23 + $0x20] sm:$0xff] %v2054_v36  ;;  %2057 = vst [vmem:[%s3156_s23 + $0x28] sm:$0xff] %v2056_v37  ;;  %v3802_v15 = vld [vmem:[%s3160_s24 + $0x38] sm:$0xff]  ;;  %v3805_v38 = vld [vmem:[%s3160_s24 + $0x40] sm:$0xff]  ;;  %s4080_s27 = smov (%p2191_p7, %s2190_s27), 0 }
 0x1a8   : >> { %2059 = vst [vmem:[%s3156_s23 + $0x30] sm:$0xff] %v2058_v56  ;;  %2061 = vst [vmem:[%s3156_s23 + $0x38] sm:$0xff] %v3802_v15  ;;  %v3813_v39 = vld [vmem:[%s3160_s24 + $0x48] sm:$0xff]  ;;  %v3816_v40 = vld [vmem:[%s3160_s24 + $0x50] sm:$0xff]  ;;  %s2193_s28 = smul.u32 192, %s4080_s27  ;;  %s4068_s25 = smov %s4080_s27 }
 0x1a9   : >> { %2063 = vst [vmem:[%s3156_s23 + $0x40] sm:$0xff] %v3805_v38  ;;  %v3819_v41 = vld [vmem:[%s3160_s24 + $0x58] sm:$0xff]  ;;  %2065 = vst [vmem:[%s3156_s23 + $0x48] sm:$0xff] %v3813_v39  ;;  %v3830_v42 = vld [vmem:[%s3160_s24 + $0x60] sm:$0xff] }
 0x1aa   : >> { %2067 = vst [vmem:[%s3156_s23 + $0x50] sm:$0xff] %v3816_v40  ;;  %2069 = vst [vmem:[%s3156_s23 + $0x58] sm:$0xff] %v3819_v41  ;;  %v3833_v43 = vld [vmem:[%s3160_s24 + $0x68] sm:$0xff]  ;;  %v3836_v44 = vld [vmem:[%s3160_s24 + $0x70] sm:$0xff]  ;;  %s3885_s29 = scalar_lea.vmem %s3418_s12, %s2193_s28 [#allocation2]   ;;  %s3888_s30 = scalar_lea.vmem %s3474_s9, %s2193_s28  }
 0x1ab   : >> { %2071 = vst [vmem:[%s3156_s23 + $0x60] sm:$0xff] %v3830_v42  ;;  %2073 = vst [vmem:[%s3156_s23 + $0x68] sm:$0xff] %v3833_v43  ;;  %v3845_v45 = vld [vmem:[%s3160_s24 + $0x78] sm:$0xff]  ;;  %v3848_v46 = vld [vmem:[%s3160_s24 + $0x80] sm:$0xff] }
 0x1ac   : >> { %2075 = vst [vmem:[%s3156_s23 + $0x70] sm:$0xff] %v3836_v44  ;;  %v3851_v47 = vld [vmem:[%s3160_s24 + $0x88] sm:$0xff]  ;;  %2077 = vst [vmem:[%s3156_s23 + $0x78] sm:$0xff] %v3845_v45  ;;  %v3861_v48 = vld [vmem:[%s3160_s24 + $0x90] sm:$0xff] }
 0x1ad   : >> { %2079 = vst [vmem:[%s3156_s23 + $0x80] sm:$0xff] %v3848_v46  ;;  %2081 = vst [vmem:[%s3156_s23 + $0x88] sm:$0xff] %v3851_v47  ;;  %v3864_v49 = vld [vmem:[%s3160_s24 + $0x98] sm:$0xff]  ;;  %v3867_v50 = vld [vmem:[%s3160_s24 + $0xa0] sm:$0xff] }
 0x1ae   : >> { %2083 = vst [vmem:[%s3156_s23 + $0x90] sm:$0xff] %v3861_v48  ;;  %2085 = vst [vmem:[%s3156_s23 + $0x98] sm:$0xff] %v3864_v49  ;;  %v3876_v51 = vld [vmem:[%s3160_s24 + $0xa8] sm:$0xff]  ;;  %v3879_v52 = vld [vmem:[%s3160_s24 + $0xb0] sm:$0xff] }
 0x1af   : >> { %2087 = vst [vmem:[%s3156_s23 + $0xa0] sm:$0xff] %v3867_v50  ;;  %v3882_v53 = vld [vmem:[%s3160_s24 + $0xb8] sm:$0xff]  ;;  %2089 = vst [vmem:[%s3156_s23 + $0xa8] sm:$0xff] %v3876_v51  ;;  %v2096_v58 = vld [vmem:[%s3160_s24 + $0x24] sm:$0xff] }
 0x1b0   : >> { %2091 = vst [vmem:[%s3156_s23 + $0xb0] sm:$0xff] %v3879_v52  ;;  %2093 = vst [vmem:[%s3156_s23 + $0xb8] sm:$0xff] %v3882_v53  ;;  %v2094_v54 = vld [vmem:[%s3160_s24 + $0x1c] sm:$0xff]  ;;  %v2098_v59 = vld [vmem:[%s3160_s24 + $0x2c] sm:$0xff] }
 0x1b1   : >> { %2095 = vst [vmem:[%s3156_s23 + $0x34] sm:$0xff] %v2094_v54  ;;  %2097 = vst [vmem:[%s3156_s23 + $0x3c] sm:$0xff] %v2096_v58  ;;  %v2100_v60 = vld [vmem:[%s3160_s24 + $0x34] sm:$0xff]  ;;  %v2102_v62 = vld [vmem:[%s3160_s24 + $0x3c] sm:$0xff] }
 0x1b2   : >> { %2099 = vst [vmem:[%s3156_s23 + $0x44] sm:$0xff] %v2098_v59  ;;  %v2104_v0 = vld [vmem:[%s3160_s24 + $0x44] sm:$0xff]  ;;  %2101 = vst [vmem:[%s3156_s23 + $0x4c] sm:$0xff] %v2100_v60  ;;  %v2106_v63 = vld [vmem:[%s3160_s24 + $0x4c] sm:$0xff] }
 0x1b3   : >> { %2103 = vst [vmem:[%s3156_s23 + $0x54] sm:$0xff] %v2102_v62  ;;  %2105 = vst [vmem:[%s3156_s23 + $0x5c] sm:$0xff] %v2104_v0  ;;  %v2108_v2 = vld [vmem:[%s3160_s24 + $0x54] sm:$0xff]  ;;  %v2110_v3 = vld [vmem:[%s3160_s24 + $0x5c] sm:$0xff] }
 0x1b4   : >> { %2107 = vst [vmem:[%s3156_s23 + $0x64] sm:$0xff] %v2106_v63  ;;  %2109 = vst [vmem:[%s3156_s23 + $0x6c] sm:$0xff] %v2108_v2  ;;  %v2112_v4 = vld [vmem:[%s3160_s24 + $0x64] sm:$0xff]  ;;  %v2114_v5 = vld [vmem:[%s3160_s24 + $0x6c] sm:$0xff] }
 0x1b5   : >> { %2111 = vst [vmem:[%s3156_s23 + $0x74] sm:$0xff] %v2110_v3  ;;  %v2116_v6 = vld [vmem:[%s3160_s24 + $0x74] sm:$0xff]  ;;  %2113 = vst [vmem:[%s3156_s23 + $0x7c] sm:$0xff] %v2112_v4  ;;  %v2118_v7 = vld [vmem:[%s3160_s24 + $0x7c] sm:$0xff] }
 0x1b6   : >> { %2115 = vst [vmem:[%s3156_s23 + $0x84] sm:$0xff] %v2114_v5  ;;  %2117 = vst [vmem:[%s3156_s23 + $0x8c] sm:$0xff] %v2116_v6  ;;  %v2120_v8 = vld [vmem:[%s3160_s24 + $0x84] sm:$0xff]  ;;  %v2122_v9 = vld [vmem:[%s3160_s24 + $0x8c] sm:$0xff] }
 0x1b7   : >> { %2143 = vst [vmem:[%s3156_s23 + $0x68] sm:$0xff] %v3802_v15  ;;  %2145 = vst [vmem:[%s3156_s23 + $0x70] sm:$0xff] %v3805_v38  ;;  %v2124_v10 = vld [vmem:[%s3160_s24 + $0x94] sm:$0xff]  ;;  %v2126_v11 = vld [vmem:[%s3160_s24 + $0x9c] sm:$0xff] }
 0x1b8   : >> { %2119 = vst [vmem:[%s3156_s23 + $0x94] sm:$0xff] %v2118_v7  ;;  %2121 = vst [vmem:[%s3156_s23 + $0x9c] sm:$0xff] %v2120_v8  ;;  %v2128_v12 = vld [vmem:[%s3160_s24 + $0xa4] sm:$0xff]  ;;  %v2130_v13 = vld [vmem:[%s3160_s24 + $0xac] sm:$0xff] }
 0x1b9   : >> { %2123 = vst [vmem:[%s3156_s23 + $0xa4] sm:$0xff] %v2122_v9  ;;  %2147 = vst [vmem:[%s3156_s23 + $0x78] sm:$0xff] %v3813_v39  ;;  %v2132_v14 = vld [vmem:[%s3160_s24 + $0xb4] sm:$0xff]  ;;  %v2134_v16 = vld [vmem:[%s3160_s24 + $0xbc] sm:$0xff] }
 0x1ba   : >> { %2149 = vst [vmem:[%s3156_s23 + $0x80] sm:$0xff] %v3816_v40  ;;  %2151 = vst [vmem:[%s3156_s23 + $0x88] sm:$0xff] %v3819_v41  ;;  %v2136_v17 = vld [vmem:[%s3160_s24 + $0xc4] sm:$0xff]  ;;  %v2138_v18 = vld [vmem:[%s3160_s24 + $0xcc] sm:$0xff] }
 0x1bb   : >> { %2125 = vst [vmem:[%s3156_s23 + $0xac] sm:$0xff] %v2124_v10  ;;  %2127 = vst [vmem:[%s3156_s23 + $0xb4] sm:$0xff] %v2126_v11  ;;  %v2140_v19 = vld [vmem:[%s3160_s24 + $0xd4] sm:$0xff]  ;;  %v2176_v20 = vld [vmem:[%s3160_s24 + $0xc0] sm:$0xff] }
 0x1bc   : >> { %2129 = vst [vmem:[%s3156_s23 + $0xbc] sm:$0xff] %v2128_v12  ;;  %2153 = vst [vmem:[%s3156_s23 + $0x90] sm:$0xff] %v3830_v42  ;;  %v2178_v21 = vld [vmem:[%s3160_s24 + $0xc8] sm:$0xff]  ;;  %v2180_v22 = vld [vmem:[%s3160_s24 + $0xd0] sm:$0xff] }
 0x1bd   : >> { %2155 = vst [vmem:[%s3156_s23 + $0x98] sm:$0xff] %v3833_v43  ;;  %2157 = vst [vmem:[%s3156_s23 + $0xa0] sm:$0xff] %v3836_v44  ;;  %v2182_v23 = vld [vmem:[%s3160_s24 + $0xd8] sm:$0xff]  ;;  %v2184_v24 = vld [vmem:[%s3160_s24 + $0xe0] sm:$0xff] }
 0x1be   : >> { %2131 = vst [vmem:[%s3156_s23 + $0xc4] sm:$0xff] %v2130_v13  ;;  %2133 = vst [vmem:[%s3156_s23 + $0xcc] sm:$0xff] %v2132_v14  ;;  %v2186_v25 = vld [vmem:[%s3160_s24 + $0xe8] sm:$0xff]  ;;  %v2188_v26 = vld [vmem:[%s3160_s24 + $0xf0] sm:$0xff]  ;;  %s4067_s24 = smov %s3885_s29 }
 0x1bf   : >> { %2135 = vst [vmem:[%s3156_s23 + $0xd4] sm:$0xff] %v2134_v16  ;;  %2159 = vst [vmem:[%s3156_s23 + $0xa8] sm:$0xff] %v3845_v45 }
 0x1c0   : >> { %2161 = vst [vmem:[%s3156_s23 + $0xb0] sm:$0xff] %v3848_v46  ;;  %2163 = vst [vmem:[%s3156_s23 + $0xb8] sm:$0xff] %v3851_v47 }
 0x1c1   : >> { %2137 = vst [vmem:[%s3156_s23 + $0xdc] sm:$0xff] %v2136_v17  ;;  %2139 = vst [vmem:[%s3156_s23 + $0xe4] sm:$0xff] %v2138_v18 }
 0x1c2   : >> { %2141 = vst [vmem:[%s3156_s23 + $0xec] sm:$0xff] %v2140_v19  ;;  %2165 = vst [vmem:[%s3156_s23 + $0xc0] sm:$0xff] %v3861_v48 }
 0x1c3   : >> { %2167 = vst [vmem:[%s3156_s23 + $0xc8] sm:$0xff] %v3864_v49  ;;  %2169 = vst [vmem:[%s3156_s23 + $0xd0] sm:$0xff] %v3867_v50 }
 0x1c4   : >> { %2171 = vst [vmem:[%s3156_s23 + $0xd8] sm:$0xff] %v3876_v51  ;;  %2173 = vst [vmem:[%s3156_s23 + $0xe0] sm:$0xff] %v3879_v52  ;;  %2042 = sbr.rel (!%p2039_p8) target bundleno = 420 (0x1a4), region = 334 }
 0x1c5   : >> { %2175 = vst [vmem:[%s3156_s23 + $0xe8] sm:$0xff] %v3882_v53  ;;  %2177 = vst [vmem:[%s3156_s23 + $0xf0] sm:$0xff] %v2176_v20 }
 0x1c6   : >> { %2179 = vst [vmem:[%s3156_s23 + $0xf8] sm:$0xff] %v2178_v21  ;;  %2181 = vst [vmem:[%s3156_s23 + $0x100] sm:$0xff] %v2180_v22 }
 0x1c7   : >> { %2183 = vst [vmem:[%s3156_s23 + $0x108] sm:$0xff] %v2182_v23  ;;  %2185 = vst [vmem:[%s3156_s23 + $0x110] sm:$0xff] %v2184_v24 }
 0x1c8   : >> { %2187 = vst [vmem:[%s3156_s23 + $0x118] sm:$0xff] %v2186_v25  ;;  %2189 = vst [vmem:[%s3156_s23 + $0x120] sm:$0xff] %v2188_v26  ;;  %s4066_s23 = smov %s3888_s30 }
 0x1c9 PF: > { %3032 = sdivrem.u32 %s2032_s14, 24 }
 0x1ca   : > { %s2547_s4 = smul.u32 3072, %s3764_s22 }
 0x1cc   : > { %s2201_s5 = sshra.s32 %s2547_s4, 4 }
 0x1cd   : > { %s4009_s6 = scalar_lea.vmem %s3418_s12, %s2201_s5 [#allocation2]   ;;  %s4012_s7 = scalar_lea.vmem %s3474_s9, %s2201_s5  }
 0x1d2   : > { %s4014_s8 = spop.drf %3032 }
 0x1d3   : > { %p2549_p9 = scmp.le.s32.totalorder %s4014_s8, 0 }
 0x1d4   : > { %s4069_s10 = smov (!%p2549_p9), %s4012_s7  ;;  %s3174_s15 = smov (!%p2549_p9), %s4009_s6  }
 0x1d5   : > { %2350 = sbr.rel (%p2549_p9) target bundleno = 482 (0x1e2), region = 339  ;;  %s3178_s21 = smov (!%p2549_p9), 0  }
 0x1d6   : > { %s3182_s23 = smov (!%p2549_p9), 0  }
 0x1da LB: >> { %v2217_v27 = vld [vmem:[%s3176_s15] sm:$0xff]  ;;  %v2221_v28 = vld [vmem:[%s3176_s15 + $0x38] sm:$0xff]  ;;  %s2223_s14 = sadd.s32 1, %s3180_s21  ;;  %s2211_s23 = sadd.s32 1, %s3184_s23   ;;  %s3184_s23 = sphi %s3182_s23, %s2211_s23   ;;  %s3180_s21 = sphi %s3178_s21, %s3179_s21   ;;  %s3176_s15 = sphi %s3174_s15, %s2228_s15   ;;  %s3172_s10 = sphi %s4069_s10, %s2229_s10  }
 0x1db   : >> { %v2219_v55 = vld [vmem:[%s3176_s15 + $0x1c] sm:$0xff]  ;;  %2218 = vst [vmem:[%s3172_s10] sm:$0xff] %v2217_v27  ;;  %2222 = vst [vmem:[%s3172_s10 + $0x68] sm:$0xff] %v2221_v28  ;;  %p2224_p10 = scmp.ge.s32.totalorder %s2223_s14, %s4014_s8  ;;  %p2210_p11 = scmp.ge.s32.totalorder %s2211_s23, %s4014_s8 }
 0x1dc   : >> { %2220 = vst [vmem:[%s3172_s10 + $0x34] sm:$0xff] %v2219_v55 }
 0x1dd   : >> { %s4082_s14 = smov (%p2224_p10, %s2223_s14), 0  ;;  %2213 = sbr.rel (!%p2210_p11) target bundleno = 474 (0x1da), region = 345 }
 0x1de   : >> { %s2550_s22 = sshll.u32 %s4082_s14, 3  ;;  %s3179_s21 = smov %s4082_s14  }
 0x1df   : >> { %s2228_s15 = scalar_lea.vmem %s4009_s6, %s2550_s22 [#allocation2]   ;;  %s2229_s10 = scalar_lea.vmem %s4012_s7, %s2550_s22  }
 0x1e2 PF: > { %s3188_s24 = smov 1  }
 0x1e3   : > { %s2230_s25 = sshll.u32 %s3188_s24, %s3480_s20 }
 0x1e4   : > { %s2552_s26 = sadd.s32 4294967295, %s2230_s25 }
 0x1e5   : > { %v2240_v61 = vld [vmem:[%s3757_s17] sm:%s2552_s26]  ;;  %v2244_v30 = vld [vmem:[%s3757_s17 + $0x38] sm:%s2552_s26] }
 0x1e6   : > { %v2242_v29 = vld [vmem:[%s3757_s17 + $0x1c] sm:%s2552_s26]  ;;  %2241 = vst [vmem:[%s3760_s18] sm:%s2552_s26] %v2240_v61 }
 0x1e7   : > { %2243 = vst [vmem:[%s3760_s18 + $0x34] sm:%s2552_s26] %v2242_v29  ;;  %2245 = vst [vmem:[%s3760_s18 + $0x68] sm:%s2552_s26] %v2244_v30 }
 0x1e8 PF: > { %p2553_p12 = scmp.ge.u32.totalorder %s3476_s11, 8 }
 0x1e9   : > { %s3189_s27 = smov (!%p2553_p12), 1  }
 0x1ea   : > { %1804 = sbr.rel (%p2553_p12) target bundleno = 498 (0x1f2), region = 48  ;;  %s1805_s20 = sshll.u32 (!%p2553_p12), %s3189_s27, %s3476_s11 }
 0x1eb   : > { %s2554_s28 = sadd.s32 (!%p2553_p12), 4294967295, %s1805_s20 }
 0x1ef   : > { %v1815_v31 = vld [vmem:[%s3418_s12] sm:%s2554_s28]  ;;  %v1819_v33 = vld [vmem:[%s3418_s12 + $0x38] sm:%s2554_s28] }
 0x1f0   : > { %v1817_v32 = vld [vmem:[%s3418_s12 + $0x1c] sm:%s2554_s28]  ;;  %1816 = vst [vmem:[%s3474_s9] sm:%s2554_s28] %v1815_v31 }
 0x1f1   : > { %1818 = vst [vmem:[%s3474_s9 + $0x34] sm:%s2554_s28] %v1817_v32  ;;  %1820 = vst [vmem:[%s3474_s9 + $0x68] sm:%s2554_s28] %v1819_v33 }
 0x1f2 PF: > { %p10_p13 = scmp.ge.s32.totalorder %s3225_s16, 4   ;;  %s4070_s12 = smov %s3116_s13 }
 0x1f3   : > { %s4071_s13 = smov %s3233_s19  ;;  %s4072_s14 = smov %s3225_s16 }
 0x1f4   :  { %12 = sbr.rel (!%p10_p13) target bundleno = 2 (0x2), region = 356 }

// kernel: bats_network_forward.16
= control target key start
LH: loop header
LB: loop body
LE: loop exit
PB: predicated region body
PF: predicated region fallthrough
CT: control target
= control target key end

     0   :  { %s1350_s12 = smov 0   ;;  %s1352_s13 = smov 0   ;;  %s1450_s0 = inlined_call_operand.vmem [shape: bf16[20,180], index: 0, kind: input, shape index: {}]   ;;  %s1451_s1 = inlined_call_operand.vmem [shape: f32[20,2], index: 1, kind: input, shape index: {}]   ;;  %s1452_s2 = inlined_call_operand.vmem [shape: bf16[392,180], index: 2, kind: input, shape index: {}]   ;;  %s1453_s3 = inlined_call_operand.vmem [shape: bf16[20,392], index: 3, kind: output, shape index: {}]  }
   0x1   :  { %s1354_s14 = smov 0  }
   0x2 LB: > { %s1363_s15 = sadd.s32 4294967295, %s1326_s14   ;;  %s1365_s16 = sadd.s32 1, %s1326_s14   ;;  %s1326_s14 = sphi %s1354_s14, %s1457_s14   ;;  %s1322_s13 = sphi %s1352_s13, %s1456_s13   ;;  %s1318_s12 = sphi %s1350_s12, %s1455_s12  }
   0x3   : > { %s85_s17 = ssub.s32 %s1326_s14, %s1365_s16  ;;  %s88_s18 = sadd.s32 1, %s1322_s13 }
   0x4   : > { %p86_p0 = scmp.eq.s32.totalorder %s85_s17, 0  ;;  %p98_p1 = scmp.ne.s32.totalorder %s1322_s13, %s1318_s12 }
   0x5   : > { %p99_p2 = scmp.eq.s32.totalorder %s1363_s15, 1  ;;  %p978_p3 = scmp.ge.s32.totalorder %s1326_s14, 1 }
   0x6   : > { %s1373_s19 = scalar_select %p86_p0, %s1322_s13, %s88_s18  }
   0x7   : > { %p1375_p4 = por %p99_p2, %p98_p1  ;;  %p138_p5 = scmp.lt.s32.totalorder %s1326_s14, 3 }
   0x9   : > { %p139_p6 = pnand %p978_p3, %p138_p5 }
   0xb   : > { %142 = sbr.rel (%p139_p6) target bundleno = 288 (0x120), region = 32 }
  0x10   : > { %s979_s21 = sshll.u32 %s1363_s15, 1  ;;  %v1301_v0 = vld [vmem:[%s1450_s0 + $0x4] ss:$8 sps:$4 sm:$0xff]   ;;  %vm755_vm0 = vcmask 424960   ;;  %v1386_v1 = vld [vmem:[%s1450_s0 + $0x10] sm:$0x33] }
  0x11   : > { %p162_p7 = scmp.lt.s32.totalorder %s979_s21, 3  ;;  %v1029_v2 = vcombine.high %v1386_v1, %v1386_v1  ;;  %v609_v3 = vld [vmem:[%s1451_s1 + $0x10] sm:$0xf]  ;;  %1055 = vmatprep.mubr.msk.bf16.mxu0 %vm755_vm0, %v1301_v0  ;;  %v1328_v4 = vmov 0   ;;  %v607_v5 = vld [vmem:[%s1451_s1] sm:$0xff]  ;;  %v608_v6 = vld [vmem:[%s1451_s1 + $0x8] sm:$0xff]  ;;  %v1028_v59 = vcombine.low %v1386_v1, %v1386_v1 }
  0x12   : > { %1252 = vset.pattern.permute.xlu1 %v1328_v4  ;;  %1251 = vset.pattern.permute.xlu0 %v1328_v4  ;;  %v1329_v9 = vmov 1   ;;  %vm762_vm1 = vcmask 1041408   ;;  %v1299_v58 = vld [vmem:[%s1450_s0] ss:$8 sps:$4 sm:$0xff]   ;;  %s158_s11 = sand.u32 1, %s1318_s12   ;;  %s1067_s17 = sshll.u32 (%p1375_p4), %s1363_s15, 3 }
  0x13   : > { %s1459_s21 = smov (!%p162_p7, %s979_s21), 3  ;;  %1056 = vmatprep.mubr.msk.bf16.mxu1 %vm755_vm0, %v1029_v2  ;;  %622 = vperm.xlu1 %1252, %v609_v3   ;;  %s1224_s14 = smul.u32 24, %s158_s11 }
  0x14   : > { %s980_s30 = sshll.u32 %s1459_s21, 2  ;;  %612 = vperm.xlu0 %1251, %v607_v5   ;;  %s882_s22 = scalar_lea.vmem (%p1375_p4), %s1453_s3, %s1067_s17 }
  0x15   : > { %s1399_s6 = scalar_lea.vmem %s1452_s2, %s980_s30  ;;  %s160_s12 = scalar_lea.vmem [#allocation2], %s1224_s14 }
  0x16   : > { %v1255_v7 = vld [vmem:[%s1399_s6 + $0xe0] sm:$0xff]   ;;  %v1256_v8 = vld [vmem:[%s1399_s6 + $0xf0] sm:$0xff]  }
  0x17   : > { %1253 = vset.pattern.permute.xlu1 %v1329_v9  ;;  %v1259_v10 = vld [vmem:[%s1399_s6 + $0xc0] sm:$0xff]   ;;  %v1045_v11 = vcombine.high %v1255_v7, %v1256_v8  ;;  %v1044_v12 = vcombine.low %v1255_v7, %v1256_v8  ;;  %v1260_v13 = vld [vmem:[%s1399_s6 + $0xd0] sm:$0xff]  }
  0x18   : > { %827 = vperm.xlu1 %1253, %v607_v5   ;;  %617 = vperm.xlu0 %1251, %v608_v6   ;;  %v1263_v14 = vld [vmem:[%s1399_s6 + $0xa0] sm:$0xff]   ;;  %v1043_v15 = vcombine.high %v1259_v10, %v1260_v13  ;;  %v1264_v16 = vld [vmem:[%s1399_s6 + $0xb0] sm:$0xff]   ;;  %v1042_v17 = vcombine.low %v1259_v10, %v1260_v13 }
  0x19   : > { %769 = vmatprep.subr.bf16.mxu0 %v1045_v11  ;;  %1200 = vmatprep.subr.bf16.mxu1 %v1045_v11  ;;  %v1267_v18 = vld [vmem:[%s1399_s6 + $0x80] sm:$0xff]   ;;  %v1041_v19 = vcombine.high %v1263_v14, %v1264_v16  ;;  %v1268_v20 = vld [vmem:[%s1399_s6 + $0x90] sm:$0xff]   ;;  %v1040_v23 = vcombine.low %v1263_v14, %v1264_v16 }
  0x1a   : > { %770 = vmatpush1.bf16.msra.mxu0 %v1044_v12  ;;  %1212 = vmatpush1.bf16.msra.mxu1 %v1044_v12  ;;  %v1271_v21 = vld [vmem:[%s1399_s6 + $0x60] sm:$0xff]   ;;  %v1272_v22 = vld [vmem:[%s1399_s6 + $0x70] sm:$0xff]   ;;  %v1039_v25 = vcombine.high %v1267_v18, %v1268_v20  ;;  %v1038_v29 = vcombine.low %v1267_v18, %v1268_v20 }
  0x1b   : > { %771 = vmatprep.subr.bf16.mxu0 %v1043_v15  ;;  %1201 = vmatprep.subr.bf16.mxu1 %v1043_v15  ;;  %v1275_v24 = vld [vmem:[%s1399_s6 + $0x40] sm:$0xff]   ;;  %v1276_v26 = vld [vmem:[%s1399_s6 + $0x50] sm:$0xff]   ;;  %v1037_v31 = vcombine.high %v1271_v21, %v1272_v22  ;;  %v1036_v35 = vcombine.low %v1271_v21, %v1272_v22 }
  0x1c   : > { %835 = vperm.xlu1 %1253, %v609_v3   ;;  %1254 = vset.pattern.permute.xlu0 %v1329_v9  ;;  %v1279_v27 = vld [vmem:[%s1399_s6 + $0x20] sm:$0xff]   ;;  %v1280_v28 = vld [vmem:[%s1399_s6 + $0x30] sm:$0xff]   ;;  %v1035_v37 = vcombine.high %v1275_v24, %v1276_v26  ;;  %v1034_v41 = vcombine.low %v1275_v24, %v1276_v26 }
  0x1d   : > { %831 = vperm.xlu0 %1254, %v608_v6   ;;  %v168_v30 = vld [vmem:[%s1399_s6] sm:$0xff]   ;;  %v1283_v32 = vld [vmem:[%s1399_s6 + $0x10] sm:$0xff]   ;;  %v1033_v43 = vcombine.high %v1279_v27, %v1280_v28  ;;  %v1032_v45 = vcombine.low %v1279_v27, %v1280_v28 }
  0x1e   : > { %772 = vmatpush1.bf16.msra.mxu0 %v1042_v17  ;;  %1213 = vmatpush1.bf16.msra.mxu1 %v1042_v17  ;;  %174 = vst [vmem:[#allocation3] sm:$0xff] %v168_v30   ;;  %v1284_v33 = vld [vmem:[%s1399_s6 + $0x160] sm:$0xff]   ;;  %v1288_v36 = vld [vmem:[%s1399_s6 + $0x150] sm:$0xff]  }
  0x1f   : > { %773 = vmatprep.subr.bf16.mxu0 %v1041_v19  ;;  %1202 = vmatprep.subr.bf16.mxu1 %v1041_v19  ;;  %v1287_v34 = vld [vmem:[%s1399_s6 + $0x140] sm:$0xff]   ;;  %1177 = vst [vmem:[#allocation3 + $0xb0] sm:$0xff] %v1284_v33   ;;  %v1292_v39 = vld [vmem:[%s1399_s6 + $0x130] sm:$0xff]  }
  0x20   : > { %v1291_v38 = vld [vmem:[%s1399_s6 + $0x120] sm:$0xff]   ;;  %v1296_v42 = vld [vmem:[%s1399_s6 + $0x110] sm:$0xff]   ;;  %v1051_v52 = vcombine.high %v1287_v34, %v1288_v36  ;;  %v1050_v53 = vcombine.low %v1287_v34, %v1288_v36 }
  0x21   : > { %v1295_v40 = vld [vmem:[%s1399_s6 + $0x100] sm:$0xff]   ;;  %v1049_v54 = vcombine.high %v1291_v38, %v1292_v39  ;;  %v1048_v55 = vcombine.low %v1291_v38, %v1292_v39 }
  0x22   : > { %774 = vmatpush1.bf16.msra.mxu0 %v1040_v23  ;;  %1214 = vmatpush1.bf16.msra.mxu1 %v1040_v23  ;;  %v1047_v56 = vcombine.high %v1295_v40, %v1296_v42  ;;  %v1046_v57 = vcombine.low %v1295_v40, %v1296_v42 }
  0x23   : > { %775 = vmatprep.subr.bf16.mxu0 %v1039_v25  ;;  %1203 = vmatprep.subr.bf16.mxu1 %v1039_v25 }
  0x25   : > { %v584_v44 = vld [vmem:[#allocation3] sm:$0xff] }
  0x26   : > { %776 = vmatpush1.bf16.msra.mxu0 %v1038_v29  ;;  %1215 = vmatpush1.bf16.msra.mxu1 %v1038_v29  ;;  %v1031_v46 = vcombine.high %v584_v44, %v1283_v32  ;;  %v606_v47 = vld [vmem:[#allocation3 + $0xb0] sm:$0x33]  ;;  %v1030_v48 = vcombine.low %v584_v44, %v1283_v32 }
  0x27   : > { %777 = vmatprep.subr.bf16.mxu0 %v1037_v31  ;;  %1204 = vmatprep.subr.bf16.mxu1 %v1037_v31  ;;  %v1053_v49 = vcombine.high %v606_v47, %v606_v47  ;;  %v1052_v50 = vcombine.low %v606_v47, %v606_v47 }
  0x29   : > { %v764_v51 = vsel %vm762_vm1, %v1052_v50, 0 }
  0x2a   : > { %778 = vmatpush1.bf16.msra.mxu0 %v1036_v35  ;;  %1216 = vmatpush1.bf16.msra.mxu1 %v1036_v35 }
  0x2b   : > { %779 = vmatprep.subr.bf16.mxu0 %v1035_v37  ;;  %1205 = vmatprep.subr.bf16.mxu1 %v1035_v37 }
  0x2e   : > { %780 = vmatpush1.bf16.msra.mxu0 %v1034_v41  ;;  %1217 = vmatpush1.bf16.msra.mxu1 %v1034_v41 }
  0x2f   : > { %781 = vmatprep.subr.bf16.mxu0 %v1033_v43  ;;  %1206 = vmatprep.subr.bf16.mxu1 %v1033_v43 }
  0x32   : > { %782 = vmatpush1.bf16.msra.mxu0 %v1032_v45  ;;  %1218 = vmatpush1.bf16.msra.mxu1 %v1032_v45 }
  0x33   : > { %783 = vmatprep.subr.bf16.mxu0 %v1031_v46  ;;  %1207 = vmatprep.subr.bf16.mxu1 %v1031_v46 }
  0x36   : > { %784 = vmatpush1.bf16.msra.mxu0 %v1030_v48  ;;  %1219 = vmatpush1.bf16.msra.mxu1 %v1030_v48 }
  0x37   : > { %1054 = vmatprep.subr.msk.bf16.mxu0 %vm762_vm1, %v1053_v49  ;;  %1208 = vmatprep.subr.msk.bf16.mxu1 %vm762_vm1, %v1053_v49 }
  0x3a   : > { %794 = vmatpush2.bf16.msra.mxu0 %v764_v51  ;;  %1220 = vmatpush2.bf16.msra.mxu1 %v764_v51 }
  0x3b   : > { %795 = vmatprep.subr.bf16.mxu0 %v1051_v52  ;;  %1209 = vmatprep.subr.bf16.mxu1 %v1051_v52 }
  0x3e   : > { %796 = vmatpush2.bf16.msra.mxu0 %v1050_v53  ;;  %1221 = vmatpush2.bf16.msra.mxu1 %v1050_v53 }
  0x3f   : > { %797 = vmatprep.subr.bf16.mxu0 %v1049_v54  ;;  %1210 = vmatprep.subr.bf16.mxu1 %v1049_v54 }
  0x42   : > { %798 = vmatpush2.bf16.msra.mxu0 %v1048_v55  ;;  %1222 = vmatpush2.bf16.msra.mxu1 %v1048_v55 }
  0x43   : > { %799 = vmatprep.subr.bf16.mxu0 %v1047_v56  ;;  %1211 = vmatprep.subr.bf16.mxu1 %v1047_v56 }
  0x46   : > { %800 = vmatpush2.bf16.msra.mxu0 %v1046_v57  ;;  %1223 = vmatpush2.bf16.msra.mxu1 %v1046_v57 }
  0x49   : > { %802 = vmatmul.mubr.bf16.vlgmr.msra.gmra.mxu0 %v1299_v58  ;;  %812 = vmatmul.mubr.bf16.vlgmr.msra.gmra.mxu1 %v1028_v59 }
  0x8e   : > { %v623_v60 = vpop.permute.xlu1 %622 }
  0x8f   : > { %v613_v61 = vpop.permute.xlu0 %612 }
  0x93   : > { %v828_v62 = vpop.permute.xlu1 %827  ;;  %v618_v2 = vpop.permute.xlu0 %617 }
  0x97   : > { %v836_v5 = vpop.permute.xlu1 %835 }
  0x98   : > { %v832_v14 = vpop.permute.xlu0 %831 }
 0x109   : > { %v803_v63 = vpop.f32.mrf.mxu0  ;;  %v813_v0 = vpop.f32.mrf.mxu1 }
 0x10a   : > { %v804_v3 = vadd.f32 %v803_v63, %v613_v61  ;;  %v814_v4 = vadd.f32 %v813_v0, %v623_v60 }
 0x10b   : > { %v805_v6 = vpop.f32.mrf.mxu0  ;;  %v815_v7 = vpop.f32.mrf.mxu1 }
 0x10c   : > { %v838_v8 = vmul.f32 %v828_v62, %v804_v3  ;;  %vm820_vm2 = vcmp.ge.f32.partialorder %v804_v3, 0.0  ;;  %v842_v9 = vmul.f32 %v836_v5, %v814_v4  ;;  %v806_v1 = vadd.f32 %v805_v6, %v613_v61 }
 0x10d   : > { %v816_v10 = vadd.f32 %v815_v7, %v623_v60  ;;  %v807_v11 = vpop.f32.mrf.mxu0  ;;  %v817_v12 = vpop.f32.mrf.mxu1  ;;  %vm824_vm3 = vcmp.ge.f32.partialorder %v814_v4, 0.0 }
 0x10e   : > { %v808_v13 = vadd.f32 %v807_v11, %v618_v2  ;;  %vm821_vm4 = vcmp.ge.f32.partialorder %v806_v1, 0.0  ;;  %v839_v15 = vmul.f32 %v828_v62, %v806_v1  ;;  %v844_v19 = vsel %vm820_vm2, %v804_v3, %v838_v8 }
 0x10f   : > { %vm825_vm5 = vcmp.ge.f32.partialorder %v816_v10, 0.0  ;;  %v843_v16 = vmul.f32 %v836_v5, %v816_v10  ;;  %v809_v17 = vpop.f32.mrf.mxu0  ;;  %v818_v18 = vpop.f32.mrf.mxu1  ;;  %v848_v21 = vsel %vm824_vm3, %v814_v4, %v842_v9 }
 0x110   : > { %v810_v20 = vadd.f32 %v809_v17, %v618_v2  ;;  %v845_v22 = vsel %vm821_vm4, %v806_v1, %v839_v15  ;;  %v840_v24 = vmul.f32 %v832_v14, %v808_v13  ;;  %vm822_vm6 = vcmp.ge.f32.partialorder %v808_v13, 0.0 }
 0x111   : > { %v849_v23 = vsel %vm825_vm5, %v816_v10, %v843_v16  ;;  %v1064_v25 = vpack.c.bf16 %v845_v22, %v844_v19 }
 0x112   : > { %v1066_v26 = vpack.c.bf16 %v849_v23, %v848_v21  ;;  %vm823_vm7 = vcmp.ge.f32.partialorder %v810_v20, 0.0  ;;  %v841_v27 = vmul.f32 %v832_v14, %v810_v20  ;;  %v846_v28 = vsel %vm822_vm6, %v808_v13, %v840_v24 }
 0x113   : > { %870 = vst [vmem:[%s160_s12] sm:$0xff] %v1064_v25  ;;  %879 = sbr.rel (!%p1375_p4) target bundleno = 288 (0x120), region = 36 }
 0x114   : > { %872 = vst [vmem:[%s160_s12 + $0x10] sm:$0x33] %v1066_v26  ;;  %v847_v29 = vsel %vm823_vm7, %v810_v20, %v841_v27 }
 0x115   : > { %v1065_v30 = vpack.c.bf16 %v847_v29, %v846_v28 }
 0x117   : > { %871 = vst [vmem:[%s160_s12 + $0x8] sm:$0xff] %v1065_v30 }
 0x11a   : > { %v915_v31 = vld [vmem:[%s160_s12] sm:$0xff] }
 0x11b   : > { %v919_v33 = vld [vmem:[%s160_s12 + $0x10] sm:$0xff]  ;;  %916 = vst [vmem:[%s882_s22] sm:$0xff] %v915_v31 }
 0x11c   : > { %920 = vst [vmem:[%s882_s22 + $0x20] sm:$0xff] %v919_v33 }
 0x11e   : > { %v917_v32 = vld [vmem:[%s160_s12 + $0x8] sm:$0xff] }
 0x11f   : > { %918 = vst [vmem:[%s882_s22 + $0x10] sm:$0xff] %v917_v32 }
 0x120 PF: > { %p10_p8 = scmp.ge.s32.totalorder %s1365_s16, 4   ;;  %s1455_s12 = smov %s1322_s13 }
 0x121   : > { %s1456_s13 = smov %s1373_s19  ;;  %s1457_s14 = smov %s1365_s16 }
 0x122   :  { %12 = sbr.rel (!%p10_p8) target bundleno = 2 (0x2), region = 190 }

// kernel: bats_network_forward.18
= control target key start
LH: loop header
LB: loop body
LE: loop exit
PB: predicated region body
PF: predicated region fallthrough
CT: control target
= control target key end

     0   :  { %s3801_s0 = inlined_call_operand.vmem [shape: bf16[60,80], index: 0, kind: input, shape index: {}]   ;;  %s3802_s1 = inlined_call_operand.vmem [shape: f32[2,80], index: 1, kind: input, shape index: {}]   ;;  %s3803_s2 = inlined_call_operand.vmem [shape: bf16[392,20], index: 2, kind: input, shape index: {}]   ;;  %s3804_s3 = inlined_call_operand.<no memory space> [shape: bf16[], index: 3, kind: input, shape index: {}]   ;;  %s3805_s4 = inlined_call_operand.vmem [shape: bf16[392,40], index: 4, kind: input, shape index: {}]   ;;  %s3806_s5 = inlined_call_operand.vmem [shape: bf16[392,80], index: 5, kind: output, shape index: {}]  }
   0x1   :  { %v10_v0 = vstv %s3804_s3 }
   0x2   :  { %v3064_v1 = vunpack.i.l.bf16 %v10_v0 }
   0x3   :  { %s3066_s20 = smov 0   ;;  %s3068_s21 = smov 0  }
   0x4   :  { %s3070_s22 = smov 0  }
   0x5 LB: > { %s3079_s3 = sadd.s32 4294967295, %s2994_s22   ;;  %s3081_s23 = sadd.s32 1, %s2994_s22   ;;  %s2994_s22 = sphi %s3070_s22, %s3815_s22   ;;  %s2990_s21 = sphi %s3068_s21, %s3814_s21   ;;  %s2986_s20 = sphi %s3066_s20, %s3813_s20  }
   0x6   : > { %s127_s24 = ssub.s32 %s2994_s22, %s3081_s23  ;;  %s130_s25 = sadd.s32 1, %s2990_s21 }
   0x7   : > { %p128_p0 = scmp.eq.s32.totalorder %s127_s24, 0  ;;  %p140_p1 = scmp.ne.s32.totalorder %s2990_s21, %s2986_s20 }
   0x8   : > { %p141_p2 = scmp.eq.s32.totalorder %s3079_s3, 1  ;;  %p2535_p3 = scmp.ge.s32.totalorder %s2994_s22, 1 }
   0x9   : > { %s3089_s26 = scalar_select %p128_p0, %s2990_s21, %s130_s25  }
   0xa   : > { %p3091_p4 = por %p141_p2, %p140_p1  ;;  %p214_p5 = scmp.lt.s32.totalorder %s2994_s22, 3 }
   0xc   : > { %p215_p6 = pnand %p2535_p3, %p214_p5 }
   0xe   : > { %218 = sbr.rel (%p215_p6) target bundleno = 486 (0x1e6), region = 36 }
  0x13   : > { %s3096_s28 = smul.u32 25, %s3079_s3  ;;  %v316_v2 = vlaneseq  ;;  %vm1856_vm0 = vcmask 1045504   ;;  %v3028_v3 = vmov 0.0   ;;  %v2919_v4 = vld [vmem:[%s3801_s0 + $0x18] sm:$0x3f]   ;;  %v2920_v8 = vld [vmem:[%s3801_s0 + $0x10] sm:$0xff]  }
  0x14   : > { %2698 = vmatprep.subr.bf16.mxu0 %v3028_v3  ;;  %2758 = vmatprep.subr.bf16.mxu1 %v3028_v3  ;;  %v1858_v6 = vsel %vm1856_vm0, %v2919_v4, 0  ;;  %v2921_v36 = vld [vmem:[%s3801_s0 + $0x8] sm:$0xff]   ;;  %s3029_s29 = smov 40   ;;  %v2922_v51 = vld [vmem:[%s3801_s0] sm:$0xff]   ;;  %vm3030_vm5 = vmmov 0   ;;  %vm1816_vm6 = vcmask 490496  }
  0x15   : > { %p266_p7 = scmp.lt.s32.totalorder %s3096_s28, 48  ;;  %v3104_v5 = vand.u32 127, %v316_v2  ;;  %s1618_s6 = sadd.s32 24, %s3096_s28  ;;  %2699 = vmatpush3.bf16.msra.mxu0 %v1858_v6  ;;  %2762 = vmatpush3.bf16.msra.mxu1 %v1858_v6  ;;  %vm2177_vm9 = vcmask 650240  }
  0x16   : > { %s3107_s7 = ssub.s32 48, %s1618_s6  ;;  %2700 = vmatprep.subr.bf16.mxu0 %v3028_v3  ;;  %2759 = vmatprep.subr.bf16.mxu1 %v3028_v3  ;;  %s2211_s22 = ssub.s32 (%p3091_p4), 49, %s3096_s28 }
  0x17   : > { %s3110_s8 = scalar_select %p266_p7, %s3096_s28, 48  ;;  %v3113_v7 = vadd.s32 128, %v3104_v5  ;;  %vm323_vm1 = vcmp.lt.s32.totalorder %v3104_v5, 88  ;;  %v1641_v12 = vstv %s3107_s7  ;;  %vm342_vm4 = vcmp.lt.s32.totalorder %v3104_v5, 40  ;;  %2706 = vmatprep.mubr.msk.bf16.mxu0 %vm3030_vm5, %v3028_v3  ;;  %2734 = vmatprep.mubr.msk.bf16.mxu1 %vm3030_vm5, %v3028_v3 }
  0x18   : > { %p1622_p8 = scmp.lt.s32.totalorder %s3107_s7, 0  ;;  %vm3237_vm3 = vcmp.lt.s32.totalorder %v1641_v12, 0  ;;  %s2680_s24 = smul.u32 (%p3091_p4), 100, %s3079_s3 }
  0x19   : > { %s2536_s11 = sshll.u32 %s3110_s8, 2  ;;  %vm319_vm2 = vcmp.lt.s32.totalorder %v3113_v7, 148  ;;  %2701 = vmatpush3.bf16.msra.mxu0 %v2920_v8  ;;  %2763 = vmatpush3.bf16.msra.mxu1 %v2920_v8  ;;  %s255_s8 = sand.u32 1, %s2986_s20  }
  0x1a   : > { %s3127_s14 = scalar_lea.vmem %s3803_s2, %s2536_s11  ;;  %2702 = vmatprep.subr.bf16.mxu0 %v3028_v3  ;;  %2760 = vmatprep.subr.bf16.mxu1 %v3028_v3  ;;  %p2212_p9 = scmp.lt.s32.totalorder (%p3091_p4), %s2211_s22, 25 }
  0x1b   : > { %v312_v9 = vld [vmem:[%s3127_s14] sm:$0xff]   ;;  %v2564_v10 = vld [vmem:[%s3127_s14 + $0x38] sm:$0xff]   ;;  %v2540_v11 = vld [vmem:[%s3127_s14 + $0x8] sm:$0xff]   ;;  %s1623_s15 = scalar_select %p1622_p8, 0, 255 }
  0x1c   : > { %v313_v13 = vunpack.c.l.bf16 %v312_v9  ;;  %v366_v14 = vunpack.c.h.bf16 %v312_v9  ;;  %v1081_v15 = vunpack.c.l.bf16 %v2564_v10  ;;  %v1136_v16 = vunpack.c.h.bf16 %v2564_v10  ;;  %v2568_v17 = vld [vmem:[%s3127_s14 + $0x40] sm:$0xff]   ;;  %v2544_v30 = vld [vmem:[%s3127_s14 + $0x10] sm:$0xff]   ;;  %v2572_v35 = vld [vmem:[%s3127_s14 + $0x48] sm:$0xff]  }
  0x1d   : > { %v421_v18 = vunpack.c.l.bf16 %v2540_v11  ;;  %v476_v19 = vunpack.c.h.bf16 %v2540_v11  ;;  %v1191_v20 = vunpack.c.l.bf16 %v2568_v17  ;;  %v1246_v21 = vunpack.c.h.bf16 %v2568_v17  ;;  %s1624_s16 = sshrl.u32 %s1623_s15, 1  ;;  %v2548_v41 = vld [vmem:[%s3127_s14 + $0x18] sm:$0xff]   ;;  %v2576_v42 = vld [vmem:[%s3127_s14 + $0x50] sm:$0xff]   ;;  %2703 = vmatpush3.bf16.msra.mxu0 %v2921_v36  ;;  %2764 = vmatpush3.bf16.msra.mxu1 %v2921_v36  ;;  %v2552_v60 = vld [vmem:[%s3127_s14 + $0x20] sm:$0xff]  }
  0x1e   : > { %v320_v22 = vsel %vm319_vm2, %v313_v13, %v3064_v1  ;;  %v373_v23 = vsel %vm319_vm2, %v366_v14, %v3064_v1  ;;  %v1088_v24 = vsel %vm319_vm2, %v1081_v15, %v3064_v1  ;;  %v1143_v25 = vsel %vm319_vm2, %v1136_v16, %v3064_v1  ;;  %s1625_s17 = sor.u32 %s1624_s16, %s1623_s15  ;;  %2704 = vmatprep.subr.bf16.mxu0 %v3028_v3  ;;  %v2580_v2 = vld [vmem:[%s3127_s14 + $0x58] sm:$0xff]   ;;  %v2556_v11 = vld [vmem:[%s3127_s14 + $0x28] sm:$0xff]   ;;  %s3265_s16 = scalar_lea.vmem %s3805_s4, %s2536_s11 }
  0x1f   : > { %v324_v26 = vsel %vm323_vm1, %v320_v22, %v3064_v1  ;;  %v377_v27 = vsel %vm323_vm1, %v373_v23, %v3064_v1  ;;  %v1092_v28 = vsel %vm323_vm1, %v1088_v24, %v3064_v1  ;;  %v1147_v29 = vsel %vm323_vm1, %v1143_v25, %v3064_v1  ;;  %s1626_s18 = sand.u32 85, %s1625_s17  ;;  %2761 = vmatprep.subr.bf16.mxu1 %v3028_v3 }
  0x20   : > { %v2859_v31 = vpack.i.bf16 %v377_v27, %v324_v26  ;;  %v2869_v32 = vpack.i.bf16 %v1147_v29, %v1092_v28  ;;  %v428_v33 = vsel %vm319_vm2, %v421_v18, %v3064_v1  ;;  %v483_v34 = vsel %vm319_vm2, %v476_v19, %v3064_v1  ;;  %s1627_s19 = sshrl.u32 %s1626_s18, 1  ;;  %v2560_v28 = vld [vmem:[%s3127_s14 + $0x30] sm:$0xff]  }
  0x21   : > { %v432_v37 = vsel %vm323_vm1, %v428_v33, %v3064_v1  ;;  %v487_v38 = vsel %vm323_vm1, %v483_v34, %v3064_v1  ;;  %v1198_v39 = vsel %vm319_vm2, %v1191_v20, %v3064_v1  ;;  %v1253_v40 = vsel %vm319_vm2, %v1246_v21, %v3064_v1  ;;  %s3187_s25 = sor.u32 %s1627_s19, %s1626_s18  ;;  %2705 = vmatpush3.bf16.msra.mxu0 %v2922_v51  ;;  %v336_v34 = vld [vmem:[%s3265_s16] sm:$0xff]   ;;  %s2766_s19 = smul.u32 100, %s255_s8 }
  0x22   : > { %2860 = vrot.lane.b32.xlu0 %v2859_v31, %s3029_s29  ;;  %2870 = vrot.lane.b32.xlu1 %v2869_v32, %s3029_s29  ;;  %v2864_v43 = vpack.i.bf16 %v487_v38, %v432_v37  ;;  %v1202_v44 = vsel %vm323_vm1, %v1198_v39, %v3064_v1  ;;  %v1257_v45 = vsel %vm323_vm1, %v1253_v40, %v3064_v1  ;;  %v531_v46 = vunpack.c.l.bf16 %v2544_v30  ;;  %s1629_s30 = sand.u32 51, %s3187_s25  ;;  %v2565_v39 = vld [vmem:[%s3265_s16 + $0x38] sm:$0xff]  }
  0x23   : > { %v2879_v47 = vpack.i.bf16 %v1257_v45, %v1202_v44  ;;  %v586_v48 = vunpack.c.h.bf16 %v2544_v30  ;;  %v1301_v49 = vunpack.c.l.bf16 %v2572_v35  ;;  %v1356_v50 = vunpack.c.h.bf16 %v2572_v35  ;;  %s1630_s6 = sshrl.u32 %s1629_s30, 2  ;;  %2765 = vmatpush3.bf16.msra.mxu1 %v2922_v51  ;;  %s3590_s20 = scalar_lea.vmem [#allocation12], %s2766_s19  }
  0x24   : > { %v538_v52 = vsel %vm319_vm2, %v531_v46, %v3064_v1  ;;  %v641_v53 = vunpack.c.l.bf16 %v2548_v41  ;;  %v696_v54 = vunpack.c.h.bf16 %v2548_v41  ;;  %v1411_v55 = vunpack.c.l.bf16 %v2576_v42  ;;  %s3233_s12 = sor.u32 %s1630_s6, %s1629_s30  ;;  %s3692_s30 = scalar_lea.vmem (%p3091_p4), %s3806_s5, %s2680_s24  }
  0x25   : > { %v542_v56 = vsel %vm323_vm1, %v538_v52, %v3064_v1  ;;  %v593_v57 = vsel %vm319_vm2, %v586_v48, %v3064_v1  ;;  %v1308_v58 = vsel %vm319_vm2, %v1301_v49, %v3064_v1  ;;  %v1363_v59 = vsel %vm319_vm2, %v1356_v50, %v3064_v1  ;;  %s1632_s7 = sand.u32 15, %s3233_s12  ;;  %v2541_v52 = vld [vmem:[%s3265_s16 + $0x8] sm:$0xff]  }
  0x26   : > { %2865 = vrot.lane.b32.xlu0 %v2864_v43, %s3029_s29  ;;  %v597_v61 = vsel %vm323_vm1, %v593_v57, %v3064_v1  ;;  %v1312_v62 = vsel %vm323_vm1, %v1308_v58, %v3064_v1  ;;  %v1367_v63 = vsel %vm323_vm1, %v1363_v59, %v3064_v1  ;;  %v648_v0 = vsel %vm319_vm2, %v641_v53, %v3064_v1  ;;  %v2584_v33 = vld [vmem:[%s3127_s14 + $0x60] sm:%s1632_s7] }
  0x27   : > { %v2874_v6 = vpack.i.bf16 %v597_v61, %v542_v56  ;;  %v2889_v8 = vpack.i.bf16 %v1367_v63, %v1312_v62  ;;  %v652_v9 = vsel %vm323_vm1, %v648_v0, %v3064_v1  ;;  %v703_v10 = vsel %vm319_vm2, %v696_v54, %v3064_v1  ;;  %v2569_v57 = vld [vmem:[%s3265_s16 + $0x40] sm:$0xff]   ;;  %v2545_v62 = vld [vmem:[%s3265_s16 + $0x10] sm:$0xff]  }
  0x28   : > { %v707_v12 = vsel %vm323_vm1, %v703_v10, %v3064_v1  ;;  %v1418_v13 = vsel %vm319_vm2, %v1411_v55, %v3064_v1  ;;  %v1466_v14 = vunpack.c.h.bf16 %v2576_v42  ;;  %v751_v15 = vunpack.c.l.bf16 %v2552_v60  ;;  %v2573_v10 = vld [vmem:[%s3265_s16 + $0x48] sm:$0xff]  }
  0x29   : > { %2875 = vrot.lane.b32.xlu1 %v2874_v6, %s3029_s29  ;;  %v2884_v16 = vpack.i.bf16 %v707_v12, %v652_v9  ;;  %v1422_v17 = vsel %vm323_vm1, %v1418_v13, %v3064_v1  ;;  %v806_v18 = vunpack.c.h.bf16 %v2552_v60  ;;  %v1521_v19 = vunpack.c.l.bf16 %v2580_v2 }
  0x2a   : > { %2880 = vrot.lane.b32.xlu0 %v2879_v47, %s3029_s29  ;;  %v1473_v20 = vsel %vm319_vm2, %v1466_v14, %v3064_v1  ;;  %v758_v21 = vsel %vm319_vm2, %v751_v15, %v3064_v1  ;;  %v1576_v22 = vunpack.c.h.bf16 %v2580_v2  ;;  %v861_v23 = vunpack.c.l.bf16 %v2556_v11  ;;  %v2549_v15 = vld [vmem:[%s3265_s16 + $0x18] sm:$0xff]  }
  0x2b   : > { %v1477_v24 = vsel %vm323_vm1, %v1473_v20, %v3064_v1  ;;  %v762_v25 = vsel %vm323_vm1, %v758_v21, %v3064_v1  ;;  %v813_v26 = vsel %vm319_vm2, %v806_v18, %v3064_v1  ;;  %v1528_v27 = vsel %vm319_vm2, %v1521_v19, %v3064_v1  ;;  %v2553_v20 = vld [vmem:[%s3265_s16 + $0x20] sm:$0xff]  }
  0x2c   : > { %v2899_v29 = vpack.i.bf16 %v1477_v24, %v1422_v17  ;;  %v817_v30 = vsel %vm323_vm1, %v813_v26, %v3064_v1  ;;  %v1532_v31 = vsel %vm323_vm1, %v1528_v27, %v3064_v1  ;;  %v1583_v32 = vsel %vm319_vm2, %v1576_v22, %v3064_v1 }
  0x2d   : > { %2885 = vrot.lane.b32.xlu1 %v2884_v16, %s3029_s29  ;;  %v2894_v35 = vpack.i.bf16 %v817_v30, %v762_v25  ;;  %v1587_v36 = vsel %vm323_vm1, %v1583_v32, %v3064_v1  ;;  %v868_v37 = vsel %vm319_vm2, %v861_v23, %v3064_v1  ;;  %v916_v38 = vunpack.c.h.bf16 %v2556_v11  ;;  %v2577_v16 = vld [vmem:[%s3265_s16 + $0x50] sm:$0xff]  }
  0x2e   : > { %2890 = vrot.lane.b32.xlu0 %v2889_v8, %s3029_s29  ;;  %v2909_v40 = vpack.i.bf16 %v1587_v36, %v1532_v31  ;;  %v872_v41 = vsel %vm323_vm1, %v868_v37, %v3064_v1  ;;  %v971_v42 = vunpack.c.l.bf16 %v2560_v28  ;;  %v1026_v43 = vunpack.c.h.bf16 %v2560_v28 }
  0x2f   : > { %v923_v44 = vsel %vm319_vm2, %v916_v38, %v3064_v1  ;;  %v1634_v45 = vunpack.c.l.bf16 %v2584_v33  ;;  %v337_v46 = vunpack.c.l.bf16 %v336_v34  ;;  %v391_v47 = vunpack.c.h.bf16 %v336_v34  ;;  %v2557_v34 = vld [vmem:[%s3265_s16 + $0x28] sm:$0xff]  }
  0x30   : > { %v927_v48 = vsel %vm323_vm1, %v923_v44, %v3064_v1  ;;  %v978_v49 = vsel %vm319_vm2, %v971_v42, %v3064_v1  ;;  %v1033_v50 = vsel %vm319_vm2, %v1026_v43, %v3064_v1  ;;  %v1106_v51 = vunpack.c.l.bf16 %v2565_v39 }
  0x31   : > { %2895 = vrot.lane.b32.xlu1 %v2894_v35, %s3029_s29  ;;  %v2904_v53 = vpack.i.bf16 %v927_v48, %v872_v41  ;;  %v982_v54 = vsel %vm323_vm1, %v978_v49, %v3064_v1  ;;  %v1037_v55 = vsel %vm323_vm1, %v1033_v50, %v3064_v1  ;;  %v1643_v56 = vsel %vm3237_vm3, %v3064_v1, %v1634_v45  ;;  %v2585_v48 = vld [vmem:[%s3265_s16 + $0x60] sm:%s1632_s7] }
  0x32   : > { %2900 = vrot.lane.b32.xlu0 %v2899_v29, %s3029_s29  ;;  %v2914_v58 = vpack.i.bf16 %v1037_v55, %v982_v54  ;;  %v1648_v59 = vsel %vm319_vm2, %v1643_v56, %v3064_v1  ;;  %v3343_v60 = vsel %vm342_vm4, %v337_v46, %v3064_v1  ;;  %v3348_v61 = vsel %vm342_vm4, %v391_v47, %v3064_v1  ;;  %v2581_v29 = vld [vmem:[%s3265_s16 + $0x58] sm:$0xff]   ;;  %v2561_v47 = vld [vmem:[%s3265_s16 + $0x30] sm:$0xff]  }
  0x33   : > { %v1652_v63 = vsel %vm323_vm1, %v1648_v59, %v3064_v1  ;;  %v3357_v7 = vsel %vm342_vm4, %v1106_v51, %v3064_v1  ;;  %v1161_v0 = vunpack.c.h.bf16 %v2565_v39  ;;  %v446_v2 = vunpack.c.l.bf16 %v2541_v52 }
  0x34   : > { %v501_v6 = vunpack.c.h.bf16 %v2541_v52  ;;  %v1216_v8 = vunpack.c.l.bf16 %v2569_v57  ;;  %v1271_v9 = vunpack.c.h.bf16 %v2569_v57  ;;  %v556_v13 = vunpack.c.l.bf16 %v2545_v62 }
  0x35   : > { %2905 = vrot.lane.b32.xlu1 %v2904_v53, %s3029_s29  ;;  %v1167_v11 = vsel %vm342_vm4, %v1161_v0, %v3064_v1  ;;  %v3367_v12 = vsel %vm342_vm4, %v446_v2, %v3064_v1  ;;  %v611_v14 = vunpack.c.h.bf16 %v2545_v62  ;;  %v1326_v23 = vunpack.c.l.bf16 %v2573_v10 }
  0x36   : > { %2910 = vrot.lane.b32.xlu0 %v2909_v40, %s3029_s29  ;;  %v3377_v17 = vsel %vm342_vm4, %v501_v6, %v3064_v1  ;;  %v3382_v18 = vsel %vm342_vm4, %v1216_v8, %v3064_v1  ;;  %v3387_v19 = vsel %vm342_vm4, %v1271_v9, %v3064_v1  ;;  %v3395_v21 = vsel %vm342_vm4, %v556_v13, %v3064_v1 }
  0x37   : > { %v3400_v22 = vsel %vm342_vm4, %v611_v14, %v3064_v1  ;;  %v1381_v24 = vunpack.c.h.bf16 %v2573_v10  ;;  %v666_v25 = vunpack.c.l.bf16 %v2549_v15  ;;  %v721_v26 = vunpack.c.h.bf16 %v2549_v15 }
  0x38   : > { %v1436_v27 = vunpack.c.l.bf16 %v2577_v16  ;;  %v1491_v28 = vunpack.c.h.bf16 %v2577_v16  ;;  %v3407_v30 = vsel %vm342_vm4, %v1326_v23, %v3064_v1  ;;  %v776_v32 = vunpack.c.l.bf16 %v2553_v20 }
  0x39   : > { %2915 = vrot.lane.b32.xlu1 %v2914_v58, %s3029_s29  ;;  %v3412_v31 = vsel %vm342_vm4, %v1381_v24, %v3064_v1  ;;  %v831_v33 = vunpack.c.h.bf16 %v2553_v20  ;;  %v3419_v35 = vsel %vm342_vm4, %v666_v25, %v3064_v1  ;;  %v3424_v36 = vsel %vm342_vm4, %v721_v26, %v3064_v1 }
  0x3a   : > { %1653 = vrot.lane.b32.xlu0 %v1652_v63, %s3029_s29  ;;  %v3429_v37 = vsel %vm342_vm4, %v1436_v27, %v3064_v1  ;;  %v3434_v38 = vsel %vm342_vm4, %v1491_v28, %v3064_v1  ;;  %v3439_v39 = vsel %vm342_vm4, %v776_v32, %v3064_v1  ;;  %v1546_v41 = vunpack.c.l.bf16 %v2581_v29 }
  0x3b   : > { %v3444_v40 = vsel %vm342_vm4, %v831_v33, %v3064_v1  ;;  %v1601_v42 = vunpack.c.h.bf16 %v2581_v29  ;;  %v886_v43 = vunpack.c.l.bf16 %v2557_v34  ;;  %v941_v44 = vunpack.c.h.bf16 %v2557_v34 }
  0x3c   : > { %v3449_v45 = vsel %vm342_vm4, %v1546_v41, %v3064_v1  ;;  %v996_v51 = vunpack.c.l.bf16 %v2561_v47  ;;  %v1051_v52 = vunpack.c.h.bf16 %v2561_v47  ;;  %v1670_v53 = vunpack.c.l.bf16 %v2585_v48 }
  0x3d   : > { %v3454_v46 = vsel %vm342_vm4, %v1601_v42, %v3064_v1  ;;  %v3463_v49 = vsel %vm342_vm4, %v886_v43, %v3064_v1  ;;  %v3468_v50 = vsel %vm342_vm4, %v941_v44, %v3064_v1 }
  0x3e   : > { %v3473_v54 = vsel %vm342_vm4, %v996_v51, %v3064_v1  ;;  %v3478_v55 = vsel %vm342_vm4, %v1051_v52, %v3064_v1  ;;  %v1676_v56 = vsel %vm3237_vm3, %v3064_v1, %v1670_v53 }
  0x3f   : > { %v3486_v57 = vsel %vm342_vm4, %v1676_v56, %v3064_v1 }
  0x94   : > { %v2861_v58 = vpop.permute.xlu0 %2860  ;;  %v2871_v59 = vpop.permute.xlu1 %2870 }
  0x95   : > { %v2863_v62 = vunpack.i.h.bf16 %v2861_v58  ;;  %v2862_v63 = vunpack.i.l.bf16 %v2861_v58  ;;  %v2873_v0 = vunpack.i.h.bf16 %v2871_v59  ;;  %v2872_v2 = vunpack.i.l.bf16 %v2871_v59 }
  0x97   : > { %v400_v6 = vmax.f32 %v3348_v61, %v2863_v62  ;;  %v346_v8 = vmax.f32 %v3343_v60, %v2862_v63  ;;  %v1170_v9 = vmax.f32 %v1167_v11, %v2873_v0  ;;  %v1115_v10 = vmax.f32 %v3357_v7, %v2872_v2 }
  0x98   : > { %v2866_v4 = vpop.permute.xlu0 %2865 }
  0x99   : > { %v403_v13 = vpack.c.bf16 %v3028_v3, %v400_v6  ;;  %v348_v5 = vpack.c.bf16 %v3028_v3, %v346_v8  ;;  %v1173_v14 = vpack.c.bf16 %v3028_v3, %v1170_v9  ;;  %v1118_v15 = vpack.c.bf16 %v3028_v3, %v1115_v10 }
  0x9a   : > { %v2868_v16 = vunpack.i.h.bf16 %v2866_v4  ;;  %v2867_v20 = vunpack.i.l.bf16 %v2866_v4 }
  0x9b   : > { %406 = vst [vmem:[#allocation13 + $0x4] sm:$0xf] %v403_v13  ;;  %351 = vst [vmem:[#allocation13] sm:$0xf] %v348_v5  ;;  %v2876_v61 = vpop.permute.xlu1 %2875 }
  0x9c   : > { %1176 = vst [vmem:[#allocation13 + $0x3c] sm:$0xf] %v1173_v14  ;;  %1121 = vst [vmem:[#allocation13 + $0x38] sm:$0xf] %v1118_v15  ;;  %v510_v60 = vmax.f32 %v3377_v17, %v2868_v16  ;;  %v455_v7 = vmax.f32 %v3367_v12, %v2867_v20  ;;  %v2881_v11 = vpop.permute.xlu0 %2880  ;;  %v2878_v23 = vunpack.i.h.bf16 %v2876_v61  ;;  %v2877_v24 = vunpack.i.l.bf16 %v2876_v61 }
  0x9d   : > { %v2883_v25 = vunpack.i.h.bf16 %v2881_v11  ;;  %v2882_v26 = vunpack.i.l.bf16 %v2881_v11 }
  0x9e   : > { %v513_v27 = vpack.c.bf16 %v3028_v3, %v510_v60  ;;  %v458_v28 = vpack.c.bf16 %v3028_v3, %v455_v7  ;;  %v620_v29 = vmax.f32 %v3400_v22, %v2878_v23  ;;  %v565_v32 = vmax.f32 %v3395_v21, %v2877_v24 }
  0x9f   : > { %v1280_v33 = vmax.f32 %v3387_v19, %v2883_v25  ;;  %v1225_v34 = vmax.f32 %v3382_v18, %v2882_v26  ;;  %v2886_v17 = vpop.permute.xlu1 %2885 }
  0xa0   : > { %516 = vst [vmem:[#allocation13 + $0xc] sm:$0xf] %v513_v27  ;;  %461 = vst [vmem:[#allocation13 + $0x8] sm:$0xf] %v458_v28  ;;  %v623_v12 = vpack.c.bf16 %v3028_v3, %v620_v29  ;;  %v568_v41 = vpack.c.bf16 %v3028_v3, %v565_v32  ;;  %v2891_v42 = vpop.permute.xlu0 %2890  ;;  %v2888_v43 = vunpack.i.h.bf16 %v2886_v17  ;;  %v2887_v44 = vunpack.i.l.bf16 %v2886_v17 }
  0xa1   : > { %v1283_v47 = vpack.c.bf16 %v3028_v3, %v1280_v33  ;;  %v1228_v22 = vpack.c.bf16 %v3028_v3, %v1225_v34  ;;  %v2893_v21 = vunpack.i.h.bf16 %v2891_v42  ;;  %v2892_v48 = vunpack.i.l.bf16 %v2891_v42 }
  0xa2   : > { %626 = vst [vmem:[#allocation13 + $0x14] sm:$0xf] %v623_v12  ;;  %571 = vst [vmem:[#allocation13 + $0x10] sm:$0xf] %v568_v41  ;;  %v2923_v18 = vld [vmem:[#allocation13] sm:$0xff]   ;;  %v730_v19 = vmax.f32 %v3424_v36, %v2888_v43  ;;  %v675_v51 = vmax.f32 %v3419_v35, %v2887_v44 }
  0xa3   : > { %1286 = vst [vmem:[#allocation13 + $0x44] sm:$0xf] %v1283_v47  ;;  %1231 = vst [vmem:[#allocation13 + $0x40] sm:$0xf] %v1228_v22  ;;  %v1390_v52 = vmax.f32 %v3412_v31, %v2893_v21  ;;  %v1335_v53 = vmax.f32 %v3407_v30, %v2892_v48  ;;  %v2924_v56 = vld [vmem:[#allocation13 + $0x38] sm:$0xff]   ;;  %v2896_v58 = vpop.permute.xlu1 %2895  ;;  %2707 = vmatmul.mubr.msk.bf16.vlgmr.msra.gmra.mxu0 %vm1816_vm6, %v2923_v18 }
  0xa4   : > { %v733_v59 = vpack.c.bf16 %v3028_v3, %v730_v19  ;;  %v678_v62 = vpack.c.bf16 %v3028_v3, %v675_v51  ;;  %v2901_v63 = vpop.permute.xlu0 %2900  ;;  %v2898_v0 = vunpack.i.h.bf16 %v2896_v58  ;;  %v2897_v2 = vunpack.i.l.bf16 %v2896_v58  ;;  %2735 = vmatmul.mubr.msk.bf16.vlgmr.msra.gmra.mxu1 %vm1816_vm6, %v2924_v56  ;;  %2710 = vmatprep.mubr.msk.bf16.mxu0 %vm3030_vm5, %v3028_v3  ;;  %v3576_v22 = vld [vmem:[%s3802_s1] ss:$0 sm:$0xff]  ;;  %v3581_v48 = vld [vmem:[%s3802_s1 + $0x1] ss:$0 sm:$0xff] }
  0xa5   : > { %v1393_v36 = vpack.c.bf16 %v3028_v3, %v1390_v52  ;;  %v1338_v35 = vpack.c.bf16 %v3028_v3, %v1335_v53  ;;  %v2903_v30 = vunpack.i.h.bf16 %v2901_v63  ;;  %v2902_v31 = vunpack.i.l.bf16 %v2901_v63  ;;  %2738 = vmatprep.mubr.msk.bf16.mxu1 %vm3030_vm5, %v3028_v3 }
  0xa6   : > { %736 = vst [vmem:[#allocation13 + $0x1c] sm:$0xf] %v733_v59  ;;  %681 = vst [vmem:[#allocation13 + $0x18] sm:$0xf] %v678_v62  ;;  %v840_v6 = vmax.f32 %v3444_v40, %v2898_v0  ;;  %v785_v8 = vmax.f32 %v3439_v39, %v2897_v2 }
  0xa7   : > { %1396 = vst [vmem:[#allocation13 + $0x4c] sm:$0xf] %v1393_v36  ;;  %1341 = vst [vmem:[#allocation13 + $0x48] sm:$0xf] %v1338_v35  ;;  %v1500_v9 = vmax.f32 %v3434_v38, %v2903_v30  ;;  %v1445_v10 = vmax.f32 %v3429_v37, %v2902_v31  ;;  %v2906_v4 = vpop.permute.xlu1 %2905  ;;  %v2925_v13 = vld [vmem:[#allocation13 + $0x8] sm:$0xff]  }
  0xa8   : > { %v843_v5 = vpack.c.bf16 %v3028_v3, %v840_v6  ;;  %v788_v14 = vpack.c.bf16 %v3028_v3, %v785_v8  ;;  %v2911_v15 = vpop.permute.xlu0 %2910  ;;  %v2908_v16 = vunpack.i.h.bf16 %v2906_v4  ;;  %v2907_v20 = vunpack.i.l.bf16 %v2906_v4 }
  0xa9   : > { %v1503_v61 = vpack.c.bf16 %v3028_v3, %v1500_v9  ;;  %v1448_v40 = vpack.c.bf16 %v3028_v3, %v1445_v10  ;;  %v2913_v39 = vunpack.i.h.bf16 %v2911_v15  ;;  %v2912_v60 = vunpack.i.l.bf16 %v2911_v15  ;;  %v2927_v34 = vld [vmem:[#allocation13 + $0x10] sm:$0xff]  }
  0xaa   : > { %v2926_v7 = vld [vmem:[#allocation13 + $0x40] sm:$0xff]   ;;  %846 = vst [vmem:[#allocation13 + $0x24] sm:$0xf] %v843_v5  ;;  %791 = vst [vmem:[#allocation13 + $0x20] sm:$0xf] %v788_v14  ;;  %v950_v37 = vmax.f32 %v3468_v50, %v2908_v16  ;;  %v895_v38 = vmax.f32 %v3463_v49, %v2907_v20 }
  0xab   : > { %1506 = vst [vmem:[#allocation13 + $0x54] sm:$0xf] %v1503_v61  ;;  %1451 = vst [vmem:[#allocation13 + $0x50] sm:$0xf] %v1448_v40  ;;  %v1610_v11 = vmax.f32 %v3454_v46, %v2913_v39  ;;  %v1555_v23 = vmax.f32 %v3449_v45, %v2912_v60  ;;  %v2916_v24 = vpop.permute.xlu1 %2915  ;;  %2711 = vmatmul.mubr.msk.bf16.gmra.mxu0 %vm1816_vm6, %v2925_v13 }
  0xac   : > { %v953_v25 = vpack.c.bf16 %v3028_v3, %v950_v37  ;;  %v898_v26 = vpack.c.bf16 %v3028_v3, %v895_v38  ;;  %v2918_v27 = vunpack.i.h.bf16 %v2916_v24  ;;  %v2917_v28 = vunpack.i.l.bf16 %v2916_v24  ;;  %v1654_v29 = vpop.permute.xlu0 %1653  ;;  %2739 = vmatmul.mubr.msk.bf16.gmra.mxu1 %vm1816_vm6, %v2926_v7  ;;  %2714 = vmatprep.mubr.msk.bf16.mxu0 %vm3030_vm5, %v3028_v3 }
  0xad   : > { %v1613_v49 = vpack.c.bf16 %v3028_v3, %v1610_v11  ;;  %v1558_v46 = vpack.c.bf16 %v3028_v3, %v1555_v23  ;;  %v1684_v45 = vmax.f32 %v3486_v57, %v1654_v29  ;;  %2742 = vmatprep.mubr.msk.bf16.mxu1 %vm3030_vm5, %v3028_v3 }
  0xae   : > { %956 = vst [vmem:[#allocation13 + $0x2c] sm:$0xf] %v953_v25  ;;  %901 = vst [vmem:[#allocation13 + $0x28] sm:$0xf] %v898_v26  ;;  %v1060_v50 = vmax.f32 %v3478_v55, %v2918_v27  ;;  %v1005_v32 = vmax.f32 %v3473_v54, %v2917_v28  ;;  %v2928_v41 = vld [vmem:[#allocation13 + $0x48] sm:$0xff]   ;;  %v2929_v54 = vld [vmem:[#allocation13 + $0x18] sm:$0xff]  }
  0xaf   : > { %1616 = vst [vmem:[#allocation13 + $0x5c] sm:$0xf] %v1613_v49  ;;  %1561 = vst [vmem:[#allocation13 + $0x58] sm:$0xf] %v1558_v46  ;;  %v1687_v33 = vpack.c.bf16 %v3028_v3, %v1684_v45 }
  0xb0   : > { %v1063_v17 = vpack.c.bf16 %v3028_v3, %v1060_v50  ;;  %v1008_v12 = vpack.c.bf16 %v3028_v3, %v1005_v32 }
  0xb1   : > { %1690 = vst [vmem:[#allocation13 + $0x60] sm:$0xf] %v1687_v33  ;;  %v2931_v57 = vld [vmem:[#allocation13 + $0x20] sm:$0xff]  }
  0xb2   : > { %1066 = vst [vmem:[#allocation13 + $0x34] sm:$0xf] %v1063_v17  ;;  %1011 = vst [vmem:[#allocation13 + $0x30] sm:$0xf] %v1008_v12  ;;  %v2930_v55 = vld [vmem:[#allocation13 + $0x50] sm:$0xff]  }
  0xb3   : > { %2715 = vmatmul.mubr.msk.bf16.gmra.mxu0 %vm1816_vm6, %v2927_v34 }
  0xb4   : > { %2743 = vmatmul.mubr.msk.bf16.gmra.mxu1 %vm1816_vm6, %v2928_v41  ;;  %2718 = vmatprep.mubr.msk.bf16.mxu0 %vm3030_vm5, %v3028_v3 }
  0xb5   : > { %2746 = vmatprep.mubr.msk.bf16.mxu1 %vm3030_vm5, %v3028_v3  ;;  %v2933_v43 = vld [vmem:[#allocation13 + $0x28] sm:$0xff]  }
  0xb6   : > { %v2932_v42 = vld [vmem:[#allocation13 + $0x58] sm:$0xff]  }
  0xb8   : > { %v2934_v44 = vld [vmem:[#allocation13 + $0x60] ss:$0 sps:$4 sm:$0xff]  }
  0xb9   : > { %v2935_v47 = vld [vmem:[#allocation13 + $0x30] sm:$0xff]  }
  0xbb   : > { %2719 = vmatmul.mubr.msk.bf16.gmra.mxu0 %vm1816_vm6, %v2929_v54 }
  0xbc   : > { %2747 = vmatmul.mubr.msk.bf16.gmra.mxu1 %vm1816_vm6, %v2930_v55  ;;  %2722 = vmatprep.mubr.msk.bf16.mxu0 %vm3030_vm5, %v3028_v3 }
  0xbd   : > { %2750 = vmatprep.mubr.msk.bf16.mxu1 %vm3030_vm5, %v3028_v3 }
  0xc3   : > { %2723 = vmatmul.mubr.msk.bf16.gmra.mxu0 %vm1816_vm6, %v2931_v57 }
  0xc4   : > { %2751 = vmatmul.mubr.msk.bf16.gmra.mxu1 %vm1816_vm6, %v2932_v42  ;;  %2726 = vmatprep.mubr.msk.bf16.mxu0 %vm3030_vm5, %v3028_v3 }
  0xc5   : > { %2754 = vmatprep.mubr.msk.bf16.mxu1 %vm3030_vm5, %v3028_v3 }
  0xcb   : > { %2727 = vmatmul.mubr.msk.bf16.gmra.mxu0 %vm1816_vm6, %v2933_v43 }
  0xcc   : > { %2755 = vmatmul.mubr.msk.bf16.gmra.mxu1 %vm1816_vm6, %v2934_v44  ;;  %2730 = vmatprep.mubr.msk.bf16.mxu0 %vm3030_vm5, %v3028_v3 }
  0xd3   : > { %2731 = vmatmul.mubr.msk.bf16.gmra.mxu0 %vm1816_vm6, %v2935_v47 }
 0x163   : > { %v1894_v21 = vpop.f32.mrf.mxu0 }
 0x164   : > { %v1895_v18 = vadd.f32 %v3576_v22, %v1894_v21  ;;  %v1950_v19 = vpop.f32.mrf.mxu1 }
 0x165   : > { %v2708_v3 = vpop.f32.mrf.mxu0  ;;  %v1951_v51 = vadd.f32 %v3576_v22, %v1950_v19 }
 0x166   : > { %vm1996_vm7 = vcmp.ge.f32.partialorder %v1895_v18, 0.0  ;;  %v2026_v52 = vmul.f32 %v3581_v48, %v1895_v18  ;;  %v2736_v53 = vpop.f32.mrf.mxu1 }
 0x167   : > { %v1897_v56 = vpop.f32.mrf.mxu0  ;;  %vm2010_vm8 = vcmp.ge.f32.partialorder %v1951_v51, 0.0  ;;  %v2040_v58 = vmul.f32 %v3581_v48, %v1951_v51 }
 0x168   : > { %v2051_v59 = vsel %vm1996_vm7, %v1895_v18, %v2026_v52  ;;  %v1898_v62 = vadd.f32 %v3576_v22, %v1897_v56  ;;  %v1953_v63 = vpop.f32.mrf.mxu1 }
 0x169   : > { %v2655_v0 = vpack.c.bf16 %v2051_v59, %v2051_v59  ;;  %v2709_v2 = vpop.f32.mrf.mxu0  ;;  %v2065_v36 = vsel %vm2010_vm8, %v1951_v51, %v2040_v58  ;;  %v1954_v35 = vadd.f32 %v3576_v22, %v1953_v63 }
 0x16a   : > { %vm1997_vm10 = vcmp.ge.f32.partialorder %v1898_v62, 0.0  ;;  %v2027_v30 = vmul.f32 %v3581_v48, %v1898_v62  ;;  %v2669_v31 = vpack.c.bf16 %v2065_v36, %v2065_v36  ;;  %v2737_v6 = vpop.f32.mrf.mxu1 }
 0x16b   : > { %2178 = vst.msk [vmem:[%s3590_s20] sm:$0xf] %vm2177_vm9, %v2655_v0  ;;  %v1902_v8 = vpop.f32.mrf.mxu0  ;;  %vm2011_vm11 = vcmp.ge.f32.partialorder %v1954_v35, 0.0  ;;  %v2041_v9 = vmul.f32 %v3581_v48, %v1954_v35 }
 0x16c   : > { %v2052_v10 = vsel %vm1997_vm10, %v1898_v62, %v2027_v30  ;;  %2192 = vst.msk [vmem:[%s3590_s20 + $0x38] sm:$0xf] %vm2177_vm9, %v2669_v31  ;;  %v1903_v4 = vadd.f32 %v3576_v22, %v1902_v8  ;;  %v1958_v13 = vpop.f32.mrf.mxu1 }
 0x16d   : > { %v2656_v5 = vpack.c.bf16 %v2052_v10, %v2052_v10  ;;  %v2712_v14 = vpop.f32.mrf.mxu0  ;;  %v2066_v15 = vsel %vm2011_vm11, %v1954_v35, %v2041_v9  ;;  %v1959_v16 = vadd.f32 %v3576_v22, %v1958_v13 }
 0x16e   : > { %vm1998_vm12 = vcmp.ge.f32.partialorder %v1903_v4, 0.0  ;;  %v2028_v20 = vmul.f32 %v3581_v48, %v1903_v4  ;;  %v2670_v61 = vpack.c.bf16 %v2066_v15, %v2066_v15  ;;  %v2740_v40 = vpop.f32.mrf.mxu1 }
 0x16f   : > { %2179 = vst.msk [vmem:[%s3590_s20 + $0x4] sm:$0xf] %vm2177_vm9, %v2656_v5  ;;  %v1905_v39 = vpop.f32.mrf.mxu0  ;;  %vm2012_vm13 = vcmp.ge.f32.partialorder %v1959_v16, 0.0  ;;  %v2042_v60 = vmul.f32 %v3581_v48, %v1959_v16 }
 0x170   : > { %v2053_v7 = vsel %vm1998_vm12, %v1903_v4, %v2028_v20  ;;  %2193 = vst.msk [vmem:[%s3590_s20 + $0x3c] sm:$0xf] %vm2177_vm9, %v2670_v61  ;;  %v1906_v37 = vadd.f32 %v3576_v22, %v1905_v39  ;;  %v1961_v38 = vpop.f32.mrf.mxu1 }
 0x171   : > { %v2657_v11 = vpack.c.bf16 %v2053_v7, %v2053_v7  ;;  %v2713_v23 = vpop.f32.mrf.mxu0  ;;  %v2067_v24 = vsel %vm2012_vm13, %v1959_v16, %v2042_v60  ;;  %v1962_v25 = vadd.f32 %v3576_v22, %v1961_v38 }
 0x172   : > { %vm1999_vm14 = vcmp.ge.f32.partialorder %v1906_v37, 0.0  ;;  %v2029_v26 = vmul.f32 %v3581_v48, %v1906_v37  ;;  %v2671_v27 = vpack.c.bf16 %v2067_v24, %v2067_v24  ;;  %v2741_v28 = vpop.f32.mrf.mxu1 }
 0x173   : > { %2180 = vst.msk [vmem:[%s3590_s20 + $0x8] sm:$0xf] %vm2177_vm9, %v2657_v11  ;;  %v1910_v29 = vpop.f32.mrf.mxu0  ;;  %vm2013_vm15 = vcmp.ge.f32.partialorder %v1962_v25, 0.0  ;;  %v2043_v49 = vmul.f32 %v3581_v48, %v1962_v25 }
 0x174   : > { %v2054_v46 = vsel %vm1999_vm14, %v1906_v37, %v2029_v26  ;;  %2194 = vst.msk [vmem:[%s3590_s20 + $0x40] sm:$0xf] %vm2177_vm9, %v2671_v27  ;;  %v1911_v45 = vadd.f32 %v3576_v22, %v1910_v29  ;;  %v1966_v50 = vpop.f32.mrf.mxu1 }
 0x175   : > { %v2658_v32 = vpack.c.bf16 %v2054_v46, %v2054_v46  ;;  %v2716_v33 = vpop.f32.mrf.mxu0  ;;  %v2068_v34 = vsel %vm2013_vm15, %v1962_v25, %v2043_v49  ;;  %v1967_v17 = vadd.f32 %v3576_v22, %v1966_v50 }
 0x176   : > { %vm2000_vm0 = vcmp.ge.f32.partialorder %v1911_v45, 0.0  ;;  %v2030_v12 = vmul.f32 %v3581_v48, %v1911_v45  ;;  %v2672_v41 = vpack.c.bf16 %v2068_v34, %v2068_v34  ;;  %v2744_v54 = vpop.f32.mrf.mxu1 }
 0x177   : > { %2181 = vst.msk [vmem:[%s3590_s20 + $0xc] sm:$0xf] %vm2177_vm9, %v2658_v32  ;;  %v1913_v55 = vpop.f32.mrf.mxu0  ;;  %vm2014_vm1 = vcmp.ge.f32.partialorder %v1967_v17, 0.0  ;;  %v2044_v57 = vmul.f32 %v3581_v48, %v1967_v17 }
 0x178   : > { %v2055_v42 = vsel %vm2000_vm0, %v1911_v45, %v2030_v12  ;;  %2195 = vst.msk [vmem:[%s3590_s20 + $0x44] sm:$0xf] %vm2177_vm9, %v2672_v41  ;;  %v1914_v43 = vadd.f32 %v3576_v22, %v1913_v55  ;;  %v1969_v44 = vpop.f32.mrf.mxu1 }
 0x179   : > { %v2659_v47 = vpack.c.bf16 %v2055_v42, %v2055_v42  ;;  %v2717_v21 = vpop.f32.mrf.mxu0  ;;  %v2069_v18 = vsel %vm2014_vm1, %v1967_v17, %v2044_v57  ;;  %v1970_v19 = vadd.f32 %v3576_v22, %v1969_v44 }
 0x17a   : > { %vm2001_vm2 = vcmp.ge.f32.partialorder %v1914_v43, 0.0  ;;  %v2031_v3 = vmul.f32 %v3581_v48, %v1914_v43  ;;  %v2673_v51 = vpack.c.bf16 %v2069_v18, %v2069_v18  ;;  %v2745_v52 = vpop.f32.mrf.mxu1 }
 0x17b   : > { %2182 = vst.msk [vmem:[%s3590_s20 + $0x10] sm:$0xf] %vm2177_vm9, %v2659_v47  ;;  %v1918_v53 = vpop.f32.mrf.mxu0  ;;  %vm2015_vm3 = vcmp.ge.f32.partialorder %v1970_v19, 0.0  ;;  %v2045_v56 = vmul.f32 %v3581_v48, %v1970_v19 }
 0x17c   : > { %v2056_v58 = vsel %vm2001_vm2, %v1914_v43, %v2031_v3  ;;  %2196 = vst.msk [vmem:[%s3590_s20 + $0x48] sm:$0xf] %vm2177_vm9, %v2673_v51  ;;  %v1919_v59 = vadd.f32 %v3576_v22, %v1918_v53  ;;  %v1974_v62 = vpop.f32.mrf.mxu1 }
 0x17d   : > { %v2660_v63 = vpack.c.bf16 %v2056_v58, %v2056_v58  ;;  %v2720_v0 = vpop.f32.mrf.mxu0  ;;  %v2070_v2 = vsel %vm2015_vm3, %v1970_v19, %v2045_v56  ;;  %v1975_v36 = vadd.f32 %v3576_v22, %v1974_v62 }
 0x17e   : > { %vm2002_vm4 = vcmp.ge.f32.partialorder %v1919_v59, 0.0  ;;  %v2032_v35 = vmul.f32 %v3581_v48, %v1919_v59  ;;  %v2674_v30 = vpack.c.bf16 %v2070_v2, %v2070_v2  ;;  %v2748_v31 = vpop.f32.mrf.mxu1 }
 0x17f   : > { %2183 = vst.msk [vmem:[%s3590_s20 + $0x14] sm:$0xf] %vm2177_vm9, %v2660_v63  ;;  %v1921_v6 = vpop.f32.mrf.mxu0  ;;  %vm2016_vm5 = vcmp.ge.f32.partialorder %v1975_v36, 0.0  ;;  %v2046_v8 = vmul.f32 %v3581_v48, %v1975_v36 }
 0x180   : > { %v2057_v9 = vsel %vm2002_vm4, %v1919_v59, %v2032_v35  ;;  %2197 = vst.msk [vmem:[%s3590_s20 + $0x4c] sm:$0xf] %vm2177_vm9, %v2674_v30  ;;  %v1922_v10 = vadd.f32 %v3576_v22, %v1921_v6  ;;  %v1977_v4 = vpop.f32.mrf.mxu1 }
 0x181   : > { %v2661_v13 = vpack.c.bf16 %v2057_v9, %v2057_v9  ;;  %v2721_v5 = vpop.f32.mrf.mxu0  ;;  %v2071_v14 = vsel %vm2016_vm5, %v1975_v36, %v2046_v8  ;;  %v1978_v15 = vadd.f32 %v3576_v22, %v1977_v4 }
 0x182   : > { %vm2003_vm6 = vcmp.ge.f32.partialorder %v1922_v10, 0.0  ;;  %v2033_v16 = vmul.f32 %v3581_v48, %v1922_v10  ;;  %v2675_v20 = vpack.c.bf16 %v2071_v14, %v2071_v14  ;;  %v2749_v61 = vpop.f32.mrf.mxu1 }
 0x183   : > { %2184 = vst.msk [vmem:[%s3590_s20 + $0x18] sm:$0xf] %vm2177_vm9, %v2661_v13  ;;  %v1926_v40 = vpop.f32.mrf.mxu0  ;;  %vm2017_vm7 = vcmp.ge.f32.partialorder %v1978_v15, 0.0  ;;  %v2047_v39 = vmul.f32 %v3581_v48, %v1978_v15 }
 0x184   : > { %v2058_v60 = vsel %vm2003_vm6, %v1922_v10, %v2033_v16  ;;  %2198 = vst.msk [vmem:[%s3590_s20 + $0x50] sm:$0xf] %vm2177_vm9, %v2675_v20  ;;  %v1927_v7 = vadd.f32 %v3576_v22, %v1926_v40  ;;  %v1982_v37 = vpop.f32.mrf.mxu1 }
 0x185   : > { %v2662_v38 = vpack.c.bf16 %v2058_v60, %v2058_v60  ;;  %v2724_v11 = vpop.f32.mrf.mxu0  ;;  %v2072_v23 = vsel %vm2017_vm7, %v1978_v15, %v2047_v39  ;;  %v1983_v24 = vadd.f32 %v3576_v22, %v1982_v37 }
 0x186   : > { %vm2004_vm8 = vcmp.ge.f32.partialorder %v1927_v7, 0.0  ;;  %v2034_v25 = vmul.f32 %v3581_v48, %v1927_v7  ;;  %v2676_v26 = vpack.c.bf16 %v2072_v23, %v2072_v23  ;;  %v2752_v27 = vpop.f32.mrf.mxu1 }
 0x187   : > { %2185 = vst.msk [vmem:[%s3590_s20 + $0x1c] sm:$0xf] %vm2177_vm9, %v2662_v38  ;;  %v1929_v28 = vpop.f32.mrf.mxu0  ;;  %vm2018_vm10 = vcmp.ge.f32.partialorder %v1983_v24, 0.0  ;;  %v2048_v29 = vmul.f32 %v3581_v48, %v1983_v24 }
 0x188   : > { %v2059_v49 = vsel %vm2004_vm8, %v1927_v7, %v2034_v25  ;;  %2199 = vst.msk [vmem:[%s3590_s20 + $0x54] sm:$0xf] %vm2177_vm9, %v2676_v26  ;;  %v1930_v46 = vadd.f32 %v3576_v22, %v1929_v28  ;;  %v1985_v45 = vpop.f32.mrf.mxu1 }
 0x189   : > { %v2663_v50 = vpack.c.bf16 %v2059_v49, %v2059_v49  ;;  %v2725_v32 = vpop.f32.mrf.mxu0  ;;  %v2073_v33 = vsel %vm2018_vm10, %v1983_v24, %v2048_v29  ;;  %v1986_v34 = vadd.f32 %v3576_v22, %v1985_v45 }
 0x18a   : > { %vm2005_vm11 = vcmp.ge.f32.partialorder %v1930_v46, 0.0  ;;  %v2035_v17 = vmul.f32 %v3581_v48, %v1930_v46  ;;  %v2677_v12 = vpack.c.bf16 %v2073_v33, %v2073_v33  ;;  %v2753_v41 = vpop.f32.mrf.mxu1 }
 0x18b   : > { %2186 = vst.msk [vmem:[%s3590_s20 + $0x20] sm:$0xf] %vm2177_vm9, %v2663_v50  ;;  %v1934_v54 = vpop.f32.mrf.mxu0  ;;  %vm2019_vm12 = vcmp.ge.f32.partialorder %v1986_v34, 0.0  ;;  %v2049_v55 = vmul.f32 %v3581_v48, %v1986_v34 }
 0x18c   : > { %v2060_v57 = vsel %vm2005_vm11, %v1930_v46, %v2035_v17  ;;  %2200 = vst.msk [vmem:[%s3590_s20 + $0x58] sm:$0xf] %vm2177_vm9, %v2677_v12  ;;  %v1935_v42 = vadd.f32 %v3576_v22, %v1934_v54  ;;  %v1990_v43 = vpop.f32.mrf.mxu1 }
 0x18d   : > { %v2664_v44 = vpack.c.bf16 %v2060_v57, %v2060_v57  ;;  %v2728_v47 = vpop.f32.mrf.mxu0  ;;  %v2074_v21 = vsel %vm2019_vm12, %v1986_v34, %v2049_v55  ;;  %v1991_v18 = vadd.f32 %v3576_v22, %v1990_v43 }
 0x18e   : > { %vm2006_vm13 = vcmp.ge.f32.partialorder %v1935_v42, 0.0  ;;  %v2036_v19 = vmul.f32 %v3581_v48, %v1935_v42  ;;  %v2678_v3 = vpack.c.bf16 %v2074_v21, %v2074_v21  ;;  %v2756_v51 = vpop.f32.mrf.mxu1 }
 0x18f   : > { %2187 = vst.msk [vmem:[%s3590_s20 + $0x24] sm:$0xf] %vm2177_vm9, %v2664_v44  ;;  %v1937_v52 = vpop.f32.mrf.mxu0  ;;  %vm2020_vm14 = vcmp.ge.f32.partialorder %v1991_v18, 0.0  ;;  %v2050_v53 = vmul.f32 %v3581_v48, %v1991_v18 }
 0x190   : > { %v2061_v56 = vsel %vm2006_vm13, %v1935_v42, %v2036_v19  ;;  %2201 = vst.msk [vmem:[%s3590_s20 + $0x5c] sm:$0xf] %vm2177_vm9, %v2678_v3  ;;  %v1938_v58 = vadd.f32 %v3576_v22, %v1937_v52  ;;  %v1993_v59 = vpop.f32.mrf.mxu1 }
 0x191   : > { %v2665_v62 = vpack.c.bf16 %v2061_v56, %v2061_v56  ;;  %v2729_v63 = vpop.f32.mrf.mxu0  ;;  %v2075_v0 = vsel %vm2020_vm14, %v1991_v18, %v2050_v53 }
 0x192   : > { %vm2007_vm15 = vcmp.ge.f32.partialorder %v1938_v58, 0.0  ;;  %v2037_v2 = vmul.f32 %v3581_v48, %v1938_v58  ;;  %v2679_v36 = vpack.c.bf16 %v2075_v0, %v2075_v0  ;;  %v2757_v35 = vpop.f32.mrf.mxu1 }
 0x193   : > { %2188 = vst.msk [vmem:[%s3590_s20 + $0x28] sm:$0xf] %vm2177_vm9, %v2665_v62  ;;  %v1942_v30 = vpop.f32.mrf.mxu0 }
 0x194   : > { %v2062_v31 = vsel %vm2007_vm15, %v1938_v58, %v2037_v2  ;;  %2202 = vst.msk [vmem:[%s3590_s20 + $0x60] sm:$0xf] %vm2177_vm9, %v2679_v36  ;;  %v1943_v6 = vadd.f32 %v3576_v22, %v1942_v30 }
 0x195   : > { %v2666_v8 = vpack.c.bf16 %v2062_v31, %v2062_v31  ;;  %v2732_v9 = vpop.f32.mrf.mxu0 }
 0x196   : > { %vm2008_vm0 = vcmp.ge.f32.partialorder %v1943_v6, 0.0  ;;  %v2038_v10 = vmul.f32 %v3581_v48, %v1943_v6 }
 0x197   : > { %2189 = vst.msk [vmem:[%s3590_s20 + $0x2c] sm:$0xf] %vm2177_vm9, %v2666_v8  ;;  %v1945_v4 = vpop.f32.mrf.mxu0 }
 0x198   : > { %v2063_v13 = vsel %vm2008_vm0, %v1943_v6, %v2038_v10  ;;  %v1946_v5 = vadd.f32 %v3576_v22, %v1945_v4 }
 0x199   : > { %v2667_v14 = vpack.c.bf16 %v2063_v13, %v2063_v13  ;;  %v2733_v15 = vpop.f32.mrf.mxu0 }
 0x19a   : > { %vm2009_vm1 = vcmp.ge.f32.partialorder %v1946_v5, 0.0  ;;  %v2039_v16 = vmul.f32 %v3581_v48, %v1946_v5 }
 0x19b   : > { %2190 = vst.msk [vmem:[%s3590_s20 + $0x30] sm:$0xf] %vm2177_vm9, %v2667_v14  ;;  %2209 = sbr.rel (!%p3091_p4) target bundleno = 486 (0x1e6), region = 40 }
 0x19c   : > { %v2064_v20 = vsel %vm2009_vm1, %v1946_v5, %v2039_v16 }
 0x19d   : > { %v2668_v61 = vpack.c.bf16 %v2064_v20, %v2064_v20 }
 0x19f   : > { %2191 = vst.msk [vmem:[%s3590_s20 + $0x34] sm:$0xf] %vm2177_vm9, %v2668_v61 }
 0x1a0   : > { %s3817_s22 = smov (!%p2212_p9, %s2211_s22), 25 }
 0x1a1   : > { %s2643_s6 = sshll.u32 %s3817_s22, 6 }
 0x1a2   : > { %p2646_p10 = scmp.eq.s32.totalorder %s2643_s6, 0 }
 0x1a3   : > { %2936 = sdivrem.u32 (!%p2646_p10), %s3817_s22, 25 }
 0x1a4   : > { %2220 = sbr.rel (%p2646_p10) target bundleno = 486 (0x1e6), region = 44 }
 0x1ac   : > { %s3698_s27 = spop.drf %2936 }
 0x1ad   : > { %p2647_p11 = scmp.le.s32.totalorder %s3698_s27, 0 }
 0x1ae   : > { %s3810_s3 = smov (!%p2647_p11), %s3692_s30  ;;  %s3811_s28 = smov (!%p2647_p11), %s3590_s20 }
 0x1af   : > { %2482 = sbr.rel (%p2647_p11) target bundleno = 461 (0x1cd), region = 215  ;;  %s3707_s9 = smov (!%p2647_p11), 0  }
 0x1b0   : > { %s3709_s10 = smov (!%p2647_p11), 0  }
 0x1b4 LB: >> { %v2238_v22 = vld [vmem:[%s3002_s28] sm:$0xf]  ;;  %v2240_v48 = vld [vmem:[%s3002_s28 + $0x4] sm:$0xf]  ;;  %v2242_v40 = vld [vmem:[%s3002_s28 + $0x8] sm:$0xf]  ;;  %s3010_s10 = sphi %s3709_s10, %s2232_s10   ;;  %s3006_s9 = sphi %s3707_s9, %s3812_s9   ;;  %s3002_s28 = sphi %s3811_s28, %s2293_s28   ;;  %s2998_s3 = sphi %s3810_s3, %s2294_s3  }
 0x1b5   : >> { %2239 = vst [vmem:[%s2998_s3] sm:$0xf] %v2238_v22  ;;  %2241 = vst [vmem:[%s2998_s3 + $0x4] sm:$0xf] %v2240_v48  ;;  %v2244_v39 = vld [vmem:[%s3002_s28 + $0xc] sm:$0xf]  ;;  %s2288_s12 = sadd.s32 1, %s3006_s9 }
 0x1b6   : >> { %2243 = vst [vmem:[%s2998_s3 + $0x8] sm:$0xf] %v2242_v40  ;;  %v2246_v60 = vld [vmem:[%s3002_s28 + $0x10] sm:$0xf]  ;;  %v2248_v7 = vld [vmem:[%s3002_s28 + $0x14] sm:$0xf]  ;;  %p2289_p12 = scmp.ge.s32.totalorder %s2288_s12, %s3698_s27 }
 0x1b7   : >> { %2245 = vst [vmem:[%s2998_s3 + $0xc] sm:$0xf] %v2244_v39  ;;  %2247 = vst [vmem:[%s2998_s3 + $0x10] sm:$0xf] %v2246_v60  ;;  %v2250_v37 = vld [vmem:[%s3002_s28 + $0x18] sm:$0xf] }
 0x1b8   : >> { %2249 = vst [vmem:[%s2998_s3 + $0x14] sm:$0xf] %v2248_v7  ;;  %v2252_v38 = vld [vmem:[%s3002_s28 + $0x1c] sm:$0xf]  ;;  %v2254_v11 = vld [vmem:[%s3002_s28 + $0x20] sm:$0xf] }
 0x1b9   : >> { %2251 = vst [vmem:[%s2998_s3 + $0x18] sm:$0xf] %v2250_v37  ;;  %2253 = vst [vmem:[%s2998_s3 + $0x1c] sm:$0xf] %v2252_v38  ;;  %v2256_v23 = vld [vmem:[%s3002_s28 + $0x24] sm:$0xf] }
 0x1ba   : >> { %2255 = vst [vmem:[%s2998_s3 + $0x20] sm:$0xf] %v2254_v11  ;;  %v2258_v24 = vld [vmem:[%s3002_s28 + $0x28] sm:$0xf]  ;;  %v2260_v25 = vld [vmem:[%s3002_s28 + $0x2c] sm:$0xf] }
 0x1bb   : >> { %2257 = vst [vmem:[%s2998_s3 + $0x24] sm:$0xf] %v2256_v23  ;;  %2259 = vst [vmem:[%s2998_s3 + $0x28] sm:$0xf] %v2258_v24  ;;  %v2262_v26 = vld [vmem:[%s3002_s28 + $0x30] sm:$0xf] }
 0x1bc   : >> { %2261 = vst [vmem:[%s2998_s3 + $0x2c] sm:$0xf] %v2260_v25  ;;  %v2264_v27 = vld [vmem:[%s3002_s28 + $0x34] sm:$0xf]  ;;  %v2266_v28 = vld [vmem:[%s3002_s28 + $0x38] sm:$0xf] }
 0x1bd   : >> { %2263 = vst [vmem:[%s2998_s3 + $0x30] sm:$0xf] %v2262_v26  ;;  %2265 = vst [vmem:[%s2998_s3 + $0x34] sm:$0xf] %v2264_v27  ;;  %v2268_v29 = vld [vmem:[%s3002_s28 + $0x3c] sm:$0xf] }
 0x1be   : >> { %2267 = vst [vmem:[%s2998_s3 + $0x38] sm:$0xf] %v2266_v28  ;;  %v2270_v49 = vld [vmem:[%s3002_s28 + $0x40] sm:$0xf]  ;;  %v2272_v46 = vld [vmem:[%s3002_s28 + $0x44] sm:$0xf] }
 0x1bf   : >> { %2269 = vst [vmem:[%s2998_s3 + $0x3c] sm:$0xf] %v2268_v29  ;;  %2271 = vst [vmem:[%s2998_s3 + $0x40] sm:$0xf] %v2270_v49  ;;  %v2274_v45 = vld [vmem:[%s3002_s28 + $0x48] sm:$0xf] }
 0x1c0   : >> { %2273 = vst [vmem:[%s2998_s3 + $0x44] sm:$0xf] %v2272_v46  ;;  %v2276_v50 = vld [vmem:[%s3002_s28 + $0x4c] sm:$0xf]  ;;  %v2278_v32 = vld [vmem:[%s3002_s28 + $0x50] sm:$0xf] }
 0x1c1   : >> { %2275 = vst [vmem:[%s2998_s3 + $0x48] sm:$0xf] %v2274_v45  ;;  %2277 = vst [vmem:[%s2998_s3 + $0x4c] sm:$0xf] %v2276_v50  ;;  %v2280_v33 = vld [vmem:[%s3002_s28 + $0x54] sm:$0xf] }
 0x1c2   : >> { %2279 = vst [vmem:[%s2998_s3 + $0x50] sm:$0xf] %v2278_v32  ;;  %v2282_v34 = vld [vmem:[%s3002_s28 + $0x58] sm:$0xf]  ;;  %v2284_v17 = vld [vmem:[%s3002_s28 + $0x5c] sm:$0xf] }
 0x1c3   : >> { %2281 = vst [vmem:[%s2998_s3 + $0x54] sm:$0xf] %v2280_v33  ;;  %2283 = vst [vmem:[%s2998_s3 + $0x58] sm:$0xf] %v2282_v34  ;;  %v2286_v12 = vld [vmem:[%s3002_s28 + $0x60] sm:$0xf] }
 0x1c4   : >> { %2285 = vst [vmem:[%s2998_s3 + $0x5c] sm:$0xf] %v2284_v17  ;;  %2287 = vst [vmem:[%s2998_s3 + $0x60] sm:$0xf] %v2286_v12  ;;  %s3819_s12 = smov (%p2289_p12, %s2288_s12), 0  ;;  %s2232_s10 = sadd.s32 1, %s3010_s10  }
 0x1c5   : >> { %s2291_s7 = smul.u32 100, %s3819_s12  ;;  %p2231_p13 = scmp.ge.s32.totalorder %s2232_s10, %s3698_s27 }
 0x1c6   : >> { %s3812_s9 = smov %s3819_s12 }
 0x1c7   : >> { %s2293_s28 = scalar_lea.vmem %s3590_s20, %s2291_s7 [#allocation12]   ;;  %s2294_s3 = scalar_lea.vmem %s3692_s30, %s2291_s7  }
 0x1c8   : > { %2234 = sbr.rel (!%p2231_p13) target bundleno = 436 (0x1b4), region = 221 }
 0x1cd PF: > { %2938 = sdivrem.u32 %s3817_s22, 25 }
 0x1ce   : > { %s2648_s13 = smul.u32 100, %s3698_s27 }
 0x1d0   : > { %s2299_s15 = scalar_lea.vmem %s3590_s20, %s2648_s13 [#allocation12]   ;;  %s2301_s16 = scalar_lea.vmem %s3692_s30, %s2648_s13  }
 0x1d6   : > { %s2939_s8 = spop.drf %2938 }
 0x1d7   : > { %p2650_p0 = scmp.le.s32.totalorder %s2939_s8, 0 }
 0x1d8   : > { %s3012_s11 = smov (!%p2650_p0), %s2301_s16   ;;  %s3016_s14 = smov (!%p2650_p0), %s2299_s15  }
 0x1d9   : > { %2496 = sbr.rel (%p2650_p0) target bundleno = 486 (0x1e6), region = 226  ;;  %s3020_s17 = smov (!%p2650_p0), 0  }
 0x1da   : > { %s3024_s18 = smov (!%p2650_p0), 0  }
 0x1de LB: >> { %v2311_v41 = vld [vmem:[%s3018_s14] sm:$0xf]  ;;  %s2313_s19 = sadd.s32 1, %s3022_s17  ;;  %s2305_s18 = sadd.s32 1, %s3026_s18   ;;  %s3026_s18 = sphi %s3024_s18, %s2305_s18   ;;  %s3022_s17 = sphi %s3020_s17, %s3021_s17   ;;  %s3018_s14 = sphi %s3016_s14, %s2318_s14   ;;  %s3014_s11 = sphi %s3012_s11, %s2319_s11  }
 0x1df   : >> { %2312 = vst [vmem:[%s3014_s11] sm:$0xf] %v2311_v41  ;;  %p2314_p1 = scmp.ge.s32.totalorder %s2313_s19, %s2939_s8  ;;  %p2304_p2 = scmp.ge.s32.totalorder %s2305_s18, %s2939_s8 }
 0x1e1   : >> { %s3821_s19 = smov (%p2314_p1, %s2313_s19), 0  ;;  %2307 = sbr.rel (!%p2304_p2) target bundleno = 478 (0x1de), region = 232 }
 0x1e2   : >> { %s2651_s20 = sshll.u32 %s3821_s19, 2  ;;  %s3021_s17 = smov %s3821_s19  }
 0x1e3   : >> { %s2318_s14 = scalar_lea.vmem %s2299_s15, %s2651_s20 [#allocation12]   ;;  %s2319_s11 = scalar_lea.vmem %s2301_s16, %s2651_s20  }
 0x1e6 PF: > { %p22_p3 = scmp.ge.s32.totalorder %s3081_s23, 4   ;;  %s3813_s20 = smov %s2990_s21 }
 0x1e7   : > { %s3814_s21 = smov %s3089_s26  ;;  %s3815_s22 = smov %s3081_s23 }
 0x1e8   :  { %24 = sbr.rel (!%p22_p3) target bundleno = 5 (0x5), region = 243 }

// kernel: bats_network_forward.17
= control target key start
LH: loop header
LB: loop body
LE: loop exit
PB: predicated region body
PF: predicated region fallthrough
CT: control target
= control target key end

     0   :  { %s4877_s0 = inlined_call_operand.vmem [shape: bf16[720,120], index: 0, kind: input, shape index: {}]   ;;  %s4878_s1 = inlined_call_operand.vmem [shape: f32[2,120], index: 1, kind: input, shape index: {}]   ;;  %s4879_s2 = inlined_call_operand.vmem [shape: bf16[98,360], index: 2, kind: input, shape index: {}]   ;;  %s4880_s3 = inlined_call_operand.<no memory space> [shape: bf16[], index: 3, kind: input, shape index: {}]   ;;  %s4881_s4 = inlined_call_operand.vmem [shape: bf16[98,360], index: 4, kind: input, shape index: {}]   ;;  %s4882_s5 = inlined_call_operand.vmem [shape: bf16[98,120], index: 5, kind: output, shape index: {}]  }
   0x1   :  { %v10_v0 = vstv %s4880_s3 }
   0x2   :  { %v3966_v1 = vunpack.i.l.bf16 %v10_v0 }
   0x3   :  { %s3968_s20 = smov 0   ;;  %s3970_s21 = smov 0  }
   0x4   :  { %s3972_s22 = smov 0  }
   0x5 LB: > { %s3981_s3 = sadd.s32 4294967295, %s3896_s22   ;;  %s3983_s23 = sadd.s32 1, %s3896_s22   ;;  %s3896_s22 = sphi %s3972_s22, %s4895_s22   ;;  %s3892_s21 = sphi %s3970_s21, %s4894_s21   ;;  %s3888_s20 = sphi %s3968_s20, %s4893_s20  }
   0x6   : > { %s123_s24 = ssub.s32 %s3896_s22, %s3983_s23  ;;  %s126_s25 = sadd.s32 1, %s3892_s21 }
   0x7   : > { %p124_p0 = scmp.eq.s32.totalorder %s123_s24, 0  ;;  %p136_p1 = scmp.ne.s32.totalorder %s3892_s21, %s3888_s20 }
   0x8   : > { %p137_p2 = scmp.eq.s32.totalorder %s3981_s3, 1  ;;  %p3198_p3 = scmp.ge.s32.totalorder %s3896_s22, 1 }
   0x9   : > { %s3991_s26 = scalar_select %p124_p0, %s3892_s21, %s126_s25  }
   0xa   : > { %p3993_p4 = por %p137_p2, %p136_p1  ;;  %p208_p5 = scmp.lt.s32.totalorder %s3896_s22, 3 }
   0xc   : > { %p209_p6 = pnand %p3198_p3, %p208_p5 }
   0xe   : > { %212 = sbr.rel (%p209_p6) target bundleno = 478 (0x1de), region = 36 }
  0x13   : > { %s3998_s28 = smul.u32 7, %s3981_s3  ;;  %v327_v2 = vlaneseq  ;;  %v3760_v3 = vld [vmem:[%s4877_s0 + $0x78] sm:$0xff]   ;;  %v3762_v10 = vld [vmem:[%s4877_s0 + $0x70] sm:$0xff]   ;;  %v3764_v12 = vld [vmem:[%s4877_s0 + $0x68] sm:$0xff]   ;;  %v3930_v28 = vmov 0   ;;  %v3931_v49 = vmov 0.0  }
  0x14   : > { %s4004_s6 = smul.u32 56, %s3981_s3  ;;  %v3761_v4 = vld [vmem:[%s4877_s0 + $0x38] sm:$0xff]   ;;  %3511 = vmatprep.subr.bf16.mxu1 %v3760_v3  ;;  %v3763_v11 = vld [vmem:[%s4877_s0 + $0x30] sm:$0xff]   ;;  %2769 = vmatprep.subr.bf16.mxu0 %v3930_v28  ;;  %v3765_v47 = vld [vmem:[%s4877_s0 + $0x28] sm:$0xff]   ;;  %vm2628_vm15 = vcmask 654336  }
  0x15   : > { %p257_p7 = scmp.lt.s32.totalorder %s3998_s28, 12  ;;  %v4010_v5 = vshrl.u32 %v327_v2, 7  ;;  %v4012_v6 = vand.u32 127, %v327_v2  ;;  %s1741_s9 = sadd.s32 6, %s3998_s28  ;;  %3512 = vmatpush3.bf16.msra.mxu1 %v3761_v4  ;;  %v3766_v48 = vld [vmem:[%s4877_s0 + $0x60] sm:$0xff]   ;;  %v3768_v59 = vld [vmem:[%s4877_s0 + $0x58] sm:$0xff]  }
  0x16   : > { %s4015_s10 = ssub.s32 12, %s1741_s9  ;;  %s3450_s11 = sadd.s32 48, %s4004_s6  ;;  %v329_v7 = vstv %s4004_s6  ;;  %3513 = vmatprep.subr.bf16.mxu1 %v3762_v10  ;;  %v3767_v54 = vld [vmem:[%s4877_s0 + $0x20] sm:$0xff]  }
  0x17   : > { %s258_s12 = scalar_select %p257_p7, %s3998_s28, 12  ;;  %v4021_v8 = vadd.s32 %v329_v7, %v4010_v5  ;;  %v4024_v9 = vadd.s32 640, %v4012_v6  ;;  %v1768_v13 = vstv %s3450_s11  ;;  %vm410_vm0 = vcmp.lt.s32.totalorder %v4012_v6, 24 }
  0x18   : > { %s1743_s15 = sor.u32 4294967293, %s4015_s10  ;;  %s1780_s16 = sor.u32 4294967294, %s4015_s10  ;;  %v1953_v15 = vstv %s4015_s10  ;;  %v4065_v17 = vadd.s32 %v1768_v13, %v4010_v5 }
  0x19   : > { %s3199_s24 = smul.u32 12, %s258_s12  ;;  %p4037_p8 = scmp.lt.s32.totalorder %s1743_s15, 0  ;;  %v4042_v14 = vstv %s1743_s15  ;;  %vm331_vm1 = vcmp.lt.s32.totalorder %v4021_v8, 98  ;;  %3514 = vmatpush3.bf16.msra.mxu1 %v3763_v11  ;;  %vm493_vm2 = vcmp.lt.s32.totalorder %v4024_v9, 744  ;;  %v4067_v18 = vstv %s1780_s16 }
  0x1a   : > { %p4044_p9 = scmp.lt.s32.totalorder %s1780_s16, 0  ;;  %s3390_s30 = sadd.s32 8, %s4004_s6  ;;  %3515 = vmatprep.subr.bf16.mxu1 %v3764_v12  ;;  %vm1762_vm4 = vcmp.lt.s32.totalorder %v4042_v14, 0  ;;  %vm1770_vm5 = vcmp.lt.s32.totalorder %v4065_v17, 98  ;;  %vm1799_vm6 = vcmp.lt.s32.totalorder %v4067_v18, 0  ;;  %v3774_v18 = vld [vmem:[%s4877_s0 + $0x48] sm:$0xff]  }
  0x1b   : > { %s4054_s9 = scalar_lea.vmem %s4879_s2, %s3199_s24  ;;  %s4059_s13 = scalar_lea.vmem %s4881_s4, %s3199_s24  ;;  %v566_v16 = vstv %s3390_s30  ;;  %vm4402_vm10 = vcmp.lt.s32.totalorder %v1953_v15, 0 }
  0x1c   : > { %s1745_s14 = scalar_select %p4037_p8, 0, 255  ;;  %v3213_v19 = vld [vmem:[%s4059_s13 + $0xc] sm:$0xff]   ;;  %v4071_v20 = vadd.s32 %v566_v16, %v4010_v5  ;;  %v323_v22 = vld [vmem:[%s4059_s13] sm:$0xff]   ;;  %v4113_v41 = vld [vmem:[%s4054_s9 + $0x14] sm:$0xff]  }
  0x1d   : > { %v3217_v21 = vld [vmem:[%s4054_s9 + $0xc] sm:$0xff]   ;;  %s1782_s15 = scalar_select %p4044_p9, 0, 255  ;;  %v560_v23 = vunpack.c.l.bf16 %v3213_v19  ;;  %v607_v24 = vunpack.c.h.bf16 %v3213_v19  ;;  %v4078_v27 = vld [vmem:[%s4054_s9] sm:$0xff]   ;;  %v324_v29 = vunpack.c.l.bf16 %v323_v22  ;;  %v369_v30 = vunpack.c.h.bf16 %v323_v22  ;;  %v4116_v42 = vld [vmem:[%s4059_s13 + $0x18] sm:$0xff]   ;;  %3516 = vmatpush3.bf16.msra.mxu1 %v3765_v47 }
  0x1e   : > { %v633_v25 = vunpack.c.l.bf16 %v3217_v21  ;;  %v691_v26 = vunpack.c.h.bf16 %v3217_v21  ;;  %s1746_s16 = sshrl.u32 %s1745_s14, 1  ;;  %vm568_vm3 = vcmp.lt.s32.totalorder %v4071_v20, 98  ;;  %v394_v31 = vunpack.c.l.bf16 %v4078_v27  ;;  %s3402_s17 = sadd.s32 16, %s4004_s6  ;;  %v4110_v40 = vld [vmem:[%s4054_s9 + $0x8] ss:$60 sps:$4 sm:$0xff]   ;;  %3517 = vmatprep.subr.bf16.mxu1 %v3766_v48  ;;  %v4181_v13 = vld [vmem:[%s4054_s9 + $0x1c] sm:$0xff]  }
  0x1f   : > { %s1747_s18 = sor.u32 %s1746_s16, %s1745_s14  ;;  %s1783_s19 = sshrl.u32 %s1782_s15, 1  ;;  %v569_v32 = vsel %vm568_vm3, %v560_v23, %v3966_v1  ;;  %v616_v33 = vsel %vm568_vm3, %v607_v24, %v3966_v1  ;;  %v332_v44 = vsel %vm331_vm1, %v324_v29, %v3966_v1  ;;  %v377_v45 = vsel %vm331_vm1, %v369_v30, %v3966_v1  ;;  %v4184_v16 = vld [vmem:[%s4059_s13 + $0x24] sm:$0xff]   ;;  %v3770_v19 = vld [vmem:[%s4877_s0 + $0x138] sm:$0xff]   ;;  %v4252_v48 = vld [vmem:[%s4059_s13 + $0x30] sm:$0xff]  }
  0x20   : > { %v642_v34 = vsel %vm568_vm3, %v633_v25, %v3966_v1  ;;  %v4097_v35 = vsel %vm568_vm3, %v691_v26, %v3966_v1  ;;  %s1748_s22 = sand.u32 85, %s1747_s18  ;;  %s1784_s24 = sor.u32 %s1783_s19, %s1782_s15  ;;  %v577_v36 = vmax.f32 %v569_v32, %v3966_v1  ;;  %v624_v37 = vmax.f32 %v616_v33, %v3966_v1  ;;  %v3769_v26 = vld [vmem:[%s4877_s0 + $0x18] sm:$0xff]   ;;  %2770 = vmatpush1.bf16.msra.mxu0 %v3770_v19  ;;  %v3771_v32 = vld [vmem:[%s4877_s0 + $0x50] sm:$0xff]  }
  0x21   : > { %v651_v38 = vsel %vm410_vm0, %v642_v34, %v3966_v1  ;;  %v709_v39 = vsel %vm410_vm0, %v4097_v35, %v642_v34  ;;  %s1749_s25 = sshrl.u32 %s1748_s22, 1  ;;  %s1785_s29 = sand.u32 85, %s1784_s24  ;;  %v402_v46 = vsel %vm331_vm1, %v394_v31, %v3966_v1  ;;  %v340_v52 = vmax.f32 %v332_v44, %v3966_v1  ;;  %3518 = vmatpush3.bf16.msra.mxu1 %v3767_v54  ;;  %v3773_v44 = vld [vmem:[%s4877_s0 + $0x130] sm:$0xff]  }
  0x22   : > { %v3695_v43 = vpack.i.bf16 %v709_v39, %v651_v38  ;;  %s1750_s12 = sor.u32 %s1749_s25, %s1748_s22  ;;  %s1786_s14 = sshrl.u32 %s1785_s29, 1  ;;  %v580_v50 = vpack.c.bf16 %v3931_v49, %v577_v36  ;;  %v627_v51 = vpack.c.bf16 %v3931_v49, %v624_v37  ;;  %v385_v53 = vmax.f32 %v377_v45, %v3966_v1  ;;  %3519 = vmatprep.subr.bf16.mxu1 %v3768_v59 }
  0x23   : > { %s1751_s18 = sand.u32 51, %s1750_s12  ;;  %s1787_s19 = sor.u32 %s1786_s14, %s1785_s29  ;;  %v4144_v55 = vsel %vm410_vm0, %v402_v46, %v3966_v1  ;;  %v450_v56 = vunpack.c.h.bf16 %v4078_v27  ;;  %v481_v57 = vunpack.c.l.bf16 %v4110_v40  ;;  %v723_v58 = vunpack.c.l.bf16 %v4113_v41  ;;  %2771 = vmatprep.subr.bf16.mxu0 %v3930_v28 }
  0x24   : > { %s3932_s24 = smov 104   ;;  %s1752_s29 = sshrl.u32 %s1751_s18, 2  ;;  %583 = vst [vmem:[#allocation13 + $0x18] sm:$0xf] %v580_v50  ;;  %630 = vst [vmem:[#allocation13 + $0x1c] sm:$0xf] %v627_v51  ;;  %v342_v60 = vpack.c.bf16 %v3931_v49, %v340_v52  ;;  %v388_v61 = vpack.c.bf16 %v3931_v49, %v385_v53  ;;  %v803_v62 = vunpack.c.l.bf16 %v4116_v42  ;;  %v809_v63 = vstv %s3402_s17  ;;  %2772 = vmatpush1.bf16.msra.mxu0 %v3773_v44 }
  0x25   : > { %3696 = vrot.lane.b32.xlu1 %v3695_v43, %s3932_s24  ;;  %s1788_s30 = sand.u32 51, %s1787_s19  ;;  %s1753_s7 = sor.u32 %s1752_s29, %s1751_s18  ;;  %v458_v0 = vsel %vm331_vm1, %v450_v56, %v3966_v1  ;;  %v489_v2 = vsel %vm331_vm1, %v481_v57, %v3966_v1  ;;  %v732_v3 = vsel %vm568_vm3, %v723_v58, %v3966_v1  ;;  %v4167_v4 = vadd.s32 %v809_v63, %v4010_v5  ;;  %v4234_v43 = vld [vmem:[%s4054_s9 + $0x24] sm:$0xff]   ;;  %v3772_v50 = vld [vmem:[%s4877_s0 + $0x10] sm:$0xff]  }
  0x26   : > { %s1789_s8 = sshrl.u32 %s1788_s30, 2  ;;  %s1754_s17 = sand.u32 15, %s1753_s7  ;;  %345 = vst [vmem:[#allocation13] sm:$0xf] %v342_v60  ;;  %391 = vst [vmem:[#allocation13 + $0x4] sm:$0xf] %v388_v61  ;;  %v4171_v7 = vsel %vm410_vm0, %v458_v0, %v402_v46  ;;  %v494_v10 = vsel %vm493_vm2, %v489_v2, %v3966_v1  ;;  %v737_v11 = vsel %vm493_vm2, %v732_v3, %v3966_v1  ;;  %v850_v12 = vunpack.c.h.bf16 %v4116_v42 }
  0x27   : > { %s1790_s11 = sor.u32 %s1789_s8, %s1788_s30  ;;  %v3273_v21 = vld [vmem:[%s4054_s9 + $0x3c] sm:%s1754_s17]  ;;  %v3690_v22 = vpack.i.bf16 %v4171_v7, %v4144_v55  ;;  %v498_v23 = vsel %vm410_vm0, %v494_v10, %v458_v0  ;;  %v513_v24 = vsel %vm410_vm0, %v3966_v1, %v494_v10  ;;  %v4200_v25 = vsel %vm410_vm0, %v737_v11, %v4097_v35  ;;  %s3414_s25 = sadd.s32 24, %s4004_s6  ;;  %3520 = vmatpush3.bf16.msra.mxu1 %v3769_v26  ;;  %v3776_v60 = vld [vmem:[%s4877_s0 + $0x128] sm:$0xff]  }
  0x28   : > { %s1791_s15 = sand.u32 15, %s1790_s11  ;;  %v1756_v27 = vunpack.c.l.bf16 %v3273_v21  ;;  %v3700_v30 = vpack.i.bf16 %v513_v24, %v498_v23  ;;  %v4209_v31 = vsel %vm410_vm0, %v3966_v1, %v737_v11  ;;  %vm811_vm7 = vcmp.lt.s32.totalorder %v4167_v4, 98  ;;  %p1937_p10 = scmp.lt.s32.totalorder %s4015_s10, 0  ;;  %3521 = vmatprep.subr.bf16.mxu1 %v3771_v32  ;;  %2773 = vmatprep.subr.bf16.mxu0 %v3930_v28  ;;  %v3777_v24 = vld [vmem:[%s4877_s0 + $0x40] sm:$0xff]   ;;  %v3784_v55 = vld [vmem:[%s4877_s0 + $0xf8] sm:$0xff]  }
  0x29   : > { %v3275_v29 = vld [vmem:[%s4054_s9 + $0x40] sm:%s1791_s15]  ;;  %v3705_v34 = vpack.i.bf16 %v4209_v31, %v4200_v25  ;;  %v812_v35 = vsel %vm811_vm7, %v803_v62, %v3966_v1  ;;  %v859_v36 = vsel %vm811_vm7, %v850_v12, %v3966_v1  ;;  %v876_v42 = vunpack.c.h.bf16 %v4113_v41  ;;  %s3426_s29 = sadd.s32 32, %s4004_s6  ;;  %v4249_v41 = vld [vmem:[%s4054_s9 + $0x2c] sm:$0xff]   ;;  %s1823_s22 = sor.u32 2, %s4015_s10  ;;  %2774 = vmatpush1.bf16.msra.mxu0 %v3776_v60 }
  0x2a   : > { %v1793_v33 = vunpack.c.l.bf16 %v3275_v29  ;;  %v1763_v37 = vsel %vm1762_vm4, %v3966_v1, %v1756_v27  ;;  %3701 = vrot.lane.b32.xlu1 %v3700_v30, %s3932_s24  ;;  %v820_v38 = vmax.f32 %v812_v35, %v3966_v1  ;;  %v867_v39 = vmax.f32 %v859_v36, %v3966_v1  ;;  %s1938_s8 = scalar_select %p1937_p10, 0, 255  ;;  %v3775_v12 = vld [vmem:[%s4877_s0 + $0x8] sm:$0xff]   ;;  %2775 = vmatprep.subr.bf16.mxu0 %v3930_v28  ;;  %v3782_v36 = vld [vmem:[%s4877_s0 + $0x120] sm:$0xff]  }
  0x2b   : > { %v1771_v14 = vsel %vm1770_vm5, %v1763_v37, %v3966_v1  ;;  %v934_v46 = vunpack.c.l.bf16 %v4181_v13  ;;  %v1046_v47 = vunpack.c.l.bf16 %v4184_v16  ;;  %v885_v54 = vsel %vm811_vm7, %v876_v42, %v3966_v1  ;;  %3522 = vmatpush3.bf16.msra.mxu1 %v3772_v50  ;;  %p4321_p11 = scmp.lt.s32.totalorder %s1823_s22, 0  ;;  %v3778_v44 = vld [vmem:[%s4877_s0] sm:$0xff]  }
  0x2c   : > { %v1800_v45 = vsel %vm1799_vm6, %v3966_v1, %v1793_v33  ;;  %v823_v52 = vpack.c.bf16 %v3931_v49, %v820_v38  ;;  %v870_v53 = vpack.c.bf16 %v3931_v49, %v867_v39  ;;  %v894_v58 = vsel %vm410_vm0, %v885_v54, %v3966_v1  ;;  %s1939_s15 = sshrl.u32 %s1938_s8, 1  ;;  %3523 = vmatprep.subr.bf16.mxu1 %v3774_v18 }
  0x2d   : > { %v1808_v51 = vsel %vm1770_vm5, %v1800_v45, %v3966_v1  ;;  %v4281_v59 = vsel %vm811_vm7, %v934_v46, %v3966_v1  ;;  %v1052_v63 = vstv %s3414_s25  ;;  %v1093_v0 = vunpack.c.h.bf16 %v4184_v16  ;;  %s1940_s19 = sor.u32 %s1939_s15, %s1938_s8  ;;  %s3438_s8 = sadd.s32 40, %s4004_s6  ;;  %v3781_v26 = vld [vmem:[#allocation13 + $0x4] ss:$24 sps:$4 sm:$0xff]   ;;  %2776 = vmatpush1.bf16.msra.mxu0 %v3782_v36 }
  0x2e   : > { %v1817_v56 = vsel %vm410_vm0, %v1808_v51, %v1771_v14  ;;  %v1885_v57 = vsel %vm410_vm0, %v3966_v1, %v1808_v51  ;;  %826 = vst [vmem:[#allocation13 + $0x30] sm:$0xf] %v823_v52  ;;  %873 = vst [vmem:[#allocation13 + $0x34] sm:$0xf] %v870_v53  ;;  %v952_v62 = vsel %vm410_vm0, %v4281_v59, %v885_v54  ;;  %v1119_v10 = vunpack.c.l.bf16 %v4234_v43  ;;  %s1941_s30 = sand.u32 85, %s1940_s19  ;;  %v3261_v52 = vld [vmem:[%s4059_s13 + $0x3c] sm:$0xff]  }
  0x2f   : > { %v3685_v61 = vpack.i.bf16 %v1885_v57, %v1817_v56  ;;  %v3710_v2 = vpack.i.bf16 %v952_v62, %v894_v58  ;;  %v4295_v3 = vadd.s32 %v1052_v63, %v4010_v5  ;;  %v1177_v11 = vunpack.c.h.bf16 %v4234_v43  ;;  %s1942_s17 = sshrl.u32 %s1941_s30, 1  ;;  %v4353_v43 = vld [vmem:[%s4054_s9 + $0x34] sm:$0xff]   ;;  %3524 = vmatpush3.bf16.msra.mxu1 %v3775_v12  ;;  %2673 = vmatprep.mubr.bf16.mxu1 %v3781_v26  ;;  %v3815_v53 = vld [vmem:[%s4877_s0 + $0x140] sm:$0xff]  }
  0x30   : > { %v966_v16 = vunpack.c.h.bf16 %v4181_v13  ;;  %v1209_v19 = vunpack.c.l.bf16 %v4249_v41  ;;  %v1289_v21 = vunpack.c.l.bf16 %v4252_v48  ;;  %v1295_v23 = vstv %s3426_s29  ;;  %s1943_s29 = sor.u32 %s1942_s17, %s1941_s30  ;;  %3525 = vmatprep.subr.bf16.mxu1 %v3777_v24  ;;  %v3779_v54 = vld [vmem:[#allocation13] ss:$24 sps:$4 sm:$0xff]   ;;  %2777 = vmatprep.subr.bf16.mxu0 %v3930_v28  ;;  %s1891_s17 = sor.u32 1, %s4015_s10 }
  0x31   : > { %3686 = vrot.lane.b32.xlu0 %v3685_v61, %s3932_s24  ;;  %3711 = vrot.lane.b32.xlu1 %v3710_v2, %s3932_s24  ;;  %vm1054_vm8 = vcmp.lt.s32.totalorder %v4295_v3, 98  ;;  %v4315_v13 = vadd.s32 %v1295_v23, %v4010_v5  ;;  %v1336_v27 = vunpack.c.h.bf16 %v4252_v48  ;;  %v1362_v29 = vunpack.c.h.bf16 %v4249_v41  ;;  %s1944_s15 = sand.u32 51, %s1943_s29  ;;  %v3783_v56 = vld [vmem:[%s4877_s0 + $0x118] sm:$0xff]   ;;  %v3790_v12 = vld [vmem:[%s4877_s0 + $0xf0] sm:$0xff]   ;;  %p4469_p12 = scmp.lt.s32.totalorder %s1891_s17, 0 }
  0x32   : > { %v1055_v30 = vsel %vm1054_vm8, %v1046_v47, %v3966_v1  ;;  %v1102_v32 = vsel %vm1054_vm8, %v1093_v0, %v3966_v1  ;;  %v1128_v33 = vsel %vm1054_vm8, %v1119_v10, %v3966_v1  ;;  %v1186_v35 = vsel %vm1054_vm8, %v1177_v11, %v3966_v1  ;;  %s1945_s19 = sshrl.u32 %s1944_s15, 2  ;;  %v3785_v61 = vld [vmem:[%s4877_s0 + $0xb8] sm:$0xff]   ;;  %2778 = vmatpush1.bf16.msra.mxu0 %v3783_v56 }
  0x33   : > { %v1063_v37 = vmax.f32 %v1055_v30, %v3966_v1  ;;  %v1110_v38 = vmax.f32 %v1102_v32, %v3966_v1  ;;  %v4346_v39 = vsel %vm410_vm0, %v1128_v33, %v3966_v1  ;;  %v4350_v42 = vsel %vm410_vm0, %v1186_v35, %v1128_v33  ;;  %s1946_s25 = sor.u32 %s1945_s19, %s1944_s15  ;;  %3526 = vmatpush3.bf16.msra.mxu1 %v3778_v44  ;;  %v3265_v10 = vld [vmem:[%s4054_s9 + $0x3c] sm:$0xff]   ;;  %v3788_v30 = vld [vmem:[%s4877_s0 + $0x110] sm:$0xff]  }
  0x34   : > { %v3715_v14 = vpack.i.bf16 %v4350_v42, %v4346_v39  ;;  %v975_v45 = vsel %vm811_vm7, %v966_v16, %v3966_v1  ;;  %v1218_v46 = vsel %vm1054_vm8, %v1209_v19, %v3966_v1  ;;  %vm1297_vm9 = vcmp.lt.s32.totalorder %v4315_v13, 98  ;;  %s4382_s12 = sand.u32 15, %s1946_s25  ;;  %3551 = vmatprep.subr.bf16.mxu1 %v3784_v55  ;;  %2779 = vmatprep.subr.bf16.mxu0 %v3930_v28  ;;  %v3791_v39 = vld [vmem:[%s4877_s0 + $0xb0] sm:$0xff]  }
  0x35   : > { %3691 = vrot.lane.b32.xlu0 %v3690_v22, %s3932_s24  ;;  %v1066_v7 = vpack.c.bf16 %v3931_v49, %v1063_v37  ;;  %v1113_v22 = vpack.c.bf16 %v3931_v49, %v1110_v38  ;;  %v980_v47 = vsel %vm493_vm2, %v975_v45, %v3966_v1  ;;  %v1223_v41 = vsel %vm493_vm2, %v1218_v46, %v3966_v1  ;;  %s1825_s16 = scalar_select %p4321_p11, 0, 255  ;;  %v4421_v60 = vld [vmem:[%s4054_s9 + $0x48] sm:%s4382_s12] }
  0x36   : > { %v984_v48 = vsel %vm410_vm0, %v980_v47, %v4281_v59  ;;  %v999_v50 = vsel %vm410_vm0, %v3966_v1, %v980_v47  ;;  %v4392_v18 = vsel %vm410_vm0, %v1223_v41, %v1186_v35  ;;  %v4397_v51 = vsel %vm410_vm0, %v3966_v1, %v1223_v41  ;;  %2674 = vmatmul.mubr.bf16.vlgmr.msra.gmra.mxu1 %v3779_v54  ;;  %v3285_v38 = vld [vmem:[%s4054_s9 + $0x4c] sm:%s4382_s12] }
  0x37   : > { %1069 = vst [vmem:[#allocation13 + $0x48] sm:$0xf] %v1066_v7  ;;  %1116 = vst [vmem:[#allocation13 + $0x4c] sm:$0xf] %v1113_v22  ;;  %v3720_v57 = vpack.i.bf16 %v999_v50, %v984_v48  ;;  %v3725_v58 = vpack.i.bf16 %v4397_v51, %v4392_v18  ;;  %v1298_v15 = vsel %vm1297_vm9, %v1289_v21, %v3966_v1  ;;  %v1420_v2 = vunpack.c.l.bf16 %v4353_v43  ;;  %s1826_s19 = sshrl.u32 %s1825_s16, 1  ;;  %v3287_v45 = vld [vmem:[%s4054_s9 + $0x50] sm:%s4382_s12] }
  0x38   : > { %v1345_v59 = vsel %vm1297_vm9, %v1336_v27, %v3966_v1  ;;  %v1306_v62 = vmax.f32 %v1298_v15, %v3966_v1  ;;  %v1371_v0 = vsel %vm1297_vm9, %v1362_v29, %v3966_v1  ;;  %v1532_v31 = vunpack.c.l.bf16 %v3261_v52  ;;  %s1827_s25 = sor.u32 %s1826_s19, %s1825_s16  ;;  %3552 = vmatpush3.bf16.msra.mxu1 %v3785_v61  ;;  %2780 = vmatpush1.bf16.msra.mxu0 %v3788_v30  ;;  %v3792_v48 = vld [vmem:[%s4877_s0 + $0x108] sm:$0xff]  }
  0x39   : > { %3706 = vrot.lane.b32.xlu0 %v3705_v34, %s3932_s24  ;;  %v1353_v63 = vmax.f32 %v1345_v59, %v3966_v1  ;;  %3721 = vrot.lane.b32.xlu1 %v3720_v57, %s3932_s24  ;;  %v1380_v25 = vsel %vm410_vm0, %v1371_v0, %v3966_v1  ;;  %v1538_v34 = vstv %s3438_s8  ;;  %v1579_v11 = vunpack.c.h.bf16 %v3261_v52  ;;  %s1828_s6 = sand.u32 85, %s1827_s25  ;;  %v3793_v57 = vld [vmem:[%s4877_s0 + $0xe8] sm:$0xff]  }
  0x3a   : > { %v1309_v16 = vpack.c.bf16 %v3931_v49, %v1306_v62  ;;  %v1429_v21 = vsel %vm1297_vm9, %v1420_v2, %v3966_v1  ;;  %v4454_v23 = vadd.s32 %v1538_v34, %v4010_v5  ;;  %v1605_v26 = vunpack.c.l.bf16 %v3265_v10  ;;  %s1829_s29 = sshrl.u32 %s1828_s6, 1  ;;  %3553 = vmatprep.subr.bf16.mxu1 %v3790_v12  ;;  %2781 = vmatprep.subr.bf16.mxu0 %v3930_v28  ;;  %v3219_v34 = vld [vmem:[%s4059_s13 + $0x8] ss:$12 sps:$4 sm:$0xff]  }
  0x3b   : > { %v1356_v19 = vpack.c.bf16 %v3931_v49, %v1353_v63  ;;  %v1438_v24 = vsel %vm410_vm0, %v1429_v21, %v1371_v0  ;;  %v1663_v27 = vunpack.c.h.bf16 %v3265_v10  ;;  %v1452_v29 = vunpack.c.h.bf16 %v4353_v43  ;;  %s1830_s15 = sor.u32 %s1829_s29, %s1828_s6  ;;  %v3797_v0 = vld [vmem:[%s4877_s0 + $0x100] sm:$0xff]  }
  0x3c   : > { %1312 = vst [vmem:[#allocation13 + $0x60] sm:$0xf] %v1309_v16  ;;  %v3730_v5 = vpack.i.bf16 %v1438_v24, %v1380_v25  ;;  %vm1540_vm11 = vcmp.lt.s32.totalorder %v4454_v23, 98  ;;  %v1695_v32 = vunpack.c.h.bf16 %v4110_v40  ;;  %v1949_v33 = vunpack.c.l.bf16 %v4421_v60  ;;  %s1831_s19 = sand.u32 51, %s1830_s15  ;;  %v3794_v60 = vld [vmem:[%s4877_s0 + $0xa8] sm:$0xff]   ;;  %3554 = vmatpush3.bf16.msra.mxu1 %v3791_v39  ;;  %2782 = vmatpush1.bf16.msra.mxu0 %v3792_v48  ;;  %v3802_v39 = vld [vmem:[%s4877_s0 + $0xd8] sm:$0xff]  }
  0x3d   : > { %3716 = vrot.lane.b32.xlu0 %v3715_v14, %s3932_s24  ;;  %1359 = vst [vmem:[#allocation13 + $0x64] sm:$0xf] %v1356_v19  ;;  %v1541_v35 = vsel %vm1540_vm11, %v1532_v31, %v3966_v1  ;;  %v1588_v40 = vsel %vm1540_vm11, %v1579_v11, %v3966_v1  ;;  %v1614_v36 = vsel %vm1540_vm11, %v1605_v26, %v3966_v1  ;;  %s1832_s30 = sshrl.u32 %s1831_s19, 2  ;;  %v2034_v63 = vunpack.c.l.bf16 %v3285_v38  ;;  %v3799_v19 = vld [vmem:[%s4877_s0 + $0xe0] sm:$0xff]   ;;  %v3805_v48 = vld [vmem:[%s4877_s0 + $0xd0] sm:$0xff]   ;;  %s3472_s15 = smul.u32 (%p3993_p4), 28, %s3981_s3 }
  0x3e   : > { %v1672_v37 = vsel %vm1540_vm11, %v1663_v27, %v3966_v1  ;;  %3731 = vrot.lane.b32.xlu1 %v3730_v5, %s3932_s24  ;;  %v1549_v42 = vmax.f32 %v1541_v35, %v3966_v1  ;;  %v1596_v43 = vmax.f32 %v1588_v40, %v3966_v1  ;;  %v1623_v44 = vsel %vm410_vm0, %v1614_v36, %v3966_v1  ;;  %v3786_v46 = vld [vmem:[#allocation13 + $0x34] ss:$24 sps:$4 sm:$0xff]   ;;  %v3789_v55 = vld [vmem:[#allocation13 + $0x30] ss:$24 sps:$4 sm:$0xff]   ;;  %s1833_s25 = sor.u32 %s1832_s30, %s1831_s19 }
  0x3f   : > { %v1681_v14 = vsel %vm410_vm0, %v1672_v37, %v1614_v36  ;;  %v1461_v22 = vsel %vm1297_vm9, %v1452_v29, %v3966_v1  ;;  %v1704_v47 = vsel %vm1540_vm11, %v1695_v32, %v3966_v1  ;;  %v1955_v41 = vsel %vm4402_vm10, %v3966_v1, %v1949_v33  ;;  %s1834_s6 = sand.u32 15, %s1833_s25  ;;  %2681 = vmatprep.mubr.bf16.mxu1 %v3786_v46  ;;  %v3800_v27 = vld [vmem:[%s4877_s0 + $0xa0] sm:$0xff]   ;;  %s4828_s16 = scalar_lea.vmem (%p3993_p4), %s4882_s5, %s3472_s15  }
  0x40   : > { %v3735_v7 = vpack.i.bf16 %v1681_v14, %v1623_v44  ;;  %v1552_v50 = vpack.c.bf16 %v3931_v49, %v1549_v42  ;;  %v1599_v52 = vpack.c.bf16 %v3931_v49, %v1596_v43  ;;  %v1466_v54 = vsel %vm493_vm2, %v1461_v22, %v3966_v1  ;;  %v3277_v59 = vld [vmem:[%s4059_s13 + $0x48] sm:%s1834_s6]  ;;  %s1893_s29 = scalar_select %p4469_p12, 0, 255  ;;  %2682 = vmatmul.mubr.bf16.gmra.mxu1 %v3789_v55  ;;  %v3801_v36 = vld [vmem:[%s4877_s0 + $0x160] sm:$0xff]  }
  0x41   : > { %3726 = vrot.lane.b32.xlu0 %v3725_v58, %s3932_s24  ;;  %v1709_v56 = vsel %vm493_vm2, %v1704_v47, %v3966_v1  ;;  %v1470_v18 = vsel %vm410_vm0, %v1466_v54, %v1429_v21  ;;  %v1485_v51 = vsel %vm410_vm0, %v3966_v1, %v1466_v54  ;;  %v1963_v62 = vsel %vm1770_vm5, %v1955_v41, %v3966_v1  ;;  %v3803_v47 = vld [vmem:[%s4877_s0 + $0x98] sm:$0xff]   ;;  %v3806_v54 = vld [vmem:[%s4877_s0 + $0x90] sm:$0xff]   ;;  %v3813_v23 = vld [vmem:[%s4877_s0 + $0xc0] sm:$0xff]   ;;  %s248_s6 = sand.u32 1, %s3888_s20  }
  0x42   : > { %v1713_v58 = vsel %vm410_vm0, %v1709_v56, %v1672_v37  ;;  %v1728_v15 = vsel %vm410_vm0, %v3966_v1, %v1709_v56  ;;  %1555 = vst [vmem:[#allocation13 + $0x78] sm:$0xf] %v1552_v50  ;;  %1602 = vst [vmem:[#allocation13 + $0x7c] sm:$0xf] %v1599_v52  ;;  %v3740_v61 = vpack.i.bf16 %v1485_v51, %v1470_v18  ;;  %v2084_v10 = vunpack.c.l.bf16 %v3287_v45  ;;  %s1894_s19 = sshrl.u32 %s1893_s29, 1  ;;  %v3804_v52 = vld [vmem:[%s4877_s0 + $0x158] sm:$0xff]  }
  0x43   : > { %v3745_v2 = vpack.i.bf16 %v1728_v15, %v1713_v58  ;;  %v1836_v25 = vunpack.c.l.bf16 %v3277_v59  ;;  %v1841_v31 = vstv %s1823_s22  ;;  %v1972_v11 = vsel %vm410_vm0, %v1963_v62, %v3966_v1  ;;  %s1895_s30 = sor.u32 %s1894_s19, %s1893_s29  ;;  %3555 = vmatprep.subr.bf16.mxu1 %v3793_v57  ;;  %2783 = vmatprep.subr.bf16.mxu0 %v3930_v28  ;;  %v3231_v37 = vld [vmem:[%s4059_s13 + $0x20] ss:$12 sps:$4 sm:$0xff]   ;;  %v3255_v57 = vld [vmem:[%s4059_s13 + $0x38] ss:$12 sps:$4 sm:$0xff]   ;;  %v3807_v59 = vld [vmem:[%s4877_s0 + $0x150] sm:$0xff]   ;;  %s2904_s29 = ssub.s32 (%p3993_p4), 13, %s3998_s28 }
  0x44   : > { %3741 = vrot.lane.b32.xlu1 %v3740_v61, %s3932_s24  ;;  %v2040_v12 = vsel %vm4402_vm10, %v3966_v1, %v2034_v63  ;;  %vm1842_vm12 = vcmp.lt.s32.totalorder %v1841_v31, 0  ;;  %v4562_v16 = vadd.s32 256, %v4012_v6  ;;  %v2090_v24 = vsel %vm4402_vm10, %v3966_v1, %v2084_v10  ;;  %s1896_s9 = sand.u32 85, %s1895_s30  ;;  %3556 = vmatpush3.bf16.msra.mxu1 %v3794_v60  ;;  %v3809_v51 = vld [vmem:[%s4877_s0 + $0xc8] sm:$0xff]   ;;  %p2905_p13 = scmp.lt.s32.totalorder (%p3993_p4), %s2904_s29, 7 }
  0x45   : > { %3736 = vrot.lane.b32.xlu0 %v3735_v7, %s3932_s24  ;;  %v2048_v21 = vsel %vm1770_vm5, %v2040_v12, %v3966_v1  ;;  %v1843_v26 = vsel %vm1842_vm12, %v3966_v1, %v1836_v25  ;;  %v2098_v30 = vsel %vm1770_vm5, %v2090_v24, %v3966_v1  ;;  %s1897_s8 = sshrl.u32 %s1896_s9, 1  ;;  %2784 = vmatpush1.bf16.msra.mxu0 %v3797_v0  ;;  %v665_v35 = vunpack.c.h.bf16 %v3219_v34  ;;  %v3811_v63 = vld [vmem:[%s4877_s0 + $0x88] sm:$0xff]  }
  0x46   : > { %v2057_v29 = vsel %vm410_vm0, %v2048_v21, %v1963_v62  ;;  %v4586_v5 = vsel %vm1770_vm5, %v1843_v26, %v3966_v1  ;;  %vm437_vm13 = vcmp.lt.s32.totalorder %v4562_v16, 360  ;;  %v2103_v33 = vsel %vm493_vm2, %v2098_v30, %v3966_v1  ;;  %s1898_s11 = sor.u32 %s1897_s8, %s1896_s9  ;;  %3557 = vmatprep.subr.bf16.mxu1 %v3799_v19  ;;  %2791 = vmatprep.subr.bf16.mxu0 %v3930_v28  ;;  %v3283_v62 = vld [vmem:[%s4059_s13 + $0x50] sm:%s4382_s12]  ;;  %v3812_v10 = vld [vmem:[%s4877_s0 + $0x148] sm:$0xff]  }
  0x47   : > { %v3750_v32 = vpack.i.bf16 %v2057_v29, %v1972_v11  ;;  %v425_v40 = vunpack.c.l.bf16 %v3219_v34  ;;  %v2107_v38 = vsel %vm410_vm0, %v2103_v33, %v2048_v21  ;;  %v2122_v9 = vsel %vm410_vm0, %v3966_v1, %v2103_v33  ;;  %s1899_s14 = sand.u32 51, %s1898_s11  ;;  %v3814_v34 = vld [vmem:[%s4877_s0 + $0x80] sm:$0xff]   ;;  %s3591_s11 = smul.u32 28, %s248_s6 }
  0x48   : > { %v908_v42 = vunpack.c.l.bf16 %v3231_v37  ;;  %v1151_v43 = vunpack.c.h.bf16 %v3231_v37  ;;  %v3755_v44 = vpack.i.bf16 %v2122_v9, %v2107_v38  ;;  %s1900_s19 = sshrl.u32 %s1899_s14, 2  ;;  %v1909_v14 = vstv %s1891_s17  ;;  %3558 = vmatpush3.bf16.msra.mxu1 %v3800_v27 }
  0x49   : > { %3746 = vrot.lane.b32.xlu0 %v3745_v2, %s3932_s24  ;;  %3751 = vrot.lane.b32.xlu1 %v3750_v32, %s3932_s24  ;;  %v3795_v45 = vld [vmem:[#allocation13 + $0x64] ss:$24 sps:$4 sm:$0xff]   ;;  %v3798_v46 = vld [vmem:[#allocation13 + $0x60] ss:$24 sps:$4 sm:$0xff]   ;;  %v674_v6 = vsel %vm568_vm3, %v665_v35, %v3966_v1  ;;  %v433_v55 = vsel %vm331_vm1, %v425_v40, %v3966_v1  ;;  %s1901_s30 = sor.u32 %s1900_s19, %s1899_s14  ;;  %vm1910_vm14 = vcmp.lt.s32.totalorder %v1909_v14, 0  ;;  %v1394_v58 = vunpack.c.l.bf16 %v3255_v57  ;;  %s4795_s20 = scalar_lea.vmem [#allocation12], %s3591_s11  }
  0x4a   : > { %v679_v7 = vsel %vm437_vm13, %v674_v6, %v3966_v1  ;;  %v4621_v22 = vsel %vm437_vm13, %v433_v55, %v3966_v1  ;;  %v917_v20 = vsel %vm811_vm7, %v908_v42, %v3966_v1  ;;  %v1160_v8 = vsel %vm1054_vm8, %v1151_v43, %v3966_v1  ;;  %s1902_s10 = sand.u32 15, %s1901_s30  ;;  %2689 = vmatprep.mubr.bf16.mxu1 %v3795_v45 }
  0x4b   : > { %v4635_v41 = vsel %vm437_vm13, %v917_v20, %v3966_v1  ;;  %v4640_v4 = vsel %vm437_vm13, %v1160_v8, %v3966_v1  ;;  %v3279_v3 = vld [vmem:[%s4059_s13 + $0x4c] sm:%s1902_s10]  ;;  %2690 = vmatmul.mubr.bf16.gmra.mxu1 %v3798_v46  ;;  %2792 = vmatpush2.bf16.msra.mxu0 %v3801_v36  ;;  %v1637_v15 = vunpack.c.h.bf16 %v3255_v57  ;;  %v1403_v60 = vsel %vm1297_vm9, %v1394_v58, %v3966_v1 }
  0x4c   : > { %v1904_v50 = vunpack.c.l.bf16 %v3279_v3  ;;  %3559 = vmatprep.subr.bf16.mxu1 %v3802_v39  ;;  %2793 = vmatprep.subr.bf16.mxu0 %v3930_v28  ;;  %v4680_v0 = vsel %vm437_vm13, %v1403_v60, %v3966_v1  ;;  %v1990_v2 = vunpack.c.l.bf16 %v3283_v62  ;;  %vm2888_vm1 = vcmask 977920  }
  0x4d   : > { %3756 = vrot.lane.b32.xlu0 %v3755_v44, %s3932_s24  ;;  %3560 = vmatpush3.bf16.msra.mxu1 %v3803_v47  ;;  %v1646_v61 = vsel %vm1540_vm11, %v1637_v15, %v3966_v1 }
  0x4e   : > { %v1911_v56 = vsel %vm1910_vm14, %v3966_v1, %v1904_v50  ;;  %3561 = vmatprep.subr.bf16.mxu1 %v3805_v48  ;;  %v4685_v13 = vsel %vm437_vm13, %v1646_v61, %v3966_v1  ;;  %v1996_v25 = vsel %vm4402_vm10, %v3966_v1, %v1990_v2 }
  0x4f   : > { %v1919_v18 = vsel %vm1770_vm5, %v1911_v56, %v3966_v1  ;;  %2794 = vmatpush2.bf16.msra.mxu0 %v3804_v52  ;;  %v2004_v31 = vsel %vm1770_vm5, %v1996_v25, %v3966_v1 }
  0x50   : > { %2795 = vmatprep.subr.bf16.mxu0 %v3930_v28  ;;  %v4706_v11 = vsel %vm437_vm13, %v2004_v31, %v3966_v1 }
  0x51   : > { %3562 = vmatpush3.bf16.msra.mxu1 %v3806_v54 }
  0x52   : > { %3563 = vmatprep.subr.bf16.mxu1 %v3809_v51 }
  0x53   : > { %2796 = vmatpush2.bf16.msra.mxu0 %v3807_v59 }
  0x54   : > { %2797 = vmatprep.subr.bf16.mxu0 %v3930_v28 }
  0x55   : > { %3564 = vmatpush3.bf16.msra.mxu1 %v3811_v63 }
  0x56   : > { %3565 = vmatprep.subr.bf16.mxu1 %v3813_v23 }
  0x57   : > { %2798 = vmatpush2.bf16.msra.mxu0 %v3812_v10 }
  0x58   : > { %2799 = vmatprep.subr.bf16.mxu0 %v3930_v28 }
  0x59   : > { %3566 = vmatpush3.bf16.msra.mxu1 %v3814_v34 }
  0x5b   : > { %2800 = vmatpush2.bf16.msra.mxu0 %v3815_v53 }
  0x97   : > { %v3697_v17 = vpop.permute.xlu1 %3696 }
  0x98   : > { %v3699_v12 = vunpack.i.h.bf16 %v3697_v17  ;;  %v3698_v19 = vunpack.i.l.bf16 %v3697_v17 }
  0x9a   : > { %v714_v21 = vmax.f32 %v3966_v1, %v3699_v12  ;;  %v682_v24 = vmax.f32 %v679_v7, %v3698_v19 }
  0x9c   : > { %v717_v16 = vpack.c.bf16 %v3931_v49, %v714_v21  ;;  %v685_v26 = vpack.c.bf16 %v3931_v49, %v682_v24  ;;  %v3702_v27 = vpop.permute.xlu1 %3701 }
  0x9d   : > { %v3704_v29 = vunpack.i.h.bf16 %v3702_v27  ;;  %v3703_v30 = vunpack.i.l.bf16 %v3702_v27 }
  0x9e   : > { %720 = vst [vmem:[#allocation13 + $0x24] sm:$0xf] %v717_v16  ;;  %688 = vst [vmem:[#allocation13 + $0x20] sm:$0xf] %v685_v26 }
  0x9f   : > { %v518_v32 = vmax.f32 %v3966_v1, %v3704_v29  ;;  %v503_v28 = vmax.f32 %v3966_v1, %v3703_v30 }
  0xa1   : > { %v521_v33 = vpack.c.bf16 %v3931_v49, %v518_v32  ;;  %v506_v35 = vpack.c.bf16 %v3931_v49, %v503_v28 }
  0xa3   : > { %v3687_v40 = vpop.permute.xlu0 %3686  ;;  %524 = vst [vmem:[#allocation13 + $0x14] sm:$0xf] %v521_v33  ;;  %509 = vst [vmem:[#allocation13 + $0x10] sm:$0xf] %v506_v35  ;;  %v3712_v38 = vpop.permute.xlu1 %3711 }
  0xa4   : > { %v3689_v36 = vunpack.i.h.bf16 %v3687_v40  ;;  %v3688_v37 = vunpack.i.l.bf16 %v3687_v40  ;;  %v3714_v9 = vunpack.i.h.bf16 %v3712_v38  ;;  %v3713_v39 = vunpack.i.l.bf16 %v3712_v38 }
  0xa6   : > { %v1927_v42 = vmax.f32 %v1919_v18, %v3689_v36  ;;  %v1859_v43 = vmax.f32 %v4586_v5, %v3688_v37  ;;  %v957_v14 = vmax.f32 %v3966_v1, %v3714_v9  ;;  %v925_v45 = vmax.f32 %v4635_v41, %v3713_v39 }
  0xa7   : > { %v3692_v44 = vpop.permute.xlu0 %3691 }
  0xa8   : > { %v1930_v46 = vpack.c.bf16 %v3931_v49, %v1927_v42  ;;  %v1862_v6 = vpack.c.bf16 %v3931_v49, %v1859_v43  ;;  %v3694_v55 = vunpack.i.h.bf16 %v3692_v44  ;;  %v3693_v7 = vunpack.i.l.bf16 %v3692_v44 }
  0xa9   : > { %v960_v20 = vpack.c.bf16 %v3931_v49, %v957_v14  ;;  %v928_v8 = vpack.c.bf16 %v3931_v49, %v925_v45 }
  0xaa   : > { %1933 = vst [vmem:[#allocation13 + $0x94] sm:$0xf] %v1930_v46  ;;  %1865 = vst [vmem:[#allocation13 + $0x90] sm:$0xf] %v1862_v6  ;;  %v472_v47 = vmax.f32 %v3966_v1, %v3694_v55  ;;  %v441_v5 = vmax.f32 %v4621_v22, %v3693_v7 }
  0xab   : > { %v3707_v3 = vpop.permute.xlu0 %3706  ;;  %963 = vst [vmem:[#allocation13 + $0x3c] sm:$0xf] %v960_v20  ;;  %931 = vst [vmem:[#allocation13 + $0x38] sm:$0xf] %v928_v8  ;;  %v3722_v54 = vpop.permute.xlu1 %3721 }
  0xac   : > { %v475_v41 = vpack.c.bf16 %v3931_v49, %v472_v47  ;;  %v444_v48 = vpack.c.bf16 %v3931_v49, %v441_v5  ;;  %v3709_v50 = vunpack.i.h.bf16 %v3707_v3  ;;  %v3708_v52 = vunpack.i.l.bf16 %v3707_v3 }
  0xad   : > { %v3724_v56 = vunpack.i.h.bf16 %v3722_v54  ;;  %v3723_v57 = vunpack.i.l.bf16 %v3722_v54 }
  0xae   : > { %478 = vst [vmem:[#allocation13 + $0xc] sm:$0xf] %v475_v41  ;;  %447 = vst [vmem:[#allocation13 + $0x8] sm:$0xf] %v444_v48  ;;  %v761_v18 = vmax.f32 %v3966_v1, %v3709_v50  ;;  %v746_v51 = vmax.f32 %v3966_v1, %v3708_v52 }
  0xaf   : > { %v3717_v58 = vpop.permute.xlu0 %3716  ;;  %v1004_v22 = vmax.f32 %v3966_v1, %v3724_v56  ;;  %v989_v15 = vmax.f32 %v3966_v1, %v3723_v57 }
  0xb0   : > { %v764_v59 = vpack.c.bf16 %v3931_v49, %v761_v18  ;;  %v749_v60 = vpack.c.bf16 %v3931_v49, %v746_v51  ;;  %v3719_v61 = vunpack.i.h.bf16 %v3717_v58  ;;  %v3718_v62 = vunpack.i.l.bf16 %v3717_v58  ;;  %v3732_v10 = vpop.permute.xlu1 %3731 }
  0xb1   : > { %v1007_v63 = vpack.c.bf16 %v3931_v49, %v1004_v22  ;;  %v992_v2 = vpack.c.bf16 %v3931_v49, %v989_v15  ;;  %v2153_v23 = vld [vmem:[#allocation13 + $0x90] sm:$0xff]  ;;  %v3734_v12 = vunpack.i.h.bf16 %v3732_v10  ;;  %v3733_v19 = vunpack.i.l.bf16 %v3732_v10 }
  0xb2   : > { %767 = vst [vmem:[#allocation13 + $0x2c] sm:$0xf] %v764_v59  ;;  %752 = vst [vmem:[#allocation13 + $0x28] sm:$0xf] %v749_v60  ;;  %v1200_v25 = vmax.f32 %v3966_v1, %v3719_v61  ;;  %v1168_v31 = vmax.f32 %v4640_v4, %v3718_v62  ;;  %v3309_v34 = vcombine.high %v2153_v23, %v2153_v23 }
  0xb3   : > { %v3308_v53 = vcombine.low %v2153_v23, %v2153_v23  ;;  %1010 = vst [vmem:[#allocation13 + $0x44] sm:$0xf] %v1007_v63  ;;  %995 = vst [vmem:[#allocation13 + $0x40] sm:$0xf] %v992_v2  ;;  %v3727_v17 = vpop.permute.xlu0 %3726  ;;  %v1443_v27 = vmax.f32 %v3966_v1, %v3734_v12  ;;  %v1411_v29 = vmax.f32 %v4680_v0, %v3733_v19 }
  0xb4   : > { %v1203_v21 = vpack.c.bf16 %v3931_v49, %v1200_v25  ;;  %v1171_v24 = vpack.c.bf16 %v3931_v49, %v1168_v31  ;;  %v3729_v16 = vunpack.i.h.bf16 %v3727_v17  ;;  %v3728_v26 = vunpack.i.l.bf16 %v3727_v17  ;;  %2697 = vmatprep.mubr.bf16.mxu1 %v3309_v34 }
  0xb5   : > { %2698 = vmatmul.mubr.bf16.gmra.mxu1 %v3308_v53  ;;  %v3818_v4 = vld [vmem:[#allocation13 + $0xc] ss:$24 sps:$4 sm:$0xff]   ;;  %v1446_v28 = vpack.c.bf16 %v3931_v49, %v1443_v27  ;;  %v1414_v33 = vpack.c.bf16 %v3931_v49, %v1411_v29  ;;  %v3816_v55 = vld [vmem:[#allocation13 + $0x8] ss:$24 sps:$4 sm:$0xff]  }
  0xb6   : > { %1206 = vst [vmem:[#allocation13 + $0x54] sm:$0xf] %v1203_v21  ;;  %1174 = vst [vmem:[#allocation13 + $0x50] sm:$0xf] %v1171_v24  ;;  %v1247_v30 = vmax.f32 %v3966_v1, %v3729_v16  ;;  %v1232_v32 = vmax.f32 %v3966_v1, %v3728_v26  ;;  %v3742_v40 = vpop.permute.xlu1 %3741  ;;  %2737 = vmatprep.mubr.bf16.mxu1 %v3818_v4 }
  0xb7   : > { %v3737_v35 = vpop.permute.xlu0 %3736  ;;  %1449 = vst [vmem:[#allocation13 + $0x6c] sm:$0xf] %v1446_v28  ;;  %1417 = vst [vmem:[#allocation13 + $0x68] sm:$0xf] %v1414_v33  ;;  %v3744_v9 = vunpack.i.h.bf16 %v3742_v40  ;;  %v3743_v39 = vunpack.i.l.bf16 %v3742_v40 }
  0xb8   : > { %v1250_v36 = vpack.c.bf16 %v3931_v49, %v1247_v30  ;;  %v1235_v37 = vpack.c.bf16 %v3931_v49, %v1232_v32  ;;  %v3739_v0 = vunpack.i.h.bf16 %v3737_v35  ;;  %v3738_v38 = vunpack.i.l.bf16 %v3737_v35 }
  0xb9   : > { %v3819_v42 = vld [vmem:[#allocation13 + $0x10] ss:$24 sps:$4 sm:$0xff]   ;;  %v3821_v43 = vld [vmem:[#allocation13 + $0x14] ss:$24 sps:$4 sm:$0xff]   ;;  %v1490_v45 = vmax.f32 %v3966_v1, %v3744_v9  ;;  %v1475_v46 = vmax.f32 %v3966_v1, %v3743_v39 }
  0xba   : > { %1253 = vst [vmem:[#allocation13 + $0x5c] sm:$0xf] %v1250_v36  ;;  %1238 = vst [vmem:[#allocation13 + $0x58] sm:$0xf] %v1235_v37  ;;  %v1686_v44 = vmax.f32 %v3966_v1, %v3739_v0  ;;  %v1654_v14 = vmax.f32 %v4685_v13, %v3738_v38  ;;  %3359 = vmatprep.mubr.msk.bf16.mxu0 %vm2628_vm15, %v3821_v43  ;;  %v4781_v43 = vld [vmem:[%s4878_s1] ss:$0 sm:$0xff] }
  0xbb   : > { %v3747_v6 = vpop.permute.xlu0 %3746  ;;  %2802 = vmatmul.mubr.bf16.vlgmr.msra.gmra.mxu0 %v3819_v42  ;;  %v3752_v5 = vpop.permute.xlu1 %3751  ;;  %v1493_v3 = vpack.c.bf16 %v3931_v49, %v1490_v45  ;;  %v1478_v13 = vpack.c.bf16 %v3931_v49, %v1475_v46 }
  0xbc   : > { %v1689_v7 = vpack.c.bf16 %v3931_v49, %v1686_v44  ;;  %v1657_v20 = vpack.c.bf16 %v3931_v49, %v1654_v14  ;;  %v3749_v8 = vunpack.i.h.bf16 %v3747_v6  ;;  %v3748_v47 = vunpack.i.l.bf16 %v3747_v6 }
  0xbd   : > { %2738 = vmatmul.mubr.bf16.vlgmr.msra.gmra.mxu1 %v3816_v55  ;;  %v3754_v41 = vunpack.i.h.bf16 %v3752_v5  ;;  %v3753_v48 = vunpack.i.l.bf16 %v3752_v5  ;;  %v3822_v50 = vld [vmem:[#allocation13 + $0x3c] ss:$24 sps:$4 sm:$0xff]   ;;  %1496 = vst [vmem:[#allocation13 + $0x74] sm:$0xf] %v1493_v3  ;;  %1481 = vst [vmem:[#allocation13 + $0x70] sm:$0xf] %v1478_v13 }
  0xbe   : > { %1692 = vst [vmem:[#allocation13 + $0x84] sm:$0xf] %v1689_v7  ;;  %1660 = vst [vmem:[#allocation13 + $0x80] sm:$0xf] %v1657_v20  ;;  %v1733_v52 = vmax.f32 %v3966_v1, %v3749_v8  ;;  %v1718_v54 = vmax.f32 %v3966_v1, %v3748_v47  ;;  %2745 = vmatprep.mubr.bf16.mxu1 %v3822_v50  ;;  %v3826_v2 = vld [vmem:[#allocation13 + $0x38] ss:$24 sps:$4 sm:$0xff]  }
  0xbf   : > { %v2062_v56 = vmax.f32 %v3966_v1, %v3754_v41  ;;  %v2012_v57 = vmax.f32 %v4706_v11, %v3753_v48  ;;  %v3757_v18 = vpop.permute.xlu0 %3756  ;;  %v4788_v3 = vld [vmem:[%s4878_s1 + $0x1] ss:$0 sm:$0xff] }
  0xc0   : > { %v1736_v51 = vpack.c.bf16 %v3931_v49, %v1733_v52  ;;  %v1721_v58 = vpack.c.bf16 %v3931_v49, %v1718_v54  ;;  %v3759_v22 = vunpack.i.h.bf16 %v3757_v18  ;;  %v3758_v15 = vunpack.i.l.bf16 %v3757_v18 }
  0xc1   : > { %v2065_v59 = vpack.c.bf16 %v3931_v49, %v2062_v56  ;;  %v2015_v60 = vpack.c.bf16 %v3931_v49, %v2012_v57  ;;  %v3824_v61 = vld [vmem:[#allocation13 + $0x44] ss:$24 sps:$4 sm:$0xff]   ;;  %v3827_v62 = vld [vmem:[#allocation13 + $0x40] ss:$24 sps:$4 sm:$0xff]  }
  0xc2   : > { %1739 = vst [vmem:[#allocation13 + $0x8c] sm:$0xf] %v1736_v51  ;;  %1724 = vst [vmem:[#allocation13 + $0x88] sm:$0xf] %v1721_v58  ;;  %v2127_v63 = vmax.f32 %v3966_v1, %v3759_v22  ;;  %v2112_v11 = vmax.f32 %v3966_v1, %v3758_v15  ;;  %3360 = vmatprep.mubr.msk.bf16.mxu0 %vm2628_vm15, %v3824_v61 }
  0xc3   : > { %2068 = vst [vmem:[#allocation13 + $0x9c] sm:$0xf] %v2065_v59  ;;  %2018 = vst [vmem:[#allocation13 + $0x98] sm:$0xf] %v2015_v60  ;;  %2810 = vmatmul.mubr.bf16.gmra.mxu0 %v3827_v62 }
  0xc4   : > { %v2130_v23 = vpack.c.bf16 %v3931_v49, %v2127_v63  ;;  %v2115_v10 = vpack.c.bf16 %v3931_v49, %v2112_v11 }
  0xc5   : > { %2746 = vmatmul.mubr.bf16.gmra.mxu1 %v3826_v2  ;;  %v3828_v25 = vld [vmem:[#allocation13 + $0x6c] ss:$24 sps:$4 sm:$0xff]   ;;  %v3832_v17 = vld [vmem:[#allocation13 + $0x68] ss:$24 sps:$4 sm:$0xff]  }
  0xc6   : > { %2133 = vst [vmem:[#allocation13 + $0xa4] sm:$0xf] %v2130_v23  ;;  %2118 = vst [vmem:[#allocation13 + $0xa0] sm:$0xf] %v2115_v10  ;;  %2753 = vmatprep.mubr.bf16.mxu1 %v3828_v25 }
  0xc9   : > { %v3830_v31 = vld [vmem:[#allocation13 + $0x74] ss:$24 sps:$4 sm:$0xff]   ;;  %v3833_v34 = vld [vmem:[#allocation13 + $0x70] ss:$24 sps:$4 sm:$0xff]  }
  0xca   : > { %v2154_v53 = vld [vmem:[#allocation13 + $0x98] sm:$0xff]  ;;  %3361 = vmatprep.mubr.msk.bf16.mxu0 %vm2628_vm15, %v3830_v31 }
  0xcb   : > { %v3311_v12 = vcombine.high %v2154_v53, %v2154_v53  ;;  %2818 = vmatmul.mubr.bf16.gmra.mxu0 %v3833_v34  ;;  %v3310_v24 = vcombine.low %v2154_v53, %v2154_v53 }
  0xcd   : > { %2754 = vmatmul.mubr.bf16.gmra.mxu1 %v3832_v17  ;;  %v2155_v19 = vld [vmem:[#allocation13 + $0xa0] sm:$0xff] }
  0xce   : > { %2761 = vmatprep.mubr.bf16.mxu1 %v3311_v12  ;;  %v3313_v21 = vcombine.high %v2155_v19, %v2155_v19  ;;  %v3312_v49 = vcombine.low %v2155_v19, %v2155_v19 }
  0xd0   : > { %3362 = vmatprep.mubr.msk.bf16.mxu0 %vm2628_vm15, %v3313_v21 }
  0xd3   : > { %2826 = vmatmul.mubr.bf16.gmra.mxu0 %v3312_v49 }
  0xd5   : > { %2762 = vmatmul.mubr.bf16.gmra.mxu1 %v3310_v24 }
  0xf6   : > { %v3527_v16 = vpop.f32.mrf.mxu1 }
  0xf8   : > { %v3528_v26 = vpop.f32.mrf.mxu1 }
  0xf9   : > { %v3529_v39 = vadd.f32 %v3528_v26, %v3527_v16 }
  0xfa   : > { %v3530_v27 = vpop.f32.mrf.mxu1 }
  0xfb   : > { %v2676_v46 = vadd.f32 %v3529_v39, %v4781_v43 }
  0xfc   : > { %v3531_v29 = vpop.f32.mrf.mxu1 }
  0xfd   : > { %v3532_v6 = vadd.f32 %v3531_v29, %v3530_v27 }
  0xff   : > { %v2679_v41 = vadd.f32 %v3532_v6, %v4781_v43 }
 0x100   : > { %v3533_v4 = vpop.f32.mrf.mxu1 }
 0x102   : > { %v3534_v30 = vpop.f32.mrf.mxu1 }
 0x103   : > { %v3535_v5 = vadd.f32 %v3534_v30, %v3533_v4 }
 0x104   : > { %v3536_v32 = vpop.f32.mrf.mxu1 }
 0x105   : > { %v2684_v51 = vadd.f32 %v3535_v5, %v4781_v43 }
 0x106   : > { %v3537_v28 = vpop.f32.mrf.mxu1 }
 0x107   : > { %v3538_v58 = vadd.f32 %v3537_v28, %v3536_v32 }
 0x109   : > { %v2687_v10 = vadd.f32 %v3538_v58, %v4781_v43 }
 0x10b   : > { %v3539_v33 = vpop.f32.mrf.mxu1 }
 0x10d   : > { %v3540_v35 = vpop.f32.mrf.mxu1 }
 0x10e   : > { %v3541_v31 = vadd.f32 %v3540_v35, %v3539_v33 }
 0x10f   : > { %v3542_v40 = vpop.f32.mrf.mxu1 }
 0x110   : > { %v2692_v29 = vadd.f32 %v3541_v31, %v4781_v43 }
 0x111   : > { %v3543_v36 = vpop.f32.mrf.mxu1 }
 0x112   : > { %v3544_v26 = vadd.f32 %v3543_v36, %v3542_v40 }
 0x175   : > { %v4774_v37 = vpop.f32.mrf.mxu1 }
 0x177   : > { %v4776_v0 = vpop.f32.mrf.mxu1 }
 0x178   : > { %v3547_v36 = vadd.f32 %v4776_v0, %v4774_v37 }
 0x179   : > { %v3548_v38 = vpop.f32.mrf.mxu1 }
 0x17a   : > { %v2700_v5 = vadd.f32 %v3547_v36, %v4781_v43 }
 0x17b   : > { %v3549_v9 = vpop.f32.mrf.mxu1  ;;  %v2803_v42 = vpop.f32.mrf.mxu0 }
 0x17d   : > { %v3567_v44 = vpop.f32.mrf.mxu1  ;;  %v2805_v14 = vpop.f32.mrf.mxu0 }
 0x17f   : > { %v3568_v45 = vpop.f32.mrf.mxu1  ;;  %v2806_v7 = vpop.f32.mrf.mxu0 }
 0x180   : > { %v3569_v55 = vadd.f32 %v3568_v45, %v3567_v44 }
 0x181   : > { %v3570_v20 = vpop.f32.mrf.mxu1  ;;  %v2808_v47 = vpop.f32.mrf.mxu0 }
 0x182   : > { %v2740_v8 = vadd.f32 %v3569_v55, %v2676_v46 }
 0x183   : > { %v3571_v13 = vpop.f32.mrf.mxu1  ;;  %v2811_v52 = vpop.f32.mrf.mxu0 }
 0x184   : > { %v2804_v48 = vadd.f32 %v2803_v42, %v2740_v8  ;;  %v3572_v50 = vadd.f32 %v3571_v13, %v3570_v20  ;;  %v2695_v42 = vadd.f32 %v3544_v26, %v4781_v43 }
 0x185   : > { %v3573_v54 = vpop.f32.mrf.mxu1  ;;  %v2813_v18 = vpop.f32.mrf.mxu0 }
 0x186   : > { %vm2833_vm0 = vcmp.ge.f32.partialorder %v2804_v48, 0.0  ;;  %v2845_v56 = vmul.f32 %v4788_v3, %v2804_v48  ;;  %v2743_v57 = vadd.f32 %v3572_v50, %v2679_v41 }
 0x187   : > { %v3574_v22 = vpop.f32.mrf.mxu1  ;;  %v2814_v61 = vpop.f32.mrf.mxu0 }
 0x188   : > { %v2852_v15 = vsel %vm2833_vm0, %v2804_v48, %v2845_v56  ;;  %v2807_v59 = vadd.f32 %v2806_v7, %v2743_v57  ;;  %v3575_v60 = vadd.f32 %v3574_v22, %v3573_v54 }
 0x189   : > { %v3465_v62 = vpack.c.bf16 %v2852_v15, %v2852_v15  ;;  %v3576_v63 = vpop.f32.mrf.mxu1  ;;  %v2816_v23 = vpop.f32.mrf.mxu0 }
 0x18a   : > { %vm2834_vm2 = vcmp.ge.f32.partialorder %v2807_v59, 0.0  ;;  %v2846_v11 = vmul.f32 %v4788_v3, %v2807_v59  ;;  %v2748_v2 = vadd.f32 %v3575_v60, %v2684_v51 }
 0x18b   : > { %2889 = vst.msk [vmem:[%s4795_s20] sm:$0xf] %vm2888_vm1, %v3465_v62  ;;  %v3577_v25 = vpop.f32.mrf.mxu1  ;;  %v2819_v12 = vpop.f32.mrf.mxu0 }
 0x18c   : > { %v2853_v34 = vsel %vm2834_vm2, %v2807_v59, %v2846_v11  ;;  %v2812_v53 = vadd.f32 %v2811_v52, %v2748_v2  ;;  %v3578_v17 = vadd.f32 %v3577_v25, %v3576_v63 }
 0x18d   : > { %v3466_v19 = vpack.c.bf16 %v2853_v34, %v2853_v34  ;;  %v3579_v21 = vpop.f32.mrf.mxu1  ;;  %v2821_v16 = vpop.f32.mrf.mxu0 }
 0x18e   : > { %vm2835_vm3 = vcmp.ge.f32.partialorder %v2812_v53, 0.0  ;;  %v2847_v49 = vmul.f32 %v4788_v3, %v2812_v53  ;;  %v2751_v24 = vadd.f32 %v3578_v17, %v2687_v10 }
 0x18f   : > { %2890 = vst.msk [vmem:[%s4795_s20 + $0x4] sm:$0xf] %vm2888_vm1, %v3466_v19  ;;  %v3580_v27 = vpop.f32.mrf.mxu1  ;;  %v2822_v28 = vpop.f32.mrf.mxu0 }
 0x190   : > { %v2854_v4 = vsel %vm2835_vm3, %v2812_v53, %v2847_v49  ;;  %v2815_v30 = vadd.f32 %v2814_v61, %v2751_v24  ;;  %v3581_v32 = vadd.f32 %v3580_v27, %v3579_v21 }
 0x191   : > { %v3467_v33 = vpack.c.bf16 %v2854_v4, %v2854_v4  ;;  %v3582_v35 = vpop.f32.mrf.mxu1  ;;  %v2824_v39 = vpop.f32.mrf.mxu0 }
 0x192   : > { %vm2836_vm4 = vcmp.ge.f32.partialorder %v2815_v30, 0.0  ;;  %v2848_v38 = vmul.f32 %v4788_v3, %v2815_v30  ;;  %v2756_v9 = vadd.f32 %v3581_v32, %v2692_v29 }
 0x193   : > { %2891 = vst.msk [vmem:[%s4795_s20 + $0x8] sm:$0xf] %vm2888_vm1, %v3467_v33  ;;  %v3583_v40 = vpop.f32.mrf.mxu1  ;;  %v2827_v46 = vpop.f32.mrf.mxu0 }
 0x194   : > { %v2855_v44 = vsel %vm2836_vm4, %v2815_v30, %v2848_v38  ;;  %v2820_v14 = vadd.f32 %v2819_v12, %v2756_v9  ;;  %v3584_v45 = vadd.f32 %v3583_v40, %v3582_v35 }
 0x195   : > { %v3468_v6 = vpack.c.bf16 %v2855_v44, %v2855_v44  ;;  %v3585_v55 = vpop.f32.mrf.mxu1  ;;  %v2829_v8 = vpop.f32.mrf.mxu0 }
 0x196   : > { %vm2837_vm5 = vcmp.ge.f32.partialorder %v2820_v14, 0.0  ;;  %v2849_v7 = vmul.f32 %v4788_v3, %v2820_v14  ;;  %v2759_v20 = vadd.f32 %v3584_v45, %v2695_v42 }
 0x197   : > { %2892 = vst.msk [vmem:[%s4795_s20 + $0xc] sm:$0xf] %vm2888_vm1, %v3468_v6  ;;  %v3586_v47 = vpop.f32.mrf.mxu1  ;;  %v2830_v0 = vpop.f32.mrf.mxu0 }
 0x198   : > { %v2856_v13 = vsel %vm2837_vm5, %v2820_v14, %v2849_v7  ;;  %v2823_v41 = vadd.f32 %v2822_v28, %v2759_v20  ;;  %v3587_v37 = vadd.f32 %v3586_v47, %v3585_v55 }
 0x199   : > { %v3469_v48 = vpack.c.bf16 %v2856_v13, %v2856_v13  ;;  %v3588_v50 = vpop.f32.mrf.mxu1  ;;  %v2831_v56 = vpop.f32.mrf.mxu0 }
 0x19a   : > { %vm2838_vm6 = vcmp.ge.f32.partialorder %v2823_v41, 0.0  ;;  %v2850_v52 = vmul.f32 %v4788_v3, %v2823_v41  ;;  %v2764_v54 = vadd.f32 %v3587_v37, %v2700_v5 }
 0x19b   : > { %2893 = vst.msk [vmem:[%s4795_s20 + $0x10] sm:$0xf] %vm2888_vm1, %v3469_v48  ;;  %v3589_v57 = vpop.f32.mrf.mxu1 }
 0x19c   : > { %v2857_v18 = vsel %vm2838_vm6, %v2823_v41, %v2850_v52  ;;  %v2828_v51 = vadd.f32 %v2827_v46, %v2764_v54 }
 0x19d   : > { %v3470_v58 = vpack.c.bf16 %v2857_v18, %v2857_v18 }
 0x19e   : > { %vm2839_vm7 = vcmp.ge.f32.partialorder %v2828_v51, 0.0  ;;  %v2851_v43 = vmul.f32 %v4788_v3, %v2828_v51 }
 0x19f   : > { %2894 = vst.msk [vmem:[%s4795_s20 + $0x14] sm:$0xf] %vm2888_vm1, %v3470_v58  ;;  %2902 = sbr.rel (!%p3993_p4) target bundleno = 478 (0x1de), region = 40 }
 0x1a0   : > { %v2858_v22 = vsel %vm2839_vm7, %v2828_v51, %v2851_v43 }
 0x1a1   : > { %v3471_v15 = vpack.c.bf16 %v2858_v22, %v2858_v22 }
 0x1a3   : > { %2895 = vst.msk [vmem:[%s4795_s20 + $0x18] sm:$0xf] %vm2888_vm1, %v3471_v15 }
 0x1a4   : > { %s4897_s29 = smov (!%p2905_p13, %s2904_s29), 7 }
 0x1a5   : > { %s3371_s19 = sshll.u32 %s4897_s29, 6 }
 0x1a6   : > { %p3374_p0 = scmp.eq.s32.totalorder %s3371_s19, 0 }
 0x1a7   : > { %3838 = sdivrem.u32 (!%p3374_p0), %s4897_s29, 7 }
 0x1a8   : > { %2913 = sbr.rel (%p3374_p0) target bundleno = 478 (0x1de), region = 44 }
 0x1b0   : > { %s4834_s27 = spop.drf %3838 }
 0x1b1   : > { %p3375_p1 = scmp.le.s32.totalorder %s4834_s27, 0 }
 0x1b2   : > { %s4890_s3 = smov (!%p3375_p1), %s4828_s16  ;;  %s4891_s28 = smov (!%p3375_p1), %s4795_s20 }
 0x1b3   : > { %3145 = sbr.rel (%p3375_p1) target bundleno = 453 (0x1c5), region = 221  ;;  %s4843_s30 = smov (!%p3375_p1), 0  }
 0x1b4   : > { %s4845_s13 = smov (!%p3375_p1), 0  }
 0x1b8 LB: >> { %v2931_v3 = vld [vmem:[%s3904_s28] sm:$0xf]  ;;  %v2933_v59 = vld [vmem:[%s3904_s28 + $0x4] sm:$0xf]  ;;  %v2935_v60 = vld [vmem:[%s3904_s28 + $0x8] sm:$0xf]  ;;  %s3912_s13 = sphi %s4845_s13, %s2925_s13   ;;  %s3908_s30 = sphi %s4843_s30, %s4892_s30   ;;  %s3904_s28 = sphi %s4891_s28, %s2950_s28   ;;  %s3900_s3 = sphi %s4890_s3, %s2951_s3  }
 0x1b9   : >> { %2932 = vst [vmem:[%s3900_s3] sm:$0xf] %v2931_v3  ;;  %2934 = vst [vmem:[%s3900_s3 + $0x4] sm:$0xf] %v2933_v59  ;;  %v2937_v61 = vld [vmem:[%s3904_s28 + $0xc] sm:$0xf]  ;;  %s2945_s12 = sadd.s32 1, %s3908_s30 }
 0x1ba   : >> { %2936 = vst [vmem:[%s3900_s3 + $0x8] sm:$0xf] %v2935_v60  ;;  %v2939_v62 = vld [vmem:[%s3904_s28 + $0x10] sm:$0xf]  ;;  %v2941_v63 = vld [vmem:[%s3904_s28 + $0x14] sm:$0xf]  ;;  %p2946_p2 = scmp.ge.s32.totalorder %s2945_s12, %s4834_s27 }
 0x1bb   : >> { %2938 = vst [vmem:[%s3900_s3 + $0xc] sm:$0xf] %v2937_v61  ;;  %2940 = vst [vmem:[%s3900_s3 + $0x10] sm:$0xf] %v2939_v62  ;;  %v2943_v11 = vld [vmem:[%s3904_s28 + $0x18] sm:$0xf] }
 0x1bc   : >> { %2942 = vst [vmem:[%s3900_s3 + $0x14] sm:$0xf] %v2941_v63  ;;  %2944 = vst [vmem:[%s3900_s3 + $0x18] sm:$0xf] %v2943_v11  ;;  %s4899_s12 = smov (%p2946_p2, %s2945_s12), 0  ;;  %s2925_s13 = sadd.s32 1, %s3912_s13  }
 0x1bd   : >> { %s2948_s10 = smul.u32 28, %s4899_s12  ;;  %p2924_p3 = scmp.ge.s32.totalorder %s2925_s13, %s4834_s27 }
 0x1be   : >> { %s4892_s30 = smov %s4899_s12 }
 0x1bf   : >> { %s2950_s28 = scalar_lea.vmem %s4795_s20, %s2948_s10 [#allocation12]   ;;  %s2951_s3 = scalar_lea.vmem %s4828_s16, %s2948_s10  }
 0x1c0   : > { %2927 = sbr.rel (!%p2924_p3) target bundleno = 440 (0x1b8), region = 227 }
 0x1c5 PF: > { %3840 = sdivrem.u32 %s4897_s29, 7 }
 0x1c6   : > { %s3376_s17 = smul.u32 28, %s4834_s27 }
 0x1c8   : > { %s2956_s22 = scalar_lea.vmem %s4795_s20, %s3376_s17 [#allocation12]   ;;  %s2958_s7 = scalar_lea.vmem %s4828_s16, %s3376_s17  }
 0x1ce   : > { %s3841_s9 = spop.drf %3840 }
 0x1cf   : > { %p3378_p4 = scmp.le.s32.totalorder %s3841_s9, 0 }
 0x1d0   : > { %s3914_s25 = smov (!%p3378_p4), %s2958_s7   ;;  %s3918_s6 = smov (!%p3378_p4), %s2956_s22  }
 0x1d1   : > { %3159 = sbr.rel (%p3378_p4) target bundleno = 478 (0x1de), region = 232  ;;  %s3922_s8 = smov (!%p3378_p4), 0  }
 0x1d2   : > { %s3926_s24 = smov (!%p3378_p4), 0  }
 0x1d6 LB: >> { %v2968_v2 = vld [vmem:[%s3920_s6] sm:$0xf]  ;;  %s2970_s11 = sadd.s32 1, %s3924_s8  ;;  %s2962_s24 = sadd.s32 1, %s3928_s24   ;;  %s3928_s24 = sphi %s3926_s24, %s2962_s24   ;;  %s3924_s8 = sphi %s3922_s8, %s3923_s8   ;;  %s3920_s6 = sphi %s3918_s6, %s2975_s6   ;;  %s3916_s25 = sphi %s3914_s25, %s2976_s25  }
 0x1d7   : >> { %2969 = vst [vmem:[%s3916_s25] sm:$0xf] %v2968_v2  ;;  %p2971_p5 = scmp.ge.s32.totalorder %s2970_s11, %s3841_s9  ;;  %p2961_p6 = scmp.ge.s32.totalorder %s2962_s24, %s3841_s9 }
 0x1d9   : >> { %s4901_s11 = smov (%p2971_p5, %s2970_s11), 0  ;;  %2964 = sbr.rel (!%p2961_p6) target bundleno = 470 (0x1d6), region = 238 }
 0x1da   : >> { %s3379_s20 = sshll.u32 %s4901_s11, 2  ;;  %s3923_s8 = smov %s4901_s11  }
 0x1db   : >> { %s2975_s6 = scalar_lea.vmem %s2956_s22, %s3379_s20 [#allocation12]   ;;  %s2976_s25 = scalar_lea.vmem %s2958_s7, %s3379_s20  }
 0x1de PF: > { %p22_p7 = scmp.ge.s32.totalorder %s3983_s23, 4   ;;  %s4893_s20 = smov %s3892_s21 }
 0x1df   : > { %s4894_s21 = smov %s3991_s26  ;;  %s4895_s22 = smov %s3983_s23 }
 0x1e0   :  { %24 = sbr.rel (!%p22_p7) target bundleno = 5 (0x5), region = 249 }

// kernel: bats_network_forward.12
= control target key start
LH: loop header
LB: loop body
LE: loop exit
PB: predicated region body
PF: predicated region fallthrough
CT: control target
= control target key end

     0   :  { %s1415_s15 = smov 0   ;;  %s1417_s16 = smov 0   ;;  %s1651_s0 = inlined_call_operand.vmem [shape: bf16[98,360], index: 0, kind: input, shape index: {}]   ;;  %s1652_s1 = inlined_call_operand.vmem [shape: bf16[360,40], index: 1, kind: input, shape index: {}]   ;;  %s1653_s2 = inlined_call_operand.vmem [shape: f32[2,40], index: 2, kind: input, shape index: {}]   ;;  %s1654_s3 = inlined_call_operand.vmem [shape: bf16[98,40], index: 3, kind: input, shape index: {}]   ;;  %s1655_s4 = inlined_call_operand.vmem [shape: bf16[98,40], index: 4, kind: output, shape index: {}]  }
   0x1   :  { %s1419_s17 = smov 0  }
   0x2 LB: > { %s1428_s18 = sadd.s32 4294967295, %s1356_s17   ;;  %s1430_s19 = sadd.s32 1, %s1356_s17   ;;  %s1356_s17 = sphi %s1419_s17, %s1662_s17   ;;  %s1352_s16 = sphi %s1417_s16, %s1661_s16   ;;  %s1348_s15 = sphi %s1415_s15, %s1660_s15  }
   0x3   : > { %s112_s20 = ssub.s32 %s1356_s17, %s1430_s19  ;;  %s115_s21 = sadd.s32 1, %s1352_s16 }
   0x4   : > { %p113_p0 = scmp.eq.s32.totalorder %s112_s20, 0  ;;  %p125_p1 = scmp.ne.s32.totalorder %s1352_s16, %s1348_s15 }
   0x5   : > { %p126_p2 = scmp.eq.s32.totalorder %s1428_s18, 1  ;;  %p1010_p3 = scmp.ge.s32.totalorder %s1356_s17, 1 }
   0x6   : > { %s1438_s22 = scalar_select %p113_p0, %s1352_s16, %s115_s21  }
   0x7   : > { %p1440_p4 = por %p126_p2, %p125_p1  ;;  %p193_p5 = scmp.lt.s32.totalorder %s1356_s17, 3 }
   0x9   : > { %p194_p6 = pnand %p1010_p3, %p193_p5 }
   0xa   : > { %s1454_s30 = smul.u32 (!%p194_p6), 7, %s1428_s18 }
   0xb   : > { %197 = sbr.rel (%p194_p6) target bundleno = 340 (0x154), region = 36 }
   0xc   : > { %p239_p7 = scmp.lt.s32.totalorder (!%p194_p6), %s1454_s30, 12 }
  0x10   : > { %v1260_v0 = vld [vmem:[%s1652_s1 + $0x78] sm:$0xff]   ;;  %v1262_v2 = vld [vmem:[%s1652_s1 + $0x70] sm:$0xff]   ;;  %v1264_v4 = vld [vmem:[%s1652_s1 + $0x68] sm:$0xff]   ;;  %vm537_vm0 = vcmask 1043456   ;;  %s1482_s27 = scalar_select %p239_p7, %s1454_s30, 12  ;;  %vm524_vm1 = vcmask 850944  }
  0x11   : > { %v1261_v1 = vld [vmem:[%s1652_s1 + $0x38] sm:$0xff]   ;;  %1095 = vmatprep.subr.bf16.mxu0 %v1260_v0  ;;  %v1263_v3 = vld [vmem:[%s1652_s1 + $0x30] sm:$0xff]   ;;  %v1266_v6 = vld [vmem:[%s1652_s1 + $0x28] sm:$0xff]   ;;  %vm745_vm3 = vcmask 322560   ;;  %s761_s29 = ssub.s32 (%p1440_p4), 13, %s1454_s30  ;;  %s1080_s5 = smul.u32 (%p1440_p4), 28, %s1428_s18 }
  0x12   : > { %1096 = vmatpush3.bf16.msra.mxu0 %v1261_v1  ;;  %v1265_v5 = vld [vmem:[%s1652_s1 + $0xb0] ss:$0 sps:$4 sm:$0xff]   ;;  %v1267_v8 = vld [vmem:[%s1652_s1 + $0x60] sm:$0xff]   ;;  %v1268_v9 = vld [vmem:[%s1652_s1 + $0xa8] sm:$0xff]   ;;  %s1170_s9 = smul.u32 12, %s1482_s27  ;;  %s1012_s13 = sshll.u32 %s1482_s27, 2 }
  0x13   : > { %1097 = vmatprep.subr.bf16.mxu0 %v1262_v2  ;;  %1168 = vmatprep.subr.msk.bf16.mxu1 %vm537_vm0, %v1265_v5  ;;  %v539_v7 = vsel %vm537_vm0, %v1265_v5, 0  ;;  %v1269_v10 = vld [vmem:[%s1652_s1 + $0x20] sm:$0xff]   ;;  %v1270_v12 = vld [vmem:[%s1652_s1 + $0x58] sm:$0xff]   ;;  %v1273_v15 = vld [vmem:[%s1652_s1 + $0x50] sm:$0xff]   ;;  %s1545_s20 = scalar_lea.vmem %s1654_s3, %s1012_s13  ;;  %s230_s27 = sand.u32 1, %s1348_s15  }
  0x14   : > { %1147 = vmatpush3.bf16.msra.mxu1 %v539_v7  ;;  %v1271_v11 = vld [vmem:[%s1652_s1 + $0xa0] sm:$0xff]   ;;  %v1274_v13 = vld [vmem:[%s1652_s1 + $0x98] sm:$0xff]   ;;  %v1277_v16 = vld [vmem:[%s1652_s1 + $0x90] sm:$0xff]   ;;  %s1506_s24 = scalar_lea.vmem %s1651_s0, %s1170_s9  ;;  %s1169_s28 = smul.u32 28, %s230_s27 }
  0x15   : > { %1148 = vmatprep.subr.bf16.mxu1 %v1268_v9  ;;  %v1272_v14 = vld [vmem:[%s1652_s1 + $0x18] sm:$0xff]   ;;  %v1275_v17 = vld [vmem:[%s1652_s1 + $0x10] sm:$0xff]   ;;  %v1276_v18 = vld [vmem:[%s1652_s1 + $0x48] sm:$0xff]   ;;  %p762_p8 = scmp.lt.s32.totalorder (%p1440_p4), %s761_s29, 7  ;;  %s1602_s8 = scalar_lea.vmem (%p1440_p4), %s1655_s4, %s1080_s5  }
  0x16   : > { %1098 = vmatpush3.bf16.msra.mxu0 %v1263_v3  ;;  %v1280_v19 = vld [vmem:[%s1652_s1 + $0x88] sm:$0xff]   ;;  %v1284_v21 = vld [vmem:[%s1506_s24 + $0x4] ss:$12 sps:$4 sm:$0xff]   ;;  %v1291_v31 = vld [vmem:[%s1506_s24 + $0x34] ss:$12 sps:$4 sm:$0xff]   ;;  %s1567_s15 = scalar_lea.vmem [#allocation2], %s1169_s28  }
  0x17   : > { %1099 = vmatprep.subr.bf16.mxu0 %v1264_v4  ;;  %v1278_v20 = vld [vmem:[%s1652_s1 + $0x8] sm:$0xff]   ;;  %v1279_v22 = vld [vmem:[%s1652_s1 + $0x40] sm:$0xff]   ;;  %573 = vmatprep.mubr.bf16.mxu0 %v1284_v21  ;;  %v1295_v32 = vld [vmem:[%s1506_s24 + $0x50] ss:$0 sps:$4 sm:$0xff]  }
  0x18   : > { %1149 = vmatpush3.bf16.msra.mxu1 %v1268_v9  ;;  %v1286_v23 = vld [vmem:[%s1506_s24 + $0x8] ss:$12 sps:$4 sm:$0xff]   ;;  %v1285_v24 = vld [vmem:[%s1652_s1 + $0x80] sm:$0xff]   ;;  %v1293_v34 = vld [vmem:[%s1506_s24 + $0x30] ss:$12 sps:$4 sm:$0xff]  }
  0x19   : > { %1150 = vmatprep.subr.bf16.mxu1 %v1271_v11  ;;  %1160 = vmatprep.mubr.msk.bf16.mxu1 %vm524_vm1, %v1286_v23  ;;  %v1281_v25 = vld [vmem:[%s1652_s1] sm:$0xff]   ;;  %v1288_v28 = vld [vmem:[%s1506_s24 + $0x1c] ss:$12 sps:$4 sm:$0xff]  }
  0x1a   : > { %1100 = vmatpush3.bf16.msra.mxu0 %v1266_v6  ;;  %v1282_v26 = vld [vmem:[%s1506_s24] ss:$12 sps:$4 sm:$0xff]   ;;  %v1294_v29 = vld [vmem:[%s1506_s24 + $0x38] ss:$12 sps:$4 sm:$0xff]  }
  0x1b   : > { %1101 = vmatprep.subr.bf16.mxu0 %v1267_v8  ;;  %v1287_v27 = vld [vmem:[%s1506_s24 + $0x20] ss:$12 sps:$4 sm:$0xff]   ;;  %v1290_v30 = vld [vmem:[%s1506_s24 + $0x18] ss:$12 sps:$4 sm:$0xff]  }
  0x1c   : > { %1151 = vmatpush3.bf16.msra.mxu1 %v1271_v11  ;;  %v282_v33 = vld [vmem:[%s1506_s24 + $0x48] sm:$0xff]  ;;  %v1550_v40 = vld [vmem:[%s1653_s2] ss:$0 sm:$0xff]  ;;  %v1558_v48 = vld [vmem:[%s1653_s2 + $0x1] ss:$0 sm:$0xff] }
  0x1d   : > { %1152 = vmatprep.subr.bf16.mxu1 %v1274_v13  ;;  %v1024_v35 = vcombine.high %v282_v33, %v282_v33  ;;  %v1023_v36 = vcombine.low %v282_v33, %v282_v33  ;;  %v1082_v45 = vld [vmem:[%s1545_s20] sm:$0xff]   ;;  %v1093_v2 = vld [vmem:[%s1545_s20 + $0x8] sm:$0xff]  }
  0x1e   : > { %1102 = vmatpush3.bf16.msra.mxu0 %v1269_v10  ;;  %v1083_v52 = vunpack.c.l.bf16 %v1082_v45  ;;  %v1084_v63 = vunpack.c.h.bf16 %v1082_v45  ;;  %v1087_v10 = vunpack.c.l.bf16 %v1093_v2  ;;  %v1088_v21 = vunpack.c.h.bf16 %v1093_v2 }
  0x1f   : > { %1103 = vmatprep.subr.bf16.mxu0 %v1270_v12 }
  0x20   : > { %1153 = vmatpush3.bf16.msra.mxu1 %v1274_v13 }
  0x21   : > { %1154 = vmatprep.subr.bf16.mxu1 %v1277_v16 }
  0x22   : > { %1104 = vmatpush3.bf16.msra.mxu0 %v1272_v14 }
  0x23   : > { %1105 = vmatprep.subr.bf16.mxu0 %v1273_v15 }
  0x24   : > { %1155 = vmatpush3.bf16.msra.mxu1 %v1277_v16 }
  0x25   : > { %1156 = vmatprep.subr.bf16.mxu1 %v1280_v19 }
  0x26   : > { %1106 = vmatpush3.bf16.msra.mxu0 %v1275_v17 }
  0x27   : > { %1107 = vmatprep.subr.bf16.mxu0 %v1276_v18 }
  0x28   : > { %1157 = vmatpush3.bf16.msra.mxu1 %v1280_v19 }
  0x29   : > { %1158 = vmatprep.subr.bf16.mxu1 %v1285_v24 }
  0x2a   : > { %1108 = vmatpush3.bf16.msra.mxu0 %v1278_v20 }
  0x2b   : > { %1109 = vmatprep.subr.bf16.mxu0 %v1279_v22 }
  0x2c   : > { %1159 = vmatpush3.bf16.msra.mxu1 %v1285_v24 }
  0x2e   : > { %1110 = vmatpush3.bf16.msra.mxu0 %v1281_v25  ;;  %v1094_v25 = vld [vmem:[%s1545_s20 + $0x10] sm:$0xff]  }
  0x2f   : > { %1161 = vmatmul.mubr.msk.bf16.vlgmr.msra.gmra.mxu1 %vm524_vm1, %v1287_v27 }
  0x30   : > { %1164 = vmatprep.mubr.msk.bf16.mxu1 %vm524_vm1, %v1294_v29 }
  0x31   : > { %574 = vmatmul.mubr.bf16.vlgmr.msra.gmra.mxu0 %v1282_v26 }
  0x32   : > { %581 = vmatprep.mubr.bf16.mxu0 %v1288_v28 }
  0x37   : > { %1165 = vmatmul.mubr.msk.bf16.gmra.mxu1 %vm524_vm1, %v1295_v32  ;;  %v1091_v32 = vunpack.c.l.bf16 %v1094_v25 }
  0x39   : > { %582 = vmatmul.mubr.bf16.gmra.mxu0 %v1290_v30 }
  0x3a   : > { %589 = vmatprep.mubr.bf16.mxu0 %v1291_v31 }
  0x41   : > { %590 = vmatmul.mubr.bf16.gmra.mxu0 %v1293_v34 }
  0x42   : > { %597 = vmatprep.mubr.bf16.mxu0 %v1024_v35 }
  0x49   : > { %598 = vmatmul.mubr.bf16.gmra.mxu0 %v1023_v36 }
  0xef   : > { %v1162_v38 = vpop.f32.mrf.mxu1 }
  0xf1   : > { %v1111_v37 = vpop.f32.mrf.mxu0  ;;  %v639_v42 = vpop.f32.mrf.mxu1 }
  0xf3   : > { %v1112_v39 = vpop.f32.mrf.mxu0  ;;  %v1163_v46 = vpop.f32.mrf.mxu1 }
  0xf4   : > { %v1113_v41 = vadd.f32 %v1112_v39, %v1111_v37 }
  0xf5   : > { %v1114_v43 = vpop.f32.mrf.mxu0  ;;  %v642_v51 = vpop.f32.mrf.mxu1 }
  0xf6   : > { %v576_v44 = vadd.f32 %v1113_v41, %v1550_v40 }
  0xf7   : > { %v1115_v47 = vpop.f32.mrf.mxu0  ;;  %v1562_v56 = vpop.f32.mrf.mxu1 }
  0xf8   : > { %v1116_v49 = vadd.f32 %v1115_v47, %v1114_v43  ;;  %v640_v50 = vadd.f32 %v639_v42, %v576_v44  ;;  %v1092_v44 = vunpack.c.h.bf16 %v1094_v25 }
  0xf9   : > { %v1117_v53 = vpop.f32.mrf.mxu0  ;;  %v655_v61 = vpop.f32.mrf.mxu1 }
  0xfa   : > { %vm669_vm2 = vcmp.ge.f32.partialorder %v640_v50, 0.0  ;;  %v681_v54 = vmul.f32 %v1558_v48, %v640_v50  ;;  %v579_v55 = vadd.f32 %v1116_v49, %v1550_v40  ;;  %v701_v49 = vld [vmem:[%s1545_s20 + $0x18] sm:$0xf] }
  0xfb   : > { %v1118_v57 = vpop.f32.mrf.mxu0  ;;  %v1167_v4 = vpop.f32.mrf.mxu1 }
  0xfc   : > { %v688_v58 = vsel %vm669_vm2, %v640_v50, %v681_v54  ;;  %v1119_v59 = vadd.f32 %v1118_v57, %v1117_v53  ;;  %v643_v60 = vadd.f32 %v642_v51, %v579_v55  ;;  %v708_v55 = vunpack.c.l.bf16 %v701_v49 }
  0xfd   : > { %v709_v62 = vadd.f32 %v1083_v52, %v688_v58  ;;  %v1120_v0 = vpop.f32.mrf.mxu0  ;;  %v658_v37 = vpop.f32.mrf.mxu1 }
  0xfe   : > { %v584_v1 = vadd.f32 %v1119_v59, %v1550_v40  ;;  %vm670_vm4 = vcmp.ge.f32.partialorder %v643_v60, 0.0  ;;  %v682_v3 = vmul.f32 %v1558_v48, %v643_v60 }
  0xff   : > { %v1073_v5 = vpack.c.bf16 %v709_v62, %v709_v62  ;;  %v1121_v6 = vpop.f32.mrf.mxu0 }
 0x100   : > { %v648_v7 = vadd.f32 %v1162_v38, %v584_v1  ;;  %v689_v8 = vsel %vm670_vm4, %v643_v60, %v682_v3  ;;  %v1122_v9 = vadd.f32 %v1121_v6, %v1120_v0 }
 0x101   : > { %746 = vst.msk [vmem:[%s1567_s15] sm:$0xf] %vm745_vm3, %v1073_v5  ;;  %v710_v11 = vadd.f32 %v1084_v63, %v689_v8  ;;  %v1123_v12 = vpop.f32.mrf.mxu0 }
 0x102   : > { %vm671_vm5 = vcmp.ge.f32.partialorder %v648_v7, 0.0  ;;  %v683_v13 = vmul.f32 %v1558_v48, %v648_v7  ;;  %v587_v14 = vadd.f32 %v1122_v9, %v1550_v40 }
 0x103   : > { %v1074_v15 = vpack.c.bf16 %v710_v11, %v710_v11  ;;  %v1124_v16 = vpop.f32.mrf.mxu0 }
 0x104   : > { %v690_v17 = vsel %vm671_vm5, %v648_v7, %v683_v13  ;;  %v651_v18 = vadd.f32 %v1163_v46, %v587_v14  ;;  %v1125_v19 = vadd.f32 %v1124_v16, %v1123_v12 }
 0x105   : > { %v711_v20 = vadd.f32 %v1087_v10, %v690_v17  ;;  %747 = vst.msk [vmem:[%s1567_s15 + $0x4] sm:$0xf] %vm745_vm3, %v1074_v15  ;;  %v1126_v22 = vpop.f32.mrf.mxu0 }
 0x106   : > { %vm672_vm6 = vcmp.ge.f32.partialorder %v651_v18, 0.0  ;;  %v684_v23 = vmul.f32 %v1558_v48, %v651_v18  ;;  %v592_v24 = vadd.f32 %v1125_v19, %v1550_v40 }
 0x107   : > { %v1075_v26 = vpack.c.bf16 %v711_v20, %v711_v20  ;;  %v1127_v27 = vpop.f32.mrf.mxu0 }
 0x108   : > { %v691_v28 = vsel %vm672_vm6, %v651_v18, %v684_v23  ;;  %v656_v29 = vadd.f32 %v655_v61, %v592_v24  ;;  %v1128_v30 = vadd.f32 %v1127_v27, %v1126_v22 }
 0x109   : > { %748 = vst.msk [vmem:[%s1567_s15 + $0x8] sm:$0xf] %vm745_vm3, %v1075_v26  ;;  %v712_v31 = vadd.f32 %v1088_v21, %v691_v28  ;;  %v1129_v33 = vpop.f32.mrf.mxu0 }
 0x10a   : > { %vm673_vm7 = vcmp.ge.f32.partialorder %v656_v29, 0.0  ;;  %v685_v34 = vmul.f32 %v1558_v48, %v656_v29  ;;  %v595_v35 = vadd.f32 %v1128_v30, %v1550_v40 }
 0x10b   : > { %v1076_v36 = vpack.c.bf16 %v712_v31, %v712_v31  ;;  %v1130_v38 = vpop.f32.mrf.mxu0 }
 0x10c   : > { %v692_v39 = vsel %vm673_vm7, %v656_v29, %v685_v34  ;;  %v659_v41 = vadd.f32 %v658_v37, %v595_v35  ;;  %v1131_v42 = vadd.f32 %v1130_v38, %v1129_v33 }
 0x10d   : > { %749 = vst.msk [vmem:[%s1567_s15 + $0xc] sm:$0xf] %vm745_vm3, %v1076_v36  ;;  %v713_v43 = vadd.f32 %v1091_v32, %v692_v39  ;;  %v1132_v45 = vpop.f32.mrf.mxu0 }
 0x10e   : > { %vm674_vm8 = vcmp.ge.f32.partialorder %v659_v41, 0.0  ;;  %v686_v46 = vmul.f32 %v1558_v48, %v659_v41  ;;  %v600_v47 = vadd.f32 %v1131_v42, %v1550_v40 }
 0x10f   : > { %v1077_v50 = vpack.c.bf16 %v713_v43, %v713_v43  ;;  %v1133_v51 = vpop.f32.mrf.mxu0 }
 0x110   : > { %v693_v52 = vsel %vm674_vm8, %v659_v41, %v686_v46  ;;  %v664_v53 = vadd.f32 %v1562_v56, %v600_v47 }
 0x111   : > { %750 = vst.msk [vmem:[%s1567_s15 + $0x10] sm:$0xf] %vm745_vm3, %v1077_v50  ;;  %v714_v54 = vadd.f32 %v1092_v44, %v693_v52 }
 0x112   : > { %vm675_vm9 = vcmp.ge.f32.partialorder %v664_v53, 0.0  ;;  %v687_v57 = vmul.f32 %v1558_v48, %v664_v53 }
 0x113   : > { %v1078_v58 = vpack.c.bf16 %v714_v54, %v714_v54 }
 0x114   : > { %v694_v59 = vsel %vm675_vm9, %v664_v53, %v687_v57 }
 0x115   : > { %751 = vst.msk [vmem:[%s1567_s15 + $0x14] sm:$0xf] %vm745_vm3, %v1078_v58  ;;  %v715_v60 = vadd.f32 %v708_v55, %v694_v59  ;;  %759 = sbr.rel (!%p1440_p4) target bundleno = 340 (0x154), region = 40 }
 0x117   : > { %v1079_v40 = vpack.c.bf16 %v715_v60, %v715_v60 }
 0x119   : > { %752 = vst.msk [vmem:[%s1567_s15 + $0x18] sm:$0xf] %vm745_vm3, %v1079_v40 }
 0x11a   : > { %s1664_s29 = smov (!%p762_p8, %s761_s29), 7 }
 0x11b   : > { %s1061_s9 = sshll.u32 %s1664_s29, 6 }
 0x11c   : > { %p1064_p9 = scmp.eq.s32.totalorder %s1061_s9, 0 }
 0x11d   : > { %1298 = sdivrem.u32 (!%p1064_p9), %s1664_s29, 7 }
 0x11e   : > { %770 = sbr.rel (%p1064_p9) target bundleno = 340 (0x154), region = 44 }
 0x126   : > { %s1608_s23 = spop.drf %1298 }
 0x127   : > { %p1065_p10 = scmp.le.s32.totalorder %s1608_s23, 0 }
 0x128   : > { %s1657_s18 = smov (!%p1065_p10), %s1602_s8  ;;  %s1658_s30 = smov (!%p1065_p10), %s1567_s15 }
 0x129   : > { %957 = sbr.rel (%p1065_p10) target bundleno = 315 (0x13b), region = 119  ;;  %s1617_s10 = smov (!%p1065_p10), 0  }
 0x12a   : > { %s1619_s11 = smov (!%p1065_p10), 0  }
 0x12e LB: >> { %v788_v48 = vld [vmem:[%s1364_s30] sm:$0xf]  ;;  %v790_v56 = vld [vmem:[%s1364_s30 + $0x4] sm:$0xf]  ;;  %v792_v61 = vld [vmem:[%s1364_s30 + $0x8] sm:$0xf]  ;;  %s1372_s11 = sphi %s1619_s11, %s782_s11   ;;  %s1368_s10 = sphi %s1617_s10, %s1659_s10   ;;  %s1364_s30 = sphi %s1658_s30, %s807_s30   ;;  %s1360_s18 = sphi %s1657_s18, %s808_s18  }
 0x12f   : >> { %789 = vst [vmem:[%s1360_s18] sm:$0xf] %v788_v48  ;;  %791 = vst [vmem:[%s1360_s18 + $0x4] sm:$0xf] %v790_v56  ;;  %v794_v62 = vld [vmem:[%s1364_s30 + $0xc] sm:$0xf]  ;;  %s802_s12 = sadd.s32 1, %s1368_s10 }
 0x130   : >> { %793 = vst [vmem:[%s1360_s18 + $0x8] sm:$0xf] %v792_v61  ;;  %v796_v63 = vld [vmem:[%s1364_s30 + $0x10] sm:$0xf]  ;;  %v798_v0 = vld [vmem:[%s1364_s30 + $0x14] sm:$0xf]  ;;  %p803_p11 = scmp.ge.s32.totalorder %s802_s12, %s1608_s23 }
 0x131   : >> { %795 = vst [vmem:[%s1360_s18 + $0xc] sm:$0xf] %v794_v62  ;;  %797 = vst [vmem:[%s1360_s18 + $0x10] sm:$0xf] %v796_v63  ;;  %v800_v1 = vld [vmem:[%s1364_s30 + $0x18] sm:$0xf] }
 0x132   : >> { %799 = vst [vmem:[%s1360_s18 + $0x14] sm:$0xf] %v798_v0  ;;  %801 = vst [vmem:[%s1360_s18 + $0x18] sm:$0xf] %v800_v1  ;;  %s1666_s12 = smov (%p803_p11, %s802_s12), 0  ;;  %s782_s11 = sadd.s32 1, %s1372_s11  }
 0x133   : >> { %s805_s13 = smul.u32 28, %s1666_s12  ;;  %p781_p12 = scmp.ge.s32.totalorder %s782_s11, %s1608_s23 }
 0x134   : >> { %s1659_s10 = smov %s1666_s12 }
 0x135   : >> { %s807_s30 = scalar_lea.vmem %s1567_s15, %s805_s13 [#allocation2]   ;;  %s808_s18 = scalar_lea.vmem %s1602_s8, %s805_s13  }
 0x136   : > { %784 = sbr.rel (!%p781_p12) target bundleno = 302 (0x12e), region = 125 }
 0x13b PF: > { %1300 = sdivrem.u32 %s1664_s29, 7 }
 0x13c   : > { %s1066_s14 = smul.u32 28, %s1608_s23 }
 0x13e   : > { %s813_s17 = scalar_lea.vmem %s1567_s15, %s1066_s14 [#allocation2]   ;;  %s815_s20 = scalar_lea.vmem %s1602_s8, %s1066_s14  }
 0x144   : > { %s1301_s21 = spop.drf %1300 }
 0x145   : > { %p1068_p13 = scmp.le.s32.totalorder %s1301_s21, 0 }
 0x146   : > { %s1374_s25 = smov (!%p1068_p13), %s815_s20   ;;  %s1378_s27 = smov (!%p1068_p13), %s813_s17  }
 0x147   : > { %971 = sbr.rel (%p1068_p13) target bundleno = 340 (0x154), region = 130  ;;  %s1382_s24 = smov (!%p1068_p13), 0  }
 0x148   : > { %s1386_s26 = smov (!%p1068_p13), 0  }
 0x14c LB: >> { %v825_v2 = vld [vmem:[%s1380_s27] sm:$0xf]  ;;  %s827_s28 = sadd.s32 1, %s1384_s24  ;;  %s819_s26 = sadd.s32 1, %s1388_s26   ;;  %s1388_s26 = sphi %s1386_s26, %s819_s26   ;;  %s1384_s24 = sphi %s1382_s24, %s1383_s24   ;;  %s1380_s27 = sphi %s1378_s27, %s832_s27   ;;  %s1376_s25 = sphi %s1374_s25, %s833_s25  }
 0x14d   : >> { %826 = vst [vmem:[%s1376_s25] sm:$0xf] %v825_v2  ;;  %p828_p0 = scmp.ge.s32.totalorder %s827_s28, %s1301_s21  ;;  %p818_p1 = scmp.ge.s32.totalorder %s819_s26, %s1301_s21 }
 0x14f   : >> { %s1668_s28 = smov (%p828_p0, %s827_s28), 0  ;;  %821 = sbr.rel (!%p818_p1) target bundleno = 332 (0x14c), region = 136 }
 0x150   : >> { %s1069_s15 = sshll.u32 %s1668_s28, 2  ;;  %s1383_s24 = smov %s1668_s28  }
 0x151   : >> { %s832_s27 = scalar_lea.vmem %s813_s17, %s1069_s15 [#allocation2]   ;;  %s833_s25 = scalar_lea.vmem %s815_s20, %s1069_s15  }
 0x154 PF: > { %p11_p2 = scmp.ge.s32.totalorder %s1430_s19, 4   ;;  %s1660_s15 = smov %s1352_s16 }
 0x155   : > { %s1661_s16 = smov %s1438_s22  ;;  %s1662_s17 = smov %s1430_s19 }
 0x156   :  { %13 = sbr.rel (!%p11_p2) target bundleno = 2 (0x2), region = 147 }

</bundles_post_ra>
